<compile_context>
chip_gen: v7x
topology: tpu7x:2x2x1
jax: 0.10.0
libtpu: 0.0.40
codegen_flags: <defaults>
</compile_context>

<pallas_src>
import functools
import math

import numpy as np
import jax
import jax.numpy as jnp
from jax.experimental import pallas as pl
from jax.experimental.pallas import tpu as pltpu


_NEG = -1e30                      # additive mask value (f32)
_VMEM_LIMIT = 64 * 1024 * 1024    # explicit scoped-VMEM limit for all kernels


def _round_up(x, m):
    return ((x + m - 1) // m) * m


def _pick_tile(n, target):
    """Sequence-like axes only (S <= ~2K): full extent if small / non-divisible."""
    if n <= target or n % target != 0:
        return n
    return target


def _const2(shape):
    """Weight block that never changes index on a 2-D grid (DMA'd once per launch)."""
    return pl.BlockSpec(shape, lambda i, j: (0, 0))


def _layernorm_f32(x, g, b, eps=1e-5):
    x = x.astype(jnp.float32)
    mean = jnp.mean(x, axis=-1, keepdims=True)
    var = jnp.mean((x - mean) ** 2, axis=-1, keepdims=True)
    return (x - mean) * jax.lax.rsqrt(var + eps) * g + b


# ----------------------------------------------------------------------------
# Kernel 1: KV projection, rows-tiled.  Optionally applies LN (self-attn path).
# Emits K and V directly in bf16 [B, H, S, Dh] — the HF present-KV layout — so the
# attention core consumes them head-major and no XLA transpose / f32 cache exists.
# Grid: (B, S // ts), both parallel.
# ----------------------------------------------------------------------------
def _kv_proj_kernel(x_ref, g_ref, b_ref, w_ref, bias_ref, k_ref, v_ref,
                    *, num_heads, head_dim, apply_ln):
    D = num_heads * head_dim
    x = x_ref[...]                                                 # [ts, D] f32
    if apply_ln:
        h = _layernorm_f32(x, g_ref[...], b_ref[...])
    else:
        h = x.astype(jnp.float32)
    kv = jnp.dot(h.astype(jnp.bfloat16), w_ref[...],
                 preferred_element_type=jnp.float32) + bias_ref[...]   # [ts, 2D]
    kv = kv.astype(jnp.bfloat16)
    ts = x.shape[0]
    k = kv[:, :D].reshape(ts, num_heads, head_dim)
    v = kv[:, D:].reshape(ts, num_heads, head_dim)
    k_ref[...] = jnp.transpose(k, (1, 0, 2))                       # [H, ts, Dh]
    v_ref[...] = jnp.transpose(v, (1, 0, 2))


def kv_projection(x, ln_g, ln_b, wkv, bkv, num_heads, *, apply_ln, seq_tile=256):
    B, S, D = x.shape
    Dh = D // num_heads
    ts = _pick_tile(S, seq_tile)
    kernel = functools.partial(_kv_proj_kernel, num_heads=num_heads,
                               head_dim=Dh, apply_ln=apply_ln)
    kv_shape = jax.ShapeDtypeStruct((B, num_heads, S, Dh), jnp.bfloat16)
    kv_spec = pl.BlockSpec((None, num_heads, ts, Dh), lambda b, si: (b, 0, si, 0))
    return pl.pallas_call(
        kernel,
        out_shape=(kv_shape, kv_shape),
        grid=(B, S // ts),
        in_specs=[
            pl.BlockSpec((None, ts, D), lambda b, si: (b, si, 0)),
            _const2((1, D)), _const2((1, D)),
            _const2((D, 2 * D)), _const2((1, 2 * D)),
        ],
        out_specs=(kv_spec, kv_spec),
        compiler_params=pltpu.CompilerParams(
            dimension_semantics=("parallel", "parallel"),
            vmem_limit_bytes=_VMEM_LIMIT),
    )(x, ln_g, ln_b, wkv, bkv)


# ----------------------------------------------------------------------------
# Shared attention math: LN'ed queries -> batched-over-heads QK^T -> softmax -> PV.
# One reshape+transpose in, one out (no per-head slicing / concat).
# ----------------------------------------------------------------------------
def _attn_ctx(h_bf16, wq_ref, bq_ref, k3, v3, bias, num_heads, head_dim):
    tq = h_bf16.shape[0]
    D = num_heads * head_dim
    q = jnp.dot(h_bf16, wq_ref[...], preferred_element_type=jnp.float32) + bq_ref[...]
    q3 = jnp.transpose(q.astype(jnp.bfloat16).reshape(tq, num_heads, head_dim),
                       (1, 0, 2))                                   # [H, tq, Dh]
    s = jax.lax.dot_general(q3, k3, (((2,), (2,)), ((0,), (0,))),
                            preferred_element_type=jnp.float32)     # [H, tq, S]
    s = s + bias
    m = jnp.max(s, axis=-1, keepdims=True)
    p = jnp.exp(s - m)
    p = p / jnp.sum(p, axis=-1, keepdims=True)                      # exact softmax
    ctx = jax.lax.dot_general(p.astype(jnp.bfloat16), v3,
                              (((2,), (1,)), ((0,), (0,))),
                              preferred_element_type=jnp.float32)   # [H, tq, Dh]
    return jnp.transpose(ctx, (1, 0, 2)).reshape(tq, D)


# ----------------------------------------------------------------------------
# Kernel 2: self-attention core (LN + Q proj + causal attn + out-proj + residual).
# Grid: (B, S // tq), both parallel.  Causal mask built in-kernel from iota + tile
# offset; K/V of the full sequence stay resident per batch element (bf16).
# ----------------------------------------------------------------------------
def _self_attn_kernel(x_ref, g_ref, b_ref, wq_ref, bq_ref, k_ref, v_ref,
                      wo_ref, bo_ref, o_ref, *, num_heads, head_dim, q_tile):
    S = k_ref.shape[1]
    x = x_ref[...]                                                  # [tq, D] f32
    h = _layernorm_f32(x, g_ref[...], b_ref[...]).astype(jnp.bfloat16)

    q_start = pl.program_id(1) * q_tile
    row = jax.lax.broadcasted_iota(jnp.int32, (q_tile, S), 0) + q_start
    col = jax.lax.broadcasted_iota(jnp.int32, (q_tile, S), 1)
    bias = jnp.where(row >= col, 0.0, _NEG).astype(jnp.float32)[None, :, :]

    ctx = _attn_ctx(h, wq_ref, bq_ref, k_ref[...], v_ref[...], bias,
                    num_heads, head_dim)
    o_ref[...] = jnp.dot(ctx.astype(jnp.bfloat16), wo_ref[...],
                         preferred_element_type=jnp.float32) + bo_ref[...] + x


def self_attention_block(x, kh, vh, ln_g, ln_b, wq, bq, wo, bo, num_heads, q_tile=256):
    B, S, D = x.shape
    Dh = D // num_heads
    tq = _pick_tile(S, q_tile)
    kernel = functools.partial(_self_attn_kernel, num_heads=num_heads,
                               head_dim=Dh, q_tile=tq)
    x_spec = pl.BlockSpec((None, tq, D), lambda b, qi: (b, qi, 0))
    kv_spec = pl.BlockSpec((None, num_heads, S, Dh), lambda b, qi: (b, 0, 0, 0))
    return pl.pallas_call(
        kernel,
        out_shape=jax.ShapeDtypeStruct((B, S, D), jnp.float32),
        grid=(B, S // tq),
        in_specs=[x_spec,
                  _const2((1, D)), _const2((1, D)),
                  _const2((D, D)), _const2((1, D)),
                  kv_spec, kv_spec,
                  _const2((D, D)), _const2((1, D))],
        out_specs=x_spec,
        compiler_params=pltpu.CompilerParams(
            dimension_semantics=("parallel", "parallel"),
            vmem_limit_bytes=_VMEM_LIMIT),
    )(x, ln_g, ln_b, wq, bq, kh, vh, wo, bo)


# ----------------------------------------------------------------------------
# Kernel 3: cross-attention core (LN + Q proj + padding-masked attn over encoder
# K/V + out-proj + residual).  Grid: (B, S // tq), both parallel.
# ----------------------------------------------------------------------------
def _cross_attn_kernel(x_ref, mask_ref, g_ref, b_ref, wq_ref, bq_ref,
                       k_ref, v_ref, wo_ref, bo_ref, o_ref, *, num_heads, head_dim):
    x = x_ref[...]                                                  # [tq, D] f32
    h = _layernorm_f32(x, g_ref[...], b_ref[...]).astype(jnp.bfloat16)
    bias = jnp.where(mask_ref[...] > 0, 0.0, _NEG).astype(jnp.float32)  # [1, S_enc]
    bias = bias[None, :, :]                                             # [1, 1, S_enc]
    ctx = _attn_ctx(h, wq_ref, bq_ref, k_ref[...], v_ref[...], bias,
                    num_heads, head_dim)
    o_ref[...] = jnp.dot(ctx.astype(jnp.bfloat16), wo_ref[...],
                         preferred_element_type=jnp.float32) + bo_ref[...] + x


def cross_attention_block(x, kh, vh, mask3d, ln_g, ln_b, wq, bq, wo, bo,
                          num_heads, q_tile=256):
    B, S, D = x.shape
    S_enc = kh.shape[2]
    Dh = D // num_heads
    tq = _pick_tile(S, q_tile)
    kernel = functools.partial(_cross_attn_kernel, num_heads=num_heads, head_dim=Dh)
    x_spec = pl.BlockSpec((None, tq, D), lambda b, qi: (b, qi, 0))
    kv_spec = pl.BlockSpec((None, num_heads, S_enc, Dh), lambda b, qi: (b, 0, 0, 0))
    mask_spec = pl.BlockSpec((None, 1, S_enc), lambda b, qi: (b, 0, 0))
    return pl.pallas_call(
        kernel,
        out_shape=jax.ShapeDtypeStruct((B, S, D), jnp.float32),
        grid=(B, S // tq),
        in_specs=[x_spec, mask_spec,
                  _const2((1, D)), _const2((1, D)),
                  _const2((D, D)), _const2((1, D)),
                  kv_spec, kv_spec,
                  _const2((D, D)), _const2((1, D))],
        out_specs=x_spec,
        compiler_params=pltpu.CompilerParams(
            dimension_semantics=("parallel", "parallel"),
            vmem_limit_bytes=_VMEM_LIMIT),
    )(x, mask3d, ln_g, ln_b, wq, bq, kh, vh, wo, bo)


# ----------------------------------------------------------------------------
# Kernel 4: FFN block (LN + fc1 + GELU + fc2 + residual), tiled over rows (parallel)
# and over the hidden dimension F as a reduction ("arbitrary").  LN result cached in
# a bf16 scratch; fc2 partial products accumulated in a f32 scratch.
# ----------------------------------------------------------------------------
def _ffn_kernel(x_ref, g_ref, b_ref, b2_ref, w1_ref, b1_ref, w2_ref, o_ref,
                h_scratch, acc_scratch):
    j = pl.program_id(1)

    @pl.when(j == 0)
    def _():
        x = x_ref[...]
        h_scratch[...] = _layernorm_f32(x, g_ref[...], b_ref[...]).astype(jnp.bfloat16)
        acc_scratch[...] = x + b2_ref[...]         # residual + fc2 bias

    a = jnp.dot(h_scratch[...], w1_ref[...],
                preferred_element_type=jnp.float32) + b1_ref[...]   # [tm, tf]
    # TODO(synk): HF Pegasus uses exact (erf) GELU; tanh approximation kept for
    # guaranteed Mosaic lowering.
    a = jax.nn.gelu(a, approximate=True)
    acc_scratch[...] += jnp.dot(a.astype(jnp.bfloat16), w2_ref[...],
                                preferred_element_type=jnp.float32)

    @pl.when(j == pl.num_programs(1) - 1)
    def _():
        o_ref[...] = acc_scratch[...]


def ffn_block(x2d, ln_g, ln_b, w1, b1, w2, b2, tile_m=256, tile_f=1024):
    M, D = x2d.shape
    F = w1.shape[1]
    tm = min(tile_m, _round_up(M, 8))
    Mp = _round_up(M, tm)
    if Mp != M:
        x2d = jnp.pad(x2d, ((0, Mp - M), (0, 0)))
    tf = _pick_tile(F, tile_f)
    out = pl.pallas_call(
        _ffn_kernel,
        out_shape=jax.ShapeDtypeStruct((Mp, D), jnp.float32),
        grid=(Mp // tm, F // tf),
        in_specs=[
            pl.BlockSpec((tm, D), lambda i, j: (i, 0)),
            _const2((1, D)), _const2((1, D)), _const2((1, D)),
            pl.BlockSpec((D, tf), lambda i, j: (0, j)),
            pl.BlockSpec((1, tf), lambda i, j: (0, j)),
            pl.BlockSpec((tf, D), lambda i, j: (j, 0)),
        ],
        out_specs=pl.BlockSpec((tm, D), lambda i, j: (i, 0)),
        scratch_shapes=[pltpu.VMEM((tm, D), jnp.bfloat16),
                        pltpu.VMEM((tm, D), jnp.float32)],
        compiler_params=pltpu.CompilerParams(
            dimension_semantics=("parallel", "arbitrary"),
            vmem_limit_bytes=_VMEM_LIMIT),
    )(x2d, ln_g, ln_b, b2, w1, b1, w2)
    return out[:M] if Mp != M else out


# ----------------------------------------------------------------------------
# Kernel 5: final layer-norm + lm_head + final_logits_bias.  Rows (parallel) x
# padded-vocab tiles (arbitrary); LN cached in a bf16 VMEM scratch per row tile.
# Vocab is padded at init to a multiple of the vocab tile (no full-extent fallback).
# ----------------------------------------------------------------------------
def _lm_head_kernel(x_ref, g_ref, b_ref, w_ref, bias_ref, o_ref, h_scratch):
    @pl.when(pl.program_id(1) == 0)
    def _():
        h_scratch[...] = _layernorm_f32(x_ref[...], g_ref[...], b_ref[...]
                                        ).astype(jnp.bfloat16)
    o_ref[...] = jnp.dot(h_scratch[...], w_ref[...],
                         preferred_element_type=jnp.float32) + bias_ref[...]


def lm_head_block(x2d, ln_g, ln_b, w_pad, bias_pad, vocab_size,
                  tile_m=512, tile_n=2048):
    M, D = x2d.shape
    Vp = w_pad.shape[1]
    tm = min(tile_m, _round_up(M, 8))
    Mp = _round_up(M, tm)
    if Mp != M:
        x2d = jnp.pad(x2d, ((0, Mp - M), (0, 0)))
    tn = min(tile_n, Vp)
    logits = pl.pallas_call(
        _lm_head_kernel,
        out_shape=jax.ShapeDtypeStruct((Mp, Vp), jnp.float32),
        grid=(Mp // tm, Vp // tn),
        in_specs=[
            pl.BlockSpec((tm, D), lambda i, j: (i, 0)),
            _const2((1, D)), _const2((1, D)),
            pl.BlockSpec((D, tn), lambda i, j: (0, j)),
            pl.BlockSpec((1, tn), lambda i, j: (0, j)),
        ],
        out_specs=pl.BlockSpec((tm, tn), lambda i, j: (i, j)),
        scratch_shapes=[pltpu.VMEM((tm, D), jnp.bfloat16)],
        compiler_params=pltpu.CompilerParams(
            dimension_semantics=("parallel", "arbitrary"),
            vmem_limit_bytes=_VMEM_LIMIT),
    )(x2d, ln_g, ln_b, w_pad, bias_pad)
    return logits[:M, :vocab_size]


# ----------------------------------------------------------------------------
# Parameters (deterministic synthetic init; lm_head tied to embed_tokens, padded
# to the vocab tile; final_logits_bias standalone; q-scaling folded into Q weights).
# ----------------------------------------------------------------------------
def sinusoidal_positions(n_pos, dim):
    position_enc = np.array(
        [[pos / np.power(10000, 2 * (j // 2) / dim) for j in range(dim)]
         for pos in range(n_pos)]
    )
    out = np.zeros((n_pos, dim), dtype=np.float32)
    sentinel = dim // 2 + dim % 2
    out[:, :sentinel] = np.sin(position_enc[:, 0::2])
    out[:, sentinel:] = np.cos(position_enc[:, 1::2])
    return jnp.asarray(out)


def init_params(key, cfg):
    D, V, F, L, H = (cfg["d_model"], cfg["vocab_size"], cfg["ffn_dim"],
                     cfg["num_layers"], cfg["num_heads"])
    Dh = D // H
    scaling = Dh ** -0.5
    lm_tile_n = cfg.get("lm_tile_n", 2048)
    Vp = _round_up(V, lm_tile_n) if V > lm_tile_n else _round_up(V, 128)
    keys = iter(jax.random.split(key, 1024))

    def w(shape, scale=0.02):
        return scale * jax.random.normal(next(keys), shape, jnp.float32)

    embed = w((V, D))
    lm_w = jnp.pad(embed.T, ((0, 0), (0, Vp - V))).astype(jnp.bfloat16)   # tied
    logit_bias = jnp.pad(0.01 * jax.random.normal(next(keys), (1, V), jnp.float32),
                         ((0, 0), (0, Vp - V)))

    params = {
        "embed_tokens": embed,
        "pos_emb": sinusoidal_positions(cfg["max_pos"], D),
        "final_ln_g": jnp.ones((1, D), jnp.float32),
        "final_ln_b": jnp.zeros((1, D), jnp.float32),
        "lm_head_w": lm_w,
        "final_logits_bias": logit_bias,
        "layers": [],
    }
    for _ in range(L):
        q_w, q_b = w((D, D)), w((D,))
        k_w, k_b = w((D, D)), w((D,))
        v_w, v_b = w((D, D)), w((D,))
        cq_w, cq_b = w((D, D)), w((D,))
        ck_w, ck_b = w((D, D)), w((D,))
        cv_w, cv_b = w((D, D)), w((D,))
        lp = {
            "self_ln_g": jnp.ones((1, D), jnp.float32),
            "self_ln_b": jnp.zeros((1, D), jnp.float32),
            "wq": (q_w * scaling).astype(jnp.bfloat16),          # q-scaling folded
            "bq": (q_b * scaling).reshape(1, D),
            "wkv": jnp.concatenate([k_w, v_w], axis=1).astype(jnp.bfloat16),
            "bkv": jnp.concatenate([k_b, v_b]).reshape(1, 2 * D),
            "o_w": w((D, D)).astype(jnp.bfloat16),
            "o_b": w((D,)).reshape(1, D),
            "cross_ln_g": jnp.ones((1, D), jnp.float32),
            "cross_ln_b": jnp.zeros((1, D), jnp.float32),
            "wq_c": (cq_w * scaling).astype(jnp.bfloat16),
            "bq_c": (cq_b * scaling).reshape(1, D),
            "wkv_c": jnp.concatenate([ck_w, cv_w], axis=1).astype(jnp.bfloat16),
            "bkv_c": jnp.concatenate([ck_b, cv_b]).reshape(1, 2 * D),
            "co_w": w((D, D)).astype(jnp.bfloat16),
            "co_b": w((D,)).reshape(1, D),
            "ffn_ln_g": jnp.ones((1, D), jnp.float32),
            "ffn_ln_b": jnp.zeros((1, D), jnp.float32),
            "fc1_w": w((D, F)).astype(jnp.bfloat16),
            "fc1_b": w((F,)).reshape(1, F),
            "fc2_w": w((F, D)).astype(jnp.bfloat16),
            "fc2_b": w((D,)).reshape(1, D),
        }
        params["layers"].append(lp)
    return params


# ----------------------------------------------------------------------------
# Forward pass: Pegasus decoder (pre-LN self-attn + cross-attn + FFN per layer,
# final LN) followed by lm_head + final_logits_bias.
# Returns (logits, present_key_values) as in PegasusDecoderWithLMheadInitial;
# KV cache is bf16 [B, H, S, Dh] emitted directly from the projection kernels.
# ----------------------------------------------------------------------------
def forward(params, cfg, input_ids, attention_mask, encoder_hidden_states):
    B, S = input_ids.shape
    D, H = cfg["d_model"], cfg["num_heads"]
    V = cfg["vocab_size"]
    S_enc = encoder_hidden_states.shape[1]

    q_tile = cfg.get("q_tile", 256)
    s_tile = cfg.get("s_tile", 256)
    ffn_tile_m = cfg.get("ffn_tile_m", 256)
    ffn_tile_f = cfg.get("ffn_tile_f", 1024)
    lm_tile_m = cfg.get("lm_tile_m", 512)
    lm_tile_n = cfg.get("lm_tile_n", 2048)

    # embeddings (scale_embedding=True as in google/pegasus-* configs)
    x = params["embed_tokens"][input_ids] * cfg["embed_scale"]
    x = (x + params["pos_emb"][None, :S, :]).astype(jnp.float32)

    enc = encoder_hidden_states.astype(jnp.float32)
    mask3d = attention_mask.astype(jnp.int32).reshape(B, 1, S_enc)

    presents = []
    for lp in params["layers"]:
        # self-attn K/V from LN'ed decoder states — also the present cache (bf16, HF layout)
        k_self, v_self = kv_projection(x, lp["self_ln_g"], lp["self_ln_b"],
                                       lp["wkv"], lp["bkv"], H,
                                       apply_ln=True, seq_tile=s_tile)
        x = self_attention_block(x, k_self, v_self, lp["self_ln_g"], lp["self_ln_b"],
                                 lp["wq"], lp["bq"], lp["o_w"], lp["o_b"], H,
                                 q_tile=q_tile)
        # cross-attn K/V from raw encoder states (no LN on the encoder side, per HF Pegasus)
        k_cross, v_cross = kv_projection(enc, lp["cross_ln_g"], lp["cross_ln_b"],
                                         lp["wkv_c"], lp["bkv_c"], H,
                                         apply_ln=False, seq_tile=s_tile)
        x = cross_attention_block(x, k_cross, v_cross, mask3d,
                                  lp["cross_ln_g"], lp["cross_ln_b"],
                                  lp["wq_c"], lp["bq_c"], lp["co_w"], lp["co_b"], H,
                                  q_tile=q_tile)
        x2d = ffn_block(x.reshape(B * S, D), lp["ffn_ln_g"], lp["ffn_ln_b"],
                        lp["fc1_w"], lp["fc1_b"], lp["fc2_w"], lp["fc2_b"],
                        tile_m=ffn_tile_m, tile_f=ffn_tile_f)
        x = x2d.reshape(B, S, D)
        # HF cache layout: (self_k, self_v, cross_k, cross_v), each [B, H, seq, Dh]
        presents.append((k_self, v_self, k_cross, v_cross))

    logits = lm_head_block(x.reshape(B * S, D), params["final_ln_g"],
                           params["final_ln_b"], params["lm_head_w"],
                           params["final_logits_bias"], V,
                           tile_m=lm_tile_m, tile_n=lm_tile_n)
    return logits.reshape(B, S, V), tuple(presents)


# ----------------------------------------------------------------------------
# main
# ----------------------------------------------------------------------------
if __name__ == "__main__":
    cfg = dict(
        vocab_size=384,
        d_model=128,
        num_heads=4,
        ffn_dim=256,
        num_layers=2,
        max_pos=64,
        # small tiles so the toy run exercises query tiling, the FFN F-reduction and
        # the padded-vocab path; real-model defaults are q_tile=256, s_tile=256,
        # ffn_tile_f=1024, lm_tile_m=512, lm_tile_n=2048.
        q_tile=8,
        s_tile=16,
        ffn_tile_m=16,
        ffn_tile_f=128,
        lm_tile_m=32,
        lm_tile_n=256,
    )
    cfg["embed_scale"] = math.sqrt(cfg["d_model"])

    B, S_dec, S_enc = 2, 16, 16

    root = jax.random.PRNGKey(0)
    k_params, k_ids, k_enc = jax.random.split(root, 3)
    params = init_params(k_params, cfg)

    input_ids = jax.random.randint(k_ids, (B, S_dec), 0, cfg["vocab_size"], jnp.int32)
    attention_mask = jnp.ones((B, S_enc), jnp.int32).at[1, -3:].set(0)  # encoder padding
    encoder_hidden_states = jax.random.normal(k_enc, (B, S_enc, cfg["d_model"]), jnp.float32)

    fwd = jax.jit(lambda ids, mask, enc: forward(params, cfg, ids, mask, enc))
    logits, presents = fwd(input_ids, attention_mask, encoder_hidden_states)
    jax.block_until_ready((logits, presents))

    Dh = cfg["d_model"] // cfg["num_heads"]
    assert logits.shape == (B, S_dec, cfg["vocab_size"])
    assert len(presents) == cfg["num_layers"] and len(presents[0]) == 4
    assert presents[0][0].shape == (B, cfg["num_heads"], S_dec, Dh)
    assert presents[0][2].shape == (B, cfg["num_heads"], S_enc, Dh)
    assert bool(jnp.isfinite(logits).all())
    print("KERNEL_OK")
</pallas_src>

<mosaic_0001>
module attributes {stable_mosaic.version = 11 : i64} {
  func.func @_self_attn_kernel(%arg0: i32, %arg1: i32, %arg2: memref<1x8x128xf32, #tpu.memory_space<vmem>>, %arg3: memref<1x128xf32, #tpu.memory_space<vmem>>, %arg4: memref<1x128xf32, #tpu.memory_space<vmem>>, %arg5: memref<128x128xbf16, #tpu.memory_space<vmem>>, %arg6: memref<1x128xf32, #tpu.memory_space<vmem>>, %arg7: memref<1x4x16x32xbf16, #tpu.memory_space<vmem>>, %arg8: memref<1x4x16x32xbf16, #tpu.memory_space<vmem>>, %arg9: memref<128x128xbf16, #tpu.memory_space<vmem>>, %arg10: memref<1x128xf32, #tpu.memory_space<vmem>>, %arg11: memref<1x8x128xf32, #tpu.memory_space<vmem>>) attributes {dimension_semantics = [#tpu.dimension_semantics<parallel>, #tpu.dimension_semantics<parallel>], iteration_bounds = array<i64: 2, 2>, scalar_prefetch = 0 : i64, scratch_operands = 0 : i64, tpu.core_type = #tpu.core_type<tc>, window_params = [{transform_indices = @transform_0, window_bounds = array<i64: 1, 8, 128>}, {pipeline_mode = #tpu.pipeline_mode<synchronous>, transform_indices = @transform_1, window_bounds = array<i64: 1, 128>}, {pipeline_mode = #tpu.pipeline_mode<synchronous>, transform_indices = @transform_2, window_bounds = array<i64: 1, 128>}, {pipeline_mode = #tpu.pipeline_mode<synchronous>, transform_indices = @transform_3, window_bounds = array<i64: 128, 128>}, {pipeline_mode = #tpu.pipeline_mode<synchronous>, transform_indices = @transform_4, window_bounds = array<i64: 1, 128>}, {transform_indices = @transform_5, window_bounds = array<i64: 1, 4, 16, 32>}, {transform_indices = @transform_6, window_bounds = array<i64: 1, 4, 16, 32>}, {pipeline_mode = #tpu.pipeline_mode<synchronous>, transform_indices = @transform_7, window_bounds = array<i64: 128, 128>}, {pipeline_mode = #tpu.pipeline_mode<synchronous>, transform_indices = @transform_8, window_bounds = array<i64: 1, 128>}, {transform_indices = @transform_9, window_bounds = array<i64: 1, 8, 128>}]} {
    %c0 = arith.constant 0 : index
    %c0_0 = arith.constant 0 : index
    %c0_1 = arith.constant 0 : index
    %0 = vector.load %arg2[%c0, %c0_0, %c0_1] : memref<1x8x128xf32, #tpu.memory_space<vmem>>, vector<1x8x128xf32>
    %1 = vector.shape_cast %0 : vector<1x8x128xf32> to vector<8x128xf32>
    %c0_2 = arith.constant 0 : index
    %c0_3 = arith.constant 0 : index
    %2 = vector.load %arg3[%c0_2, %c0_3] : memref<1x128xf32, #tpu.memory_space<vmem>>, vector<1x128xf32>
    %c0_4 = arith.constant 0 : index
    %c0_5 = arith.constant 0 : index
    %3 = vector.load %arg4[%c0_4, %c0_5] : memref<1x128xf32, #tpu.memory_space<vmem>>, vector<1x128xf32>
    %cst = arith.constant dense<0.000000e+00> : vector<8xf32>
    %4 = vector.multi_reduction <add>, %1, %cst [1] : vector<8x128xf32> to vector<8xf32>
    %5 = vector.shape_cast %4 : vector<8xf32> to vector<8x1xf32>
    %cst_6 = arith.constant 1.280000e+02 : f32
    %6 = vector.broadcast %cst_6 : f32 to vector<8x1xf32>
    %7 = arith.divf %5, %6 : vector<8x1xf32>
    %8 = vector.broadcast %7 : vector<8x1xf32> to vector<8x128xf32>
    %9 = arith.subf %1, %8 : vector<8x128xf32>
    %10 = arith.mulf %9, %9 : vector<8x128xf32>
    %cst_7 = arith.constant dense<0.000000e+00> : vector<8xf32>
    %11 = vector.multi_reduction <add>, %10, %cst_7 [1] : vector<8x128xf32> to vector<8xf32>
    %12 = vector.shape_cast %11 : vector<8xf32> to vector<8x1xf32>
    %cst_8 = arith.constant 1.280000e+02 : f32
    %13 = vector.broadcast %cst_8 : f32 to vector<8x1xf32>
    %14 = arith.divf %12, %13 : vector<8x1xf32>
    %15 = vector.broadcast %7 : vector<8x1xf32> to vector<8x128xf32>
    %16 = arith.subf %1, %15 : vector<8x128xf32>
    %cst_9 = arith.constant 9.99999974E-6 : f32
    %17 = vector.broadcast %cst_9 : f32 to vector<8x1xf32>
    %18 = arith.addf %14, %17 : vector<8x1xf32>
    %19 = math.rsqrt %18 : vector<8x1xf32>
    %20 = vector.broadcast %19 : vector<8x1xf32> to vector<8x128xf32>
    %21 = arith.mulf %16, %20 : vector<8x128xf32>
    %22 = vector.broadcast %2 : vector<1x128xf32> to vector<8x128xf32>
    %23 = arith.mulf %21, %22 : vector<8x128xf32>
    %24 = vector.broadcast %3 : vector<1x128xf32> to vector<8x128xf32>
    %25 = arith.addf %23, %24 : vector<8x128xf32>
    %26 = arith.truncf %25 : vector<8x128xf32> to vector<8x128xbf16>
    %c8_i32 = arith.constant 8 : i32
    %27 = arith.muli %arg1, %c8_i32 : i32
    %28 = tpu.iota {dimensions = array<i32: 0>} : vector<8x16xi32>
    %29 = vector.broadcast %27 : i32 to vector<8x16xi32>
    %30 = arith.addi %28, %29 : vector<8x16xi32>
    %31 = tpu.iota {dimensions = array<i32: 1>} : vector<8x16xi32>
    %32 = arith.cmpi sge, %30, %31 : vector<8x16xi32>
    %cst_10 = arith.constant 0.000000e+00 : f32
    %cst_11 = arith.constant -1.000000e+30 : f32
    %33 = vector.broadcast %cst_10 : f32 to vector<8x16xf32>
    %34 = vector.broadcast %cst_11 : f32 to vector<8x16xf32>
    %35 = arith.select %32, %33, %34 : vector<8x16xi1>, vector<8x16xf32>
    %36 = vector.shape_cast %35 : vector<8x16xf32> to vector<1x8x16xf32>
    %c0_12 = arith.constant 0 : index
    %c0_13 = arith.constant 0 : index
    %c0_14 = arith.constant 0 : index
    %c0_15 = arith.constant 0 : index
    %37 = vector.load %arg7[%c0_12, %c0_13, %c0_14, %c0_15] : memref<1x4x16x32xbf16, #tpu.memory_space<vmem>>, vector<1x4x16x32xbf16>
    %38 = vector.shape_cast %37 : vector<1x4x16x32xbf16> to vector<4x16x32xbf16>
    %c0_16 = arith.constant 0 : index
    %c0_17 = arith.constant 0 : index
    %c0_18 = arith.constant 0 : index
    %c0_19 = arith.constant 0 : index
    %39 = vector.load %arg8[%c0_16, %c0_17, %c0_18, %c0_19] : memref<1x4x16x32xbf16, #tpu.memory_space<vmem>>, vector<1x4x16x32xbf16>
    %40 = vector.shape_cast %39 : vector<1x4x16x32xbf16> to vector<4x16x32xbf16>
    %c0_20 = arith.constant 0 : index
    %c0_21 = arith.constant 0 : index
    %41 = vector.load %arg5[%c0_20, %c0_21] : memref<128x128xbf16, #tpu.memory_space<vmem>>, vector<128x128xbf16>
    %cst_22 = arith.constant dense<0.000000e+00> : vector<8x128xf32>
    %42 = tpu.matmul %26, %41, %cst_22 {dimension_numbers = #tpu.dot_dimension_numbers<[1], [0], [0], [1], [0, 0, 1, 1], [], []>} : vector<8x128xbf16>, vector<128x128xbf16>, vector<8x128xf32> -> vector<8x128xf32>
    %c0_23 = arith.constant 0 : index
    %c0_24 = arith.constant 0 : index
    %43 = vector.load %arg6[%c0_23, %c0_24] : memref<1x128xf32, #tpu.memory_space<vmem>>, vector<1x128xf32>
    %44 = vector.broadcast %43 : vector<1x128xf32> to vector<8x128xf32>
    %45 = arith.addf %42, %44 : vector<8x128xf32>
    %46 = arith.truncf %45 : vector<8x128xf32> to vector<8x128xbf16>
    %47 = vector.shape_cast %46 : vector<8x128xbf16> to vector<8x4x32xbf16>
    %48 = tpu.transpose %47, [1, 0, 2] : vector<8x4x32xbf16> -> vector<4x8x32xbf16>
    %cst_25 = arith.constant dense<0.000000e+00> : vector<4x8x16xf32>
    %49 = tpu.matmul %48, %38, %cst_25 {dimension_numbers = #tpu.dot_dimension_numbers<[2], [2], [1], [1], [0, 0, 0, 1, 1, 1], [0], [0]>} : vector<4x8x32xbf16>, vector<4x16x32xbf16>, vector<4x8x16xf32> -> vector<4x8x16xf32>
    %50 = vector.broadcast %36 : vector<1x8x16xf32> to vector<4x8x16xf32>
    %51 = arith.addf %49, %50 : vector<4x8x16xf32>
    %cst_26 = arith.constant dense<0xFF800000> : vector<4x8xf32>
    %52 = vector.multi_reduction <maximumf>, %51, %cst_26 [2] : vector<4x8x16xf32> to vector<4x8xf32>
    %53 = vector.shape_cast %52 : vector<4x8xf32> to vector<4x8x1xf32>
    %54 = vector.broadcast %53 : vector<4x8x1xf32> to vector<4x8x16xf32>
    %55 = arith.subf %51, %54 : vector<4x8x16xf32>
    %56 = math.exp %55 : vector<4x8x16xf32>
    %cst_27 = arith.constant dense<0.000000e+00> : vector<4x8xf32>
    %57 = vector.multi_reduction <add>, %56, %cst_27 [2] : vector<4x8x16xf32> to vector<4x8xf32>
    %58 = vector.shape_cast %57 : vector<4x8xf32> to vector<4x8x1xf32>
    %59 = vector.broadcast %58 : vector<4x8x1xf32> to vector<4x8x16xf32>
    %60 = arith.divf %56, %59 : vector<4x8x16xf32>
    %61 = arith.truncf %60 : vector<4x8x16xf32> to vector<4x8x16xbf16>
    %cst_28 = arith.constant dense<0.000000e+00> : vector<4x8x32xf32>
    %62 = tpu.matmul %61, %40, %cst_28 {dimension_numbers = #tpu.dot_dimension_numbers<[2], [1], [1], [2], [0, 0, 0, 1, 1, 2], [0], [0]>} : vector<4x8x16xbf16>, vector<4x16x32xbf16>, vector<4x8x32xf32> -> vector<4x8x32xf32>
    %63 = tpu.transpose %62, [1, 0, 2] : vector<4x8x32xf32> -> vector<8x4x32xf32>
    %64 = vector.shape_cast %63 : vector<8x4x32xf32> to vector<8x128xf32>
    %65 = arith.truncf %64 : vector<8x128xf32> to vector<8x128xbf16>
    %c0_29 = arith.constant 0 : index
    %c0_30 = arith.constant 0 : index
    %66 = vector.load %arg9[%c0_29, %c0_30] : memref<128x128xbf16, #tpu.memory_space<vmem>>, vector<128x128xbf16>
    %cst_31 = arith.constant dense<0.000000e+00> : vector<8x128xf32>
    %67 = tpu.matmul %65, %66, %cst_31 {dimension_numbers = #tpu.dot_dimension_numbers<[1], [0], [0], [1], [0, 0, 1, 1], [], []>} : vector<8x128xbf16>, vector<128x128xbf16>, vector<8x128xf32> -> vector<8x128xf32>
    %c0_32 = arith.constant 0 : index
    %c0_33 = arith.constant 0 : index
    %68 = vector.load %arg10[%c0_32, %c0_33] : memref<1x128xf32, #tpu.memory_space<vmem>>, vector<1x128xf32>
    %69 = vector.broadcast %68 : vector<1x128xf32> to vector<8x128xf32>
    %70 = arith.addf %67, %69 : vector<8x128xf32>
    %71 = arith.addf %70, %1 : vector<8x128xf32>
    %c0_34 = arith.constant 0 : index
    %c0_35 = arith.constant 0 : index
    %c0_36 = arith.constant 0 : index
    %72 = vector.load %arg11[%c0_34, %c0_35, %c0_36] : memref<1x8x128xf32, #tpu.memory_space<vmem>>, vector<1x8x128xf32>
    %73 = vector.shape_cast %72 : vector<1x8x128xf32> to vector<8x128xf32>
    %74 = vector.shape_cast %71 : vector<8x128xf32> to vector<1x8x128xf32>
    tpu.vector_store %arg11[%c0_34, %c0_35, %c0_36], %74 {strides = array<i32>} : memref<1x8x128xf32, #tpu.memory_space<vmem>>, vector<1x8x128xf32>,
    return
  }
  func.func @transform_0(%arg0: i32, %arg1: i32) -> (i32, i32, i32) {
    %c0_i32 = arith.constant 0 : i32
    %c0_i32_0 = arith.constant 0 : i32
    return %arg0, %arg1, %c0_i32 : i32, i32, i32
  }
  func.func @transform_1(%arg0: i32, %arg1: i32) -> (i32, i32) {
    %c0_i32 = arith.constant 0 : i32
    %c0_i32_0 = arith.constant 0 : i32
    %c0_i32_1 = arith.constant 0 : i32
    return %c0_i32, %c0_i32_0 : i32, i32
  }
  func.func @transform_2(%arg0: i32, %arg1: i32) -> (i32, i32) {
    %c0_i32 = arith.constant 0 : i32
    %c0_i32_0 = arith.constant 0 : i32
    %c0_i32_1 = arith.constant 0 : i32
    return %c0_i32, %c0_i32_0 : i32, i32
  }
  func.func @transform_3(%arg0: i32, %arg1: i32) -> (i32, i32) {
    %c0_i32 = arith.constant 0 : i32
    %c0_i32_0 = arith.constant 0 : i32
    %c0_i32_1 = arith.constant 0 : i32
    return %c0_i32, %c0_i32_0 : i32, i32
  }
  func.func @transform_4(%arg0: i32, %arg1: i32) -> (i32, i32) {
    %c0_i32 = arith.constant 0 : i32
    %c0_i32_0 = arith.constant 0 : i32
    %c0_i32_1 = arith.constant 0 : i32
    return %c0_i32, %c0_i32_0 : i32, i32
  }
  func.func @transform_5(%arg0: i32, %arg1: i32) -> (i32, i32, i32, i32) {
    %c0_i32 = arith.constant 0 : i32
    %c0_i32_0 = arith.constant 0 : i32
    %c0_i32_1 = arith.constant 0 : i32
    %c0_i32_2 = arith.constant 0 : i32
    return %arg0, %c0_i32, %c0_i32_0, %c0_i32_1 : i32, i32, i32, i32
  }
  func.func @transform_6(%arg0: i32, %arg1: i32) -> (i32, i32, i32, i32) {
    %c0_i32 = arith.constant 0 : i32
    %c0_i32_0 = arith.constant 0 : i32
    %c0_i32_1 = arith.constant 0 : i32
    %c0_i32_2 = arith.constant 0 : i32
    return %arg0, %c0_i32, %c0_i32_0, %c0_i32_1 : i32, i32, i32, i32
  }
  func.func @transform_7(%arg0: i32, %arg1: i32) -> (i32, i32) {
    %c0_i32 = arith.constant 0 : i32
    %c0_i32_0 = arith.constant 0 : i32
    %c0_i32_1 = arith.constant 0 : i32
    return %c0_i32, %c0_i32_0 : i32, i32
  }
  func.func @transform_8(%arg0: i32, %arg1: i32) -> (i32, i32) {
    %c0_i32 = arith.constant 0 : i32
    %c0_i32_0 = arith.constant 0 : i32
    %c0_i32_1 = arith.constant 0 : i32
    return %c0_i32, %c0_i32_0 : i32, i32
  }
  func.func @transform_9(%arg0: i32, %arg1: i32) -> (i32, i32, i32) {
    %c0_i32 = arith.constant 0 : i32
    %c0_i32_0 = arith.constant 0 : i32
    return %arg0, %arg1, %c0_i32 : i32, i32, i32
  }
}

module attributes {stable_mosaic.version = 11 : i64} {
  func.func @_kv_proj_kernel(%arg0: i32, %arg1: i32, %arg2: memref<1x16x128xf32, #tpu.memory_space<vmem>>, %arg3: memref<1x128xf32, #tpu.memory_space<vmem>>, %arg4: memref<1x128xf32, #tpu.memory_space<vmem>>, %arg5: memref<128x256xbf16, #tpu.memory_space<vmem>>, %arg6: memref<1x256xf32, #tpu.memory_space<vmem>>, %arg7: memref<1x4x16x32xbf16, #tpu.memory_space<vmem>>, %arg8: memref<1x4x16x32xbf16, #tpu.memory_space<vmem>>) attributes {dimension_semantics = [#tpu.dimension_semantics<parallel>, #tpu.dimension_semantics<parallel>], iteration_bounds = array<i64: 2, 1>, scalar_prefetch = 0 : i64, scratch_operands = 0 : i64, tpu.core_type = #tpu.core_type<tc>, window_params = [{transform_indices = @transform_0, window_bounds = array<i64: 1, 16, 128>}, {pipeline_mode = #tpu.pipeline_mode<synchronous>, transform_indices = @transform_1, window_bounds = array<i64: 1, 128>}, {pipeline_mode = #tpu.pipeline_mode<synchronous>, transform_indices = @transform_2, window_bounds = array<i64: 1, 128>}, {pipeline_mode = #tpu.pipeline_mode<synchronous>, transform_indices = @transform_3, window_bounds = array<i64: 128, 256>}, {pipeline_mode = #tpu.pipeline_mode<synchronous>, transform_indices = @transform_4, window_bounds = array<i64: 1, 256>}, {transform_indices = @transform_5, window_bounds = array<i64: 1, 4, 16, 32>}, {transform_indices = @transform_6, window_bounds = array<i64: 1, 4, 16, 32>}]} {
    %c0 = arith.constant 0 : index
    %c0_0 = arith.constant 0 : index
    %c0_1 = arith.constant 0 : index
    %0 = vector.load %arg2[%c0, %c0_0, %c0_1] : memref<1x16x128xf32, #tpu.memory_space<vmem>>, vector<1x16x128xf32>
    %1 = vector.shape_cast %0 : vector<1x16x128xf32> to vector<16x128xf32>
    %2 = arith.truncf %1 : vector<16x128xf32> to vector<16x128xbf16>
    %c0_2 = arith.constant 0 : index
    %c0_3 = arith.constant 0 : index
    %3 = vector.load %arg5[%c0_2, %c0_3] : memref<128x256xbf16, #tpu.memory_space<vmem>>, vector<128x256xbf16>
    %cst = arith.constant dense<0.000000e+00> : vector<16x256xf32>
    %4 = tpu.matmul %2, %3, %cst {dimension_numbers = #tpu.dot_dimension_numbers<[1], [0], [0], [1], [0, 0, 1, 1], [], []>} : vector<16x128xbf16>, vector<128x256xbf16>, vector<16x256xf32> -> vector<16x256xf32>
    %c0_4 = arith.constant 0 : index
    %c0_5 = arith.constant 0 : index
    %5 = vector.load %arg6[%c0_4, %c0_5] : memref<1x256xf32, #tpu.memory_space<vmem>>, vector<1x256xf32>
    %6 = vector.broadcast %5 : vector<1x256xf32> to vector<16x256xf32>
    %7 = arith.addf %4, %6 : vector<16x256xf32>
    %8 = arith.truncf %7 : vector<16x256xf32> to vector<16x256xbf16>
    %9 = vector.extract_strided_slice %8 {offsets = [0, 0], sizes = [16, 128], strides = [1, 1]} : vector<16x256xbf16> to vector<16x128xbf16>
    %10 = vector.shape_cast %9 : vector<16x128xbf16> to vector<16x4x32xbf16>
    %11 = vector.extract_strided_slice %8 {offsets = [0, 128], sizes = [16, 128], strides = [1, 1]} : vector<16x256xbf16> to vector<16x128xbf16>
    %12 = vector.shape_cast %11 : vector<16x128xbf16> to vector<16x4x32xbf16>
    %13 = tpu.transpose %10, [1, 0, 2] : vector<16x4x32xbf16> -> vector<4x16x32xbf16>
    %c0_6 = arith.constant 0 : index
    %c0_7 = arith.constant 0 : index
    %c0_8 = arith.constant 0 : index
    %c0_9 = arith.constant 0 : index
    %14 = vector.load %arg7[%c0_6, %c0_7, %c0_8, %c0_9] : memref<1x4x16x32xbf16, #tpu.memory_space<vmem>>, vector<1x4x16x32xbf16>
    %15 = vector.shape_cast %14 : vector<1x4x16x32xbf16> to vector<4x16x32xbf16>
    %16 = vector.shape_cast %13 : vector<4x16x32xbf16> to vector<1x4x16x32xbf16>
    tpu.vector_store %arg7[%c0_6, %c0_7, %c0_8, %c0_9], %16 {strides = array<i32>} : memref<1x4x16x32xbf16, #tpu.memory_space<vmem>>, vector<1x4x16x32xbf16>,
    %17 = tpu.transpose %12, [1, 0, 2] : vector<16x4x32xbf16> -> vector<4x16x32xbf16>
    %c0_10 = arith.constant 0 : index
    %c0_11 = arith.constant 0 : index
    %c0_12 = arith.constant 0 : index
    %c0_13 = arith.constant 0 : index
    %18 = vector.load %arg8[%c0_10, %c0_11, %c0_12, %c0_13] : memref<1x4x16x32xbf16, #tpu.memory_space<vmem>>, vector<1x4x16x32xbf16>
    %19 = vector.shape_cast %18 : vector<1x4x16x32xbf16> to vector<4x16x32xbf16>
    %20 = vector.shape_cast %17 : vector<4x16x32xbf16> to vector<1x4x16x32xbf16>
    tpu.vector_store %arg8[%c0_10, %c0_11, %c0_12, %c0_13], %20 {strides = array<i32>} : memref<1x4x16x32xbf16, #tpu.memory_space<vmem>>, vector<1x4x16x32xbf16>,
    return
  }
  func.func @transform_0(%arg0: i32, %arg1: i32) -> (i32, i32, i32) {
    %c0_i32 = arith.constant 0 : i32
    %c0_i32_0 = arith.constant 0 : i32
    return %arg0, %arg1, %c0_i32 : i32, i32, i32
  }
  func.func @transform_1(%arg0: i32, %arg1: i32) -> (i32, i32) {
    %c0_i32 = arith.constant 0 : i32
    %c0_i32_0 = arith.constant 0 : i32
    %c0_i32_1 = arith.constant 0 : i32
    return %c0_i32, %c0_i32_0 : i32, i32
  }
  func.func @transform_2(%arg0: i32, %arg1: i32) -> (i32, i32) {
    %c0_i32 = arith.constant 0 : i32
    %c0_i32_0 = arith.constant 0 : i32
    %c0_i32_1 = arith.constant 0 : i32
    return %c0_i32, %c0_i32_0 : i32, i32
  }
  func.func @transform_3(%arg0: i32, %arg1: i32) -> (i32, i32) {
    %c0_i32 = arith.constant 0 : i32
    %c0_i32_0 = arith.constant 0 : i32
    %c0_i32_1 = arith.constant 0 : i32
    return %c0_i32, %c0_i32_0 : i32, i32
  }
  func.func @transform_4(%arg0: i32, %arg1: i32) -> (i32, i32) {
    %c0_i32 = arith.constant 0 : i32
    %c0_i32_0 = arith.constant 0 : i32
    %c0_i32_1 = arith.constant 0 : i32
    return %c0_i32, %c0_i32_0 : i32, i32
  }
  func.func @transform_5(%arg0: i32, %arg1: i32) -> (i32, i32, i32, i32) {
    %c0_i32 = arith.constant 0 : i32
    %c0_i32_0 = arith.constant 0 : i32
    %c0_i32_1 = arith.constant 0 : i32
    return %arg0, %c0_i32, %arg1, %c0_i32_0 : i32, i32, i32, i32
  }
  func.func @transform_6(%arg0: i32, %arg1: i32) -> (i32, i32, i32, i32) {
    %c0_i32 = arith.constant 0 : i32
    %c0_i32_0 = arith.constant 0 : i32
    %c0_i32_1 = arith.constant 0 : i32
    return %arg0, %c0_i32, %arg1, %c0_i32_0 : i32, i32, i32, i32
  }
}

module attributes {stable_mosaic.version = 11 : i64} {
  func.func @_kv_proj_kernel(%arg0: i32, %arg1: i32, %arg2: memref<1x16x128xf32, #tpu.memory_space<vmem>>, %arg3: memref<1x128xf32, #tpu.memory_space<vmem>>, %arg4: memref<1x128xf32, #tpu.memory_space<vmem>>, %arg5: memref<128x256xbf16, #tpu.memory_space<vmem>>, %arg6: memref<1x256xf32, #tpu.memory_space<vmem>>, %arg7: memref<1x4x16x32xbf16, #tpu.memory_space<vmem>>, %arg8: memref<1x4x16x32xbf16, #tpu.memory_space<vmem>>) attributes {dimension_semantics = [#tpu.dimension_semantics<parallel>, #tpu.dimension_semantics<parallel>], iteration_bounds = array<i64: 2, 1>, scalar_prefetch = 0 : i64, scratch_operands = 0 : i64, tpu.core_type = #tpu.core_type<tc>, window_params = [{transform_indices = @transform_0, window_bounds = array<i64: 1, 16, 128>}, {pipeline_mode = #tpu.pipeline_mode<synchronous>, transform_indices = @transform_1, window_bounds = array<i64: 1, 128>}, {pipeline_mode = #tpu.pipeline_mode<synchronous>, transform_indices = @transform_2, window_bounds = array<i64: 1, 128>}, {pipeline_mode = #tpu.pipeline_mode<synchronous>, transform_indices = @transform_3, window_bounds = array<i64: 128, 256>}, {pipeline_mode = #tpu.pipeline_mode<synchronous>, transform_indices = @transform_4, window_bounds = array<i64: 1, 256>}, {transform_indices = @transform_5, window_bounds = array<i64: 1, 4, 16, 32>}, {transform_indices = @transform_6, window_bounds = array<i64: 1, 4, 16, 32>}]} {
    %c0 = arith.constant 0 : index
    %c0_0 = arith.constant 0 : index
    %c0_1 = arith.constant 0 : index
    %0 = vector.load %arg2[%c0, %c0_0, %c0_1] : memref<1x16x128xf32, #tpu.memory_space<vmem>>, vector<1x16x128xf32>
    %1 = vector.shape_cast %0 : vector<1x16x128xf32> to vector<16x128xf32>
    %c0_2 = arith.constant 0 : index
    %c0_3 = arith.constant 0 : index
    %2 = vector.load %arg3[%c0_2, %c0_3] : memref<1x128xf32, #tpu.memory_space<vmem>>, vector<1x128xf32>
    %c0_4 = arith.constant 0 : index
    %c0_5 = arith.constant 0 : index
    %3 = vector.load %arg4[%c0_4, %c0_5] : memref<1x128xf32, #tpu.memory_space<vmem>>, vector<1x128xf32>
    %cst = arith.constant dense<0.000000e+00> : vector<16xf32>
    %4 = vector.multi_reduction <add>, %1, %cst [1] : vector<16x128xf32> to vector<16xf32>
    %5 = vector.shape_cast %4 : vector<16xf32> to vector<16x1xf32>
    %cst_6 = arith.constant 1.280000e+02 : f32
    %6 = vector.broadcast %cst_6 : f32 to vector<16x1xf32>
    %7 = arith.divf %5, %6 : vector<16x1xf32>
    %8 = vector.broadcast %7 : vector<16x1xf32> to vector<16x128xf32>
    %9 = arith.subf %1, %8 : vector<16x128xf32>
    %10 = arith.mulf %9, %9 : vector<16x128xf32>
    %cst_7 = arith.constant dense<0.000000e+00> : vector<16xf32>
    %11 = vector.multi_reduction <add>, %10, %cst_7 [1] : vector<16x128xf32> to vector<16xf32>
    %12 = vector.shape_cast %11 : vector<16xf32> to vector<16x1xf32>
    %cst_8 = arith.constant 1.280000e+02 : f32
    %13 = vector.broadcast %cst_8 : f32 to vector<16x1xf32>
    %14 = arith.divf %12, %13 : vector<16x1xf32>
    %15 = vector.broadcast %7 : vector<16x1xf32> to vector<16x128xf32>
    %16 = arith.subf %1, %15 : vector<16x128xf32>
    %cst_9 = arith.constant 9.99999974E-6 : f32
    %17 = vector.broadcast %cst_9 : f32 to vector<16x1xf32>
    %18 = arith.addf %14, %17 : vector<16x1xf32>
    %19 = math.rsqrt %18 : vector<16x1xf32>
    %20 = vector.broadcast %19 : vector<16x1xf32> to vector<16x128xf32>
    %21 = arith.mulf %16, %20 : vector<16x128xf32>
    %22 = vector.broadcast %2 : vector<1x128xf32> to vector<16x128xf32>
    %23 = arith.mulf %21, %22 : vector<16x128xf32>
    %24 = vector.broadcast %3 : vector<1x128xf32> to vector<16x128xf32>
    %25 = arith.addf %23, %24 : vector<16x128xf32>
    %26 = arith.truncf %25 : vector<16x128xf32> to vector<16x128xbf16>
    %c0_10 = arith.constant 0 : index
    %c0_11 = arith.constant 0 : index
    %27 = vector.load %arg5[%c0_10, %c0_11] : memref<128x256xbf16, #tpu.memory_space<vmem>>, vector<128x256xbf16>
    %cst_12 = arith.constant dense<0.000000e+00> : vector<16x256xf32>
    %28 = tpu.matmul %26, %27, %cst_12 {dimension_numbers = #tpu.dot_dimension_numbers<[1], [0], [0], [1], [0, 0, 1, 1], [], []>} : vector<16x128xbf16>, vector<128x256xbf16>, vector<16x256xf32> -> vector<16x256xf32>
    %c0_13 = arith.constant 0 : index
    %c0_14 = arith.constant 0 : index
    %29 = vector.load %arg6[%c0_13, %c0_14] : memref<1x256xf32, #tpu.memory_space<vmem>>, vector<1x256xf32>
    %30 = vector.broadcast %29 : vector<1x256xf32> to vector<16x256xf32>
    %31 = arith.addf %28, %30 : vector<16x256xf32>
    %32 = arith.truncf %31 : vector<16x256xf32> to vector<16x256xbf16>
    %33 = vector.extract_strided_slice %32 {offsets = [0, 0], sizes = [16, 128], strides = [1, 1]} : vector<16x256xbf16> to vector<16x128xbf16>
    %34 = vector.shape_cast %33 : vector<16x128xbf16> to vector<16x4x32xbf16>
    %35 = vector.extract_strided_slice %32 {offsets = [0, 128], sizes = [16, 128], strides = [1, 1]} : vector<16x256xbf16> to vector<16x128xbf16>
    %36 = vector.shape_cast %35 : vector<16x128xbf16> to vector<16x4x32xbf16>
    %37 = tpu.transpose %34, [1, 0, 2] : vector<16x4x32xbf16> -> vector<4x16x32xbf16>
    %c0_15 = arith.constant 0 : index
    %c0_16 = arith.constant 0 : index
    %c0_17 = arith.constant 0 : index
    %c0_18 = arith.constant 0 : index
    %38 = vector.load %arg7[%c0_15, %c0_16, %c0_17, %c0_18] : memref<1x4x16x32xbf16, #tpu.memory_space<vmem>>, vector<1x4x16x32xbf16>
    %39 = vector.shape_cast %38 : vector<1x4x16x32xbf16> to vector<4x16x32xbf16>
    %40 = vector.shape_cast %37 : vector<4x16x32xbf16> to vector<1x4x16x32xbf16>
    tpu.vector_store %arg7[%c0_15, %c0_16, %c0_17, %c0_18], %40 {strides = array<i32>} : memref<1x4x16x32xbf16, #tpu.memory_space<vmem>>, vector<1x4x16x32xbf16>,
    %41 = tpu.transpose %36, [1, 0, 2] : vector<16x4x32xbf16> -> vector<4x16x32xbf16>
    %c0_19 = arith.constant 0 : index
    %c0_20 = arith.constant 0 : index
    %c0_21 = arith.constant 0 : index
    %c0_22 = arith.constant 0 : index
    %42 = vector.load %arg8[%c0_19, %c0_20, %c0_21, %c0_22] : memref<1x4x16x32xbf16, #tpu.memory_space<vmem>>, vector<1x4x16x32xbf16>
    %43 = vector.shape_cast %42 : vector<1x4x16x32xbf16> to vector<4x16x32xbf16>
    %44 = vector.shape_cast %41 : vector<4x16x32xbf16> to vector<1x4x16x32xbf16>
    tpu.vector_store %arg8[%c0_19, %c0_20, %c0_21, %c0_22], %44 {strides = array<i32>} : memref<1x4x16x32xbf16, #tpu.memory_space<vmem>>, vector<1x4x16x32xbf16>,
    return
  }
  func.func @transform_0(%arg0: i32, %arg1: i32) -> (i32, i32, i32) {
    %c0_i32 = arith.constant 0 : i32
    %c0_i32_0 = arith.constant 0 : i32
    return %arg0, %arg1, %c0_i32 : i32, i32, i32
  }
  func.func @transform_1(%arg0: i32, %arg1: i32) -> (i32, i32) {
    %c0_i32 = arith.constant 0 : i32
    %c0_i32_0 = arith.constant 0 : i32
    %c0_i32_1 = arith.constant 0 : i32
    return %c0_i32, %c0_i32_0 : i32, i32
  }
  func.func @transform_2(%arg0: i32, %arg1: i32) -> (i32, i32) {
    %c0_i32 = arith.constant 0 : i32
    %c0_i32_0 = arith.constant 0 : i32
    %c0_i32_1 = arith.constant 0 : i32
    return %c0_i32, %c0_i32_0 : i32, i32
  }
  func.func @transform_3(%arg0: i32, %arg1: i32) -> (i32, i32) {
    %c0_i32 = arith.constant 0 : i32
    %c0_i32_0 = arith.constant 0 : i32
    %c0_i32_1 = arith.constant 0 : i32
    return %c0_i32, %c0_i32_0 : i32, i32
  }
  func.func @transform_4(%arg0: i32, %arg1: i32) -> (i32, i32) {
    %c0_i32 = arith.constant 0 : i32
    %c0_i32_0 = arith.constant 0 : i32
    %c0_i32_1 = arith.constant 0 : i32
    return %c0_i32, %c0_i32_0 : i32, i32
  }
  func.func @transform_5(%arg0: i32, %arg1: i32) -> (i32, i32, i32, i32) {
    %c0_i32 = arith.constant 0 : i32
    %c0_i32_0 = arith.constant 0 : i32
    %c0_i32_1 = arith.constant 0 : i32
    return %arg0, %c0_i32, %arg1, %c0_i32_0 : i32, i32, i32, i32
  }
  func.func @transform_6(%arg0: i32, %arg1: i32) -> (i32, i32, i32, i32) {
    %c0_i32 = arith.constant 0 : i32
    %c0_i32_0 = arith.constant 0 : i32
    %c0_i32_1 = arith.constant 0 : i32
    return %arg0, %c0_i32, %arg1, %c0_i32_0 : i32, i32, i32, i32
  }
}

module attributes {stable_mosaic.version = 11 : i64} {
  func.func @_cross_attn_kernel(%arg0: i32, %arg1: i32, %arg2: memref<1x8x128xf32, #tpu.memory_space<vmem>>, %arg3: memref<1x1x16xi32, #tpu.memory_space<vmem>>, %arg4: memref<1x128xf32, #tpu.memory_space<vmem>>, %arg5: memref<1x128xf32, #tpu.memory_space<vmem>>, %arg6: memref<128x128xbf16, #tpu.memory_space<vmem>>, %arg7: memref<1x128xf32, #tpu.memory_space<vmem>>, %arg8: memref<1x4x16x32xbf16, #tpu.memory_space<vmem>>, %arg9: memref<1x4x16x32xbf16, #tpu.memory_space<vmem>>, %arg10: memref<128x128xbf16, #tpu.memory_space<vmem>>, %arg11: memref<1x128xf32, #tpu.memory_space<vmem>>, %arg12: memref<1x8x128xf32, #tpu.memory_space<vmem>>) attributes {dimension_semantics = [#tpu.dimension_semantics<parallel>, #tpu.dimension_semantics<parallel>], iteration_bounds = array<i64: 2, 2>, scalar_prefetch = 0 : i64, scratch_operands = 0 : i64, tpu.core_type = #tpu.core_type<tc>, window_params = [{transform_indices = @transform_0, window_bounds = array<i64: 1, 8, 128>}, {transform_indices = @transform_1, window_bounds = array<i64: 1, 1, 16>}, {pipeline_mode = #tpu.pipeline_mode<synchronous>, transform_indices = @transform_2, window_bounds = array<i64: 1, 128>}, {pipeline_mode = #tpu.pipeline_mode<synchronous>, transform_indices = @transform_3, window_bounds = array<i64: 1, 128>}, {pipeline_mode = #tpu.pipeline_mode<synchronous>, transform_indices = @transform_4, window_bounds = array<i64: 128, 128>}, {pipeline_mode = #tpu.pipeline_mode<synchronous>, transform_indices = @transform_5, window_bounds = array<i64: 1, 128>}, {transform_indices = @transform_6, window_bounds = array<i64: 1, 4, 16, 32>}, {transform_indices = @transform_7, window_bounds = array<i64: 1, 4, 16, 32>}, {pipeline_mode = #tpu.pipeline_mode<synchronous>, transform_indices = @transform_8, window_bounds = array<i64: 128, 128>}, {pipeline_mode = #tpu.pipeline_mode<synchronous>, transform_indices = @transform_9, window_bounds = array<i64: 1, 128>}, {transform_indices = @transform_10, window_bounds = array<i64: 1, 8, 128>}]} {
    %c0 = arith.constant 0 : index
    %c0_0 = arith.constant 0 : index
    %c0_1 = arith.constant 0 : index
    %0 = vector.load %arg2[%c0, %c0_0, %c0_1] : memref<1x8x128xf32, #tpu.memory_space<vmem>>, vector<1x8x128xf32>
    %1 = vector.shape_cast %0 : vector<1x8x128xf32> to vector<8x128xf32>
    %c0_2 = arith.constant 0 : index
    %c0_3 = arith.constant 0 : index
    %2 = vector.load %arg4[%c0_2, %c0_3] : memref<1x128xf32, #tpu.memory_space<vmem>>, vector<1x128xf32>
    %c0_4 = arith.constant 0 : index
    %c0_5 = arith.constant 0 : index
    %3 = vector.load %arg5[%c0_4, %c0_5] : memref<1x128xf32, #tpu.memory_space<vmem>>, vector<1x128xf32>
    %cst = arith.constant dense<0.000000e+00> : vector<8xf32>
    %4 = vector.multi_reduction <add>, %1, %cst [1] : vector<8x128xf32> to vector<8xf32>
    %5 = vector.shape_cast %4 : vector<8xf32> to vector<8x1xf32>
    %cst_6 = arith.constant 1.280000e+02 : f32
    %6 = vector.broadcast %cst_6 : f32 to vector<8x1xf32>
    %7 = arith.divf %5, %6 : vector<8x1xf32>
    %8 = vector.broadcast %7 : vector<8x1xf32> to vector<8x128xf32>
    %9 = arith.subf %1, %8 : vector<8x128xf32>
    %10 = arith.mulf %9, %9 : vector<8x128xf32>
    %cst_7 = arith.constant dense<0.000000e+00> : vector<8xf32>
    %11 = vector.multi_reduction <add>, %10, %cst_7 [1] : vector<8x128xf32> to vector<8xf32>
    %12 = vector.shape_cast %11 : vector<8xf32> to vector<8x1xf32>
    %cst_8 = arith.constant 1.280000e+02 : f32
    %13 = vector.broadcast %cst_8 : f32 to vector<8x1xf32>
    %14 = arith.divf %12, %13 : vector<8x1xf32>
    %15 = vector.broadcast %7 : vector<8x1xf32> to vector<8x128xf32>
    %16 = arith.subf %1, %15 : vector<8x128xf32>
    %cst_9 = arith.constant 9.99999974E-6 : f32
    %17 = vector.broadcast %cst_9 : f32 to vector<8x1xf32>
    %18 = arith.addf %14, %17 : vector<8x1xf32>
    %19 = math.rsqrt %18 : vector<8x1xf32>
    %20 = vector.broadcast %19 : vector<8x1xf32> to vector<8x128xf32>
    %21 = arith.mulf %16, %20 : vector<8x128xf32>
    %22 = vector.broadcast %2 : vector<1x128xf32> to vector<8x128xf32>
    %23 = arith.mulf %21, %22 : vector<8x128xf32>
    %24 = vector.broadcast %3 : vector<1x128xf32> to vector<8x128xf32>
    %25 = arith.addf %23, %24 : vector<8x128xf32>
    %26 = arith.truncf %25 : vector<8x128xf32> to vector<8x128xbf16>
    %c0_10 = arith.constant 0 : index
    %c0_11 = arith.constant 0 : index
    %c0_12 = arith.constant 0 : index
    %27 = vector.load %arg3[%c0_10, %c0_11, %c0_12] : memref<1x1x16xi32, #tpu.memory_space<vmem>>, vector<1x1x16xi32>
    %28 = vector.shape_cast %27 : vector<1x1x16xi32> to vector<1x16xi32>
    %c0_i32 = arith.constant 0 : i32
    %29 = vector.broadcast %c0_i32 : i32 to vector<1x16xi32>
    %30 = arith.cmpi sgt, %28, %29 : vector<1x16xi32>
    %cst_13 = arith.constant 0.000000e+00 : f32
    %cst_14 = arith.constant -1.000000e+30 : f32
    %31 = vector.broadcast %cst_13 : f32 to vector<1x16xf32>
    %32 = vector.broadcast %cst_14 : f32 to vector<1x16xf32>
    %33 = arith.select %30, %31, %32 : vector<1x16xi1>, vector<1x16xf32>
    %34 = vector.shape_cast %33 : vector<1x16xf32> to vector<1x1x16xf32>
    %c0_15 = arith.constant 0 : index
    %c0_16 = arith.constant 0 : index
    %c0_17 = arith.constant 0 : index
    %c0_18 = arith.constant 0 : index
    %35 = vector.load %arg8[%c0_15, %c0_16, %c0_17, %c0_18] : memref<1x4x16x32xbf16, #tpu.memory_space<vmem>>, vector<1x4x16x32xbf16>
    %36 = vector.shape_cast %35 : vector<1x4x16x32xbf16> to vector<4x16x32xbf16>
    %c0_19 = arith.constant 0 : index
    %c0_20 = arith.constant 0 : index
    %c0_21 = arith.constant 0 : index
    %c0_22 = arith.constant 0 : index
    %37 = vector.load %arg9[%c0_19, %c0_20, %c0_21, %c0_22] : memref<1x4x16x32xbf16, #tpu.memory_space<vmem>>, vector<1x4x16x32xbf16>
    %38 = vector.shape_cast %37 : vector<1x4x16x32xbf16> to vector<4x16x32xbf16>
    %c0_23 = arith.constant 0 : index
    %c0_24 = arith.constant 0 : index
    %39 = vector.load %arg6[%c0_23, %c0_24] : memref<128x128xbf16, #tpu.memory_space<vmem>>, vector<128x128xbf16>
    %cst_25 = arith.constant dense<0.000000e+00> : vector<8x128xf32>
    %40 = tpu.matmul %26, %39, %cst_25 {dimension_numbers = #tpu.dot_dimension_numbers<[1], [0], [0], [1], [0, 0, 1, 1], [], []>} : vector<8x128xbf16>, vector<128x128xbf16>, vector<8x128xf32> -> vector<8x128xf32>
    %c0_26 = arith.constant 0 : index
    %c0_27 = arith.constant 0 : index
    %41 = vector.load %arg7[%c0_26, %c0_27] : memref<1x128xf32, #tpu.memory_space<vmem>>, vector<1x128xf32>
    %42 = vector.broadcast %41 : vector<1x128xf32> to vector<8x128xf32>
    %43 = arith.addf %40, %42 : vector<8x128xf32>
    %44 = arith.truncf %43 : vector<8x128xf32> to vector<8x128xbf16>
    %45 = vector.shape_cast %44 : vector<8x128xbf16> to vector<8x4x32xbf16>
    %46 = tpu.transpose %45, [1, 0, 2] : vector<8x4x32xbf16> -> vector<4x8x32xbf16>
    %cst_28 = arith.constant dense<0.000000e+00> : vector<4x8x16xf32>
    %47 = tpu.matmul %46, %36, %cst_28 {dimension_numbers = #tpu.dot_dimension_numbers<[2], [2], [1], [1], [0, 0, 0, 1, 1, 1], [0], [0]>} : vector<4x8x32xbf16>, vector<4x16x32xbf16>, vector<4x8x16xf32> -> vector<4x8x16xf32>
    %48 = vector.broadcast %34 : vector<1x1x16xf32> to vector<4x8x16xf32>
    %49 = arith.addf %47, %48 : vector<4x8x16xf32>
    %cst_29 = arith.constant dense<0xFF800000> : vector<4x8xf32>
    %50 = vector.multi_reduction <maximumf>, %49, %cst_29 [2] : vector<4x8x16xf32> to vector<4x8xf32>
    %51 = vector.shape_cast %50 : vector<4x8xf32> to vector<4x8x1xf32>
    %52 = vector.broadcast %51 : vector<4x8x1xf32> to vector<4x8x16xf32>
    %53 = arith.subf %49, %52 : vector<4x8x16xf32>
    %54 = math.exp %53 : vector<4x8x16xf32>
    %cst_30 = arith.constant dense<0.000000e+00> : vector<4x8xf32>
    %55 = vector.multi_reduction <add>, %54, %cst_30 [2] : vector<4x8x16xf32> to vector<4x8xf32>
    %56 = vector.shape_cast %55 : vector<4x8xf32> to vector<4x8x1xf32>
    %57 = vector.broadcast %56 : vector<4x8x1xf32> to vector<4x8x16xf32>
    %58 = arith.divf %54, %57 : vector<4x8x16xf32>
    %59 = arith.truncf %58 : vector<4x8x16xf32> to vector<4x8x16xbf16>
    %cst_31 = arith.constant dense<0.000000e+00> : vector<4x8x32xf32>
    %60 = tpu.matmul %59, %38, %cst_31 {dimension_numbers = #tpu.dot_dimension_numbers<[2], [1], [1], [2], [0, 0, 0, 1, 1, 2], [0], [0]>} : vector<4x8x16xbf16>, vector<4x16x32xbf16>, vector<4x8x32xf32> -> vector<4x8x32xf32>
    %61 = tpu.transpose %60, [1, 0, 2] : vector<4x8x32xf32> -> vector<8x4x32xf32>
    %62 = vector.shape_cast %61 : vector<8x4x32xf32> to vector<8x128xf32>
    %63 = arith.truncf %62 : vector<8x128xf32> to vector<8x128xbf16>
    %c0_32 = arith.constant 0 : index
    %c0_33 = arith.constant 0 : index
    %64 = vector.load %arg10[%c0_32, %c0_33] : memref<128x128xbf16, #tpu.memory_space<vmem>>, vector<128x128xbf16>
    %cst_34 = arith.constant dense<0.000000e+00> : vector<8x128xf32>
    %65 = tpu.matmul %63, %64, %cst_34 {dimension_numbers = #tpu.dot_dimension_numbers<[1], [0], [0], [1], [0, 0, 1, 1], [], []>} : vector<8x128xbf16>, vector<128x128xbf16>, vector<8x128xf32> -> vector<8x128xf32>
    %c0_35 = arith.constant 0 : index
    %c0_36 = arith.constant 0 : index
    %66 = vector.load %arg11[%c0_35, %c0_36] : memref<1x128xf32, #tpu.memory_space<vmem>>, vector<1x128xf32>
    %67 = vector.broadcast %66 : vector<1x128xf32> to vector<8x128xf32>
    %68 = arith.addf %65, %67 : vector<8x128xf32>
    %69 = arith.addf %68, %1 : vector<8x128xf32>
    %c0_37 = arith.constant 0 : index
    %c0_38 = arith.constant 0 : index
    %c0_39 = arith.constant 0 : index
    %70 = vector.load %arg12[%c0_37, %c0_38, %c0_39] : memref<1x8x128xf32, #tpu.memory_space<vmem>>, vector<1x8x128xf32>
    %71 = vector.shape_cast %70 : vector<1x8x128xf32> to vector<8x128xf32>
    %72 = vector.shape_cast %69 : vector<8x128xf32> to vector<1x8x128xf32>
    tpu.vector_store %arg12[%c0_37, %c0_38, %c0_39], %72 {strides = array<i32>} : memref<1x8x128xf32, #tpu.memory_space<vmem>>, vector<1x8x128xf32>,
    return
  }
  func.func @transform_0(%arg0: i32, %arg1: i32) -> (i32, i32, i32) {
    %c0_i32 = arith.constant 0 : i32
    %c0_i32_0 = arith.constant 0 : i32
    return %arg0, %arg1, %c0_i32 : i32, i32, i32
  }
  func.func @transform_1(%arg0: i32, %arg1: i32) -> (i32, i32, i32) {
    %c0_i32 = arith.constant 0 : i32
    %c0_i32_0 = arith.constant 0 : i32
    %c0_i32_1 = arith.constant 0 : i32
    return %arg0, %c0_i32, %c0_i32_0 : i32, i32, i32
  }
  func.func @transform_2(%arg0: i32, %arg1: i32) -> (i32, i32) {
    %c0_i32 = arith.constant 0 : i32
    %c0_i32_0 = arith.constant 0 : i32
    %c0_i32_1 = arith.constant 0 : i32
    return %c0_i32, %c0_i32_0 : i32, i32
  }
  func.func @transform_3(%arg0: i32, %arg1: i32) -> (i32, i32) {
    %c0_i32 = arith.constant 0 : i32
    %c0_i32_0 = arith.constant 0 : i32
    %c0_i32_1 = arith.constant 0 : i32
    return %c0_i32, %c0_i32_0 : i32, i32
  }
  func.func @transform_4(%arg0: i32, %arg1: i32) -> (i32, i32) {
    %c0_i32 = arith.constant 0 : i32
    %c0_i32_0 = arith.constant 0 : i32
    %c0_i32_1 = arith.constant 0 : i32
    return %c0_i32, %c0_i32_0 : i32, i32
  }
  func.func @transform_5(%arg0: i32, %arg1: i32) -> (i32, i32) {
    %c0_i32 = arith.constant 0 : i32
    %c0_i32_0 = arith.constant 0 : i32
    %c0_i32_1 = arith.constant 0 : i32
    return %c0_i32, %c0_i32_0 : i32, i32
  }
  func.func @transform_6(%arg0: i32, %arg1: i32) -> (i32, i32, i32, i32) {
    %c0_i32 = arith.constant 0 : i32
    %c0_i32_0 = arith.constant 0 : i32
    %c0_i32_1 = arith.constant 0 : i32
    %c0_i32_2 = arith.constant 0 : i32
    return %arg0, %c0_i32, %c0_i32_0, %c0_i32_1 : i32, i32, i32, i32
  }
  func.func @transform_7(%arg0: i32, %arg1: i32) -> (i32, i32, i32, i32) {
    %c0_i32 = arith.constant 0 : i32
    %c0_i32_0 = arith.constant 0 : i32
    %c0_i32_1 = arith.constant 0 : i32
    %c0_i32_2 = arith.constant 0 : i32
    return %arg0, %c0_i32, %c0_i32_0, %c0_i32_1 : i32, i32, i32, i32
  }
  func.func @transform_8(%arg0: i32, %arg1: i32) -> (i32, i32) {
    %c0_i32 = arith.constant 0 : i32
    %c0_i32_0 = arith.constant 0 : i32
    %c0_i32_1 = arith.constant 0 : i32
    return %c0_i32, %c0_i32_0 : i32, i32
  }
  func.func @transform_9(%arg0: i32, %arg1: i32) -> (i32, i32) {
    %c0_i32 = arith.constant 0 : i32
    %c0_i32_0 = arith.constant 0 : i32
    %c0_i32_1 = arith.constant 0 : i32
    return %c0_i32, %c0_i32_0 : i32, i32
  }
  func.func @transform_10(%arg0: i32, %arg1: i32) -> (i32, i32, i32) {
    %c0_i32 = arith.constant 0 : i32
    %c0_i32_0 = arith.constant 0 : i32
    return %arg0, %arg1, %c0_i32 : i32, i32, i32
  }
}

module attributes {stable_mosaic.version = 11 : i64} {
  func.func @_ffn_kernel(%arg0: i32, %arg1: i32, %arg2: memref<16x128xf32, #tpu.memory_space<vmem>>, %arg3: memref<1x128xf32, #tpu.memory_space<vmem>>, %arg4: memref<1x128xf32, #tpu.memory_space<vmem>>, %arg5: memref<1x128xf32, #tpu.memory_space<vmem>>, %arg6: memref<128x128xbf16, #tpu.memory_space<vmem>>, %arg7: memref<1x128xf32, #tpu.memory_space<vmem>>, %arg8: memref<128x128xbf16, #tpu.memory_space<vmem>>, %arg9: memref<16x128xf32, #tpu.memory_space<vmem>>, %arg10: memref<16x128xbf16, #tpu.memory_space<vmem>>, %arg11: memref<16x128xf32, #tpu.memory_space<vmem>>) attributes {dimension_semantics = [#tpu.dimension_semantics<parallel>, #tpu.dimension_semantics<arbitrary>], iteration_bounds = array<i64: 2, 2>, scalar_prefetch = 0 : i64, scratch_operands = 2 : i64, tpu.core_type = #tpu.core_type<tc>, window_params = [{transform_indices = @transform_0, window_bounds = array<i64: 16, 128>}, {pipeline_mode = #tpu.pipeline_mode<synchronous>, transform_indices = @transform_1, window_bounds = array<i64: 1, 128>}, {pipeline_mode = #tpu.pipeline_mode<synchronous>, transform_indices = @transform_2, window_bounds = array<i64: 1, 128>}, {pipeline_mode = #tpu.pipeline_mode<synchronous>, transform_indices = @transform_3, window_bounds = array<i64: 1, 128>}, {transform_indices = @transform_4, window_bounds = array<i64: 128, 128>}, {transform_indices = @transform_5, window_bounds = array<i64: 1, 128>}, {transform_indices = @transform_6, window_bounds = array<i64: 128, 128>}, {transform_indices = @transform_7, window_bounds = array<i64: 16, 128>}]} {
    %c0_i32 = arith.constant 0 : i32
    %0 = arith.cmpi eq, %arg1, %c0_i32 : i32
    %1 = arith.extui %0 : i1 to i32
    %c0_i32_0 = arith.constant 0 : i32
    %2 = arith.cmpi ne, %1, %c0_i32_0 : i32
    scf.if %2 {
      %c0_18 = arith.constant 0 : index
      %c0_19 = arith.constant 0 : index
      %31 = vector.load %arg2[%c0_18, %c0_19] : memref<16x128xf32, #tpu.memory_space<vmem>>, vector<16x128xf32>
      %c0_20 = arith.constant 0 : index
      %c0_21 = arith.constant 0 : index
      %32 = vector.load %arg3[%c0_20, %c0_21] : memref<1x128xf32, #tpu.memory_space<vmem>>, vector<1x128xf32>
      %c0_22 = arith.constant 0 : index
      %c0_23 = arith.constant 0 : index
      %33 = vector.load %arg4[%c0_22, %c0_23] : memref<1x128xf32, #tpu.memory_space<vmem>>, vector<1x128xf32>
      %cst_24 = arith.constant dense<0.000000e+00> : vector<16xf32>
      %34 = vector.multi_reduction <add>, %31, %cst_24 [1] : vector<16x128xf32> to vector<16xf32>
      %35 = vector.shape_cast %34 : vector<16xf32> to vector<16x1xf32>
      %cst_25 = arith.constant 1.280000e+02 : f32
      %36 = vector.broadcast %cst_25 : f32 to vector<16x1xf32>
      %37 = arith.divf %35, %36 : vector<16x1xf32>
      %38 = vector.broadcast %37 : vector<16x1xf32> to vector<16x128xf32>
      %39 = arith.subf %31, %38 : vector<16x128xf32>
      %40 = arith.mulf %39, %39 : vector<16x128xf32>
      %cst_26 = arith.constant dense<0.000000e+00> : vector<16xf32>
      %41 = vector.multi_reduction <add>, %40, %cst_26 [1] : vector<16x128xf32> to vector<16xf32>
      %42 = vector.shape_cast %41 : vector<16xf32> to vector<16x1xf32>
      %cst_27 = arith.constant 1.280000e+02 : f32
      %43 = vector.broadcast %cst_27 : f32 to vector<16x1xf32>
      %44 = arith.divf %42, %43 : vector<16x1xf32>
      %45 = vector.broadcast %37 : vector<16x1xf32> to vector<16x128xf32>
      %46 = arith.subf %31, %45 : vector<16x128xf32>
      %cst_28 = arith.constant 9.99999974E-6 : f32
      %47 = vector.broadcast %cst_28 : f32 to vector<16x1xf32>
      %48 = arith.addf %44, %47 : vector<16x1xf32>
      %49 = math.rsqrt %48 : vector<16x1xf32>
      %50 = vector.broadcast %49 : vector<16x1xf32> to vector<16x128xf32>
      %51 = arith.mulf %46, %50 : vector<16x128xf32>
      %52 = vector.broadcast %32 : vector<1x128xf32> to vector<16x128xf32>
      %53 = arith.mulf %51, %52 : vector<16x128xf32>
      %54 = vector.broadcast %33 : vector<1x128xf32> to vector<16x128xf32>
      %55 = arith.addf %53, %54 : vector<16x128xf32>
      %56 = arith.truncf %55 : vector<16x128xf32> to vector<16x128xbf16>
      %c0_29 = arith.constant 0 : index
      %c0_30 = arith.constant 0 : index
      %57 = vector.load %arg10[%c0_29, %c0_30] : memref<16x128xbf16, #tpu.memory_space<vmem>>, vector<16x128xbf16>
      tpu.vector_store %arg10[%c0_29, %c0_30], %56 {strides = array<i32>} : memref<16x128xbf16, #tpu.memory_space<vmem>>, vector<16x128xbf16>,
      %c0_31 = arith.constant 0 : index
      %c0_32 = arith.constant 0 : index
      %58 = vector.load %arg5[%c0_31, %c0_32] : memref<1x128xf32, #tpu.memory_space<vmem>>, vector<1x128xf32>
      %59 = vector.broadcast %58 : vector<1x128xf32> to vector<16x128xf32>
      %60 = arith.addf %31, %59 : vector<16x128xf32>
      %c0_33 = arith.constant 0 : index
      %c0_34 = arith.constant 0 : index
      %61 = vector.load %arg11[%c0_33, %c0_34] : memref<16x128xf32, #tpu.memory_space<vmem>>, vector<16x128xf32>
      tpu.vector_store %arg11[%c0_33, %c0_34], %60 {strides = array<i32>} : memref<16x128xf32, #tpu.memory_space<vmem>>, vector<16x128xf32>,
    } else {
    }
    %c0 = arith.constant 0 : index
    %c0_1 = arith.constant 0 : index
    %3 = vector.load %arg10[%c0, %c0_1] : memref<16x128xbf16, #tpu.memory_space<vmem>>, vector<16x128xbf16>
    %c0_2 = arith.constant 0 : index
    %c0_3 = arith.constant 0 : index
    %4 = vector.load %arg6[%c0_2, %c0_3] : memref<128x128xbf16, #tpu.memory_space<vmem>>, vector<128x128xbf16>
    %cst = arith.constant dense<0.000000e+00> : vector<16x128xf32>
    %5 = tpu.matmul %3, %4, %cst {dimension_numbers = #tpu.dot_dimension_numbers<[1], [0], [0], [1], [0, 0, 1, 1], [], []>} : vector<16x128xbf16>, vector<128x128xbf16>, vector<16x128xf32> -> vector<16x128xf32>
    %c0_4 = arith.constant 0 : index
    %c0_5 = arith.constant 0 : index
    %6 = vector.load %arg7[%c0_4, %c0_5] : memref<1x128xf32, #tpu.memory_space<vmem>>, vector<1x128xf32>
    %7 = vector.broadcast %6 : vector<1x128xf32> to vector<16x128xf32>
    %8 = arith.addf %5, %7 : vector<16x128xf32>
    %9 = arith.mulf %8, %8 : vector<16x128xf32>
    %10 = arith.mulf %8, %9 : vector<16x128xf32>
    %cst_6 = arith.constant 4.471500e-02 : f32
    %11 = vector.broadcast %cst_6 : f32 to vector<16x128xf32>
    %12 = arith.mulf %11, %10 : vector<16x128xf32>
    %13 = arith.addf %8, %12 : vector<16x128xf32>
    %cst_7 = arith.constant 0.797884583 : f32
    %14 = vector.broadcast %cst_7 : f32 to vector<16x128xf32>
    %15 = arith.mulf %14, %13 : vector<16x128xf32>
    %16 = math.tanh %15 : vector<16x128xf32>
    %cst_8 = arith.constant 1.000000e+00 : f32
    %17 = vector.broadcast %cst_8 : f32 to vector<16x128xf32>
    %18 = arith.addf %17, %16 : vector<16x128xf32>
    %cst_9 = arith.constant 5.000000e-01 : f32
    %19 = vector.broadcast %cst_9 : f32 to vector<16x128xf32>
    %20 = arith.mulf %19, %18 : vector<16x128xf32>
    %21 = arith.mulf %8, %20 : vector<16x128xf32>
    %c0_10 = arith.constant 0 : index
    %c0_11 = arith.constant 0 : index
    %22 = vector.load %arg11[%c0_10, %c0_11] : memref<16x128xf32, #tpu.memory_space<vmem>>, vector<16x128xf32>
    %23 = arith.truncf %21 : vector<16x128xf32> to vector<16x128xbf16>
    %c0_12 = arith.constant 0 : index
    %c0_13 = arith.constant 0 : index
    %24 = vector.load %arg8[%c0_12, %c0_13] : memref<128x128xbf16, #tpu.memory_space<vmem>>, vector<128x128xbf16>
    %cst_14 = arith.constant dense<0.000000e+00> : vector<16x128xf32>
    %25 = tpu.matmul %23, %24, %cst_14 {dimension_numbers = #tpu.dot_dimension_numbers<[1], [0], [0], [1], [0, 0, 1, 1], [], []>} : vector<16x128xbf16>, vector<128x128xbf16>, vector<16x128xf32> -> vector<16x128xf32>
    %26 = arith.addf %22, %25 : vector<16x128xf32>
    %c0_15 = arith.constant 0 : index
    %c0_16 = arith.constant 0 : index
    %27 = vector.load %arg11[%c0_15, %c0_16] : memref<16x128xf32, #tpu.memory_space<vmem>>, vector<16x128xf32>
    tpu.vector_store %arg11[%c0_15, %c0_16], %26 {strides = array<i32>} : memref<16x128xf32, #tpu.memory_space<vmem>>, vector<16x128xf32>,
    %c1_i32 = arith.constant 1 : i32
    %28 = arith.cmpi eq, %arg1, %c1_i32 : i32
    %29 = arith.extui %28 : i1 to i32
    %c0_i32_17 = arith.constant 0 : i32
    %30 = arith.cmpi ne, %29, %c0_i32_17 : i32
    scf.if %30 {
      %c0_18 = arith.constant 0 : index
      %c0_19 = arith.constant 0 : index
      %31 = vector.load %arg11[%c0_18, %c0_19] : memref<16x128xf32, #tpu.memory_space<vmem>>, vector<16x128xf32>
      %c0_20 = arith.constant 0 : index
      %c0_21 = arith.constant 0 : index
      %32 = vector.load %arg9[%c0_20, %c0_21] : memref<16x128xf32, #tpu.memory_space<vmem>>, vector<16x128xf32>
      tpu.vector_store %arg9[%c0_20, %c0_21], %31 {strides = array<i32>} : memref<16x128xf32, #tpu.memory_space<vmem>>, vector<16x128xf32>,
    } else {
    }
    return
  }
  func.func @transform_0(%arg0: i32, %arg1: i32) -> (i32, i32) {
    %c0_i32 = arith.constant 0 : i32
    %c0_i32_0 = arith.constant 0 : i32
    return %arg0, %c0_i32 : i32, i32
  }
  func.func @transform_1(%arg0: i32, %arg1: i32) -> (i32, i32) {
    %c0_i32 = arith.constant 0 : i32
    %c0_i32_0 = arith.constant 0 : i32
    %c0_i32_1 = arith.constant 0 : i32
    return %c0_i32, %c0_i32_0 : i32, i32
  }
  func.func @transform_2(%arg0: i32, %arg1: i32) -> (i32, i32) {
    %c0_i32 = arith.constant 0 : i32
    %c0_i32_0 = arith.constant 0 : i32
    %c0_i32_1 = arith.constant 0 : i32
    return %c0_i32, %c0_i32_0 : i32, i32
  }
  func.func @transform_3(%arg0: i32, %arg1: i32) -> (i32, i32) {
    %c0_i32 = arith.constant 0 : i32
    %c0_i32_0 = arith.constant 0 : i32
    %c0_i32_1 = arith.constant 0 : i32
    return %c0_i32, %c0_i32_0 : i32, i32
  }
  func.func @transform_4(%arg0: i32, %arg1: i32) -> (i32, i32) {
    %c0_i32 = arith.constant 0 : i32
    %c0_i32_0 = arith.constant 0 : i32
    return %c0_i32, %arg1 : i32, i32
  }
  func.func @transform_5(%arg0: i32, %arg1: i32) -> (i32, i32) {
    %c0_i32 = arith.constant 0 : i32
    %c0_i32_0 = arith.constant 0 : i32
    return %c0_i32, %arg1 : i32, i32
  }
  func.func @transform_6(%arg0: i32, %arg1: i32) -> (i32, i32) {
    %c0_i32 = arith.constant 0 : i32
    %c0_i32_0 = arith.constant 0 : i32
    return %arg1, %c0_i32 : i32, i32
  }
  func.func @transform_7(%arg0: i32, %arg1: i32) -> (i32, i32) {
    %c0_i32 = arith.constant 0 : i32
    %c0_i32_0 = arith.constant 0 : i32
    return %arg0, %c0_i32 : i32, i32
  }
}

module attributes {stable_mosaic.version = 11 : i64} {
  func.func @_lm_head_kernel(%arg0: i32, %arg1: i32, %arg2: memref<32x128xf32, #tpu.memory_space<vmem>>, %arg3: memref<1x128xf32, #tpu.memory_space<vmem>>, %arg4: memref<1x128xf32, #tpu.memory_space<vmem>>, %arg5: memref<128x256xbf16, #tpu.memory_space<vmem>>, %arg6: memref<1x256xf32, #tpu.memory_space<vmem>>, %arg7: memref<32x256xf32, #tpu.memory_space<vmem>>, %arg8: memref<32x128xbf16, #tpu.memory_space<vmem>>) attributes {dimension_semantics = [#tpu.dimension_semantics<parallel>, #tpu.dimension_semantics<arbitrary>], iteration_bounds = array<i64: 1, 2>, scalar_prefetch = 0 : i64, scratch_operands = 1 : i64, tpu.core_type = #tpu.core_type<tc>, window_params = [{transform_indices = @transform_0, window_bounds = array<i64: 32, 128>}, {pipeline_mode = #tpu.pipeline_mode<synchronous>, transform_indices = @transform_1, window_bounds = array<i64: 1, 128>}, {pipeline_mode = #tpu.pipeline_mode<synchronous>, transform_indices = @transform_2, window_bounds = array<i64: 1, 128>}, {transform_indices = @transform_3, window_bounds = array<i64: 128, 256>}, {transform_indices = @transform_4, window_bounds = array<i64: 1, 256>}, {transform_indices = @transform_5, window_bounds = array<i64: 32, 256>}]} {
    %c0_i32 = arith.constant 0 : i32
    %0 = arith.cmpi eq, %arg1, %c0_i32 : i32
    %1 = arith.extui %0 : i1 to i32
    %c0_i32_0 = arith.constant 0 : i32
    %2 = arith.cmpi ne, %1, %c0_i32_0 : i32
    scf.if %2 {
      %c0_8 = arith.constant 0 : index
      %c0_9 = arith.constant 0 : index
      %10 = vector.load %arg2[%c0_8, %c0_9] : memref<32x128xf32, #tpu.memory_space<vmem>>, vector<32x128xf32>
      %c0_10 = arith.constant 0 : index
      %c0_11 = arith.constant 0 : index
      %11 = vector.load %arg3[%c0_10, %c0_11] : memref<1x128xf32, #tpu.memory_space<vmem>>, vector<1x128xf32>
      %c0_12 = arith.constant 0 : index
      %c0_13 = arith.constant 0 : index
      %12 = vector.load %arg4[%c0_12, %c0_13] : memref<1x128xf32, #tpu.memory_space<vmem>>, vector<1x128xf32>
      %cst_14 = arith.constant dense<0.000000e+00> : vector<32xf32>
      %13 = vector.multi_reduction <add>, %10, %cst_14 [1] : vector<32x128xf32> to vector<32xf32>
      %14 = vector.shape_cast %13 : vector<32xf32> to vector<32x1xf32>
      %cst_15 = arith.constant 1.280000e+02 : f32
      %15 = vector.broadcast %cst_15 : f32 to vector<32x1xf32>
      %16 = arith.divf %14, %15 : vector<32x1xf32>
      %17 = vector.broadcast %16 : vector<32x1xf32> to vector<32x128xf32>
      %18 = arith.subf %10, %17 : vector<32x128xf32>
      %19 = arith.mulf %18, %18 : vector<32x128xf32>
      %cst_16 = arith.constant dense<0.000000e+00> : vector<32xf32>
      %20 = vector.multi_reduction <add>, %19, %cst_16 [1] : vector<32x128xf32> to vector<32xf32>
      %21 = vector.shape_cast %20 : vector<32xf32> to vector<32x1xf32>
      %cst_17 = arith.constant 1.280000e+02 : f32
      %22 = vector.broadcast %cst_17 : f32 to vector<32x1xf32>
      %23 = arith.divf %21, %22 : vector<32x1xf32>
      %24 = vector.broadcast %16 : vector<32x1xf32> to vector<32x128xf32>
      %25 = arith.subf %10, %24 : vector<32x128xf32>
      %cst_18 = arith.constant 9.99999974E-6 : f32
      %26 = vector.broadcast %cst_18 : f32 to vector<32x1xf32>
      %27 = arith.addf %23, %26 : vector<32x1xf32>
      %28 = math.rsqrt %27 : vector<32x1xf32>
      %29 = vector.broadcast %28 : vector<32x1xf32> to vector<32x128xf32>
      %30 = arith.mulf %25, %29 : vector<32x128xf32>
      %31 = vector.broadcast %11 : vector<1x128xf32> to vector<32x128xf32>
      %32 = arith.mulf %30, %31 : vector<32x128xf32>
      %33 = vector.broadcast %12 : vector<1x128xf32> to vector<32x128xf32>
      %34 = arith.addf %32, %33 : vector<32x128xf32>
      %35 = arith.truncf %34 : vector<32x128xf32> to vector<32x128xbf16>
      %c0_19 = arith.constant 0 : index
      %c0_20 = arith.constant 0 : index
      %36 = vector.load %arg8[%c0_19, %c0_20] : memref<32x128xbf16, #tpu.memory_space<vmem>>, vector<32x128xbf16>
      tpu.vector_store %arg8[%c0_19, %c0_20], %35 {strides = array<i32>} : memref<32x128xbf16, #tpu.memory_space<vmem>>, vector<32x128xbf16>,
    } else {
    }
    %c0 = arith.constant 0 : index
    %c0_1 = arith.constant 0 : index
    %3 = vector.load %arg8[%c0, %c0_1] : memref<32x128xbf16, #tpu.memory_space<vmem>>, vector<32x128xbf16>
    %c0_2 = arith.constant 0 : index
    %c0_3 = arith.constant 0 : index
    %4 = vector.load %arg5[%c0_2, %c0_3] : memref<128x256xbf16, #tpu.memory_space<vmem>>, vector<128x256xbf16>
    %cst = arith.constant dense<0.000000e+00> : vector<32x256xf32>
    %5 = tpu.matmul %3, %4, %cst {dimension_numbers = #tpu.dot_dimension_numbers<[1], [0], [0], [1], [0, 0, 1, 1], [], []>} : vector<32x128xbf16>, vector<128x256xbf16>, vector<32x256xf32> -> vector<32x256xf32>
    %c0_4 = arith.constant 0 : index
    %c0_5 = arith.constant 0 : index
    %6 = vector.load %arg6[%c0_4, %c0_5] : memref<1x256xf32, #tpu.memory_space<vmem>>, vector<1x256xf32>
    %7 = vector.broadcast %6 : vector<1x256xf32> to vector<32x256xf32>
    %8 = arith.addf %5, %7 : vector<32x256xf32>
    %c0_6 = arith.constant 0 : index
    %c0_7 = arith.constant 0 : index
    %9 = vector.load %arg7[%c0_6, %c0_7] : memref<32x256xf32, #tpu.memory_space<vmem>>, vector<32x256xf32>
    tpu.vector_store %arg7[%c0_6, %c0_7], %8 {strides = array<i32>} : memref<32x256xf32, #tpu.memory_space<vmem>>, vector<32x256xf32>,
    return
  }
  func.func @transform_0(%arg0: i32, %arg1: i32) -> (i32, i32) {
    %c0_i32 = arith.constant 0 : i32
    %c0_i32_0 = arith.constant 0 : i32
    return %arg0, %c0_i32 : i32, i32
  }
  func.func @transform_1(%arg0: i32, %arg1: i32) -> (i32, i32) {
    %c0_i32 = arith.constant 0 : i32
    %c0_i32_0 = arith.constant 0 : i32
    %c0_i32_1 = arith.constant 0 : i32
    return %c0_i32, %c0_i32_0 : i32, i32
  }
  func.func @transform_2(%arg0: i32, %arg1: i32) -> (i32, i32) {
    %c0_i32 = arith.constant 0 : i32
    %c0_i32_0 = arith.constant 0 : i32
    %c0_i32_1 = arith.constant 0 : i32
    return %c0_i32, %c0_i32_0 : i32, i32
  }
  func.func @transform_3(%arg0: i32, %arg1: i32) -> (i32, i32) {
    %c0_i32 = arith.constant 0 : i32
    %c0_i32_0 = arith.constant 0 : i32
    return %c0_i32, %arg1 : i32, i32
  }
  func.func @transform_4(%arg0: i32, %arg1: i32) -> (i32, i32) {
    %c0_i32 = arith.constant 0 : i32
    %c0_i32_0 = arith.constant 0 : i32
    return %c0_i32, %arg1 : i32, i32
  }
  func.func @transform_5(%arg0: i32, %arg1: i32) -> (i32, i32) {
    %c0_i32 = arith.constant 0 : i32
    return %arg0, %arg1 : i32, i32
  }
}

</mosaic_0001>

<bundles_post_ra>
// kernel: _lambda_.13
= control target key start
LH: loop header
LB: loop body
LE: loop exit
PB: predicated region body
PF: predicated region fallthrough
CT: control target
= control target key end

     0   :  { %s2321_s0 = inlined_call_operand.hbm [shape: f32[2,16,128], index: 0, kind: input, shape index: {}]   ;;  %s2322_s1 = inlined_call_operand.hbm [shape: f32[1,128], index: 1, kind: input, shape index: {}]   ;;  %s2323_s2 = inlined_call_operand.hbm [shape: f32[1,128], index: 2, kind: input, shape index: {}]   ;;  %s2324_s3 = inlined_call_operand.hbm [shape: bf16[128,256], index: 3, kind: input, shape index: {}]   ;;  %s2325_s4 = inlined_call_operand.hbm [shape: f32[1,256], index: 4, kind: input, shape index: {}]   ;;  %s2326_s5 = inlined_call_operand.hbm [shape: bf16[2,4,16,32], index: 5, kind: output, shape index: {0}]   ;;  %s2327_s6 = inlined_call_operand.hbm [shape: bf16[2,4,16,32], index: 6, kind: output, shape index: {1}]  }
   0x1   :  { %2334 = sst [smem:[#allocation20_spill]] %s2322_s1 }
   0x2   :  { %12 = vsyncpa [#allocation3], 0 }
   0x3   :  { %14 = vsyncpa [#allocation3 + $0x1], 0 }
   0x4   :  { %15 = vsyncpa [#allocation6], 0 }
   0x5   :  { %16 = vsyncpa [#allocation9], 0 }
   0x6   :  { %17 = vsyncpa [#allocation4], 0 }
   0x7   :  { %19 = vsyncpa [#allocation4 + $0x1], 0 }
   0x8   :  { %20 = vsyncpa [#allocation13], 0 }
   0x9   :  { %22 = vsyncpa [#allocation13 + $0x1], 0  ;;  %s1845_s21 = smov 0   ;;  %s1847_s22 = smov 0  }
   0xa   :  { %s1849_s23 = smov 0   ;;  %s1851_s24 = smov 0  }
   0xb   :  { %s1853_s25 = smov 0   ;;  %s1855_s26 = smov 0  }
   0xc LB: > { %s1317_s27 = sadd.s32 4294967295, %s1792_s26   ;;  %s1318_s28 = sadd.s32 4294967294, %s1792_s26   ;;  %s1792_s26 = sphi %s1855_s26, %s28_s26   ;;  %s1788_s25 = sphi %s1853_s25, %s2358_s25   ;;  %s1784_s24 = sphi %s1851_s24, %s2357_s24   ;;  %s1780_s23 = sphi %s1849_s23, %s2356_s23   ;;  %s1776_s22 = sphi %s1847_s22, %s2355_s22   ;;  %s1772_s21 = sphi %s1845_s21, %s2354_s21  }
   0xd   : > { %p62_p0 = scmp.ne.s32.totalorder %s1776_s22, %s1772_s21  ;;  %p1879_p1 = scmp.eq.s32.totalorder %s1317_s27, 0 }
   0xe   : > { %p1883_p2 = scmp.eq.s32.totalorder %s1317_s27, 1  ;;  %p178_p3 = scmp.eq.s32.totalorder %s1318_s28, 1 }
   0xf   : > { %s2335_s29 = scalar_select %p1879_p1, 1, 0 }
  0x10   : > { %s2336_s30 = scalar_select %p1883_p2, 1, 0 }
  0x11   : > { %p1889_p4 = por %p1879_p1, %p62_p0  ;;  %p1319_p5 = scmp.ge.s32.totalorder %s1792_s26, 1 }
  0x12   : > { %p1894_p6 = por %p178_p3, %p62_p0  ;;  %p213_p7 = scmp.lt.s32.totalorder %s1792_s26, 3 }
  0x13   : > { %s2337_s7 = scalar_select %p1889_p4, 1, 0 }
  0x14   : > { %s2338_s8 = scalar_select %p1894_p6, 1, 0 }
  0x15   : > { %p1899_p8 = pnand %p1319_p5, %p213_p7  ;;  %s1794_s10 = smov [#allocation5]  }
  0x16   : > { %2339 = sst [smem:[#allocation19_spill]] %s2338_s8  ;;  %s226_s11 = sshll.u32 %s1794_s10, 4  ;;  %s227_s11 = int_to_ptr.vmem [resolvable:$true] %s226_s11 }
  0x17   : > { %s2340_s9 = scalar_select %p1899_p8, 1, 0 }
  0x18   : > { %p1409_p10 = pneg %p1899_p8  ;;  %s1795_s12 = smov [#allocation8]  }
  0x19   : > { %s247_s13 = sshll.u32 %s1795_s12, 4  ;;  %s1796_s15 = smov [#allocation7]   ;;  %s1912_s13 = int_to_ptr.vmem [resolvable:$true] %s247_s13 }
  0x1a   : > { %p1908_p11 = pnand %p1409_p10, %p1879_p1  ;;  %s1914_s16 = sshll.u32 %s1796_s15, 4  ;;  %s238_s16 = int_to_ptr.vmem [resolvable:$true] %s1914_s16 }
  0x1b   : > { %s2342_s1 = sld [smem:[#allocation20_spill]] }
  0x1c   : > { %p1924_p13 = pneg %p1908_p11 }
  0x21   : > { %s1528_s19 = scalar_lea.hbm %s2342_s1, 16 }
  0x22   : > { %p1529_p12 = scmp.ne.s32.totalorder %s2342_s1, %s1528_s19  ;;  %p1535_p5 = scmp.lt.u32.totalorder %s1528_s19, %s2342_s1 }
  0x24   : > { %p1531_p0 = pnand %p1924_p13, %p1529_p12 }
  0x26   : > { %p1532_p3 = pneg %p1531_p0 }
  0x28   : > { %p1537_p7 = pnand %p1535_p5, %p1532_p3 }
  0x2a   : > { %1540 = shalt.err (!%p1537_p7)
}
  0x2b   : > { %s1541_s15 = scalar_lea.vmem %s227_s11, 16  ;;  %s1548_s17 = scalar_lea.vmem %s227_s11, 32 }
  0x2c   : > { %p1542_p10 = scmp.ne.s32.totalorder %s227_s11, %s1541_s15  ;;  %p1549_p1 = scmp.lt.s32.totalorder %s227_s11, %s227_s11 }
  0x2d   : > { %p1550_p4 = scmp.lt.s32.totalorder %s1548_s17, %s1541_s15 }
  0x2e   : > { %p1544_p9 = pnand %p1542_p10, %p1924_p13 }
  0x2f   : > { %p1551_p8 = por %p1550_p4, %p1549_p1 }
  0x30   : > { %p1545_p6 = pneg %p1544_p9 }
  0x32   : > { %p1552_p2 = pnand %p1551_p8, %p1545_p6 }
  0x34   : > { %1555 = shalt.err (!%p1552_p2)
}
  0x35   : > { %1412 = dma.hbm_to_vmem [thread:$0]  (!%p1908_p11), %s2342_s1, 16, %s227_s11, [#allocation6]  }
  0x36   : > { %s1556_s10 = scalar_lea.hbm %s2324_s3, 2048 }
  0x37   : > { %p1557_p9 = scmp.ne.s32.totalorder %s2324_s3, %s1556_s10  ;;  %p1563_p2 = scmp.lt.u32.totalorder %s1556_s10, %s2324_s3 }
  0x39   : > { %p1559_p12 = pnand %p1557_p9, %p1924_p13 }
  0x3b   : > { %p1560_p1 = pneg %p1559_p12 }
  0x3d   : > { %p1565_p4 = pnand %p1563_p2, %p1560_p1 }
  0x3f   : > { %1568 = shalt.err (!%p1565_p4)
}
  0x40   : > { %s1569_s11 = scalar_lea.vmem %s1912_s13, 2048  ;;  %p1577_p3 = scmp.lt.s32.totalorder %s1912_s13, %s1912_s13 }
  0x41   : > { %p1570_p6 = scmp.ne.s32.totalorder %s1912_s13, %s1569_s11  ;;  %p1578_p5 = scmp.lt.s32.totalorder %s1569_s11, %s1569_s11 }
  0x43   : > { %p1572_p8 = pnand %p1570_p6, %p1924_p13  ;;  %p1579_p7 = por %p1578_p5, %p1577_p3 }
  0x45   : > { %p1573_p0 = pneg %p1572_p8 }
  0x47   : > { %p1580_p10 = pnand %p1579_p7, %p1573_p0 }
  0x49   : > { %1583 = shalt.err (!%p1580_p10)
}
  0x4a   : > { %s2333_s8 = smov 128   ;;  %s1798_s18 = smov 8  }
  0x4b   : > { %1418 = dma.hbm_to_vmem [thread:$0]  (!%p1908_p11), %s2324_s3, 2048, %s1912_s13, [#allocation9], %s2333_s8, %s2333_s8, %s1798_s18  }
  0x4c   : > { %s1584_s12 = scalar_lea.hbm %s2323_s2, 16 }
  0x4d   : > { %p1585_p9 = scmp.ne.s32.totalorder %s2323_s2, %s1584_s12  ;;  %p1591_p2 = scmp.lt.u32.totalorder %s1584_s12, %s2323_s2 }
  0x4f   : > { %p1587_p12 = pnand %p1585_p9, %p1924_p13 }
  0x51   : > { %p1588_p1 = pneg %p1587_p12 }
  0x53   : > { %p1593_p4 = pnand %p1591_p2, %p1588_p1 }
  0x55   : > { %1596 = shalt.err (!%p1593_p4)
}
  0x56   : > { %s1597_s20 = scalar_lea.vmem %s238_s16, 16  ;;  %s1604_s13 = scalar_lea.vmem %s238_s16, 32 }
  0x57   : > { %p1598_p6 = scmp.ne.s32.totalorder %s238_s16, %s1597_s20  ;;  %p1605_p3 = scmp.lt.s32.totalorder %s238_s16, %s238_s16 }
  0x58   : > { %p1606_p5 = scmp.lt.s32.totalorder %s1604_s13, %s1597_s20 }
  0x59   : > { %p1600_p8 = pnand %p1598_p6, %p1924_p13 }
  0x5a   : > { %p1607_p7 = por %p1606_p5, %p1605_p3 }
  0x5b   : > { %p1601_p0 = pneg %p1600_p8 }
  0x5d   : > { %p1608_p10 = pnand %p1607_p7, %p1601_p0 }
  0x5f   : > { %1611 = shalt.err (!%p1608_p10)
}
  0x60   : > { %1415 = dma.hbm_to_vmem [thread:$0]  (!%p1908_p11), %s2323_s2, 16, %s238_s16, [#allocation6]  }
  0x61   : > { %s1799_s1 = smov [#allocation10]   ;;  %s1612_s17 = scalar_lea.hbm %s2325_s4, 32 }
  0x62   : > { %s261_s10 = sshll.u32 %s1799_s1, 4  ;;  %p1613_p9 = scmp.ne.s32.totalorder %s2325_s4, %s1612_s17  ;;  %s262_s10 = int_to_ptr.vmem [resolvable:$true] %s261_s10 }
  0x63   : > { %p1619_p2 = scmp.lt.u32.totalorder %s1612_s17, %s2325_s4 }
  0x64   : > { %p1615_p12 = pnand %p1613_p9, %p1924_p13 }
  0x66   : > { %p1616_p1 = pneg %p1615_p12 }
  0x68   : > { %p1621_p4 = pnand %p1619_p2, %p1616_p1 }
  0x6a   : > { %1624 = shalt.err (!%p1621_p4)
}
  0x6b   : > { %s1625_s16 = scalar_lea.vmem %s262_s10, 32  ;;  %p1633_p3 = scmp.lt.s32.totalorder %s262_s10, %s262_s10 }
  0x6c   : > { %p1626_p6 = scmp.ne.s32.totalorder %s262_s10, %s1625_s16  ;;  %p1634_p5 = scmp.lt.s32.totalorder %s1625_s16, %s1625_s16 }
  0x6e   : > { %p1628_p8 = pnand %p1626_p6, %p1924_p13  ;;  %p1635_p7 = por %p1634_p5, %p1633_p3 }
  0x70   : > { %p1629_p0 = pneg %p1628_p8 }
  0x72   : > { %p1636_p10 = pnand %p1635_p7, %p1629_p0 }
  0x74   : > { %1639 = shalt.err (!%p1636_p10)
}
  0x75   : > { %1421 = dma.hbm_to_vmem [thread:$0]  (!%p1908_p11), %s2325_s4, 32, %s262_s10, [#allocation9]  }
  0x76   : > { %s40_s28 = sadd.s32 1, %s1788_s25  ;;  %s49_s27 = sadd.s32 1, %s1780_s23 }
  0x77   : > { %p42_p13 = scmp.ge.s32.totalorder %s40_s28, 2  ;;  %p56_p9 = scmp.ne.s32.totalorder %s1780_s23, %s1776_s22 }
  0x78   : > { %p57_p12 = scmp.eq.s32.totalorder %s1792_s26, 0  ;;  %p1437_p1 = scmp.lt.s32.totalorder %s1792_s26, 2 }
  0x79   : > { %s2360_s28 = smov (%p42_p13, %s40_s28), 0  ;;  %p2344_p4 = scmp.ne.s32.totalorder %s2336_s30, 0 }
  0x7a   : > { %p58_p2 = por %p57_p12, %p56_p9  ;;  %s44_s1 = ssub.s32 %s1788_s25, %s2360_s28 }
  0x7b   : > { %p2013_p6 = por %p2344_p4, %p56_p9  ;;  %s272_s12 = sand.u32 1, %s1780_s23  }
  0x7c   : > { %p47_p8 = scmp.eq.s32.totalorder %s44_s1, 0  ;;  %s1325_s10 = sshll.u32 %s272_s12, 4 }
  0x7d   : > { %s1384_s15 = sshll.u32 %s1788_s25, 8  ;;  %s276_s30 = scalar_lea.vmem [#allocation2], %s1325_s10 }
  0x7e   : > { %s2022_s17 = scalar_select %p47_p8, %s1780_s23, %s49_s27  }
  0x7f   : > { %s2027_s13 = scalar_lea.hbm %s2321_s0, %s1384_s15  ;;  %s285_s16 = sshll.u32 %s276_s30, 4  ;;  %s2035_s16 = int_to_ptr.vmem [resolvable:$true] %s285_s16 }
  0x80   : > { %p2031_p11 = pnand %p1437_p1, %p58_p2  ;;  %s2037_s19 = scalar_lea.sflag [#allocation3], %s272_s12 }
  0x81   : > { %s1640_s27 = scalar_lea.hbm %s2027_s13, 256  ;;  %s1645_s15 = scalar_lea.hbm %s2321_s0, 512 }
  0x82   : > { %p1641_p0 = scmp.ne.s32.totalorder %s2027_s13, %s1640_s27  ;;  %p1642_p3 = pneg %p2031_p11 }
  0x83   : > { %p1646_p10 = scmp.lt.u32.totalorder %s2027_s13, %s2321_s0  ;;  %p1647_p13 = scmp.lt.u32.totalorder %s1645_s15, %s1640_s27 }
  0x84   : > { %p1643_p5 = pnand %p1642_p3, %p1641_p0  ;;  %p1649_p12 = scmp.lt.u32.totalorder %s1640_s27, %s2027_s13 }
  0x85   : > { %p1648_p9 = por %p1647_p13, %p1646_p10 }
  0x86   : > { %p1644_p7 = pneg %p1643_p5 }
  0x87   : > { %p1650_p1 = por %p1649_p12, %p1648_p9 }
  0x89   : > { %p1651_p2 = pnand %p1650_p1, %p1644_p7 }
  0x8b   : > { %1654 = shalt.err (!%p1651_p2)
}
  0x8c   : > { %s1655_s12 = scalar_lea.vmem %s2035_s16, 256  ;;  %s1800_s30 = smov [#allocation2]  }
  0x8d   : > { %p1656_p4 = scmp.ne.s32.totalorder %s2035_s16, %s1655_s12  ;;  %s1660_s1 = sshll.u32 %s1800_s30, 4  ;;  %s1661_s1 = int_to_ptr.vmem [resolvable:$false] %s1660_s1 }
  0x8e   : > { %s1662_s10 = scalar_lea.vmem %s1661_s1, 512  ;;  %p1663_p5 = scmp.lt.s32.totalorder %s2035_s16, %s1661_s1 }
  0x8f   : > { %p1658_p8 = pnand %p1656_p4, %p1642_p3  ;;  %p1664_p10 = scmp.lt.s32.totalorder %s1662_s10, %s1655_s12 }
  0x91   : > { %p1659_p0 = pneg %p1658_p8  ;;  %p1665_p13 = por %p1664_p10, %p1663_p5 }
  0x93   : > { %p1666_p9 = pnand %p1665_p13, %p1659_p0 }
  0x95   : > { %1669 = shalt.err (!%p1666_p9)
}
  0x96   : > { %s2347_s27 = smov 128   ;;  %p2348_p3 = scmp.ne.s32.totalorder %s2340_s9, 0 }
  0x97   : > { %1425 = dma.hbm_to_vmem [thread:$0]  (!%p2031_p11), %s2027_s13, 256, %s2035_s16, %s2037_s19, %s2347_s27, %s2347_s27, %s1798_s18  }
  0x98   : > { %297 = sbr.rel (%p2348_p3) target bundleno = 610 (0x262), region = 40  ;;  %s2071_s15 = sand.u32 (!%p2348_p3), 1, %s1776_s22  }
  0x99   : > { %s1329_s11 = sshll.u32 (!%p2348_p3), %s2071_s15, 4  ;;  %s300_s20 = scalar_lea.sflag (!%p2348_p3), [#allocation3], %s2071_s15 }
  0x9a   : > { %s2075_s12 = scalar_lea.vmem (!%p2348_p3), [#allocation2], %s1329_s11  ;;  %p2349_p7 = scmp.ne.s32.totalorder (!%p2348_p3), %s2337_s7, 0 }
  0x9f   : > { %1751 = dma.done.wait (%p2349_p7), %s300_s20, 256  }
  0xa0   : > { %1753 = vsyncadd (%p2349_p7), %s300_s20, 4294967040  ;;  %p2350_p11 = scmp.ne.s32.totalorder %s2335_s29, 0 }
  0xa2   : > { %1755 = dma.done.wait (%p2350_p11), [#allocation6], 32  }
  0xa3   : > { %1757 = vsyncadd (%p2350_p11), [#allocation6], 4294967264 }
  0xa4   : > { %1759 = dma.done.wait (%p2350_p11), [#allocation9], 2080  }
  0xa5   : > { %1761 = vsyncadd (%p2350_p11), [#allocation9], 4294965216  ;;  %v1801_v0 = vmov 0   ;;  %v1504_v1 = vld [vmem:[#allocation8 + $0x4] ss:$8 sps:$4 sm:$0xff]   ;;  %v378_v20 = vlaneseq  ;;  %s1802_s29 = smov 32  }
  0xa6   : > { %500 = vmatprep.mubr.bf16.mxu0 %v1801_v0  ;;  %v1506_v2 = vld [vmem:[#allocation8] ss:$8 sps:$4 sm:$0xff]   ;;  %468 = vmatprep.subr.bf16.mxu0 %v1504_v1  ;;  %v1507_v3 = vld [vmem:[#allocation8 + $0x14] ss:$8 sps:$4 sm:$0xff]   ;;  %v1509_v4 = vld [vmem:[#allocation8 + $0x10] ss:$8 sps:$4 sm:$0xff]   ;;  %v2096_v42 = vpack.i.b16 %v1801_v0, %v1801_v0 }
  0xa7   : > { %469 = vmatpush1.bf16.msra.mxu0 %v1506_v2  ;;  %v1510_v5 = vld [vmem:[#allocation8 + $0x24] ss:$8 sps:$4 sm:$0xff]   ;;  %v1512_v6 = vld [vmem:[#allocation8 + $0x20] ss:$8 sps:$4 sm:$0xff]   ;;  %v1513_v7 = vld [vmem:[#allocation8 + $0x34] ss:$8 sps:$4 sm:$0xff]  }
  0xa8   : > { %470 = vmatprep.subr.bf16.mxu0 %v1507_v3  ;;  %v1515_v8 = vld [vmem:[#allocation8 + $0x30] ss:$8 sps:$4 sm:$0xff]   ;;  %v1516_v9 = vld [vmem:[#allocation8 + $0x44] ss:$8 sps:$4 sm:$0xff]   ;;  %v1518_v10 = vld [vmem:[#allocation8 + $0x40] ss:$8 sps:$4 sm:$0xff]  }
  0xa9   : > { %v1519_v11 = vld [vmem:[#allocation8 + $0x54] ss:$8 sps:$4 sm:$0xff]   ;;  %v1521_v12 = vld [vmem:[#allocation8 + $0x50] ss:$8 sps:$4 sm:$0xff]   ;;  %v1522_v13 = vld [vmem:[#allocation8 + $0x64] ss:$8 sps:$4 sm:$0xff]  }
  0xaa   : > { %v1524_v14 = vld [vmem:[#allocation8 + $0x60] ss:$8 sps:$4 sm:$0xff]   ;;  %v1525_v15 = vld [vmem:[#allocation8 + $0x74] ss:$8 sps:$4 sm:$0xff]   ;;  %v1527_v16 = vld [vmem:[#allocation8 + $0x70] ss:$8 sps:$4 sm:$0xff]  }
  0xab   : > { %471 = vmatpush1.bf16.msra.mxu0 %v1509_v4  ;;  %v357_v17 = vld [vmem:[%s2075_s12] sm:$0xff]  ;;  %v358_v18 = vld [vmem:[%s2075_s12 + $0x8] sm:$0xff]  ;;  %v379_v21 = vshrl.u32 %v378_v20, 7  ;;  %s1803_s7 = smov 96   ;;  %s1804_s9 = smov 64   ;;  %vm965_vm0 = vcmask 257024  }
  0xac   : > { %472 = vmatprep.subr.bf16.mxu0 %v1510_v5  ;;  %v359_v19 = vpack.c.bf16 %v358_v18, %v357_v17  ;;  %v376_v23 = vld [vmem:[#allocation10] sm:$0x3]  ;;  %v1805_v37 = vmov 1983009808   ;;  %v1806_v39 = vmov 1934713408  }
  0xad   : > { %v380_v22 = vsub.s32 0, %v379_v21  ;;  %v384_v24 = vsub.s32 1, %v379_v21  ;;  %v544_v38 = vunpack.c.l.s4 %v1805_v37  ;;  %v575_v40 = vunpack.c.l.s4 %v1806_v39  ;;  %s1334_s18 = sshll.u32 %s2071_s15, 5  ;;  %s1385_s13 = sshll.u32 %s1784_s24, 9 }
  0xae   : > { %s345_s16 = scalar_lea.vmem [#allocation11], %s1334_s18  ;;  %s2193_s1 = scalar_lea.hbm %s2326_s5, %s1385_s13 }
  0xaf   : > { %473 = vmatpush1.bf16.msra.mxu0 %v1512_v6  ;;  %v381_v25 = vrot.slane %v376_v23, %v380_v22  ;;  %v385_v27 = vrot.slane %v376_v23, %v384_v24  ;;  %v545_v41 = vunpack.c.0.s8 %v544_v38  ;;  %v576_v43 = vunpack.c.0.s8 %v575_v40  ;;  %s1139_s8 = sshll.u32 %s345_s16, 4  ;;  %s1119_s10 = scalar_lea.sflag [#allocation4], %s2071_s15  ;;  %s2197_s8 = int_to_ptr.vmem [resolvable:$true] %s1139_s8 }
  0xb0   : > { %474 = vmatprep.subr.bf16.mxu0 %v1513_v7  ;;  %s1670_s27 = scalar_lea.vmem %s2197_s8, 512  ;;  %s1807_s11 = smov [#allocation11]  }
  0xb1   : > { %v2098_v46 = vsub.s32 %v545_v41, %v379_v21  ;;  %v2101_v52 = vsub.s32 %v576_v43, %v379_v21  ;;  %p1671_p12 = scmp.ne.s32.totalorder %s2197_s8, %s1670_s27  ;;  %s1674_s20 = sshll.u32 %s1807_s11, 4  ;;  %s1675_s20 = int_to_ptr.vmem [resolvable:$false] %s1674_s20 }
  0xb2   : > { %s1676_s12 = scalar_lea.vmem %s1675_s20, 1024  ;;  %p1677_p4 = scmp.lt.s32.totalorder %s2197_s8, %s1675_s20 }
  0xb3   : > { %475 = vmatpush1.bf16.msra.mxu0 %v1515_v8  ;;  %p1672_p1 = pnand %p1671_p12, %p2013_p6  ;;  %p1678_p8 = scmp.lt.s32.totalorder %s1676_s12, %s1670_s27 }
  0xb4   : > { %476 = vmatprep.subr.bf16.mxu0 %v1516_v9 }
  0xb5   : > { %p1673_p2 = pneg %p1672_p1  ;;  %p1679_p0 = por %p1678_p8, %p1677_p4 }
  0xb7   : > { %477 = vmatpush1.bf16.msra.mxu0 %v1518_v10  ;;  %p1680_p5 = pnand %p1679_p0, %p1673_p2 }
  0xb8   : > { %478 = vmatprep.subr.bf16.mxu0 %v1519_v11 }
  0xbb   : > { %479 = vmatpush1.bf16.msra.mxu0 %v1521_v12 }
  0xbc   : > { %480 = vmatprep.subr.bf16.mxu0 %v1522_v13 }
  0xbf   : > { %481 = vmatpush1.bf16.msra.mxu0 %v1524_v14 }
  0xc0   : > { %482 = vmatprep.subr.bf16.mxu0 %v1525_v15 }
  0xc3   : > { %483 = vmatpush1.bf16.msra.mxu0 %v1527_v16 }
  0xc6   : > { %501 = vmatmul.mubr.bf16.vlgmr.msra.gmra.mrb[0].mxu0 %v359_v19 }
 0x199   : > { %v502_v26 = vpop.f32.mrb[0].mxu0 }
 0x19a   : > { %v504_v28 = vpop.f32.mrb[1].mxu0  ;;  %v503_v30 = vadd.f32 %v502_v26, %v381_v25 }
 0x19b   : > { %v506_v29 = vpop.f32.mrb[2].mxu0  ;;  %v505_v33 = vadd.f32 %v504_v28, %v385_v27 }
 0x19c   : > { %v507_v31 = vadd.f32 %v506_v29, %v381_v25  ;;  %v508_v32 = vpop.f32.mrb[3].mxu0 }
 0x19d   : > { %v509_v34 = vadd.f32 %v508_v32, %v385_v27 }
 0x19e   : > { %v511_v35 = vpack.c.bf16 %v507_v31, %v503_v30 }
 0x19f   : > { %v512_v36 = vpack.c.bf16 %v509_v34, %v505_v33 }
 0x1a0   : > { %518 = vrot.lane.b32.xlu1 %v511_v35, %s1802_s29  ;;  %514 = vrot.lane.b32.xlu0 %v511_v35, %s1803_s7  ;;  %v524_v48 = vshrl.u32 %v511_v35, 16 }
 0x1a1   : > { %v685_v53 = vshrl.u32 %v512_v36, 16 }
 0x1a4   : > { %675 = vrot.lane.b32.xlu1 %v512_v36, %s1803_s7  ;;  %516 = vrot.lane.b32.xlu0 %v511_v35, %s1804_s9 }
 0x1a8   : > { %679 = vrot.lane.b32.xlu1 %v512_v36, %s1802_s29  ;;  %677 = vrot.lane.b32.xlu0 %v512_v36, %s1804_s9 }
 0x212   : > { %v519_v44 = vpop.permute.xlu1 %518  ;;  %v515_v45 = vpop.permute.xlu0 %514 }
 0x213   : > { %v522_v47 = vpack.i.b16 %v515_v45, %v511_v35  ;;  %v525_v49 = vshrl.u32 %v515_v45, 16  ;;  %v533_v56 = vshrl.u32 %v519_v44, 16 }
 0x215   : > { %v526_v50 = vpack.i.b16 %v525_v49, %v524_v48  ;;  %v542_v51 = vcombine.high %v522_v47, %v2096_v42  ;;  %v549_v57 = vrot.slane %v522_v47, %v2098_v46 }
 0x216   : > { %v676_v54 = vpop.permute.xlu1 %675  ;;  %v517_v55 = vpop.permute.xlu0 %516 }
 0x217   : > { %v608_v58 = vcombine.high %v526_v50, %v2096_v42  ;;  %v683_v59 = vpack.i.b16 %v676_v54, %v512_v36  ;;  %v556_v60 = vrot.slane %v542_v51, %v2098_v46  ;;  %v686_v61 = vshrl.u32 %v676_v54, 16 }
 0x218   : > { %v530_v62 = vpack.i.b16 %v519_v44, %v517_v55  ;;  %v532_v63 = vshrl.u32 %v517_v55, 16  ;;  %v615_v0 = vrot.slane %v526_v50, %v2098_v46 }
 0x219   : > { %v622_v1 = vrot.slane %v608_v58, %v2098_v46  ;;  %v697_v2 = vcombine.high %v683_v59, %v2096_v42  ;;  %v2110_v3 = vrot.slane %v683_v59, %v2098_v46  ;;  %v687_v4 = vpack.i.b16 %v686_v61, %v685_v53 }
 0x21a   : > { %v534_v5 = vpack.i.b16 %v533_v56, %v532_v63  ;;  %v557_v6 = vcombine.high %v530_v62, %v2096_v42  ;;  %v564_v7 = vrot.slane %v530_v62, %v2098_v46  ;;  %v680_v8 = vpop.permute.xlu1 %679  ;;  %v678_v9 = vpop.permute.xlu0 %677 }
 0x21b   : > { %v2115_v10 = vrot.slane %v697_v2, %v2098_v46  ;;  %v694_v11 = vshrl.u32 %v680_v8, 16  ;;  %v691_v12 = vpack.i.b16 %v680_v8, %v678_v9  ;;  %v693_v13 = vshrl.u32 %v678_v9, 16 }
 0x21c   : > { %v763_v14 = vcombine.high %v687_v4, %v2096_v42  ;;  %v2119_v15 = vrot.slane %v687_v4, %v2098_v46  ;;  %v571_v16 = vrot.slane %v557_v6, %v2098_v46  ;;  %v572_v17 = vcombine.low %v549_v57, %v564_v7 }
 0x21d   : > { %v573_v18 = vcombine.high %v549_v57, %v564_v7  ;;  %v623_v19 = vcombine.high %v534_v5, %v2096_v42  ;;  %v630_v20 = vrot.slane %v534_v5, %v2098_v46  ;;  %v695_v21 = vpack.i.b16 %v694_v11, %v693_v13 }
 0x21e   : > { %v2125_v22 = vrot.slane %v763_v14, %v2098_v46  ;;  %v580_v23 = vrot.slane %v572_v17, %v2101_v52  ;;  %v588_v24 = vcombine.low %v556_v60, %v571_v16  ;;  %v589_v25 = vcombine.high %v556_v60, %v571_v16 }
 0x21f   : > { %v587_v26 = vrot.slane %v573_v18, %v2101_v52  ;;  %v637_v27 = vrot.slane %v623_v19, %v2098_v46  ;;  %v638_v28 = vcombine.low %v615_v0, %v630_v20  ;;  %v639_v29 = vcombine.high %v615_v0, %v630_v20 }
 0x220   : > { %v596_v30 = vrot.slane %v588_v24, %v2101_v52  ;;  %v603_v31 = vrot.slane %v589_v25, %v2101_v52  ;;  %v712_v32 = vcombine.high %v691_v12, %v2096_v42  ;;  %v719_v33 = vrot.slane %v691_v12, %v2098_v46 }
 0x221   : > { %v646_v34 = vrot.slane %v638_v28, %v2101_v52  ;;  %v653_v35 = vrot.slane %v639_v29, %v2101_v52  ;;  %v654_v36 = vcombine.low %v622_v1, %v637_v27  ;;  %v655_v37 = vcombine.high %v622_v1, %v637_v27 }
 0x222   : > { %v829_v38 = vcombine.low %v580_v23, %v587_v26  ;;  %v1352_v39 = vcombine.high %v580_v23, %v587_v26  ;;  %v845_v40 = vcombine.low %v596_v30, %v603_v31  ;;  %v1353_v41 = vcombine.high %v596_v30, %v603_v31 }
 0x223   : > { %v662_v43 = vrot.slane %v654_v36, %v2101_v52  ;;  %v669_v44 = vrot.slane %v655_v37, %v2101_v52  ;;  %v879_v45 = vcombine.low %v646_v34, %v653_v35  ;;  %v1354_v47 = vcombine.high %v646_v34, %v653_v35 }
 0x224   : > { %v836_v48 = vrot.slane %v829_v38, %v2098_v46  ;;  %v844_v49 = vrot.slane %v1352_v39, %v2098_v46  ;;  %v852_v50 = vrot.slane %v845_v40, %v2098_v46  ;;  %v860_v51 = vrot.slane %v1353_v41, %v2098_v46 }
 0x225   : > { %v886_v53 = vrot.slane %v879_v45, %v2098_v46  ;;  %v894_v54 = vrot.slane %v1354_v47, %v2098_v46  ;;  %v895_v55 = vcombine.low %v662_v43, %v669_v44  ;;  %v1355_v56 = vcombine.high %v662_v43, %v669_v44 }
 0x226   : > { %v861_v57 = vcombine.low %v836_v48, %v844_v49  ;;  %v869_v58 = vcombine.low %v852_v50, %v860_v51  ;;  %v726_v59 = vrot.slane %v712_v32, %v2098_v46  ;;  %v727_v60 = vcombine.low %v2110_v3, %v719_v33 }
 0x227   : > { %v902_v61 = vrot.slane %v895_v55, %v2098_v46  ;;  %v910_v62 = vrot.slane %v1355_v56, %v2098_v46  ;;  %v911_v63 = vcombine.low %v886_v53, %v894_v54  ;;  %v728_v0 = vcombine.high %v2110_v3, %v719_v33 }
 0x228   : > { %v868_v1 = vrot.slane %v861_v57, %v2101_v52  ;;  %v876_v2 = vrot.slane %v869_v58, %v2101_v52  ;;  %v735_v4 = vrot.slane %v727_v60, %v2101_v52  ;;  %v743_v5 = vcombine.low %v2115_v10, %v726_v59 }
 0x229   : > { %v918_v6 = vrot.slane %v911_v63, %v2101_v52  ;;  %v919_v7 = vcombine.low %v902_v61, %v910_v62  ;;  %v742_v8 = vrot.slane %v728_v0, %v2101_v52  ;;  %v744_v9 = vcombine.high %v2115_v10, %v726_v59 }
 0x22a   : > { %v877_v11 = vcombine.low %v868_v1, %v876_v2  ;;  %v878_v12 = vcombine.high %v868_v1, %v876_v2  ;;  %v751_v3 = vrot.slane %v743_v5, %v2101_v52  ;;  %v778_v13 = vcombine.high %v695_v21, %v2096_v42 }
 0x22b   : > { %v926_v14 = vrot.slane %v919_v7, %v2101_v52  ;;  %v758_v16 = vrot.slane %v744_v9, %v2101_v52  ;;  %v785_v17 = vrot.slane %v695_v21, %v2098_v46  ;;  %v974_v18 = vcombine.low %v735_v4, %v742_v8 }
 0x22c   : > { %v932_v19 = vshrl.u32 %v877_v11, 16  ;;  %v938_v20 = vshrl.u32 %v878_v12, 16  ;;  %v792_v23 = vrot.slane %v778_v13, %v2098_v46  ;;  %v1364_v10 = vcombine.high %v735_v4, %v742_v8 }
 0x22d   : > { %v927_v24 = vcombine.low %v918_v6, %v926_v14  ;;  %v928_v25 = vcombine.high %v918_v6, %v926_v14  ;;  %v793_v26 = vcombine.low %v2119_v15, %v785_v17  ;;  %v794_v42 = vcombine.high %v2119_v15, %v785_v17 }
 0x22e   : > { %v809_v27 = vcombine.low %v2125_v22, %v792_v23  ;;  %v810_v28 = vcombine.high %v2125_v22, %v792_v23  ;;  %v2168_v21 = vrot.slane %v974_v18, %v2098_v46  ;;  %v2171_v29 = vrot.slane %v1364_v10, %v2098_v46 }
 0x22f   : > { %v931_v30 = vpack.i.b16 %v927_v24, %v877_v11  ;;  %v933_v31 = vshrl.u32 %v927_v24, 16  ;;  %v937_v32 = vpack.i.b16 %v928_v25, %v878_v12  ;;  %v939_v33 = vshrl.u32 %v928_v25, 16 }
 0x230   : > { %v2175_v34 = vrot.slane %v793_v26, %v2101_v52  ;;  %v2178_v15 = vrot.slane %v794_v42, %v2101_v52  ;;  %v2181_v22 = vrot.slane %v809_v27, %v2101_v52  ;;  %v2184_v35 = vrot.slane %v810_v28, %v2101_v52 }
 0x231   : > { %v934_v36 = vpack.i.b16 %v933_v31, %v932_v19  ;;  %v940_v37 = vpack.i.b16 %v939_v33, %v938_v20  ;;  %v1356_v38 = vcombine.low %v931_v30, %v931_v30  ;;  %v1357_v39 = vcombine.high %v931_v30, %v931_v30 }
 0x232   : > { %v1360_v40 = vcombine.low %v937_v32, %v937_v32  ;;  %v1361_v41 = vcombine.high %v937_v32, %v937_v32  ;;  %v990_v43 = vcombine.low %v751_v3, %v758_v16  ;;  %v1365_v44 = vcombine.high %v751_v3, %v758_v16 }
 0x233   : > { %v1358_v45 = vcombine.low %v934_v36, %v934_v36  ;;  %v1359_v47 = vcombine.high %v934_v36, %v934_v36  ;;  %v1362_v48 = vcombine.low %v940_v37, %v940_v37  ;;  %v1363_v49 = vcombine.high %v940_v37, %v940_v37  ;;  %966 = vst.msk [vmem:[%s345_s16] sm:$0xf] %vm965_vm0, %v1356_v38 }
 0x234   : > { %967 = vst.msk [vmem:[%s345_s16 + $0x4] sm:$0xf] %vm965_vm0, %v1357_v39  ;;  %970 = vst.msk [vmem:[%s345_s16 + $0x10] sm:$0xf] %vm965_vm0, %v1360_v40  ;;  %v997_v50 = vrot.slane %v990_v43, %v2098_v46  ;;  %v1005_v51 = vrot.slane %v1365_v44, %v2098_v46  ;;  %v1006_v53 = vcombine.low %v2168_v21, %v2171_v29 }
 0x235   : > { %971 = vst.msk [vmem:[%s345_s16 + $0x14] sm:$0xf] %vm965_vm0, %v1361_v41  ;;  %v1024_v54 = vcombine.low %v2175_v34, %v2178_v15  ;;  %968 = vst.msk [vmem:[%s345_s16 + $0x8] sm:$0xf] %vm965_vm0, %v1358_v45  ;;  %v1366_v55 = vcombine.high %v2175_v34, %v2178_v15  ;;  %v1040_v56 = vcombine.low %v2181_v22, %v2184_v35 }
 0x236   : > { %969 = vst.msk [vmem:[%s345_s16 + $0xc] sm:$0xf] %vm965_vm0, %v1359_v47  ;;  %972 = vst.msk [vmem:[%s345_s16 + $0x18] sm:$0xf] %vm965_vm0, %v1362_v48  ;;  %v1367_v57 = vcombine.high %v2181_v22, %v2184_v35  ;;  %v1014_v58 = vcombine.low %v997_v50, %v1005_v51 }
 0x237   : > { %973 = vst.msk [vmem:[%s345_s16 + $0x1c] sm:$0xf] %vm965_vm0, %v1363_v49  ;;  %v1031_v59 = vrot.slane %v1024_v54, %v2098_v46 }
 0x238   : > { %1683 = shalt.err (!%p1680_p5)
}
 0x239   : > { %s1684_s29 = scalar_lea.hbm %s2193_s1, 512  ;;  %s1688_s19 = scalar_lea.hbm %s2326_s5, 1024 }
 0x23a   : > { %p1685_p10 = scmp.ne.s32.totalorder %s2193_s1, %s1684_s29  ;;  %p1689_p3 = scmp.lt.u32.totalorder %s2193_s1, %s2326_s5 }
 0x23b   : > { %p1690_p7 = scmp.lt.u32.totalorder %s1688_s19, %s1684_s29  ;;  %p1692_p12 = scmp.lt.u32.totalorder %s1684_s29, %s2193_s1 }
 0x23c   : > { %p1686_p13 = pnand %p1685_p10, %p2013_p6 }
 0x23d   : > { %p1691_p11 = por %p1690_p7, %p1689_p3 }
 0x23e   : > { %p1687_p9 = pneg %p1686_p13 }
 0x23f   : > { %p1693_p1 = por %p1692_p12, %p1691_p11 }
 0x241   : > { %p1694_p2 = pnand %p1693_p1, %p1687_p9 }
 0x243   : > { %1697 = shalt.err (!%p1694_p2)
}
 0x244   : > { %s1808_s27 = smov 4   ;;  %v1039_v60 = vrot.slane %v1366_v55, %v2098_v46  ;;  %v1047_v61 = vrot.slane %v1040_v56, %v2098_v46  ;;  %v1055_v62 = vrot.slane %v1367_v57, %v2098_v46  ;;  %v1013_v63 = vrot.slane %v1006_v53, %v2101_v52  ;;  %s2261_s20 = scalar_lea.hbm %s2327_s6, %s1385_s13 }
 0x245   : > { %1405 = dma.vmem_to_hbm [thread:$0]  (%p2013_p6), %s2197_s8, 512, %s2193_s1, %s1119_s10, %s1804_s9, %s1804_s9, %s1808_s27   ;;  %v1021_v0 = vrot.slane %v1014_v58, %v2101_v52 }
 0x246   : > { %v1056_v1 = vcombine.low %v1031_v59, %v1039_v60  ;;  %v1064_v2 = vcombine.low %v1047_v61, %v1055_v62  ;;  %s352_s8 = scalar_lea.vmem [#allocation12], %s1334_s18  ;;  %s1124_s24 = scalar_lea.sflag [#allocation13], %s2071_s15 }
 0x247   : > { %v1022_v4 = vcombine.low %v1013_v63, %v1021_v0  ;;  %v1023_v5 = vcombine.high %v1013_v63, %v1021_v0  ;;  %s1157_s1 = sshll.u32 %s352_s8, 4  ;;  %s1809_s12 = smov [#allocation12]   ;;  %s2263_s1 = int_to_ptr.vmem [resolvable:$true] %s1157_s1 }
 0x248   : > { %v1063_v6 = vrot.slane %v1056_v1, %v2101_v52  ;;  %v1071_v7 = vrot.slane %v1064_v2, %v2101_v52  ;;  %s1698_s13 = scalar_lea.vmem %s2263_s1, 512  ;;  %s1702_s29 = sshll.u32 %s1809_s12, 4  ;;  %s1703_s29 = int_to_ptr.vmem [resolvable:$false] %s1702_s29 }
 0x249   : > { %v1077_v11 = vshrl.u32 %v1022_v4, 16  ;;  %v1083_v12 = vshrl.u32 %v1023_v5, 16  ;;  %p1699_p4 = scmp.ne.s32.totalorder %s2263_s1, %s1698_s13  ;;  %s1704_s7 = scalar_lea.vmem %s1703_s29, 1024 }
 0x24a   : > { %v1072_v8 = vcombine.low %v1063_v6, %v1071_v7  ;;  %v1073_v9 = vcombine.high %v1063_v6, %v1071_v7  ;;  %p1705_p5 = scmp.lt.s32.totalorder %s2263_s1, %s1703_s29  ;;  %p1706_p10 = scmp.lt.s32.totalorder %s1704_s7, %s1698_s13 }
 0x24b   : > { %p1700_p8 = pnand %p1699_p4, %p2013_p6 }
 0x24c   : > { %v1076_v3 = vpack.i.b16 %v1072_v8, %v1022_v4  ;;  %v1078_v13 = vshrl.u32 %v1072_v8, 16  ;;  %v1082_v46 = vpack.i.b16 %v1073_v9, %v1023_v5  ;;  %v1084_v14 = vshrl.u32 %v1073_v9, 16  ;;  %p1707_p13 = por %p1706_p10, %p1705_p5 }
 0x24d   : > { %p1701_p0 = pneg %p1700_p8 }
 0x24e   : > { %v1079_v16 = vpack.i.b16 %v1078_v13, %v1077_v11  ;;  %v1085_v17 = vpack.i.b16 %v1084_v14, %v1083_v12  ;;  %v1368_v18 = vcombine.low %v1076_v3, %v1076_v3  ;;  %v1369_v19 = vcombine.high %v1076_v3, %v1076_v3 }
 0x24f   : > { %v1372_v20 = vcombine.low %v1082_v46, %v1082_v46  ;;  %v1373_v23 = vcombine.high %v1082_v46, %v1082_v46  ;;  %p1708_p9 = pnand %p1707_p13, %p1701_p0 }
 0x250   : > { %v1370_v52 = vcombine.low %v1079_v16, %v1079_v16  ;;  %v1371_v10 = vcombine.high %v1079_v16, %v1079_v16  ;;  %v1374_v24 = vcombine.low %v1085_v17, %v1085_v17  ;;  %v1375_v25 = vcombine.high %v1085_v17, %v1085_v17  ;;  %1110 = vst.msk [vmem:[%s352_s8] sm:$0xf] %vm965_vm0, %v1368_v18 }
 0x251   : > { %1111 = vst.msk [vmem:[%s352_s8 + $0x4] sm:$0xf] %vm965_vm0, %v1369_v19  ;;  %1114 = vst.msk [vmem:[%s352_s8 + $0x10] sm:$0xf] %vm965_vm0, %v1372_v20 }
 0x252   : > { %1115 = vst.msk [vmem:[%s352_s8 + $0x14] sm:$0xf] %vm965_vm0, %v1373_v23  ;;  %1112 = vst.msk [vmem:[%s352_s8 + $0x8] sm:$0xf] %vm965_vm0, %v1370_v52 }
 0x253   : > { %1113 = vst.msk [vmem:[%s352_s8 + $0xc] sm:$0xf] %vm965_vm0, %v1371_v10  ;;  %1116 = vst.msk [vmem:[%s352_s8 + $0x18] sm:$0xf] %vm965_vm0, %v1374_v24 }
 0x254   : > { %1117 = vst.msk [vmem:[%s352_s8 + $0x1c] sm:$0xf] %vm965_vm0, %v1375_v25 }
 0x255   : > { %1711 = shalt.err (!%p1708_p9)
}
 0x256   : > { %s1712_s16 = scalar_lea.hbm %s2261_s20, 512  ;;  %s1716_s11 = scalar_lea.hbm %s2327_s6, 1024 }
 0x257   : > { %p1713_p3 = scmp.ne.s32.totalorder %s2261_s20, %s1712_s16  ;;  %p1717_p12 = scmp.lt.u32.totalorder %s2261_s20, %s2327_s6 }
 0x258   : > { %p1718_p1 = scmp.lt.u32.totalorder %s1716_s11, %s1712_s16  ;;  %p1720_p4 = scmp.lt.u32.totalorder %s1712_s16, %s2261_s20 }
 0x259   : > { %p1714_p7 = pnand %p1713_p3, %p2013_p6 }
 0x25a   : > { %p1719_p2 = por %p1718_p1, %p1717_p12 }
 0x25b   : > { %p1715_p11 = pneg %p1714_p7 }
 0x25c   : > { %p1721_p8 = por %p1720_p4, %p1719_p2 }
 0x25e   : > { %p1722_p0 = pnand %p1721_p8, %p1715_p11 }
 0x260   : > { %1725 = shalt.err (!%p1722_p0)
}
 0x261   : > { %1406 = dma.vmem_to_hbm [thread:$0]  (%p2013_p6), %s2263_s1, 512, %s2261_s20, %s1124_s24, %s1804_s9, %s1804_s9, %s1808_s27  }
 0x262 PF: > { %s2351_s18 = sld [smem:[#allocation19_spill]]  ;;  %s1172_s13 = sand.u32 1, %s1772_s21  }
 0x263   : > { %p2353_p10 = scmp.ge.s32.totalorder %s1792_s26, 2  ;;  %s1173_s12 = scalar_lea.sflag [#allocation4], %s1172_s13 }
 0x268   : > { %p2352_p5 = scmp.ne.s32.totalorder %s2351_s18, 0 }
 0x26a   : > { %p1427_p13 = pnand %p2353_p10, %p2352_p5 }
 0x26c   : > { %1763 = dma.done.wait (!%p1427_p13), %s1173_s12, 512  }
 0x26d   : > { %1765 = vsyncadd (!%p1427_p13), %s1173_s12, 4294966784  ;;  %s1182_s14 = scalar_lea.sflag [#allocation13], %s1172_s13 }
 0x26e   : > { %1767 = dma.done.wait (!%p1427_p13), %s1182_s14, 512  }
 0x26f   : > { %1769 = vsyncadd (!%p1427_p13), %s1182_s14, 4294966784  ;;  %s28_s26 = sadd.s32 1, %s1792_s26   ;;  %s2354_s21 = smov %s1776_s22 }
 0x270   : > { %p25_p9 = scmp.ge.s32.totalorder %s28_s26, 4   ;;  %s2355_s22 = smov %s1780_s23 }
 0x271   : > { %s2356_s23 = smov %s2022_s17  ;;  %s2357_s24 = smov %s1788_s25 }
 0x272   : > { %s2358_s25 = smov %s2360_s28  ;;  %27 = sbr.rel (!%p25_p9) target bundleno = 12 (0xc), region = 118 }
 0x279   :  { %1187 = vsyncpa [#allocation3], 1 }
 0x27a   :  { %1189 = vsyncpa [#allocation3 + $0x1], 1 }
 0x27b   :  { %1190 = vsyncpa [#allocation6], 1 }
 0x27c   :  { %1191 = vsyncpa [#allocation9], 1 }
 0x27d   :  { %1192 = vsyncpa [#allocation4], 1 }
 0x27e   :  { %1194 = vsyncpa [#allocation4 + $0x1], 1 }
 0x27f   :  { %1195 = vsyncpa [#allocation13], 1 }
 0x280   :  { %1197 = vsyncpa [#allocation13 + $0x1], 1 }

// kernel: _lambda_.11
= control target key start
LH: loop header
LB: loop body
LE: loop exit
PB: predicated region body
PF: predicated region fallthrough
CT: control target
= control target key end

     0   :  { %s2342_s0 = inlined_call_operand.hbm [shape: f32[2,16,128], index: 0, kind: input, shape index: {}]   ;;  %s2343_s1 = inlined_call_operand.hbm [shape: f32[1,128], index: 1, kind: input, shape index: {}]   ;;  %s2344_s2 = inlined_call_operand.hbm [shape: f32[1,128], index: 2, kind: input, shape index: {}]   ;;  %s2345_s3 = inlined_call_operand.hbm [shape: bf16[128,256], index: 3, kind: input, shape index: {}]   ;;  %s2346_s4 = inlined_call_operand.hbm [shape: f32[1,256], index: 4, kind: input, shape index: {}]   ;;  %s2347_s5 = inlined_call_operand.hbm [shape: bf16[2,4,16,32], index: 5, kind: output, shape index: {0}]   ;;  %s2348_s6 = inlined_call_operand.hbm [shape: bf16[2,4,16,32], index: 6, kind: output, shape index: {1}]  }
   0x1   :  { %2355 = sst [smem:[#allocation20_spill]] %s2343_s1 }
   0x2   :  { %12 = vsyncpa [#allocation3], 0 }
   0x3   :  { %14 = vsyncpa [#allocation3 + $0x1], 0 }
   0x4   :  { %15 = vsyncpa [#allocation6], 0 }
   0x5   :  { %16 = vsyncpa [#allocation9], 0 }
   0x6   :  { %17 = vsyncpa [#allocation4], 0 }
   0x7   :  { %19 = vsyncpa [#allocation4 + $0x1], 0 }
   0x8   :  { %20 = vsyncpa [#allocation13], 0 }
   0x9   :  { %22 = vsyncpa [#allocation13 + $0x1], 0  ;;  %s1892_s21 = smov 0   ;;  %s1894_s22 = smov 0  }
   0xa   :  { %s1896_s23 = smov 0   ;;  %s1898_s24 = smov 0  }
   0xb   :  { %s1900_s25 = smov 0   ;;  %s1902_s26 = smov 0  }
   0xc LB: > { %s1358_s27 = sadd.s32 4294967295, %s1839_s26   ;;  %s1359_s28 = sadd.s32 4294967294, %s1839_s26   ;;  %s1839_s26 = sphi %s1902_s26, %s28_s26   ;;  %s1835_s25 = sphi %s1900_s25, %s2379_s25   ;;  %s1831_s24 = sphi %s1898_s24, %s2378_s24   ;;  %s1827_s23 = sphi %s1896_s23, %s2377_s23   ;;  %s1823_s22 = sphi %s1894_s22, %s2376_s22   ;;  %s1819_s21 = sphi %s1892_s21, %s2375_s21  }
   0xd   : > { %p62_p0 = scmp.ne.s32.totalorder %s1823_s22, %s1819_s21  ;;  %p1926_p1 = scmp.eq.s32.totalorder %s1358_s27, 0 }
   0xe   : > { %p1930_p2 = scmp.eq.s32.totalorder %s1358_s27, 1  ;;  %p178_p3 = scmp.eq.s32.totalorder %s1359_s28, 1 }
   0xf   : > { %s2356_s29 = scalar_select %p1926_p1, 1, 0 }
  0x10   : > { %s2357_s30 = scalar_select %p1930_p2, 1, 0 }
  0x11   : > { %p1936_p4 = por %p1926_p1, %p62_p0  ;;  %p1360_p5 = scmp.ge.s32.totalorder %s1839_s26, 1 }
  0x12   : > { %p1941_p6 = por %p178_p3, %p62_p0  ;;  %p213_p7 = scmp.lt.s32.totalorder %s1839_s26, 3 }
  0x13   : > { %s2358_s7 = scalar_select %p1936_p4, 1, 0 }
  0x14   : > { %s2359_s8 = scalar_select %p1941_p6, 1, 0 }
  0x15   : > { %p1946_p8 = pnand %p1360_p5, %p213_p7  ;;  %s1841_s10 = smov [#allocation5]  }
  0x16   : > { %2360 = sst [smem:[#allocation19_spill]] %s2359_s8  ;;  %s226_s11 = sshll.u32 %s1841_s10, 4  ;;  %s227_s11 = int_to_ptr.vmem [resolvable:$true] %s226_s11 }
  0x17   : > { %s2361_s9 = scalar_select %p1946_p8, 1, 0 }
  0x18   : > { %p1452_p10 = pneg %p1946_p8  ;;  %s1842_s12 = smov [#allocation8]  }
  0x19   : > { %s247_s13 = sshll.u32 %s1842_s12, 4  ;;  %s1843_s15 = smov [#allocation7]   ;;  %s1959_s13 = int_to_ptr.vmem [resolvable:$true] %s247_s13 }
  0x1a   : > { %p1955_p11 = pnand %p1452_p10, %p1926_p1  ;;  %s1961_s16 = sshll.u32 %s1843_s15, 4  ;;  %s238_s16 = int_to_ptr.vmem [resolvable:$true] %s1961_s16 }
  0x1b   : > { %s2363_s1 = sld [smem:[#allocation20_spill]] }
  0x1c   : > { %p1971_p13 = pneg %p1955_p11 }
  0x21   : > { %s1575_s19 = scalar_lea.hbm %s2363_s1, 16 }
  0x22   : > { %p1576_p12 = scmp.ne.s32.totalorder %s2363_s1, %s1575_s19  ;;  %p1582_p5 = scmp.lt.u32.totalorder %s1575_s19, %s2363_s1 }
  0x24   : > { %p1578_p0 = pnand %p1971_p13, %p1576_p12 }
  0x26   : > { %p1579_p3 = pneg %p1578_p0 }
  0x28   : > { %p1584_p7 = pnand %p1582_p5, %p1579_p3 }
  0x2a   : > { %1587 = shalt.err (!%p1584_p7)
}
  0x2b   : > { %s1588_s15 = scalar_lea.vmem %s227_s11, 16  ;;  %s1595_s17 = scalar_lea.vmem %s227_s11, 32 }
  0x2c   : > { %p1589_p10 = scmp.ne.s32.totalorder %s227_s11, %s1588_s15  ;;  %p1596_p1 = scmp.lt.s32.totalorder %s227_s11, %s227_s11 }
  0x2d   : > { %p1597_p4 = scmp.lt.s32.totalorder %s1595_s17, %s1588_s15 }
  0x2e   : > { %p1591_p9 = pnand %p1589_p10, %p1971_p13 }
  0x2f   : > { %p1598_p8 = por %p1597_p4, %p1596_p1 }
  0x30   : > { %p1592_p6 = pneg %p1591_p9 }
  0x32   : > { %p1599_p2 = pnand %p1598_p8, %p1592_p6 }
  0x34   : > { %1602 = shalt.err (!%p1599_p2)
}
  0x35   : > { %1455 = dma.hbm_to_vmem [thread:$0]  (!%p1955_p11), %s2363_s1, 16, %s227_s11, [#allocation6]  }
  0x36   : > { %s1603_s10 = scalar_lea.hbm %s2345_s3, 2048 }
  0x37   : > { %p1604_p9 = scmp.ne.s32.totalorder %s2345_s3, %s1603_s10  ;;  %p1610_p2 = scmp.lt.u32.totalorder %s1603_s10, %s2345_s3 }
  0x39   : > { %p1606_p12 = pnand %p1604_p9, %p1971_p13 }
  0x3b   : > { %p1607_p1 = pneg %p1606_p12 }
  0x3d   : > { %p1612_p4 = pnand %p1610_p2, %p1607_p1 }
  0x3f   : > { %1615 = shalt.err (!%p1612_p4)
}
  0x40   : > { %s1616_s11 = scalar_lea.vmem %s1959_s13, 2048  ;;  %p1624_p3 = scmp.lt.s32.totalorder %s1959_s13, %s1959_s13 }
  0x41   : > { %p1617_p6 = scmp.ne.s32.totalorder %s1959_s13, %s1616_s11  ;;  %p1625_p5 = scmp.lt.s32.totalorder %s1616_s11, %s1616_s11 }
  0x43   : > { %p1619_p8 = pnand %p1617_p6, %p1971_p13  ;;  %p1626_p7 = por %p1625_p5, %p1624_p3 }
  0x45   : > { %p1620_p0 = pneg %p1619_p8 }
  0x47   : > { %p1627_p10 = pnand %p1626_p7, %p1620_p0 }
  0x49   : > { %1630 = shalt.err (!%p1627_p10)
}
  0x4a   : > { %s2354_s8 = smov 128   ;;  %s1845_s18 = smov 8  }
  0x4b   : > { %1461 = dma.hbm_to_vmem [thread:$0]  (!%p1955_p11), %s2345_s3, 2048, %s1959_s13, [#allocation9], %s2354_s8, %s2354_s8, %s1845_s18  }
  0x4c   : > { %s1631_s12 = scalar_lea.hbm %s2344_s2, 16 }
  0x4d   : > { %p1632_p9 = scmp.ne.s32.totalorder %s2344_s2, %s1631_s12  ;;  %p1638_p2 = scmp.lt.u32.totalorder %s1631_s12, %s2344_s2 }
  0x4f   : > { %p1634_p12 = pnand %p1632_p9, %p1971_p13 }
  0x51   : > { %p1635_p1 = pneg %p1634_p12 }
  0x53   : > { %p1640_p4 = pnand %p1638_p2, %p1635_p1 }
  0x55   : > { %1643 = shalt.err (!%p1640_p4)
}
  0x56   : > { %s1644_s20 = scalar_lea.vmem %s238_s16, 16  ;;  %s1651_s13 = scalar_lea.vmem %s238_s16, 32 }
  0x57   : > { %p1645_p6 = scmp.ne.s32.totalorder %s238_s16, %s1644_s20  ;;  %p1652_p3 = scmp.lt.s32.totalorder %s238_s16, %s238_s16 }
  0x58   : > { %p1653_p5 = scmp.lt.s32.totalorder %s1651_s13, %s1644_s20 }
  0x59   : > { %p1647_p8 = pnand %p1645_p6, %p1971_p13 }
  0x5a   : > { %p1654_p7 = por %p1653_p5, %p1652_p3 }
  0x5b   : > { %p1648_p0 = pneg %p1647_p8 }
  0x5d   : > { %p1655_p10 = pnand %p1654_p7, %p1648_p0 }
  0x5f   : > { %1658 = shalt.err (!%p1655_p10)
}
  0x60   : > { %1458 = dma.hbm_to_vmem [thread:$0]  (!%p1955_p11), %s2344_s2, 16, %s238_s16, [#allocation6]  }
  0x61   : > { %s1846_s1 = smov [#allocation10]   ;;  %s1659_s17 = scalar_lea.hbm %s2346_s4, 32 }
  0x62   : > { %s261_s10 = sshll.u32 %s1846_s1, 4  ;;  %p1660_p9 = scmp.ne.s32.totalorder %s2346_s4, %s1659_s17  ;;  %s262_s10 = int_to_ptr.vmem [resolvable:$true] %s261_s10 }
  0x63   : > { %p1666_p2 = scmp.lt.u32.totalorder %s1659_s17, %s2346_s4 }
  0x64   : > { %p1662_p12 = pnand %p1660_p9, %p1971_p13 }
  0x66   : > { %p1663_p1 = pneg %p1662_p12 }
  0x68   : > { %p1668_p4 = pnand %p1666_p2, %p1663_p1 }
  0x6a   : > { %1671 = shalt.err (!%p1668_p4)
}
  0x6b   : > { %s1672_s16 = scalar_lea.vmem %s262_s10, 32  ;;  %p1680_p3 = scmp.lt.s32.totalorder %s262_s10, %s262_s10 }
  0x6c   : > { %p1673_p6 = scmp.ne.s32.totalorder %s262_s10, %s1672_s16  ;;  %p1681_p5 = scmp.lt.s32.totalorder %s1672_s16, %s1672_s16 }
  0x6e   : > { %p1675_p8 = pnand %p1673_p6, %p1971_p13  ;;  %p1682_p7 = por %p1681_p5, %p1680_p3 }
  0x70   : > { %p1676_p0 = pneg %p1675_p8 }
  0x72   : > { %p1683_p10 = pnand %p1682_p7, %p1676_p0 }
  0x74   : > { %1686 = shalt.err (!%p1683_p10)
}
  0x75   : > { %1464 = dma.hbm_to_vmem [thread:$0]  (!%p1955_p11), %s2346_s4, 32, %s262_s10, [#allocation9]  }
  0x76   : > { %s40_s28 = sadd.s32 1, %s1835_s25  ;;  %s49_s27 = sadd.s32 1, %s1827_s23 }
  0x77   : > { %p42_p13 = scmp.ge.s32.totalorder %s40_s28, 2  ;;  %p56_p9 = scmp.ne.s32.totalorder %s1827_s23, %s1823_s22 }
  0x78   : > { %p57_p12 = scmp.eq.s32.totalorder %s1839_s26, 0  ;;  %p1480_p1 = scmp.lt.s32.totalorder %s1839_s26, 2 }
  0x79   : > { %s2381_s28 = smov (%p42_p13, %s40_s28), 0  ;;  %p2365_p4 = scmp.ne.s32.totalorder %s2357_s30, 0 }
  0x7a   : > { %p58_p2 = por %p57_p12, %p56_p9  ;;  %s44_s1 = ssub.s32 %s1835_s25, %s2381_s28 }
  0x7b   : > { %p2060_p6 = por %p2365_p4, %p56_p9  ;;  %s272_s12 = sand.u32 1, %s1827_s23  }
  0x7c   : > { %p47_p8 = scmp.eq.s32.totalorder %s44_s1, 0  ;;  %s1366_s10 = sshll.u32 %s272_s12, 4 }
  0x7d   : > { %s1427_s15 = sshll.u32 %s1835_s25, 8  ;;  %s276_s30 = scalar_lea.vmem [#allocation2], %s1366_s10 }
  0x7e   : > { %s2069_s17 = scalar_select %p47_p8, %s1827_s23, %s49_s27  }
  0x7f   : > { %s2074_s13 = scalar_lea.hbm %s2342_s0, %s1427_s15  ;;  %s285_s16 = sshll.u32 %s276_s30, 4  ;;  %s2082_s16 = int_to_ptr.vmem [resolvable:$true] %s285_s16 }
  0x80   : > { %p2078_p11 = pnand %p1480_p1, %p58_p2  ;;  %s2084_s19 = scalar_lea.sflag [#allocation3], %s272_s12 }
  0x81   : > { %s1687_s27 = scalar_lea.hbm %s2074_s13, 256  ;;  %s1692_s15 = scalar_lea.hbm %s2342_s0, 512 }
  0x82   : > { %p1688_p0 = scmp.ne.s32.totalorder %s2074_s13, %s1687_s27  ;;  %p1689_p3 = pneg %p2078_p11 }
  0x83   : > { %p1693_p10 = scmp.lt.u32.totalorder %s2074_s13, %s2342_s0  ;;  %p1694_p13 = scmp.lt.u32.totalorder %s1692_s15, %s1687_s27 }
  0x84   : > { %p1690_p5 = pnand %p1689_p3, %p1688_p0  ;;  %p1696_p12 = scmp.lt.u32.totalorder %s1687_s27, %s2074_s13 }
  0x85   : > { %p1695_p9 = por %p1694_p13, %p1693_p10 }
  0x86   : > { %p1691_p7 = pneg %p1690_p5 }
  0x87   : > { %p1697_p1 = por %p1696_p12, %p1695_p9 }
  0x89   : > { %p1698_p2 = pnand %p1697_p1, %p1691_p7 }
  0x8b   : > { %1701 = shalt.err (!%p1698_p2)
}
  0x8c   : > { %s1702_s12 = scalar_lea.vmem %s2082_s16, 256  ;;  %s1847_s30 = smov [#allocation2]  }
  0x8d   : > { %p1703_p4 = scmp.ne.s32.totalorder %s2082_s16, %s1702_s12  ;;  %s1707_s1 = sshll.u32 %s1847_s30, 4  ;;  %s1708_s1 = int_to_ptr.vmem [resolvable:$false] %s1707_s1 }
  0x8e   : > { %s1709_s10 = scalar_lea.vmem %s1708_s1, 512  ;;  %p1710_p5 = scmp.lt.s32.totalorder %s2082_s16, %s1708_s1 }
  0x8f   : > { %p1705_p8 = pnand %p1703_p4, %p1689_p3  ;;  %p1711_p10 = scmp.lt.s32.totalorder %s1709_s10, %s1702_s12 }
  0x91   : > { %p1706_p0 = pneg %p1705_p8  ;;  %p1712_p13 = por %p1711_p10, %p1710_p5 }
  0x93   : > { %p1713_p9 = pnand %p1712_p13, %p1706_p0 }
  0x95   : > { %1716 = shalt.err (!%p1713_p9)
}
  0x96   : > { %s2368_s27 = smov 128   ;;  %p2369_p3 = scmp.ne.s32.totalorder %s2361_s9, 0 }
  0x97   : > { %1468 = dma.hbm_to_vmem [thread:$0]  (!%p2078_p11), %s2074_s13, 256, %s2082_s16, %s2084_s19, %s2368_s27, %s2368_s27, %s1845_s18  }
  0x98   : > { %297 = sbr.rel (%p2369_p3) target bundleno = 897 (0x381), region = 40  ;;  %s2118_s15 = sand.u32 (!%p2369_p3), 1, %s1823_s22  }
  0x99   : > { %s1370_s11 = sshll.u32 (!%p2369_p3), %s2118_s15, 4  ;;  %s300_s20 = scalar_lea.sflag (!%p2369_p3), [#allocation3], %s2118_s15 }
  0x9a   : > { %s303_s12 = scalar_lea.vmem (!%p2369_p3), [#allocation2], %s1370_s11  ;;  %p2370_p7 = scmp.ne.s32.totalorder (!%p2369_p3), %s2358_s7, 0 }
  0x9f   : > { %1798 = dma.done.wait (%p2370_p7), %s300_s20, 256  }
  0xa0   : > { %1800 = vsyncadd (%p2370_p7), %s300_s20, 4294967040  ;;  %p2371_p12 = scmp.ne.s32.totalorder %s2356_s29, 0 }
  0xa2   : > { %1802 = dma.done.wait (%p2371_p12), [#allocation6], 32  }
  0xa3   : > { %1804 = vsyncadd (%p2371_p12), [#allocation6], 4294967264 }
  0xa4   : > { %1806 = dma.done.wait (%p2371_p12), [#allocation9], 2080  }
  0xa5   : > { %1808 = vsyncadd (%p2371_p12), [#allocation9], 4294965216  ;;  %v357_v0 = vld [vmem:[%s303_s12] sm:$0xff]  ;;  %v358_v1 = vld [vmem:[%s303_s12 + $0x8] sm:$0xff]  ;;  %v1848_v21 = vmov 0   ;;  %v419_v44 = vlaneseq  ;;  %s1849_s29 = smov 64  }
  0xa6   : > { %361 = vadd.xlane.f32.xlu0 %v357_v0  ;;  %v1547_v2 = vld [vmem:[#allocation8 + $0x4] ss:$8 sps:$4 sm:$0xff]   ;;  %v1549_v3 = vld [vmem:[#allocation8] ss:$8 sps:$4 sm:$0xff]   ;;  %v1550_v4 = vld [vmem:[#allocation8 + $0x14] ss:$8 sps:$4 sm:$0xff]   ;;  %541 = vmatprep.mubr.bf16.mxu0 %v1848_v21 }
  0xa7   : > { %509 = vmatprep.subr.bf16.mxu0 %v1547_v2  ;;  %v1552_v13 = vld [vmem:[#allocation8 + $0x10] ss:$8 sps:$4 sm:$0xff]   ;;  %v1553_v14 = vld [vmem:[#allocation8 + $0x24] ss:$8 sps:$4 sm:$0xff]   ;;  %v1555_v15 = vld [vmem:[#allocation8 + $0x20] ss:$8 sps:$4 sm:$0xff]   ;;  %v2139_v2 = vpack.i.b16 %v1848_v21, %v1848_v21 }
  0xa8   : > { %510 = vmatpush1.bf16.msra.mxu0 %v1549_v3  ;;  %v1556_v16 = vld [vmem:[#allocation8 + $0x34] ss:$8 sps:$4 sm:$0xff]   ;;  %v1558_v17 = vld [vmem:[#allocation8 + $0x30] ss:$8 sps:$4 sm:$0xff]   ;;  %v1559_v18 = vld [vmem:[#allocation8 + $0x44] ss:$8 sps:$4 sm:$0xff]  }
  0xa9   : > { %511 = vmatprep.subr.bf16.mxu0 %v1550_v4  ;;  %v1561_v19 = vld [vmem:[#allocation8 + $0x40] ss:$8 sps:$4 sm:$0xff]   ;;  %v1562_v20 = vld [vmem:[#allocation8 + $0x54] ss:$8 sps:$4 sm:$0xff]   ;;  %v1564_v22 = vld [vmem:[#allocation8 + $0x50] ss:$8 sps:$4 sm:$0xff]  }
  0xaa   : > { %363 = vadd.xlane.f32.xlu0 %v358_v1  ;;  %v1565_v23 = vld [vmem:[#allocation8 + $0x64] ss:$8 sps:$4 sm:$0xff]   ;;  %v1567_v24 = vld [vmem:[#allocation8 + $0x60] ss:$8 sps:$4 sm:$0xff]   ;;  %v1568_v25 = vld [vmem:[#allocation8 + $0x74] ss:$8 sps:$4 sm:$0xff]  }
  0xab   : > { %v1570_v26 = vld [vmem:[#allocation8 + $0x70] ss:$8 sps:$4 sm:$0xff]   ;;  %v1377_v35 = vld [vmem:[#allocation5] ss:$0 sm:$0xff]  ;;  %v1378_v39 = vld [vmem:[#allocation7] ss:$0 sm:$0xff] }
  0xac   : > { %512 = vmatpush1.bf16.msra.mxu0 %v1552_v13  ;;  %v420_v45 = vshrl.u32 %v419_v44, 7  ;;  %v417_v47 = vld [vmem:[#allocation10] sm:$0x3]  ;;  %s1850_s7 = smov 96   ;;  %s1851_s9 = smov 32   ;;  %vm1006_vm0 = vcmask 257024  }
  0xad   : > { %513 = vmatprep.subr.bf16.mxu0 %v1553_v14  ;;  %v1852_v61 = vmov 1983009808   ;;  %s1375_s18 = sshll.u32 %s2118_s15, 5  ;;  %s1428_s13 = sshll.u32 %s1831_s24, 9 }
  0xae   : > { %v421_v46 = vsub.s32 0, %v420_v45  ;;  %v425_v48 = vsub.s32 1, %v420_v45  ;;  %v585_v62 = vunpack.c.l.s4 %v1852_v61  ;;  %s345_s16 = scalar_lea.vmem [#allocation11], %s1375_s18  ;;  %s2210_s1 = scalar_lea.hbm %s2347_s5, %s1428_s13 }
  0xaf   : > { %s1180_s8 = sshll.u32 %s345_s16, 4  ;;  %s1160_s10 = scalar_lea.sflag [#allocation4], %s2118_s15  ;;  %s2214_s8 = int_to_ptr.vmem [resolvable:$true] %s1180_s8 }
  0xb0   : > { %514 = vmatpush1.bf16.msra.mxu0 %v1555_v15  ;;  %v422_v49 = vrot.slane %v417_v47, %v421_v46  ;;  %v426_v51 = vrot.slane %v417_v47, %v425_v48  ;;  %v586_v63 = vunpack.c.0.s8 %v585_v62  ;;  %s1717_s27 = scalar_lea.vmem %s2214_s8, 512  ;;  %s1854_s11 = smov [#allocation11]  }
  0xb1   : > { %515 = vmatprep.subr.bf16.mxu0 %v1556_v16  ;;  %p1718_p11 = scmp.ne.s32.totalorder %s2214_s8, %s1717_s27  ;;  %s1721_s20 = sshll.u32 %s1854_s11, 4  ;;  %s1722_s20 = int_to_ptr.vmem [resolvable:$false] %s1721_s20 }
  0xb2   : > { %s1723_s12 = scalar_lea.vmem %s1722_s20, 1024  ;;  %p1724_p4 = scmp.lt.s32.totalorder %s2214_s8, %s1722_s20 }
  0xb3   : > { %p1719_p1 = pnand %p1718_p11, %p2060_p6  ;;  %p1725_p8 = scmp.lt.s32.totalorder %s1723_s12, %s1717_s27 }
  0xb4   : > { %516 = vmatpush1.bf16.msra.mxu0 %v1558_v17 }
  0xb5   : > { %517 = vmatprep.subr.bf16.mxu0 %v1559_v18  ;;  %p1720_p2 = pneg %p1719_p1  ;;  %p1726_p0 = por %p1725_p8, %p1724_p4 }
  0xb7   : > { %p1727_p5 = pnand %p1726_p0, %p1720_p2 }
  0xb8   : > { %518 = vmatpush1.bf16.msra.mxu0 %v1561_v19 }
  0xb9   : > { %519 = vmatprep.subr.bf16.mxu0 %v1562_v20 }
  0xbc   : > { %520 = vmatpush1.bf16.msra.mxu0 %v1564_v22 }
  0xbd   : > { %521 = vmatprep.subr.bf16.mxu0 %v1565_v23 }
  0xc0   : > { %522 = vmatpush1.bf16.msra.mxu0 %v1567_v24 }
  0xc1   : > { %523 = vmatprep.subr.bf16.mxu0 %v1568_v25 }
  0xc4   : > { %524 = vmatpush1.bf16.msra.mxu0 %v1570_v26 }
 0x133   : > { %v362_v5 = vpop.xlane.xlu0 %361 }
 0x134   : > { %v366_v6 = vmul.f32 0.0078125, %v362_v5 }
 0x136   : > { %v368_v7 = vsub.f32 %v357_v0, %v366_v6  ;;  %v1853_v0 = vmov 1934713408  }
 0x137   : > { %v364_v8 = vpop.xlane.xlu0 %363 }
 0x138   : > { %v367_v9 = vmul.f32 0.0078125, %v364_v8  ;;  %v370_v10 = vmul.f32 %v368_v7, %v368_v7  ;;  %v2141_v8 = vsub.s32 %v586_v63, %v420_v45 }
 0x13a   : > { %v369_v11 = vsub.f32 %v358_v1, %v367_v9  ;;  %372 = vadd.xlane.f32.xlu1 %v370_v10  ;;  %v616_v1 = vunpack.c.l.s4 %v1853_v0 }
 0x13c   : > { %v371_v12 = vmul.f32 %v369_v11, %v369_v11  ;;  %v617_v9 = vunpack.c.0.s8 %v616_v1 }
 0x13e   : > { %374 = vadd.xlane.f32.xlu1 %v371_v12  ;;  %v2145_v17 = vsub.s32 %v617_v9, %v420_v45 }
 0x1c7   : > { %v373_v27 = vpop.xlane.xlu1 %372 }
 0x1c8   : > { %v376_v28 = vmul.f32 0.0078125, %v373_v27 }
 0x1ca   : > { %v378_v29 = vadd.f32 1e-05, %v376_v28 }
 0x1cb   : > { %v375_v30 = vpop.xlane.xlu1 %374 }
 0x1cc   : > { %1571 = vrsqrt.f32 %v378_v29  ;;  %v377_v31 = vmul.f32 0.0078125, %v375_v30 }
 0x1ce   : > { %v379_v32 = vadd.f32 1e-05, %v377_v31 }
 0x1d0   : > { %1573 = vrsqrt.f32 %v379_v32 }
 0x1d6   : > { %v1572_v33 = vpop.eup %1571 }
 0x1d7   : > { %v382_v34 = vmul.f32 %v1572_v33, %v368_v7 }
 0x1d9   : > { %v390_v38 = vmul.f32 %v1377_v35, %v382_v34 }
 0x1da   : > { %v1574_v36 = vpop.eup %1573 }
 0x1db   : > { %v383_v37 = vmul.f32 %v1574_v36, %v369_v11  ;;  %v398_v41 = vadd.f32 %v1378_v39, %v390_v38 }
 0x1dd   : > { %v391_v40 = vmul.f32 %v1377_v35, %v383_v37 }
 0x1df   : > { %v399_v42 = vadd.f32 %v1378_v39, %v391_v40 }
 0x1e1   : > { %v400_v43 = vpack.c.bf16 %v399_v42, %v398_v41 }
 0x1e3   : > { %542 = vmatmul.mubr.bf16.vlgmr.msra.gmra.mrb[0].mxu0 %v400_v43 }
 0x2b6   : > { %v543_v50 = vpop.f32.mrb[0].mxu0 }
 0x2b7   : > { %v545_v52 = vpop.f32.mrb[1].mxu0  ;;  %v544_v54 = vadd.f32 %v543_v50, %v422_v49 }
 0x2b8   : > { %v547_v53 = vpop.f32.mrb[2].mxu0  ;;  %v546_v57 = vadd.f32 %v545_v52, %v426_v51 }
 0x2b9   : > { %v548_v55 = vadd.f32 %v547_v53, %v422_v49  ;;  %v549_v56 = vpop.f32.mrb[3].mxu0 }
 0x2ba   : > { %v550_v58 = vadd.f32 %v549_v56, %v426_v51 }
 0x2bb   : > { %v552_v59 = vpack.c.bf16 %v548_v55, %v544_v54 }
 0x2bc   : > { %v553_v60 = vpack.c.bf16 %v550_v58, %v546_v57 }
 0x2bd   : > { %557 = vrot.lane.b32.xlu1 %v552_v59, %s1849_s29  ;;  %555 = vrot.lane.b32.xlu0 %v552_v59, %s1850_s7  ;;  %v565_v6 = vshrl.u32 %v552_v59, 16 }
 0x2be   : > { %v726_v24 = vshrl.u32 %v553_v60, 16 }
 0x2c1   : > { %559 = vrot.lane.b32.xlu1 %v552_v59, %s1851_s9  ;;  %718 = vrot.lane.b32.xlu0 %v553_v60, %s1849_s29 }
 0x2c5   : > { %716 = vrot.lane.b32.xlu1 %v553_v60, %s1850_s7 }
 0x2c9   : > { %720 = vrot.lane.b32.xlu1 %v553_v60, %s1851_s9 }
 0x32f   : > { %v558_v3 = vpop.permute.xlu1 %557  ;;  %v556_v4 = vpop.permute.xlu0 %555 }
 0x330   : > { %v563_v5 = vpack.i.b16 %v556_v4, %v552_v59  ;;  %v566_v7 = vshrl.u32 %v556_v4, 16  ;;  %v573_v15 = vshrl.u32 %v558_v3, 16 }
 0x332   : > { %v567_v10 = vpack.i.b16 %v566_v7, %v565_v6  ;;  %v583_v11 = vcombine.high %v563_v5, %v2139_v2  ;;  %v590_v18 = vrot.slane %v563_v5, %v2141_v8 }
 0x333   : > { %v560_v12 = vpop.permute.xlu1 %559  ;;  %v719_v58 = vpop.permute.xlu0 %718 }
 0x334   : > { %v649_v13 = vcombine.high %v567_v10, %v2139_v2  ;;  %v571_v14 = vpack.i.b16 %v560_v12, %v558_v3  ;;  %v574_v16 = vshrl.u32 %v560_v12, 16  ;;  %v597_v21 = vrot.slane %v583_v11, %v2141_v8 }
 0x335   : > { %v656_v22 = vrot.slane %v567_v10, %v2141_v8  ;;  %v734_v6 = vshrl.u32 %v719_v58, 16 }
 0x336   : > { %v598_v19 = vcombine.high %v571_v14, %v2139_v2  ;;  %v605_v20 = vrot.slane %v571_v14, %v2141_v8  ;;  %v575_v23 = vpack.i.b16 %v574_v16, %v573_v15  ;;  %v663_v26 = vrot.slane %v649_v13, %v2141_v8 }
 0x337   : > { %v717_v25 = vpop.permute.xlu1 %716 }
 0x338   : > { %v612_v27 = vrot.slane %v598_v19, %v2141_v8  ;;  %v613_v28 = vcombine.low %v590_v18, %v605_v20  ;;  %v614_v29 = vcombine.high %v590_v18, %v605_v20  ;;  %v664_v30 = vcombine.high %v575_v23, %v2139_v2 }
 0x339   : > { %v671_v31 = vrot.slane %v575_v23, %v2141_v8  ;;  %v724_v32 = vpack.i.b16 %v717_v25, %v553_v60  ;;  %v727_v33 = vshrl.u32 %v717_v25, 16 }
 0x33a   : > { %v621_v34 = vrot.slane %v613_v28, %v2145_v17  ;;  %v628_v35 = vrot.slane %v614_v29, %v2145_v17  ;;  %v629_v36 = vcombine.low %v597_v21, %v612_v27  ;;  %v630_v37 = vcombine.high %v597_v21, %v612_v27 }
 0x33b   : > { %v678_v38 = vrot.slane %v664_v30, %v2141_v8  ;;  %v679_v39 = vcombine.low %v656_v22, %v671_v31  ;;  %v680_v40 = vcombine.high %v656_v22, %v671_v31  ;;  %v728_v41 = vpack.i.b16 %v727_v33, %v726_v24  ;;  %v721_v4 = vpop.permute.xlu1 %720 }
 0x33c   : > { %v637_v42 = vrot.slane %v629_v36, %v2145_v17  ;;  %v644_v43 = vrot.slane %v630_v37, %v2145_v17  ;;  %v870_v44 = vcombine.low %v621_v34, %v628_v35  ;;  %v1395_v45 = vcombine.high %v621_v34, %v628_v35 }
 0x33d   : > { %v687_v46 = vrot.slane %v679_v39, %v2145_v17  ;;  %v694_v47 = vrot.slane %v680_v40, %v2145_v17  ;;  %v695_v48 = vcombine.low %v663_v26, %v678_v38  ;;  %v696_v49 = vcombine.high %v663_v26, %v678_v38 }
 0x33e   : > { %v877_v50 = vrot.slane %v870_v44, %v2141_v8  ;;  %v885_v51 = vrot.slane %v1395_v45, %v2141_v8  ;;  %v886_v52 = vcombine.low %v637_v42, %v644_v43  ;;  %v1396_v53 = vcombine.high %v637_v42, %v644_v43 }
 0x33f   : > { %v703_v54 = vrot.slane %v695_v48, %v2145_v17  ;;  %v710_v55 = vrot.slane %v696_v49, %v2145_v17  ;;  %v920_v56 = vcombine.low %v687_v46, %v694_v47  ;;  %v1397_v57 = vcombine.high %v687_v46, %v694_v47 }
 0x340   : > { %v893_v59 = vrot.slane %v886_v52, %v2141_v8  ;;  %v901_v60 = vrot.slane %v1396_v53, %v2141_v8  ;;  %v902_v61 = vcombine.low %v877_v50, %v885_v51  ;;  %v738_v62 = vcombine.high %v724_v32, %v2139_v2 }
 0x341   : > { %v927_v63 = vrot.slane %v920_v56, %v2141_v8  ;;  %v935_v0 = vrot.slane %v1397_v57, %v2141_v8  ;;  %v936_v1 = vcombine.low %v703_v54, %v710_v55  ;;  %v1398_v3 = vcombine.high %v703_v54, %v710_v55 }
 0x342   : > { %v910_v5 = vcombine.low %v893_v59, %v901_v60  ;;  %v804_v11 = vcombine.high %v728_v41, %v2139_v2  ;;  %v909_v12 = vrot.slane %v902_v61, %v2145_v17  ;;  %v732_v14 = vpack.i.b16 %v721_v4, %v719_v58 }
 0x343   : > { %v943_v7 = vrot.slane %v936_v1, %v2141_v8  ;;  %v951_v9 = vrot.slane %v1398_v3, %v2141_v8  ;;  %v952_v10 = vcombine.low %v927_v63, %v935_v0  ;;  %v735_v15 = vshrl.u32 %v721_v4, 16 }
 0x344   : > { %v917_v13 = vrot.slane %v910_v5, %v2145_v17  ;;  %v745_v18 = vrot.slane %v724_v32, %v2141_v8  ;;  %v752_v19 = vrot.slane %v738_v62, %v2141_v8  ;;  %v811_v20 = vrot.slane %v728_v41, %v2141_v8 }
 0x345   : > { %v960_v16 = vcombine.low %v943_v7, %v951_v9  ;;  %v736_v23 = vpack.i.b16 %v735_v15, %v734_v6  ;;  %v753_v24 = vcombine.high %v732_v14, %v2139_v2  ;;  %v959_v25 = vrot.slane %v952_v10, %v2145_v17 }
 0x346   : > { %v918_v21 = vcombine.low %v909_v12, %v917_v13  ;;  %v919_v22 = vcombine.high %v909_v12, %v917_v13  ;;  %v818_v27 = vrot.slane %v804_v11, %v2141_v8  ;;  %v760_v28 = vrot.slane %v732_v14, %v2141_v8 }
 0x347   : > { %v967_v26 = vrot.slane %v960_v16, %v2145_v17  ;;  %v767_v31 = vrot.slane %v753_v24, %v2141_v8  ;;  %v819_v32 = vcombine.high %v736_v23, %v2139_v2  ;;  %v826_v39 = vrot.slane %v736_v23, %v2141_v8 }
 0x348   : > { %v973_v29 = vshrl.u32 %v918_v21, 16  ;;  %v979_v30 = vshrl.u32 %v919_v22, 16  ;;  %v768_v35 = vcombine.low %v745_v18, %v760_v28  ;;  %v769_v36 = vcombine.high %v745_v18, %v760_v28 }
 0x349   : > { %v968_v33 = vcombine.low %v959_v25, %v967_v26  ;;  %v969_v34 = vcombine.high %v959_v25, %v967_v26  ;;  %v784_v37 = vcombine.low %v752_v19, %v767_v31  ;;  %v785_v38 = vcombine.high %v752_v19, %v767_v31 }
 0x34a   : > { %v833_v40 = vrot.slane %v819_v32, %v2141_v8  ;;  %v2192_v45 = vrot.slane %v768_v35, %v2145_v17  ;;  %v2195_v2 = vrot.slane %v769_v36, %v2145_v17  ;;  %v834_v54 = vcombine.low %v811_v20, %v826_v39 }
 0x34b   : > { %v972_v41 = vpack.i.b16 %v968_v33, %v918_v21  ;;  %v974_v42 = vshrl.u32 %v968_v33, 16  ;;  %v978_v43 = vpack.i.b16 %v969_v34, %v919_v22  ;;  %v980_v44 = vshrl.u32 %v969_v34, 16 }
 0x34c   : > { %v2198_v46 = vrot.slane %v784_v37, %v2145_v17  ;;  %v2201_v47 = vrot.slane %v785_v38, %v2145_v17  ;;  %v835_v55 = vcombine.high %v811_v20, %v826_v39  ;;  %v842_v60 = vrot.slane %v834_v54, %v2145_v17 }
 0x34d   : > { %v975_v48 = vpack.i.b16 %v974_v42, %v973_v29  ;;  %v981_v49 = vpack.i.b16 %v980_v44, %v979_v30  ;;  %v1399_v50 = vcombine.low %v972_v41, %v972_v41  ;;  %v1400_v51 = vcombine.high %v972_v41, %v972_v41 }
 0x34e   : > { %v1403_v52 = vcombine.low %v978_v43, %v978_v43  ;;  %v1404_v53 = vcombine.high %v978_v43, %v978_v43  ;;  %v849_v61 = vrot.slane %v835_v55, %v2145_v17  ;;  %v850_v62 = vcombine.low %v818_v27, %v833_v40 }
 0x34f   : > { %v1401_v56 = vcombine.low %v975_v48, %v975_v48  ;;  %v1402_v57 = vcombine.high %v975_v48, %v975_v48  ;;  %v1405_v58 = vcombine.low %v981_v49, %v981_v49  ;;  %v1406_v59 = vcombine.high %v981_v49, %v981_v49  ;;  %1007 = vst.msk [vmem:[%s345_s16] sm:$0xf] %vm1006_vm0, %v1399_v50 }
 0x350   : > { %1008 = vst.msk [vmem:[%s345_s16 + $0x4] sm:$0xf] %vm1006_vm0, %v1400_v51  ;;  %1011 = vst.msk [vmem:[%s345_s16 + $0x10] sm:$0xf] %vm1006_vm0, %v1403_v52  ;;  %v851_v63 = vcombine.high %v818_v27, %v833_v40  ;;  %v1015_v0 = vcombine.low %v2192_v45, %v2195_v2  ;;  %v1407_v1 = vcombine.high %v2192_v45, %v2195_v2 }
 0x351   : > { %1012 = vst.msk [vmem:[%s345_s16 + $0x14] sm:$0xf] %vm1006_vm0, %v1404_v53  ;;  %1009 = vst.msk [vmem:[%s345_s16 + $0x8] sm:$0xf] %vm1006_vm0, %v1401_v56  ;;  %v1031_v3 = vcombine.low %v2198_v46, %v2201_v47  ;;  %v1408_v4 = vcombine.high %v2198_v46, %v2201_v47  ;;  %v858_v5 = vrot.slane %v850_v62, %v2145_v17 }
 0x352   : > { %1010 = vst.msk [vmem:[%s345_s16 + $0xc] sm:$0xf] %vm1006_vm0, %v1402_v57  ;;  %1013 = vst.msk [vmem:[%s345_s16 + $0x18] sm:$0xf] %vm1006_vm0, %v1405_v58  ;;  %v865_v6 = vrot.slane %v851_v63, %v2145_v17  ;;  %v1065_v7 = vcombine.low %v842_v60, %v849_v61  ;;  %v1409_v9 = vcombine.high %v842_v60, %v849_v61 }
 0x353   : > { %1014 = vst.msk [vmem:[%s345_s16 + $0x1c] sm:$0xf] %vm1006_vm0, %v1406_v59 }
 0x354   : > { %1730 = shalt.err (!%p1727_p5)
}
 0x355   : > { %s1731_s7 = scalar_lea.hbm %s2210_s1, 512  ;;  %s1735_s19 = scalar_lea.hbm %s2347_s5, 1024 }
 0x356   : > { %p1732_p10 = scmp.ne.s32.totalorder %s2210_s1, %s1731_s7  ;;  %p1736_p3 = scmp.lt.u32.totalorder %s2210_s1, %s2347_s5 }
 0x357   : > { %p1737_p7 = scmp.lt.u32.totalorder %s1735_s19, %s1731_s7  ;;  %p1739_p11 = scmp.lt.u32.totalorder %s1731_s7, %s2210_s1 }
 0x358   : > { %p1733_p13 = pnand %p1732_p10, %p2060_p6 }
 0x359   : > { %p1738_p12 = por %p1737_p7, %p1736_p3 }
 0x35a   : > { %p1734_p9 = pneg %p1733_p13 }
 0x35b   : > { %p1740_p1 = por %p1739_p11, %p1738_p12 }
 0x35d   : > { %p1741_p2 = pnand %p1740_p1, %p1734_p9 }
 0x35f   : > { %1744 = shalt.err (!%p1741_p2)
}
 0x360   : > { %s1855_s27 = smov 4   ;;  %v1022_v10 = vrot.slane %v1015_v0, %v2141_v8  ;;  %v1030_v11 = vrot.slane %v1407_v1, %v2141_v8  ;;  %v1038_v12 = vrot.slane %v1031_v3, %v2141_v8  ;;  %v1046_v13 = vrot.slane %v1408_v4, %v2141_v8  ;;  %s2282_s20 = scalar_lea.hbm %s2348_s6, %s1428_s13 }
 0x361   : > { %1448 = dma.vmem_to_hbm [thread:$0]  (%p2060_p6), %s2214_s8, 512, %s2210_s1, %s1160_s10, %s1849_s29, %s1849_s29, %s1855_s27   ;;  %v1072_v14 = vrot.slane %v1065_v7, %v2141_v8  ;;  %v1080_v15 = vrot.slane %v1409_v9, %v2141_v8  ;;  %v1081_v16 = vcombine.low %v858_v5, %v865_v6  ;;  %v1410_v18 = vcombine.high %v858_v5, %v865_v6 }
 0x362   : > { %v1047_v19 = vcombine.low %v1022_v10, %v1030_v11  ;;  %v1055_v20 = vcombine.low %v1038_v12, %v1046_v13  ;;  %s352_s8 = scalar_lea.vmem [#allocation12], %s1375_s18  ;;  %s1165_s24 = scalar_lea.sflag [#allocation13], %s2118_s15 }
 0x363   : > { %v1088_v21 = vrot.slane %v1081_v16, %v2141_v8  ;;  %v1096_v22 = vrot.slane %v1410_v18, %v2141_v8  ;;  %v1097_v23 = vcombine.low %v1072_v14, %v1080_v15  ;;  %s1198_s1 = sshll.u32 %s352_s8, 4  ;;  %s1856_s12 = smov [#allocation12]   ;;  %s2284_s1 = int_to_ptr.vmem [resolvable:$true] %s1198_s1 }
 0x364   : > { %v1054_v24 = vrot.slane %v1047_v19, %v2145_v17  ;;  %v1062_v25 = vrot.slane %v1055_v20, %v2145_v17  ;;  %s1745_s13 = scalar_lea.vmem %s2284_s1, 512  ;;  %s1749_s7 = sshll.u32 %s1856_s12, 4  ;;  %s1750_s7 = int_to_ptr.vmem [resolvable:$false] %s1749_s7 }
 0x365   : > { %v1105_v26 = vcombine.low %v1088_v21, %v1096_v22  ;;  %v1104_v29 = vrot.slane %v1097_v23, %v2145_v17  ;;  %p1746_p4 = scmp.ne.s32.totalorder %s2284_s1, %s1745_s13  ;;  %s1751_s9 = scalar_lea.vmem %s1750_s7, 1024 }
 0x366   : > { %v1063_v27 = vcombine.low %v1054_v24, %v1062_v25  ;;  %v1064_v28 = vcombine.high %v1054_v24, %v1062_v25  ;;  %p1752_p5 = scmp.lt.s32.totalorder %s2284_s1, %s1750_s7  ;;  %p1753_p10 = scmp.lt.s32.totalorder %s1751_s9, %s1745_s13 }
 0x367   : > { %v1112_v30 = vrot.slane %v1105_v26, %v2145_v17  ;;  %p1747_p8 = pnand %p1746_p4, %p2060_p6 }
 0x368   : > { %v1118_v33 = vshrl.u32 %v1063_v27, 16  ;;  %v1124_v34 = vshrl.u32 %v1064_v28, 16  ;;  %p1754_p13 = por %p1753_p10, %p1752_p5 }
 0x369   : > { %v1113_v31 = vcombine.low %v1104_v29, %v1112_v30  ;;  %v1114_v32 = vcombine.high %v1104_v29, %v1112_v30  ;;  %p1748_p0 = pneg %p1747_p8 }
 0x36b   : > { %v1117_v35 = vpack.i.b16 %v1113_v31, %v1063_v27  ;;  %v1119_v36 = vshrl.u32 %v1113_v31, 16  ;;  %v1123_v8 = vpack.i.b16 %v1114_v32, %v1064_v28  ;;  %v1125_v37 = vshrl.u32 %v1114_v32, 16  ;;  %p1755_p9 = pnand %p1754_p13, %p1748_p0 }
 0x36d   : > { %v1120_v38 = vpack.i.b16 %v1119_v36, %v1118_v33  ;;  %v1126_v39 = vpack.i.b16 %v1125_v37, %v1124_v34  ;;  %v1411_v40 = vcombine.low %v1117_v35, %v1117_v35  ;;  %v1412_v41 = vcombine.high %v1117_v35, %v1117_v35 }
 0x36e   : > { %v1415_v42 = vcombine.low %v1123_v8, %v1123_v8  ;;  %v1416_v43 = vcombine.high %v1123_v8, %v1123_v8 }
 0x36f   : > { %v1413_v17 = vcombine.low %v1120_v38, %v1120_v38  ;;  %v1414_v44 = vcombine.high %v1120_v38, %v1120_v38  ;;  %v1417_v45 = vcombine.low %v1126_v39, %v1126_v39  ;;  %v1418_v2 = vcombine.high %v1126_v39, %v1126_v39  ;;  %1151 = vst.msk [vmem:[%s352_s8] sm:$0xf] %vm1006_vm0, %v1411_v40 }
 0x370   : > { %1152 = vst.msk [vmem:[%s352_s8 + $0x4] sm:$0xf] %vm1006_vm0, %v1412_v41  ;;  %1155 = vst.msk [vmem:[%s352_s8 + $0x10] sm:$0xf] %vm1006_vm0, %v1415_v42 }
 0x371   : > { %1156 = vst.msk [vmem:[%s352_s8 + $0x14] sm:$0xf] %vm1006_vm0, %v1416_v43  ;;  %1153 = vst.msk [vmem:[%s352_s8 + $0x8] sm:$0xf] %vm1006_vm0, %v1413_v17 }
 0x372   : > { %1154 = vst.msk [vmem:[%s352_s8 + $0xc] sm:$0xf] %vm1006_vm0, %v1414_v44  ;;  %1157 = vst.msk [vmem:[%s352_s8 + $0x18] sm:$0xf] %vm1006_vm0, %v1417_v45 }
 0x373   : > { %1158 = vst.msk [vmem:[%s352_s8 + $0x1c] sm:$0xf] %vm1006_vm0, %v1418_v2 }
 0x374   : > { %1758 = shalt.err (!%p1755_p9)
}
 0x375   : > { %s1759_s16 = scalar_lea.hbm %s2282_s20, 512  ;;  %s1763_s11 = scalar_lea.hbm %s2348_s6, 1024 }
 0x376   : > { %p1760_p3 = scmp.ne.s32.totalorder %s2282_s20, %s1759_s16  ;;  %p1764_p11 = scmp.lt.u32.totalorder %s2282_s20, %s2348_s6 }
 0x377   : > { %p1765_p1 = scmp.lt.u32.totalorder %s1763_s11, %s1759_s16  ;;  %p1767_p4 = scmp.lt.u32.totalorder %s1759_s16, %s2282_s20 }
 0x378   : > { %p1761_p7 = pnand %p1760_p3, %p2060_p6 }
 0x379   : > { %p1766_p2 = por %p1765_p1, %p1764_p11 }
 0x37a   : > { %p1762_p12 = pneg %p1761_p7 }
 0x37b   : > { %p1768_p8 = por %p1767_p4, %p1766_p2 }
 0x37d   : > { %p1769_p0 = pnand %p1768_p8, %p1762_p12 }
 0x37f   : > { %1772 = shalt.err (!%p1769_p0)
}
 0x380   : > { %1449 = dma.vmem_to_hbm [thread:$0]  (%p2060_p6), %s2284_s1, 512, %s2282_s20, %s1165_s24, %s1849_s29, %s1849_s29, %s1855_s27  }
 0x381 PF: > { %s2372_s18 = sld [smem:[#allocation19_spill]]  ;;  %s1213_s13 = sand.u32 1, %s1819_s21  }
 0x382   : > { %p2374_p10 = scmp.ge.s32.totalorder %s1839_s26, 2  ;;  %s1214_s12 = scalar_lea.sflag [#allocation4], %s1213_s13 }
 0x387   : > { %p2373_p5 = scmp.ne.s32.totalorder %s2372_s18, 0 }
 0x389   : > { %p1470_p13 = pnand %p2374_p10, %p2373_p5 }
 0x38b   : > { %1810 = dma.done.wait (!%p1470_p13), %s1214_s12, 512  }
 0x38c   : > { %1812 = vsyncadd (!%p1470_p13), %s1214_s12, 4294966784  ;;  %s1223_s14 = scalar_lea.sflag [#allocation13], %s1213_s13 }
 0x38d   : > { %1814 = dma.done.wait (!%p1470_p13), %s1223_s14, 512  }
 0x38e   : > { %1816 = vsyncadd (!%p1470_p13), %s1223_s14, 4294966784  ;;  %s28_s26 = sadd.s32 1, %s1839_s26   ;;  %s2375_s21 = smov %s1823_s22 }
 0x38f   : > { %p25_p9 = scmp.ge.s32.totalorder %s28_s26, 4   ;;  %s2376_s22 = smov %s1827_s23 }
 0x390   : > { %s2377_s23 = smov %s2069_s17  ;;  %s2378_s24 = smov %s1835_s25 }
 0x391   : > { %s2379_s25 = smov %s2381_s28  ;;  %27 = sbr.rel (!%p25_p9) target bundleno = 12 (0xc), region = 118 }
 0x398   :  { %1228 = vsyncpa [#allocation3], 1 }
 0x399   :  { %1230 = vsyncpa [#allocation3 + $0x1], 1 }
 0x39a   :  { %1231 = vsyncpa [#allocation6], 1 }
 0x39b   :  { %1232 = vsyncpa [#allocation9], 1 }
 0x39c   :  { %1233 = vsyncpa [#allocation4], 1 }
 0x39d   :  { %1235 = vsyncpa [#allocation4 + $0x1], 1 }
 0x39e   :  { %1236 = vsyncpa [#allocation13], 1 }
 0x39f   :  { %1238 = vsyncpa [#allocation13 + $0x1], 1 }

// kernel: _lambda_.12
= control target key start
LH: loop header
LB: loop body
LE: loop exit
PB: predicated region body
PF: predicated region fallthrough
CT: control target
= control target key end

     0   :  { %s3300_s0 = inlined_call_operand.hbm [shape: f32[2,16,128], index: 0, kind: input, shape index: {}]   ;;  %s3301_s1 = inlined_call_operand.hbm [shape: f32[1,128], index: 1, kind: input, shape index: {}]   ;;  %s3302_s2 = inlined_call_operand.hbm [shape: f32[1,128], index: 2, kind: input, shape index: {}]   ;;  %s3303_s3 = inlined_call_operand.hbm [shape: bf16[128,128], index: 3, kind: input, shape index: {}]   ;;  %s3304_s4 = inlined_call_operand.hbm [shape: f32[1,128], index: 4, kind: input, shape index: {}]   ;;  %s3305_s5 = inlined_call_operand.hbm [shape: bf16[2,4,16,32], index: 5, kind: input, shape index: {}]   ;;  %s3306_s6 = inlined_call_operand.hbm [shape: bf16[2,4,16,32], index: 6, kind: input, shape index: {}]   ;;  %s3307_s7 = inlined_call_operand.hbm [shape: bf16[128,128], index: 7, kind: input, shape index: {}]   ;;  %s3308_s8 = inlined_call_operand.hbm [shape: f32[1,128], index: 8, kind: input, shape index: {}]   ;;  %s3309_s9 = inlined_call_operand.hbm [shape: f32[2,16,128], index: 9, kind: output, shape index: {}]  }
   0x1   :  { %3339 = sst [smem:[#allocation34_spill]] %s3300_s0 }
   0x2   :  { %3340 = sst [smem:[#allocation35_spill]] %s3301_s1 }
   0x3   :  { %3341 = sst [smem:[#allocation36_spill]] %s3302_s2 }
   0x4   :  { %3342 = sst [smem:[#allocation37_spill]] %s3303_s3 }
   0x5   :  { %3343 = sst [smem:[#allocation38_spill]] %s3304_s4 }
   0x6   :  { %3344 = sst [smem:[#allocation39_spill]] %s3305_s5 }
   0x7   :  { %3345 = sst [smem:[#allocation40_spill]] %s3307_s7 }
   0x8   :  { %3346 = sst [smem:[#allocation41_spill]] %s3308_s8 }
   0x9   :  { %3347 = sst [smem:[#allocation42_spill]] %s3309_s9 }
   0xa   :  { %14 = vsyncpa [#allocation3], 0 }
   0xb   :  { %16 = vsyncpa [#allocation3 + $0x1], 0 }
   0xc   :  { %17 = vsyncpa [#allocation6], 0 }
   0xd   :  { %18 = vsyncpa [#allocation9], 0 }
   0xe   :  { %19 = vsyncpa [#allocation12], 0 }
   0xf   :  { %21 = vsyncpa [#allocation12 + $0x1], 0 }
  0x10   :  { %22 = vsyncpa [#allocation15], 0 }
  0x11   :  { %23 = vsyncpa [#allocation4], 0 }
  0x12   :  { %25 = vsyncpa [#allocation4 + $0x1], 0  ;;  %s2669_s30 = smov 0   ;;  %s2671_s10 = smov 0  }
  0x13   :  { %s2673_s11 = smov 0   ;;  %s2675_s12 = smov 0  }
  0x14   :  { %s2677_s13 = smov 0   ;;  %s2679_s14 = smov 0  }
  0x15   :  { %s2681_s15 = smov 0   ;;  %s2683_s16 = smov 0  }
  0x16   :  { %s2685_s17 = smov 0   ;;  %s2687_s18 = smov 0  }
  0x17   :  { %s2689_s19 = smov 0  }
  0x18 LB: > { %3348 = sst [smem:[#allocation24_spill]] %s2560_s10  ;;  %s2725_s20 = sadd.s32 4294967295, %s2596_s19   ;;  %s2596_s19 = sphi %s2689_s19, %s31_s19   ;;  %s2592_s18 = sphi %s2687_s18, %s3418_s18   ;;  %s2588_s17 = sphi %s2685_s17, %s3417_s17   ;;  %s2584_s16 = sphi %s2683_s16, %s3416_s16   ;;  %s2580_s15 = sphi %s2681_s15, %s3415_s15   ;;  %s2576_s14 = sphi %s2679_s14, %s3414_s14   ;;  %s2572_s13 = sphi %s2677_s13, %s3413_s13   ;;  %s2568_s12 = sphi %s2675_s12, %s3412_s12   ;;  %s2564_s11 = sphi %s2673_s11, %s3411_s11   ;;  %s2560_s10 = sphi %s2671_s10, %s3410_s10   ;;  %s2556_s30 = sphi %s2669_s30, %s3406_s30  }
  0x19   : > { %3349 = sst [smem:[#allocation25_spill]] %s2568_s12  ;;  %p1778_p0 = scmp.ge.s32.totalorder %s2596_s19, 1 }
  0x1a   : > { %3350 = sst [smem:[#allocation26_spill]] %s2580_s15  ;;  %p3313_p1 = scmp.eq.s32.totalorder %s2725_s20, 0 }
  0x1b   : > { %3351 = sst [smem:[#allocation27_spill]] %s2584_s16  ;;  %p282_p2 = scmp.lt.s32.totalorder %s2596_s19, 5 }
  0x1c   : > { %s2598_s22 = smov [#allocation5]   ;;  %s2599_s24 = smov [#allocation8]  }
  0x1d   : > { %p2730_p3 = pnand %p1778_p0, %p282_p2  ;;  %s295_s23 = sshll.u32 %s2598_s22, 4  ;;  %s296_s23 = int_to_ptr.vmem [resolvable:$true] %s295_s23 }
  0x1e   : > { %s316_s25 = sshll.u32 %s2599_s24, 4  ;;  %s2600_s27 = smov [#allocation14]   ;;  %s2742_s25 = int_to_ptr.vmem [resolvable:$true] %s316_s25 }
  0x1f   : > { %s3352_s21 = scalar_select %p2730_p3, 1, 0 }
  0x20   : > { %p2006_p4 = pneg %p2730_p3  ;;  %s2744_s28 = sshll.u32 %s2600_s27, 4  ;;  %s341_s28 = int_to_ptr.vmem [resolvable:$true] %s2744_s28 }
  0x21   : > { %3353 = sst [smem:[#allocation28_spill]] %s3352_s21  ;;  %s3355_s1 = sld [smem:[#allocation35_spill]] }
  0x22   : > { %p2738_p5 = pnand %p2006_p4, %p3313_p1 }
  0x24   : > { %s3354_s26 = scalar_select %p2738_p5, 1, 0 }
  0x25   : > { %p2754_p7 = pneg %p2738_p5 }
  0x27   : > { %s2200_s22 = scalar_lea.hbm %s3355_s1, 16 }
  0x28   : > { %p2201_p6 = scmp.ne.s32.totalorder %s3355_s1, %s2200_s22  ;;  %p2207_p10 = scmp.lt.u32.totalorder %s2200_s22, %s3355_s1 }
  0x2a   : > { %p2203_p8 = pnand %p2754_p7, %p2201_p6 }
  0x2c   : > { %p2204_p9 = pneg %p2203_p8 }
  0x2e   : > { %p2209_p11 = pnand %p2207_p10, %p2204_p9 }
  0x30   : > { %2212 = shalt.err (!%p2209_p11)
}
  0x31   : > { %s2213_s9 = scalar_lea.vmem %s296_s23, 16  ;;  %s2220_s15 = scalar_lea.vmem %s296_s23, 32 }
  0x32   : > { %p2214_p12 = scmp.ne.s32.totalorder %s296_s23, %s2213_s9  ;;  %p2221_p2 = scmp.lt.s32.totalorder %s296_s23, %s296_s23 }
  0x33   : > { %p2222_p4 = scmp.lt.s32.totalorder %s2220_s15, %s2213_s9 }
  0x34   : > { %p2216_p13 = pnand %p2214_p12, %p2754_p7 }
  0x35   : > { %p2223_p1 = por %p2222_p4, %p2221_p2 }
  0x36   : > { %p2217_p0 = pneg %p2216_p13 }
  0x38   : > { %p2224_p3 = pnand %p2223_p1, %p2217_p0 }
  0x3a   : > { %2227 = shalt.err (!%p2224_p3)
}
  0x3b   : > { %2009 = dma.hbm_to_vmem [thread:$0]  (!%p2738_p5), %s3355_s1, 16, %s296_s23, [#allocation6]  }
  0x3c   : > { %s3357_s3 = sld [smem:[#allocation37_spill]] }
  0x42   : > { %s2228_s27 = scalar_lea.hbm %s3357_s3, 1024 }
  0x43   : > { %p2229_p6 = scmp.ne.s32.totalorder %s3357_s3, %s2228_s27  ;;  %p2235_p1 = scmp.lt.u32.totalorder %s2228_s27, %s3357_s3 }
  0x45   : > { %p2231_p8 = pnand %p2229_p6, %p2754_p7 }
  0x47   : > { %p2232_p9 = pneg %p2231_p8 }
  0x49   : > { %p2237_p3 = pnand %p2235_p1, %p2232_p9 }
  0x4b   : > { %2240 = shalt.err (!%p2237_p3)
}
  0x4c   : > { %s2241_s23 = scalar_lea.vmem %s2742_s25, 1024  ;;  %p2249_p13 = scmp.lt.s32.totalorder %s2742_s25, %s2742_s25 }
  0x4d   : > { %p2242_p10 = scmp.ne.s32.totalorder %s2742_s25, %s2241_s23  ;;  %p2250_p0 = scmp.lt.s32.totalorder %s2241_s23, %s2241_s23 }
  0x4f   : > { %p2244_p11 = pnand %p2242_p10, %p2754_p7  ;;  %p2251_p2 = por %p2250_p0, %p2249_p13 }
  0x51   : > { %p2245_p12 = pneg %p2244_p11 }
  0x53   : > { %p2252_p4 = pnand %p2251_p2, %p2245_p12 }
  0x55   : > { %2255 = shalt.err (!%p2252_p4)
}
  0x56   : > { %s3317_s0 = smov 64   ;;  %s3319_s12 = smov 4  }
  0x57   : > { %2015 = dma.hbm_to_vmem [thread:$0]  (!%p2738_p5), %s3357_s3, 1024, %s2742_s25, [#allocation9], %s3317_s0, %s3317_s0, %s3319_s12  }
  0x58   : > { %s3358_s7 = sld [smem:[#allocation40_spill]] }
  0x5e   : > { %s2256_s27 = scalar_lea.hbm %s3358_s7, 1024 }
  0x5f   : > { %p2257_p6 = scmp.ne.s32.totalorder %s3358_s7, %s2256_s27  ;;  %p2263_p1 = scmp.lt.u32.totalorder %s2256_s27, %s3358_s7 }
  0x61   : > { %p2259_p8 = pnand %p2257_p6, %p2754_p7 }
  0x63   : > { %p2260_p9 = pneg %p2259_p8 }
  0x65   : > { %p2265_p3 = pnand %p2263_p1, %p2260_p9 }
  0x67   : > { %2268 = shalt.err (!%p2265_p3)
}
  0x68   : > { %s2269_s16 = scalar_lea.vmem %s341_s28, 1024  ;;  %p2277_p13 = scmp.lt.s32.totalorder %s341_s28, %s341_s28 }
  0x69   : > { %p2270_p10 = scmp.ne.s32.totalorder %s341_s28, %s2269_s16  ;;  %p2278_p0 = scmp.lt.s32.totalorder %s2269_s16, %s2269_s16 }
  0x6b   : > { %p2272_p11 = pnand %p2270_p10, %p2754_p7  ;;  %p2279_p2 = por %p2278_p0, %p2277_p13 }
  0x6d   : > { %p2273_p12 = pneg %p2272_p11 }
  0x6f   : > { %p2280_p4 = pnand %p2279_p2, %p2273_p12 }
  0x71   : > { %2283 = shalt.err (!%p2280_p4)
}
  0x72   : > { %2021 = dma.hbm_to_vmem [thread:$0]  (!%p2738_p5), %s3358_s7, 1024, %s341_s28, [#allocation15], %s3317_s0, %s3317_s0, %s3319_s12  }
  0x73   : > { %p3324_p6 = scmp.eq.s32.totalorder %s2596_s19, 0  ;;  %p169_p8 = scmp.ne.s32.totalorder %s2564_s11, %s2560_s10 }
  0x74   : > { %p175_p9 = scmp.ne.s32.totalorder %s2560_s10, %s2556_s30  ;;  %p3323_p1 = scmp.lt.s32.totalorder %s2596_s19, 4 }
  0x75   : > { %s385_s29 = sand.u32 1, %s2596_s19   ;;  %p171_p3 = por %p169_p8, %p3324_p6 }
  0x76   : > { %p3359_p10 = scmp.eq.s32.totalorder %s2725_s20, 0  ;;  %s387_s22 = sand.u32 1, %s2564_s11  }
  0x77   : > { %s2834_s27 = sshll.u32 %s387_s22, 5  ;;  %s1850_s9 = sshll.u32 %s2592_s18, 9 }
  0x78   : > { %p2829_p11 = por %p175_p9, %p3359_p10  ;;  %s3362_s5 = sld [smem:[#allocation39_spill]] }
  0x79   : > { %s389_s30 = scalar_lea.vmem [#allocation11], %s2834_s27  ;;  %p2845_p12 = pnand %p3323_p1, %p171_p3 }
  0x7a   : > { %s3360_s21 = scalar_select %p2829_p11, 1, 0 }
  0x7b   : > { %s396_s16 = sshll.u32 %s389_s30, 4  ;;  %s2854_s15 = scalar_lea.hbm %s3306_s6, %s1850_s9  ;;  %s2849_s16 = int_to_ptr.vmem [resolvable:$true] %s396_s16 }
  0x7c   : > { %3361 = sst [smem:[#allocation29_spill]] %s3360_s21  ;;  %s2856_s23 = scalar_lea.sflag [#allocation12], %s385_s29 }
  0x7d   : > { %s3363_s1 = scalar_select %p2845_p12, 1, 0 }
  0x7e   : > { %s2840_s28 = scalar_lea.hbm %s3362_s5, %s1850_s9  ;;  %3364 = sst [smem:[#allocation30_spill]] %s2856_s23 }
  0x7f   : > { %s2284_s0 = scalar_lea.hbm %s2840_s28, 512  ;;  %p3329_p0 = pneg %p2845_p12 }
  0x80   : > { %p2285_p13 = scmp.ne.s32.totalorder %s2840_s28, %s2284_s0  ;;  %s2289_s3 = scalar_lea.hbm %s3362_s5, 1024 }
  0x81   : > { %p2290_p8 = scmp.lt.u32.totalorder %s2840_s28, %s3362_s5  ;;  %p2291_p9 = scmp.lt.u32.totalorder %s2289_s3, %s2284_s0 }
  0x82   : > { %p2287_p2 = pnand %p3329_p0, %p2285_p13  ;;  %p2293_p10 = scmp.lt.u32.totalorder %s2284_s0, %s2840_s28 }
  0x83   : > { %p2292_p3 = por %p2291_p9, %p2290_p8 }
  0x84   : > { %p2288_p4 = pneg %p2287_p2 }
  0x85   : > { %p2294_p1 = por %p2293_p10, %p2292_p3 }
  0x87   : > { %p2295_p6 = pnand %p2294_p1, %p2288_p4 }
  0x89   : > { %2298 = shalt.err (!%p2295_p6)
}
  0x8a   : > { %s2299_s29 = scalar_lea.vmem %s2849_s16, 512  ;;  %s2603_s12 = smov [#allocation11]  }
  0x8b   : > { %p2300_p13 = scmp.ne.s32.totalorder %s2849_s16, %s2299_s29  ;;  %s2304_s9 = sshll.u32 %s2603_s12, 4  ;;  %s2305_s9 = int_to_ptr.vmem [resolvable:$false] %s2304_s9 }
  0x8c   : > { %s2306_s7 = scalar_lea.vmem %s2305_s9, 1024  ;;  %p2307_p5 = scmp.lt.s32.totalorder %s2849_s16, %s2305_s9 }
  0x8d   : > { %p2302_p2 = pnand %p2300_p13, %p3329_p0  ;;  %p2308_p8 = scmp.lt.s32.totalorder %s2306_s7, %s2299_s29 }
  0x8f   : > { %p2303_p11 = pneg %p2302_p2  ;;  %p2309_p9 = por %p2308_p8, %p2307_p5 }
  0x91   : > { %p2310_p3 = pnand %p2309_p9, %p2303_p11 }
  0x93   : > { %2313 = shalt.err (!%p2310_p3)
}
  0x94   : > { %s3365_s3 = smov 4   ;;  %s3366_s0 = smov 64  }
  0x95   : > { %2031 = dma.hbm_to_vmem [thread:$0]  (!%p2845_p12), %s2840_s28, 512, %s2849_s16, %s2856_s23, %s3366_s0, %s3366_s0, %s3365_s3  }
  0x96   : > { %s410_s21 = scalar_lea.vmem [#allocation13], %s2834_s27  ;;  %s2604_s22 = smov [#allocation7]  }
  0x97   : > { %s417_s25 = sshll.u32 %s410_s21, 4  ;;  %s306_s30 = sshll.u32 %s2604_s22, 4  ;;  %s2888_s25 = int_to_ptr.vmem [resolvable:$true] %s417_s25  ;;  %s307_s30 = int_to_ptr.vmem [resolvable:$true] %s306_s30 }
  0x98   : > { %s3367_s2 = sld [smem:[#allocation36_spill]] }
  0x9e   : > { %s2314_s9 = scalar_lea.hbm %s3367_s2, 16 }
  0x9f   : > { %p2315_p5 = scmp.ne.s32.totalorder %s3367_s2, %s2314_s9  ;;  %p2321_p11 = scmp.lt.u32.totalorder %s2314_s9, %s3367_s2 }
  0xa1   : > { %p2317_p6 = pnand %p2315_p5, %p2754_p7 }
  0xa3   : > { %p2318_p1 = pneg %p2317_p6 }
  0xa5   : > { %p2323_p4 = pnand %p2321_p11, %p2318_p1 }
  0xa7   : > { %2326 = shalt.err (!%p2323_p4)
}
  0xa8   : > { %s2327_s27 = scalar_lea.vmem %s307_s30, 16  ;;  %s2334_s16 = scalar_lea.vmem %s307_s30, 32 }
  0xa9   : > { %p2328_p10 = scmp.ne.s32.totalorder %s307_s30, %s2327_s27  ;;  %p2335_p8 = scmp.lt.s32.totalorder %s307_s30, %s307_s30 }
  0xaa   : > { %p2336_p9 = scmp.lt.s32.totalorder %s2334_s16, %s2327_s27 }
  0xab   : > { %p2330_p13 = pnand %p2328_p10, %p2754_p7 }
  0xac   : > { %p2337_p3 = por %p2336_p9, %p2335_p8 }
  0xad   : > { %p2331_p2 = pneg %p2330_p13 }
  0xaf   : > { %p2338_p0 = pnand %p2337_p3, %p2331_p2 }
  0xb1   : > { %2341 = shalt.err (!%p2338_p0)
}
  0xb2   : > { %p3368_p5 = scmp.ne.s32.totalorder %s3354_s26, 0  ;;  %s2605_s10 = smov [#allocation10]  }
  0xb3   : > { %s330_s22 = sshll.u32 %s2605_s10, 4  ;;  %s2606_s29 = smov [#allocation16]   ;;  %s331_s22 = int_to_ptr.vmem [resolvable:$true] %s330_s22 }
  0xb4   : > { %2012 = dma.hbm_to_vmem [thread:$0]  (!%p3368_p5), %s3367_s2, 16, %s307_s30, [#allocation6]  }
  0xb5   : > { %s354_s12 = sshll.u32 %s2606_s29, 4  ;;  %s3369_s4 = sld [smem:[#allocation38_spill]]  ;;  %s355_s12 = int_to_ptr.vmem [resolvable:$true] %s354_s12 }
  0xbb   : > { %s2342_s28 = scalar_lea.hbm %s3369_s4, 16 }
  0xbc   : > { %p2343_p0 = scmp.ne.s32.totalorder %s3369_s4, %s2342_s28  ;;  %p2349_p11 = scmp.lt.u32.totalorder %s2342_s28, %s3369_s4 }
  0xbe   : > { %p2345_p6 = pnand %p2343_p0, %p2754_p7 }
  0xc0   : > { %p2346_p1 = pneg %p2345_p6 }
  0xc2   : > { %p2351_p4 = pnand %p2349_p11, %p2346_p1 }
  0xc4   : > { %2354 = shalt.err (!%p2351_p4)
}
  0xc5   : > { %s2355_s30 = scalar_lea.vmem %s331_s22, 16  ;;  %s2362_s21 = scalar_lea.vmem %s331_s22, 32 }
  0xc6   : > { %p2356_p10 = scmp.ne.s32.totalorder %s331_s22, %s2355_s30  ;;  %p2363_p8 = scmp.lt.s32.totalorder %s331_s22, %s331_s22 }
  0xc7   : > { %p2364_p9 = scmp.lt.s32.totalorder %s2362_s21, %s2355_s30 }
  0xc8   : > { %p2358_p13 = pnand %p2356_p10, %p2754_p7 }
  0xc9   : > { %p2365_p3 = por %p2364_p9, %p2363_p8 }
  0xca   : > { %p2359_p2 = pneg %p2358_p13 }
  0xcc   : > { %p2366_p12 = pnand %p2365_p3, %p2359_p2 }
  0xce   : > { %2369 = shalt.err (!%p2366_p12)
}
  0xcf   : > { %2018 = dma.hbm_to_vmem [thread:$0]  (!%p3368_p5), %s3369_s4, 16, %s331_s22, [#allocation9]  }
  0xd0   : > { %s3370_s8 = sld [smem:[#allocation41_spill]] }
  0xd6   : > { %s2370_s7 = scalar_lea.hbm %s3370_s8, 16 }
  0xd7   : > { %p2371_p0 = scmp.ne.s32.totalorder %s3370_s8, %s2370_s7  ;;  %p2377_p12 = scmp.lt.u32.totalorder %s2370_s7, %s3370_s8 }
  0xd9   : > { %p2373_p6 = pnand %p2371_p0, %p2754_p7 }
  0xdb   : > { %p2374_p1 = pneg %p2373_p6 }
  0xdd   : > { %p2379_p11 = pnand %p2377_p12, %p2374_p1 }
  0xdf   : > { %2382 = shalt.err (!%p2379_p11)
}
  0xe0   : > { %s2383_s30 = scalar_lea.vmem %s355_s12, 16  ;;  %s2390_s22 = scalar_lea.vmem %s355_s12, 32 }
  0xe1   : > { %p2384_p4 = scmp.ne.s32.totalorder %s355_s12, %s2383_s30  ;;  %p2391_p2 = scmp.lt.s32.totalorder %s355_s12, %s355_s12 }
  0xe2   : > { %p2392_p8 = scmp.lt.s32.totalorder %s2390_s22, %s2383_s30 }
  0xe3   : > { %p2386_p10 = pnand %p2384_p4, %p2754_p7 }
  0xe4   : > { %p2393_p9 = por %p2392_p8, %p2391_p2 }
  0xe5   : > { %p2387_p13 = pneg %p2386_p10 }
  0xe7   : > { %p2394_p3 = pnand %p2393_p9, %p2387_p13 }
  0xe9   : > { %2397 = shalt.err (!%p2394_p3)
}
  0xea   : > { %s3371_s24 = sld [smem:[#allocation25_spill]]  ;;  %s1777_s26 = sadd.s32 4294967294, %s2596_s19  }
  0xeb   : > { %2024 = dma.hbm_to_vmem [thread:$0]  (!%p3368_p5), %s3370_s8, 16, %s355_s12, [#allocation15]  }
  0xec   : > { %s40_s29 = sadd.s32 1, %s2588_s17  ;;  %s43_s23 = sadd.s32 1, %s2592_s18 }
  0xed   : > { %p41_p7 = scmp.ge.s32.totalorder %s40_s29, 2  ;;  %s52_s9 = sadd.s32 1, %s2576_s14 }
  0xee   : > { %p59_p0 = scmp.ne.s32.totalorder %s2576_s14, %s2572_s13  ;;  %p3373_p1 = scmp.eq.s32.totalorder %s2596_s19, 0 }
  0xef   : > { %s3420_s29 = smov (%p41_p7, %s40_s29), 0  ;;  %s3422_s23 = smov (!%p41_p7, %s43_s23), %s2592_s18 }
  0xf0   : > { %p65_p6 = scmp.ne.s32.totalorder %s2572_s13, %s3371_s24  ;;  %3372 = sst [smem:[#allocation31_spill]] %s3420_s29 }
  0xf1   : > { %s48_s7 = ssub.s32 %s2588_s17, %s3420_s29  ;;  %p2959_p5 = por %p3373_p1, %p59_p0 }
  0xf2   : > { %p45_p12 = scmp.ge.s32.totalorder %s3422_s23, 2  ;;  %p3375_p11 = scmp.eq.s32.totalorder %s2725_s20, 0 }
  0xf3   : > { %s162_s27 = sadd.s32 1, %s2564_s11  ;;  %p269_p10 = scmp.eq.s32.totalorder %s2725_s20, 3 }
  0xf4   : > { %p2968_p4 = por %p3375_p11, %p65_p6  ;;  %s3424_s23 = smov (%p45_p12, %s3422_s23), 0 }
  0xf5   : > { %3377 = sst [smem:[#allocation32_spill]] %s3424_s23  ;;  %p2976_p13 = por %p269_p10, %p59_p0 }
  0xf6   : > { %s3376_s28 = scalar_select %p2968_p4, 1, 0 }
  0xf7   : > { %s3378_s16 = scalar_select %p2976_p13, 1, 0 }
  0xf8   : > { %p275_p2 = scmp.eq.s32.totalorder %s1777_s26, 3  ;;  %s47_s5 = ssub.s32 %s2592_s18, %s3424_s23 }
  0xf9   : > { %3379 = sst [smem:[#allocation33_spill]] %s3378_s16  ;;  %s365_s30 = sand.u32 1, %s2576_s14  }
  0xfa   : > { %s49_s22 = sor.u32 %s48_s7, %s47_s5  ;;  %p160_p8 = scmp.eq.s32.totalorder %s47_s5, 0 }
  0xfb   : > { %p50_p9 = scmp.eq.s32.totalorder %s49_s22, 0  ;;  %p2986_p3 = por %p275_p2, %p65_p6 }
  0xfc   : > { %s2991_s10 = scalar_select %p160_p8, %s2564_s11, %s162_s27  }
  0xfd   : > { %s3380_s21 = scalar_select %p2986_p3, 1, 0 }
  0xfe   : > { %s2994_s2 = scalar_select %p50_p9, %s2576_s14, %s52_s9  }
  0xff   : > { %s1786_s26 = sshll.u32 %s365_s30, 3  ;;  %s1787_s4 = sshll.u32 %s2592_s18, 1 }
 0x100   : > { %s374_s8 = sadd.s32 %s2588_s17, %s1787_s4  ;;  %s369_s7 = scalar_lea.vmem [#allocation2], %s1786_s26 }
 0x101   : > { %s378_s23 = sshll.u32 %s369_s7, 4  ;;  %s1788_s5 = sshll.u32 %s374_s8, 7  ;;  %s3000_s23 = int_to_ptr.vmem [resolvable:$true] %s378_s23 }
 0x102   : > { %s3381_s29 = sld [smem:[#allocation34_spill]]  ;;  %p3382_p7 = scmp.lt.s32.totalorder %s2596_s19, 4 }
 0x103   : > { %s2398_s27 = scalar_lea.hbm %s2854_s15, 512  ;;  %p3384_p1 = scmp.ne.s32.totalorder %s3363_s1, 0 }
 0x104   : > { %p3011_p0 = pnand %p3382_p7, %p2959_p5  ;;  %p2399_p6 = scmp.ne.s32.totalorder %s2854_s15, %s2398_s27 }
 0x105   : > { %p3385_p12 = pneg %p3384_p1  ;;  %s2403_s26 = scalar_lea.hbm %s3306_s6, 1024 }
 0x106   : > { %p2404_p2 = scmp.lt.u32.totalorder %s2854_s15, %s3306_s6  ;;  %p2405_p8 = scmp.lt.u32.totalorder %s2403_s26, %s2398_s27 }
 0x107   : > { %p2401_p11 = pnand %p2399_p6, %p3385_p12  ;;  %p2407_p5 = scmp.lt.u32.totalorder %s2398_s27, %s2854_s15 }
 0x108   : > { %s3005_s16 = scalar_lea.hbm %s3381_s29, %s1788_s5  ;;  %p2406_p9 = por %p2405_p8, %p2404_p2 }
 0x109   : > { %p2402_p10 = pneg %p2401_p11 }
 0x10a   : > { %p2408_p7 = por %p2407_p5, %p2406_p9 }
 0x10c   : > { %p2409_p3 = pnand %p2408_p7, %p2402_p10 }
 0x10e   : > { %2412 = shalt.err (!%p2409_p3)
}
 0x10f   : > { %s2413_s12 = scalar_lea.vmem %s2888_s25, 512  ;;  %s2607_s5 = smov [#allocation13]  }
 0x110   : > { %p2414_p6 = scmp.ne.s32.totalorder %s2888_s25, %s2413_s12  ;;  %s2418_s22 = sshll.u32 %s2607_s5, 4  ;;  %s2419_s22 = int_to_ptr.vmem [resolvable:$false] %s2418_s22 }
 0x111   : > { %s2420_s4 = scalar_lea.vmem %s2419_s22, 1024  ;;  %p2421_p4 = scmp.lt.s32.totalorder %s2888_s25, %s2419_s22 }
 0x112   : > { %p2416_p11 = pnand %p2414_p6, %p3385_p12  ;;  %p2422_p2 = scmp.lt.s32.totalorder %s2420_s4, %s2413_s12 }
 0x114   : > { %p2417_p13 = pneg %p2416_p11  ;;  %p2423_p8 = por %p2422_p2, %p2421_p4 }
 0x116   : > { %p2424_p9 = pnand %p2423_p8, %p2417_p13 }
 0x118   : > { %2427 = shalt.err (!%p2424_p9)
}
 0x119   : > { %s3386_s27 = sld [smem:[#allocation30_spill]]  ;;  %s366_s8 = scalar_lea.sflag [#allocation3], %s365_s30 }
 0x11a   : > { %s2428_s26 = scalar_lea.hbm %s3005_s16, 128  ;;  %p2430_p13 = pneg %p3011_p0 }
 0x11b   : > { %p2429_p4 = scmp.ne.s32.totalorder %s3005_s16, %s2428_s26  ;;  %s2433_s24 = scalar_lea.hbm %s3381_s29, 512 }
 0x11c   : > { %p2434_p5 = scmp.lt.u32.totalorder %s3005_s16, %s3381_s29  ;;  %p2435_p7 = scmp.lt.u32.totalorder %s2433_s24, %s2428_s26 }
 0x11d   : > { %p2431_p3 = pnand %p2430_p13, %p2429_p4  ;;  %p2437_p6 = scmp.lt.u32.totalorder %s2428_s26, %s3005_s16 }
 0x11f   : > { %2034 = dma.hbm_to_vmem [thread:$0]  (!%p3384_p1), %s2854_s15, 512, %s2888_s25, %s3386_s27, %s3366_s0, %s3366_s0, %s3365_s3  }
 0x120   : > { %p2432_p10 = pneg %p2431_p3  ;;  %p2436_p1 = por %p2435_p7, %p2434_p5 }
 0x122   : > { %p2438_p12 = por %p2437_p6, %p2436_p1 }
 0x124   : > { %p2439_p11 = pnand %p2438_p12, %p2432_p10 }
 0x126   : > { %2442 = shalt.err (!%p2439_p11)
}
 0x127   : > { %s2443_s15 = scalar_lea.vmem %s3000_s23, 128  ;;  %s2608_s3 = smov [#allocation2]  }
 0x128   : > { %p2444_p2 = scmp.ne.s32.totalorder %s3000_s23, %s2443_s15  ;;  %s2448_s0 = sshll.u32 %s2608_s3, 4  ;;  %s2449_s0 = int_to_ptr.vmem [resolvable:$false] %s2448_s0 }
 0x129   : > { %s2450_s25 = scalar_lea.vmem %s2449_s0, 256  ;;  %p2451_p4 = scmp.lt.s32.totalorder %s3000_s23, %s2449_s0 }
 0x12a   : > { %p2446_p8 = pnand %p2444_p2, %p2430_p13  ;;  %p2452_p3 = scmp.lt.s32.totalorder %s2450_s25, %s2443_s15 }
 0x12c   : > { %p2447_p9 = pneg %p2446_p8  ;;  %p2453_p5 = por %p2452_p3, %p2451_p4 }
 0x12e   : > { %p2454_p7 = pnand %p2453_p5, %p2447_p9 }
 0x130   : > { %2457 = shalt.err (!%p2454_p7)
}
 0x131   : > { %2028 = dma.hbm_to_vmem [thread:$0]  (!%p3011_p0), %s3005_s16, 128, %s3000_s23, %s366_s8  }
 0x132   : > { %s3387_s30 = sld [smem:[#allocation28_spill]] }
 0x138   : > { %p3388_p10 = scmp.ne.s32.totalorder %s3387_s30, 0 }
 0x139   : > { %s3072_s22 = sand.u32 (!%p3388_p10), 1, %s2572_s13   ;;  %p3389_p13 = scmp.ne.s32.totalorder (!%p3388_p10), %s3376_s28, 0 }
 0x13a   : > { %429 = sbr.rel (%p3388_p10) target bundleno = 2149 (0x865), region = 56  ;;  %s1796_s4 = sshll.u32 (!%p3388_p10), %s3072_s22, 3 }
 0x13b   : > { %s432_s27 = scalar_lea.sflag (!%p3388_p10), [#allocation3], %s3072_s22  ;;  %s435_s26 = scalar_lea.vmem (!%p3388_p10), [#allocation2], %s1796_s4 }
 0x141   : > { %2531 = dma.done.wait (%p3389_p13), %s432_s27, 128  }
 0x142   : > { %2533 = vsyncadd (%p3389_p13), %s432_s27, 4294967168  ;;  %p3390_p0 = scmp.eq.s32.totalorder %s2725_s20, 0 }
 0x144   : > { %2535 = dma.done.wait (%p3390_p0), [#allocation6], 32   ;;  %p3391_p1 = pmov %p3390_p0 }
 0x145   : > { %p3392_p6 = pmov %p3390_p0 }
 0x146   : > { %2537 = vsyncadd (%p3391_p1), [#allocation6], 4294967264 }
 0x147   : > { %2539 = dma.done.wait (%p3392_p6), [#allocation9], 1040   ;;  %p3393_p12 = pmov %p3390_p0 }
 0x148   : > { %s3394_s23 = sld [smem:[#allocation24_spill]]  ;;  %s3395_s16 = sld [smem:[#allocation29_spill]] }
 0x149   : > { %2541 = vsyncadd (%p3393_p12), [#allocation9], 4294966256  ;;  %s456_s9 = sand.u32 1, %s2725_s20  }
 0x14a   : > { %s457_s28 = scalar_lea.sflag [#allocation12], %s456_s9 }
 0x14e   : > { %s458_s8 = sand.u32 1, %s3394_s23   ;;  %p3396_p11 = scmp.ne.s32.totalorder %s3395_s16, 0 }
 0x14f   : > { %s1801_s1 = sshll.u32 %s458_s8, 5 }
 0x150   : > { %s3092_s7 = scalar_lea.vmem [#allocation11], %s1801_s1 }
 0x151   : > { %2543 = dma.done.wait (%p3396_p11), %s457_s28, 1024  }
 0x152   : > { %2545 = vsyncadd (%p3396_p11), %s457_s28, 4294966272  ;;  %s3098_s24 = scalar_lea.vmem [#allocation13], %s1801_s1  ;;  %p3397_p2 = pmov %p3390_p0 }
 0x153   : > { %p3398_p8 = pmov %p3390_p0 }
 0x154   : > { %2547 = dma.done.wait (%p3397_p2), [#allocation15], 1040  }
 0x155   : > { %2549 = vsyncadd (%p3398_p8), [#allocation15], 4294966256  ;;  %v3104_v0 = vld [vmem:[%s435_s26] sm:$0xff]  ;;  %v2158_v1 = vld [vmem:[#allocation8] sm:$0xff]   ;;  %v2609_v2 = vmov 0.0   ;;  %vm2610_vm0 = vmmov 0   ;;  %v554_v33 = vlaneseq }
 0x156   : > { %526 = vadd.xlane.f32.xlu0 %v3104_v0  ;;  %1886 = vmatprep.subr.bf16.mxu0 %v2609_v2  ;;  %v2159_v3 = vld [vmem:[#allocation8 + $0x8] sm:$0xff]   ;;  %v2160_v8 = vld [vmem:[#allocation8 + $0x10] sm:$0xff]   ;;  %v2161_v9 = vld [vmem:[#allocation8 + $0x18] sm:$0xff]   ;;  %s2611_s20 = smov 32   ;;  %s2612_s12 = smov 96   ;;  %vm863_vm1 = vcmask 261120  }
 0x157   : > { %1906 = vmatprep.subr.bf16.mxu1 %v2609_v2  ;;  %1887 = vmatpush3.bf16.msra.mxu0 %v2158_v1  ;;  %v2162_v10 = vld [vmem:[#allocation8 + $0x20] sm:$0xff]   ;;  %v2163_v11 = vld [vmem:[#allocation8 + $0x28] sm:$0xff]   ;;  %v2164_v12 = vld [vmem:[#allocation8 + $0x30] sm:$0xff]   ;;  %s2613_s5 = smov 64   ;;  %v2614_v34 = vmov 1983009808  }
 0x158   : > { %1888 = vmatprep.subr.bf16.mxu0 %v2609_v2  ;;  %1902 = vmatprep.mubr.msk.bf16.mxu0 %vm2610_vm0, %v2609_v2  ;;  %v2165_v13 = vld [vmem:[#allocation8 + $0x38] sm:$0xff]   ;;  %v1809_v24 = vld [vmem:[#allocation10] ss:$0 sm:$0xff]  ;;  %v2166_v31 = vld [vmem:[%s3092_s7] sm:$0xff]   ;;  %v698_v35 = vunpack.c.l.s4 %v2614_v34  ;;  %v2615_v36 = vmov 1934713408  }
 0x159   : > { %1908 = vmatprep.mubr.msk.bf16.mxu1 %vm2610_vm0, %v2609_v2  ;;  %v1806_v18 = vld [vmem:[#allocation5] ss:$0 sm:$0xff]  ;;  %v1807_v20 = vld [vmem:[#allocation7] ss:$0 sm:$0xff]  ;;  %v868_v32 = vsel %vm863_vm1, %v2166_v31, 0  ;;  %v715_v37 = vunpack.c.l.s4 %v2615_v36  ;;  %v3131_v38 = vshrl.u32 %v554_v33, 7 }
 0x15a   : > { %1907 = vmatpush3.bf16.xpose.msra.mxu1 %v868_v32  ;;  %v699_v39 = vunpack.c.0.s8 %v698_v35  ;;  %v2616_v56 = vmov 0   ;;  %v2168_v34 = vld [vmem:[%s3092_s7 + $0x10] sm:$0xff]   ;;  %s3399_s15 = sld [smem:[#allocation26_spill]]  ;;  %vm1063_vm3 = vcmask 130048   ;;  %s3400_s0 = sld [smem:[#allocation27_spill]]  ;;  %vm1457_vm4 = vcmask 523264  }
 0x15b   : > { %1889 = vmatpush3.bf16.msra.mxu0 %v2159_v3  ;;  %1912 = vmatprep.subr.bf16.mxu1 %v2609_v2  ;;  %v716_v40 = vunpack.c.0.s8 %v715_v37  ;;  %v970_v37 = vsel %vm863_vm1, %v2168_v34, 0  ;;  %vm1459_vm5 = vcmask 785408   ;;  %s3401_s27 = sld [smem:[#allocation33_spill]]  ;;  %s521_s23 = scalar_lea.vmem [#allocation17], %s1796_s4 }
 0x15c   : > { %1890 = vmatprep.subr.bf16.mxu0 %v2609_v2  ;;  %v3134_v41 = vsub.s32 %v699_v39, %v3131_v38  ;;  %s1591_s16 = sshll.u32 %s521_s23, 4  ;;  %s3402_s1 = sld [smem:[#allocation42_spill]]  ;;  %s3239_s16 = int_to_ptr.vmem [resolvable:$true] %s1591_s16 }
 0x15d   : > { %v3138_v45 = vsub.s32 %v716_v40, %v3131_v38  ;;  %v2169_v40 = vld [vmem:[%s3092_s7 + $0x18] sm:$0xff]   ;;  %s2458_s4 = scalar_lea.vmem %s3239_s16, 128 }
 0x15e   : > { %p2459_p9 = scmp.ne.s32.totalorder %s3239_s16, %s2458_s4 }
 0x15f   : > { %1891 = vmatpush3.bf16.msra.mxu0 %v2160_v8 }
 0x160   : > { %1892 = vmatprep.subr.bf16.mxu0 %v2609_v2  ;;  %s1808_s3 = sshll.u32 %s3399_s15, 3  ;;  %s1846_s25 = sshll.u32 %s3400_s0, 1 }
 0x161   : > { %s1587_s30 = sadd.s32 %s3399_s15, %s1846_s25  ;;  %p3403_p4 = scmp.ne.s32.totalorder %s3401_s27, 0 }
 0x162   : > { %s1847_s26 = sshll.u32 %s1587_s30, 7 }
 0x163   : > { %1893 = vmatpush3.bf16.msra.mxu0 %v2161_v9  ;;  %s3237_s28 = scalar_lea.hbm %s3402_s1, %s1847_s26  ;;  %p2460_p3 = pnand %p2459_p9, %p3403_p4 }
 0x164   : > { %1894 = vmatprep.subr.bf16.mxu0 %v2609_v2 }
 0x165   : > { %p2461_p5 = pneg %p2460_p3 }
 0x167   : > { %1895 = vmatpush3.bf16.msra.mxu0 %v2162_v10 }
 0x168   : > { %1896 = vmatprep.subr.bf16.mxu0 %v2609_v2 }
 0x16b   : > { %1897 = vmatpush3.bf16.msra.mxu0 %v2163_v11 }
 0x16c   : > { %1898 = vmatprep.subr.bf16.mxu0 %v2609_v2 }
 0x16f   : > { %1899 = vmatpush3.bf16.msra.mxu0 %v2164_v12 }
 0x170   : > { %1900 = vmatprep.subr.bf16.mxu0 %v2609_v2 }
 0x173   : > { %1901 = vmatpush3.bf16.msra.mxu0 %v2165_v13 }
 0x174   : > { %1954 = vmatprep.subr.bf16.mxu0 %v2609_v2 }
 0x1e3   : > { %v527_v4 = vpop.xlane.xlu0 %526 }
 0x1e4   : > { %v529_v5 = vmul.f32 0.0078125, %v527_v4 }
 0x1e6   : > { %v530_v6 = vsub.f32 %v3104_v0, %v529_v5 }
 0x1e8   : > { %v531_v7 = vmul.f32 %v530_v6, %v530_v6 }
 0x1ea   : > { %532 = vadd.xlane.f32.xlu0 %v531_v7 }
 0x277   : > { %v533_v14 = vpop.xlane.xlu0 %532 }
 0x278   : > { %v534_v15 = vmul.f32 0.0078125, %v533_v14 }
 0x27a   : > { %v535_v16 = vadd.f32 1e-05, %v534_v15 }
 0x27c   : > { %2182 = vrsqrt.f32 %v535_v16 }
 0x286   : > { %v2183_v17 = vpop.eup %2182 }
 0x287   : > { %v537_v19 = vmul.f32 %v2183_v17, %v530_v6 }
 0x289   : > { %v544_v21 = vmul.f32 %v1806_v18, %v537_v19 }
 0x28b   : > { %v551_v22 = vadd.f32 %v1807_v20, %v544_v21 }
 0x28d   : > { %v552_v23 = vpack.c.bf16 %v551_v22, %v551_v22 }
 0x28f   : > { %1903 = vmatmul.mubr.bf16.vlgmr.msra.gmra.mrb[0].mxu0 %v552_v23 }
 0x290   : > { %1970 = vmatprep.mubr.msk.bf16.mxu0 %vm2610_vm0, %v2609_v2 }
 0x362   : > { %v683_v25 = vpop.f32.mrb[0].mxu0 }
 0x363   : > { %v684_v26 = vadd.f32 %v1809_v24, %v683_v25  ;;  %v1904_v27 = vpop.f32.mrb[1].mxu0 }
 0x364   : > { %v686_v28 = vpop.f32.mrb[2].mxu0  ;;  %v2167_v27 = vld [vmem:[%s3092_s7 + $0x8] sm:$0xff]   ;;  %s1576_s7 = scalar_lea.sflag [#allocation4], %s3072_s22 }
 0x365   : > { %v689_v29 = vpack.c.bf16 %v684_v26, %v684_v26  ;;  %v1905_v30 = vpop.f32.mrb[3].mxu0  ;;  %v919_v31 = vsel %vm863_vm1, %v2167_v27, 0 }
 0x367   : > { %695 = vrot.lane.b32.xlu0 %v689_v29, %s2611_s20  ;;  %691 = vrot.lane.b32.xlu1 %v689_v29, %s2612_s12  ;;  %v703_v52 = vrot.slane %v689_v29, %v3134_v41 }
 0x36b   : > { %693 = vrot.lane.b32.xlu1 %v689_v29, %s2613_s5 }
 0x3d9   : > { %v696_v42 = vpop.permute.xlu0 %695  ;;  %v692_v43 = vpop.permute.xlu1 %691 }
 0x3da   : > { %v745_v44 = vrot.slane %v696_v42, %v3134_v41  ;;  %v737_v46 = vrot.slane %v692_v43, %v3134_v41 }
 0x3dc   : > { %v746_v47 = vcombine.low %v737_v46, %v745_v44  ;;  %v747_v48 = vcombine.high %v737_v46, %v745_v44  ;;  %v1021_v44 = vsel %vm863_vm1, %v2169_v40, 0 }
 0x3dd   : > { %v694_v49 = vpop.permute.xlu1 %693 }
 0x3de   : > { %v754_v50 = vrot.slane %v746_v47, %v3138_v45  ;;  %v711_v51 = vrot.slane %v694_v49, %v3134_v41  ;;  %v761_v53 = vrot.slane %v747_v48, %v3138_v45  ;;  %v556_v49 = vstv %s1808_s3 }
 0x3e0   : > { %v712_v54 = vcombine.low %v703_v52, %v711_v51  ;;  %v713_v55 = vcombine.high %v703_v52, %v711_v51  ;;  %v762_v57 = vcombine.high %v754_v50, %v2616_v56  ;;  %v763_v60 = vcombine.high %v761_v53, %v2616_v56 }
 0x3e1   : > { %v769_v61 = vshrl.u32 %v754_v50, 16  ;;  %v785_v5 = vshrl.u32 %v761_v53, 16  ;;  %v559_v51 = vand.u32 127, %v554_v33  ;;  %v2617_v52 = vmov -1e+30  }
 0x3e2   : > { %v720_v58 = vrot.slane %v712_v54, %v3138_v45  ;;  %v727_v59 = vrot.slane %v713_v55, %v3138_v45  ;;  %v777_v4 = vshrl.u32 %v762_v57, 16  ;;  %v793_v12 = vshrl.u32 %v763_v60, 16 }
 0x3e4   : > { %v728_v62 = vcombine.high %v720_v58, %v2616_v56  ;;  %v729_v63 = vcombine.high %v727_v59, %v2616_v56  ;;  %v766_v1 = vpack.i.b16 %v754_v50, %v720_v58  ;;  %v768_v3 = vshrl.u32 %v720_v58, 16 }
 0x3e5   : > { %v782_v6 = vpack.i.b16 %v761_v53, %v727_v59  ;;  %v784_v7 = vshrl.u32 %v727_v59, 16  ;;  %v557_v50 = vadd.s32 %v556_v49, %v3131_v38 }
 0x3e6   : > { %v770_v8 = vpack.i.b16 %v769_v61, %v768_v3  ;;  %v774_v9 = vpack.i.b16 %v762_v57, %v728_v62  ;;  %v776_v10 = vshrl.u32 %v728_v62, 16  ;;  %v790_v11 = vpack.i.b16 %v763_v60, %v729_v63 }
 0x3e7   : > { %v786_v13 = vpack.i.b16 %v785_v5, %v784_v7  ;;  %v792_v14 = vshrl.u32 %v729_v63, 16  ;;  %v796_v15 = vcombine.low %v766_v1, %v782_v6  ;;  %vm560_vm2 = vcmp.ge.s32.totalorder %v557_v50, %v559_v51 }
 0x3e8   : > { %v778_v16 = vpack.i.b16 %v777_v4, %v776_v10  ;;  %v804_v17 = vcombine.low %v774_v9, %v790_v11  ;;  %v561_v53 = vsel %vm560_vm2, 0.0, %v2617_v52 }
 0x3e9   : > { %v794_v18 = vpack.i.b16 %v793_v12, %v792_v14  ;;  %v821_v19 = vcombine.low %v770_v8, %v786_v13  ;;  %v803_v21 = vrot.slane %v796_v15, %v3134_v41 }
 0x3ea   : > { %v811_v20 = vrot.slane %v804_v17, %v3134_v41 }
 0x3eb   : > { %v829_v22 = vcombine.low %v778_v16, %v794_v18  ;;  %v828_v23 = vrot.slane %v821_v19, %v3134_v41 }
 0x3ec   : > { %v812_v24 = vcombine.low %v803_v21, %v811_v20 }
 0x3ed   : > { %v836_v25 = vrot.slane %v829_v22, %v3134_v41 }
 0x3ee   : > { %v819_v28 = vrot.slane %v812_v24, %v3138_v45 }
 0x3ef   : > { %v837_v26 = vcombine.low %v828_v23, %v836_v25 }
 0x3f0   : > { %v849_v35 = vshrl.u32 %v819_v28, 16  ;;  %v820_v42 = vcombine.high %v819_v28, %v2616_v56 }
 0x3f1   : > { %v844_v29 = vrot.slane %v837_v26, %v3138_v45 }
 0x3f2   : > { %v855_v47 = vshrl.u32 %v820_v42, 16 }
 0x3f3   : > { %v848_v30 = vpack.i.b16 %v844_v29, %v819_v28  ;;  %v850_v32 = vshrl.u32 %v844_v29, 16  ;;  %v845_v39 = vcombine.high %v844_v29, %v2616_v56 }
 0x3f5   : > { %1909 = vmatmul.mubr.msk.bf16.vlgmr.msra.gmra.mrb[0].mxu1 %vm863_vm1, %v848_v30  ;;  %v851_v36 = vpack.i.b16 %v850_v32, %v849_v35  ;;  %v854_v43 = vpack.i.b16 %v845_v39, %v820_v42  ;;  %v856_v46 = vshrl.u32 %v845_v39, 16  ;;  %v2170_v35 = vld [vmem:[%s3098_s24] sm:$0xff]   ;;  %v2171_v42 = vld [vmem:[%s3098_s24 + $0x8] sm:$0xff]  }
 0x3f6   : > { %1913 = vmatpush3.bf16.xpose.msra.mxu1 %v919_v31  ;;  %1914 = vmatprep.mubr.msk.bf16.mxu1 %vm2610_vm0, %v2609_v2 }
 0x3f7   : > { %1918 = vmatprep.subr.bf16.mxu1 %v2609_v2  ;;  %v857_v48 = vpack.i.b16 %v856_v46, %v855_v47 }
 0x3fd   : > { %1915 = vmatmul.mubr.msk.bf16.vlgmr.msra.gmra.mrb[4].mxu1 %vm863_vm1, %v851_v36 }
 0x3fe   : > { %1919 = vmatpush3.bf16.xpose.msra.mxu1 %v970_v37  ;;  %1920 = vmatprep.mubr.msk.bf16.mxu1 %vm2610_vm0, %v2609_v2 }
 0x3ff   : > { %1924 = vmatprep.subr.bf16.mxu1 %v2609_v2 }
 0x405   : > { %1921 = vmatmul.mubr.msk.bf16.vlgmr.msra.gmra.mrb[8].mxu1 %vm863_vm1, %v854_v43 }
 0x406   : > { %1925 = vmatpush3.bf16.xpose.msra.mxu1 %v1021_v44  ;;  %1926 = vmatprep.mubr.msk.bf16.mxu1 %vm2610_vm0, %v2609_v2 }
 0x407   : > { %1930 = vmatprep.subr.bf16.mxu1 %v2609_v2 }
 0x40d   : > { %1927 = vmatmul.mubr.msk.bf16.vlgmr.msra.gmra.mrb[12].mxu1 %vm863_vm1, %v857_v48  ;;  %v2172_v48 = vld [vmem:[%s3098_s24 + $0x10] sm:$0xff]  }
 0x40e   : > { %1932 = vmatprep.mubr.msk.bf16.mxu1 %vm2610_vm0, %v2609_v2  ;;  %1931 = vmatpush3.bf16.msra.mxu1 %v2170_v35 }
 0x40f   : > { %1936 = vmatprep.subr.bf16.mxu1 %v2609_v2 }
 0x4c8   : > { %v904_v54 = vpop.f32.mrb[0].mxu1 }
 0x4c9   : > { %v905_v55 = vadd.f32 %v904_v54, %v561_v53  ;;  %v1910_v56 = vpop.f32.mrb[1].mxu1 }
 0x4ca   : > { %v907_v57 = vpop.f32.mrb[2].mxu1 }
 0x4cb   : > { %v1911_v58 = vpop.f32.mrb[3].mxu1  ;;  %v1064_v59 = vsel %vm1063_vm3, %v905_v55, -inf }
 0x4cc   : > { %1065 = vmax.xlane.f32.xlu1 %v1064_v59  ;;  %v2174_v58 = vld [vmem:[#allocation14] sm:$0xff]   ;;  %v2175_v59 = vld [vmem:[#allocation14 + $0x8] sm:$0xff]  }
 0x4cd   : > { %1955 = vmatpush3.bf16.msra.mxu0 %v2174_v58 }
 0x4ce   : > { %1956 = vmatprep.subr.bf16.mxu0 %v2609_v2 }
 0x4d0   : > { %v955_v60 = vpop.f32.mrb[4].mxu1 }
 0x4d1   : > { %v956_v61 = vadd.f32 %v955_v60, %v561_v53  ;;  %v1916_v62 = vpop.f32.mrb[5].mxu1  ;;  %1957 = vmatpush3.bf16.msra.mxu0 %v2175_v59  ;;  %v2176_v60 = vld [vmem:[#allocation14 + $0x10] sm:$0xff]  }
 0x4d2   : > { %v958_v63 = vpop.f32.mrb[6].mxu1  ;;  %1958 = vmatprep.subr.bf16.mxu0 %v2609_v2  ;;  %v2178_v62 = vld [vmem:[#allocation14 + $0x20] sm:$0xff]  }
 0x4d3   : > { %v1917_v1 = vpop.f32.mrb[7].mxu1  ;;  %v1067_v38 = vsel %vm1063_vm3, %v956_v61, -inf  ;;  %v2179_v63 = vld [vmem:[#allocation14 + $0x28] sm:$0xff]  }
 0x4d4   : > { %1068 = vmax.xlane.f32.xlu0 %v1067_v38 }
 0x4d5   : > { %1959 = vmatpush3.bf16.msra.mxu0 %v2176_v60 }
 0x4d6   : > { %1960 = vmatprep.subr.bf16.mxu0 %v2609_v2 }
 0x4d8   : > { %v1006_v33 = vpop.f32.mrb[8].mxu1 }
 0x4d9   : > { %v1007_v3 = vadd.f32 %v1006_v33, %v561_v53  ;;  %v1922_v4 = vpop.f32.mrb[9].mxu1 }
 0x4da   : > { %v1009_v5 = vpop.f32.mrb[10].mxu1 }
 0x4db   : > { %v1923_v6 = vpop.f32.mrb[11].mxu1  ;;  %v1070_v7 = vsel %vm1063_vm3, %v1007_v3, -inf }
 0x4dc   : > { %1071 = vmax.xlane.f32.xlu1 %v1070_v7 }
 0x4e0   : > { %v1057_v8 = vpop.f32.mrb[12].mxu1 }
 0x4e1   : > { %v1058_v9 = vadd.f32 %v1057_v8, %v561_v53  ;;  %v1928_v10 = vpop.f32.mrb[13].mxu1  ;;  %v2173_v53 = vld [vmem:[%s3098_s24 + $0x18] sm:$0xff]   ;;  %s2618_s24 = smov [#allocation17]  }
 0x4e2   : > { %v1060_v11 = vpop.f32.mrb[14].mxu1 }
 0x4e3   : > { %v1929_v12 = vpop.f32.mrb[15].mxu1  ;;  %v1073_v13 = vsel %vm1063_vm3, %v1058_v9, -inf }
 0x4e4   : > { %1074 = vmax.xlane.f32.xlu1 %v1073_v13 }
 0x559   : > { %v1066_v14 = vpop.xlane.xlu1 %1065 }
 0x55a   : > { %v1076_v15 = vsub.f32 %v905_v55, %v1066_v14 }
 0x55c   : > { %v1080_v16 = vmul.f32 1.442695, %v1076_v15 }
 0x55e   : > { %2184 = vpow2.f32 %v1080_v16 }
 0x561   : > { %v1069_v17 = vpop.xlane.xlu0 %1068 }
 0x562   : > { %v1077_v18 = vsub.f32 %v956_v61, %v1069_v17  ;;  %v2177_v61 = vld [vmem:[#allocation14 + $0x18] sm:$0xff]  }
 0x563   : > { %1961 = vmatpush3.bf16.msra.mxu0 %v2177_v61 }
 0x564   : > { %v1082_v19 = vmul.f32 1.442695, %v1077_v18  ;;  %1962 = vmatprep.subr.bf16.mxu0 %v2609_v2 }
 0x566   : > { %2186 = vpow2.f32 %v1082_v19 }
 0x567   : > { %1963 = vmatpush3.bf16.msra.mxu0 %v2178_v62  ;;  %v1836_v62 = vld [vmem:[#allocation16] ss:$0 sm:$0xff] }
 0x568   : > { %v2185_v20 = vpop.eup %2184  ;;  %1964 = vmatprep.subr.bf16.mxu0 %v2609_v2 }
 0x569   : > { %v1072_v21 = vpop.xlane.xlu1 %1071  ;;  %v1088_v22 = vsel %vm1063_vm3, %v2185_v20, 0.0 }
 0x56a   : > { %v1078_v23 = vsub.f32 %v1007_v3, %v1072_v21  ;;  %1089 = vadd.xlane.f32.xlu1 %v1088_v22 }
 0x56b   : > { %1965 = vmatpush3.bf16.msra.mxu0 %v2179_v63 }
 0x56c   : > { %v1084_v24 = vmul.f32 1.442695, %v1078_v23  ;;  %1966 = vmatprep.subr.bf16.mxu0 %v2609_v2 }
 0x56e   : > { %2188 = vpow2.f32 %v1084_v24  ;;  %v2180_v24 = vld [vmem:[#allocation14 + $0x30] sm:$0xff]  }
 0x56f   : > { %1967 = vmatpush3.bf16.msra.mxu0 %v2180_v24 }
 0x570   : > { %v2187_v25 = vpop.eup %2186  ;;  %1968 = vmatprep.subr.bf16.mxu0 %v2609_v2 }
 0x571   : > { %v1075_v26 = vpop.xlane.xlu1 %1074  ;;  %v1091_v27 = vsel %vm1063_vm3, %v2187_v25, 0.0 }
 0x572   : > { %v1079_v28 = vsub.f32 %v1058_v9, %v1075_v26  ;;  %1092 = vadd.xlane.f32.xlu1 %v1091_v27 }
 0x574   : > { %v1086_v29 = vmul.f32 1.442695, %v1079_v28 }
 0x576   : > { %2190 = vpow2.f32 %v1086_v29 }
 0x578   : > { %v2189_v30 = vpop.eup %2188 }
 0x579   : > { %v1094_v31 = vsel %vm1063_vm3, %v2189_v30, 0.0 }
 0x57a   : > { %1095 = vadd.xlane.f32.xlu1 %v1094_v31 }
 0x580   : > { %v2191_v32 = vpop.eup %2190 }
 0x581   : > { %v1097_v34 = vsel %vm1063_vm3, %v2191_v32, 0.0 }
 0x582   : > { %1098 = vadd.xlane.f32.xlu0 %v1097_v34  ;;  %v2181_v34 = vld [vmem:[#allocation14 + $0x38] sm:$0xff]  }
 0x583   : > { %1969 = vmatpush3.bf16.msra.mxu0 %v2181_v34 }
 0x5f7   : > { %v1090_v36 = vpop.xlane.xlu1 %1089 }
 0x5f8   : > { %2192 = vrcp.f32 %v1090_v36 }
 0x5ff   : > { %v1093_v37 = vpop.xlane.xlu1 %1092 }
 0x600   : > { %2194 = vrcp.f32 %v1093_v37 }
 0x602   : > { %v2193_v39 = vpop.eup %2192 }
 0x603   : > { %v1101_v40 = vmul.f32 %v2193_v39, %v2185_v20 }
 0x605   : > { %v1108_v43 = vpack.c.bf16 %v1101_v40, %v1101_v40 }
 0x607   : > { %1933 = vmatmul.mubr.msk.bf16.vlgmr.msra.gmra.mrb[16].mxu1 %vm1063_vm3, %v1108_v43  ;;  %v1096_v44 = vpop.xlane.xlu1 %1095 }
 0x608   : > { %1937 = vmatpush3.bf16.msra.mxu1 %v2171_v42  ;;  %2196 = vrcp.f32 %v1096_v44  ;;  %1938 = vmatprep.mubr.msk.bf16.mxu1 %vm2610_vm0, %v2609_v2 }
 0x609   : > { %1942 = vmatprep.subr.bf16.mxu1 %v2609_v2 }
 0x60a   : > { %v2195_v46 = vpop.eup %2194 }
 0x60b   : > { %v1103_v47 = vmul.f32 %v2195_v46, %v2187_v25 }
 0x60d   : > { %v1109_v49 = vpack.c.bf16 %v1103_v47, %v1103_v47 }
 0x60f   : > { %v1099_v50 = vpop.xlane.xlu0 %1098  ;;  %1939 = vmatmul.mubr.msk.bf16.vlgmr.msra.gmra.mrb[20].mxu1 %vm1063_vm3, %v1109_v49 }
 0x610   : > { %2198 = vrcp.f32 %v1099_v50  ;;  %1943 = vmatpush3.bf16.msra.mxu1 %v2172_v48  ;;  %1944 = vmatprep.mubr.msk.bf16.mxu1 %vm2610_vm0, %v2609_v2 }
 0x611   : > { %1948 = vmatprep.subr.bf16.mxu1 %v2609_v2 }
 0x612   : > { %v2197_v51 = vpop.eup %2196 }
 0x613   : > { %v1105_v52 = vmul.f32 %v2197_v51, %v2189_v30 }
 0x615   : > { %v1110_v54 = vpack.c.bf16 %v1105_v52, %v1105_v52 }
 0x617   : > { %1945 = vmatmul.mubr.msk.bf16.vlgmr.msra.gmra.mrb[24].mxu1 %vm1063_vm3, %v1110_v54 }
 0x618   : > { %1949 = vmatpush3.bf16.msra.mxu1 %v2173_v53  ;;  %1950 = vmatprep.mubr.msk.bf16.mxu1 %vm2610_vm0, %v2609_v2 }
 0x61a   : > { %v2199_v55 = vpop.eup %2198 }
 0x61b   : > { %v1107_v56 = vmul.f32 %v2199_v55, %v2191_v32 }
 0x61d   : > { %v1111_v57 = vpack.c.bf16 %v1107_v56, %v1107_v56 }
 0x61f   : > { %1951 = vmatmul.mubr.msk.bf16.vlgmr.msra.gmra.mrb[28].mxu1 %vm1063_vm3, %v1111_v57 }
 0x6da   : > { %v1155_v1 = vpop.f32.mrb[16].mxu1 }
 0x6db   : > { %v1934_v38 = vpop.f32.mrb[17].mxu1 }
 0x6dc   : > { %v1158_v33 = vpop.f32.mrb[18].mxu1 }
 0x6dd   : > { %v1935_v3 = vpop.f32.mrb[19].mxu1 }
 0x6e2   : > { %v1204_v4 = vpop.f32.mrb[20].mxu1 }
 0x6e3   : > { %v1940_v5 = vpop.f32.mrb[21].mxu1 }
 0x6e4   : > { %v1207_v6 = vpop.f32.mrb[22].mxu1 }
 0x6e5   : > { %v1941_v7 = vpop.f32.mrb[23].mxu1 }
 0x6ea   : > { %v1253_v8 = vpop.f32.mrb[24].mxu1 }
 0x6eb   : > { %v1308_v9 = vcombine.low %v1155_v1, %v1253_v8  ;;  %v1309_v10 = vcombine.high %v1155_v1, %v1253_v8  ;;  %v1946_v11 = vpop.f32.mrb[25].mxu1 }
 0x6ec   : > { %v1256_v12 = vpop.f32.mrb[26].mxu1 }
 0x6ed   : > { %v1947_v13 = vpop.f32.mrb[27].mxu1  ;;  %v1316_v19 = vrot.slane %v1308_v9, %v3134_v41  ;;  %v1323_v20 = vrot.slane %v1309_v10, %v3134_v41 }
 0x6f2   : > { %v1302_v14 = vpop.f32.mrb[28].mxu1 }
 0x6f3   : > { %v1324_v15 = vcombine.low %v1204_v4, %v1302_v14  ;;  %v1325_v16 = vcombine.high %v1204_v4, %v1302_v14  ;;  %v1952_v17 = vpop.f32.mrb[29].mxu1 }
 0x6f4   : > { %v1305_v18 = vpop.f32.mrb[30].mxu1 }
 0x6f5   : > { %v1332_v21 = vrot.slane %v1324_v15, %v3134_v41  ;;  %v1339_v22 = vrot.slane %v1325_v16, %v3134_v41  ;;  %v1953_v23 = vpop.f32.mrb[31].mxu1 }
 0x6f7   : > { %v1340_v25 = vcombine.low %v1316_v19, %v1332_v21  ;;  %v1341_v26 = vcombine.high %v1316_v19, %v1332_v21  ;;  %v1356_v27 = vcombine.low %v1323_v20, %v1339_v22  ;;  %v1357_v28 = vcombine.high %v1323_v20, %v1339_v22 }
 0x6f9   : > { %v1348_v29 = vrot.slane %v1340_v25, %v3138_v45  ;;  %v1355_v30 = vrot.slane %v1341_v26, %v3138_v45  ;;  %v1364_v31 = vrot.slane %v1356_v27, %v3138_v45  ;;  %v1371_v32 = vrot.slane %v1357_v28, %v3138_v45 }
 0x6fb   : > { %v1376_v35 = vcombine.low %v1348_v29, %v1355_v30  ;;  %v1834_v36 = vcombine.high %v1348_v29, %v1355_v30  ;;  %v1392_v37 = vcombine.low %v1364_v31, %v1371_v32  ;;  %v1835_v39 = vcombine.high %v1364_v31, %v1371_v32 }
 0x6fd   : > { %v1383_v40 = vrot.slane %v1376_v35, %v3134_v41  ;;  %v1391_v42 = vrot.slane %v1834_v36, %v3134_v41  ;;  %v1399_v43 = vrot.slane %v1392_v37, %v3134_v41  ;;  %v1407_v44 = vrot.slane %v1835_v39, %v3134_v41 }
 0x6ff   : > { %v1409_v46 = vcombine.high %v1383_v40, %v1391_v42  ;;  %v1425_v47 = vcombine.high %v1399_v43, %v1407_v44  ;;  %v1408_v48 = vcombine.low %v1383_v40, %v1391_v42  ;;  %v1424_v49 = vcombine.low %v1399_v43, %v1407_v44 }
 0x701   : > { %v1423_v2 = vrot.slane %v1409_v46, %v3138_v45  ;;  %v1439_v50 = vrot.slane %v1425_v47, %v3138_v45  ;;  %v1416_v51 = vrot.slane %v1408_v48, %v3138_v45  ;;  %v1432_v52 = vrot.slane %v1424_v49, %v3138_v45 }
 0x703   : > { %v1442_v53 = vcombine.low %v1423_v2, %v1439_v50  ;;  %v1441_v54 = vcombine.high %v1416_v51, %v1432_v52  ;;  %v1443_v55 = vcombine.high %v1423_v2, %v1439_v50  ;;  %v1440_v56 = vcombine.low %v1416_v51, %v1432_v52 }
 0x705   : > { %1449 = vrot.lane.b32.xlu0 %v1442_v53, %s2613_s5  ;;  %1445 = vrot.lane.b32.xlu1 %v1441_v54, %s2611_s20  ;;  %s2462_s20 = sshll.u32 %s2618_s24, 4  ;;  %s2463_s20 = int_to_ptr.vmem [resolvable:$false] %s2462_s20 }
 0x706   : > { %p2465_p7 = scmp.lt.s32.totalorder %s3239_s16, %s2463_s20 }
 0x709   : > { %1453 = vrot.lane.b32.xlu1 %v1443_v55, %s2612_s12  ;;  %s2464_s12 = scalar_lea.vmem %s2463_s20, 256 }
 0x70a   : > { %p2466_p10 = scmp.lt.s32.totalorder %s2464_s12, %s2458_s4 }
 0x70c   : > { %p2467_p13 = por %p2466_p10, %p2465_p7 }
 0x70e   : > { %p2468_p0 = pnand %p2467_p13, %p2461_p5 }
 0x777   : > { %v1446_v41 = vpop.permute.xlu1 %1445  ;;  %v1450_v57 = vpop.permute.xlu0 %1449 }
 0x778   : > { %v1456_v58 = vsel %vm863_vm1, %v1440_v56, %v1446_v41 }
 0x779   : > { %v1458_v59 = vsel %vm1457_vm4, %v1456_v58, %v1450_v57 }
 0x77b   : > { %v1454_v45 = vpop.permute.xlu1 %1453 }
 0x77c   : > { %v1460_v60 = vsel %vm1459_vm5, %v1458_v59, %v1454_v45 }
 0x77d   : > { %v1461_v61 = vpack.c.bf16 %v1460_v60, %v1460_v60 }
 0x77f   : > { %1971 = vmatmul.mubr.bf16.vlgmr.msra.gmra.mrb[4].mxu0 %v1461_v61 }
 0x852   : > { %v1567_v63 = vpop.f32.mrb[4].mxu0 }
 0x853   : > { %v1568_v1 = vadd.f32 %v1836_v62, %v1567_v63  ;;  %v1972_v38 = vpop.f32.mrb[5].mxu0 }
 0x854   : > { %v1570_v33 = vpop.f32.mrb[6].mxu0 }
 0x855   : > { %v1573_v3 = vadd.f32 %v1568_v1, %v3104_v0  ;;  %v1973_v4 = vpop.f32.mrb[7].mxu0 }
 0x857   : > { %1574 = vst [vmem:[%s521_s23] sm:$0xff] %v1573_v3 }
 0x858   : > { %2471 = shalt.err (!%p2468_p0)
}
 0x859   : > { %s2472_s22 = scalar_lea.hbm %s3237_s28, 128  ;;  %s2476_s3 = scalar_lea.hbm %s3402_s1, 512 }
 0x85a   : > { %p2473_p1 = scmp.ne.s32.totalorder %s3237_s28, %s2472_s22  ;;  %p2477_p11 = scmp.lt.u32.totalorder %s3237_s28, %s3402_s1 }
 0x85b   : > { %p2478_p2 = scmp.lt.u32.totalorder %s2476_s3, %s2472_s22  ;;  %p2480_p9 = scmp.lt.u32.totalorder %s2472_s22, %s3237_s28 }
 0x85c   : > { %p2474_p6 = pnand %p2473_p1, %p3403_p4 }
 0x85d   : > { %p2479_p8 = por %p2478_p2, %p2477_p11 }
 0x85e   : > { %p2475_p12 = pneg %p2474_p6 }
 0x85f   : > { %p2481_p3 = por %p2480_p9, %p2479_p8 }
 0x861   : > { %p2482_p5 = pnand %p2481_p3, %p2475_p12 }
 0x863   : > { %2485 = shalt.err (!%p2482_p5)
}
 0x864   : > { %2004 = dma.vmem_to_hbm [thread:$0]  (%p3403_p4), %s3239_s16, 128, %s3237_s28, %s1576_s7  }
 0x865 PF: > { %s3404_s30 = sld [smem:[#allocation25_spill]]  ;;  %p2052_p7 = scmp.ge.s32.totalorder %s2596_s19, 2 }
 0x866   : > { %p3405_p10 = scmp.ne.s32.totalorder %s3380_s21, 0 }
 0x868   : > { %p2036_p13 = pnand %p2052_p7, %p3405_p10 }
 0x86b   : > { %s1603_s26 = sand.u32 1, %s3404_s30  }
 0x86c   : > { %s1604_s23 = scalar_lea.sflag [#allocation4], %s1603_s26 }
 0x86d   : > { %2551 = dma.done.wait (!%p2036_p13), %s1604_s23, 128  }
 0x86e   : > { %2553 = vsyncadd (!%p2036_p13), %s1604_s23, 4294967168  ;;  %s31_s19 = sadd.s32 1, %s2596_s19   ;;  %s3406_s30 = sld [smem:[#allocation24_spill]] }
 0x86f   : > { %p28_p0 = scmp.ge.s32.totalorder %s31_s19, 6   ;;  %s3407_s27 = smov %s2991_s10 }
 0x870   : > { %s3408_s9 = sld [smem:[#allocation31_spill]]  ;;  %s3409_s8 = sld [smem:[#allocation32_spill]] }
 0x871   : > { %s3410_s10 = smov %s2564_s11  ;;  %s3411_s11 = smov %s3407_s27 }
 0x872   : > { %s3412_s12 = smov %s2572_s13  ;;  %s3413_s13 = smov %s2576_s14 }
 0x873   : > { %s3414_s14 = smov %s2994_s2  ;;  %s3415_s15 = smov %s2588_s17 }
 0x874   : > { %s3416_s16 = smov %s2592_s18  ;;  %30 = sbr.rel (!%p28_p0) target bundleno = 24 (0x18), region = 149 }
 0x876   : > { %s3417_s17 = smov %s3408_s9  ;;  %s3418_s18 = smov %s3409_s8 }
 0x87b   :  { %1609 = vsyncpa [#allocation3], 1 }
 0x87c   :  { %1611 = vsyncpa [#allocation3 + $0x1], 1 }
 0x87d   :  { %1612 = vsyncpa [#allocation6], 1 }
 0x87e   :  { %1613 = vsyncpa [#allocation9], 1 }
 0x87f   :  { %1614 = vsyncpa [#allocation12], 1 }
 0x880   :  { %1616 = vsyncpa [#allocation12 + $0x1], 1 }
 0x881   :  { %1617 = vsyncpa [#allocation15], 1 }
 0x882   :  { %1618 = vsyncpa [#allocation4], 1 }
 0x883   :  { %1620 = vsyncpa [#allocation4 + $0x1], 1 }

// kernel: _lambda_.14
= control target key start
LH: loop header
LB: loop body
LE: loop exit
PB: predicated region body
PF: predicated region fallthrough
CT: control target
= control target key end

     0   :  { %s3483_s0 = inlined_call_operand.hbm [shape: f32[2,16,128], index: 0, kind: input, shape index: {}]   ;;  %s3484_s1 = inlined_call_operand.hbm [shape: s32[2,1,16], index: 1, kind: input, shape index: {}]   ;;  %s3485_s2 = inlined_call_operand.hbm [shape: f32[1,128], index: 2, kind: input, shape index: {}]   ;;  %s3486_s3 = inlined_call_operand.hbm [shape: f32[1,128], index: 3, kind: input, shape index: {}]   ;;  %s3487_s4 = inlined_call_operand.hbm [shape: bf16[128,128], index: 4, kind: input, shape index: {}]   ;;  %s3488_s5 = inlined_call_operand.hbm [shape: f32[1,128], index: 5, kind: input, shape index: {}]   ;;  %s3489_s6 = inlined_call_operand.hbm [shape: bf16[2,4,16,32], index: 6, kind: input, shape index: {}]   ;;  %s3490_s7 = inlined_call_operand.hbm [shape: bf16[2,4,16,32], index: 7, kind: input, shape index: {}]   ;;  %s3491_s8 = inlined_call_operand.hbm [shape: bf16[128,128], index: 8, kind: input, shape index: {}]   ;;  %s3492_s9 = inlined_call_operand.hbm [shape: f32[1,128], index: 9, kind: input, shape index: {}]   ;;  %s3493_s10 = inlined_call_operand.hbm [shape: f32[2,16,128], index: 10, kind: output, shape index: {}]  }
   0x1   :  { %3528 = sst [smem:[#allocation41_spill]] %s3483_s0 }
   0x2   :  { %3529 = sst [smem:[#allocation42_spill]] %s3484_s1 }
   0x3   :  { %3530 = sst [smem:[#allocation43_spill]] %s3485_s2 }
   0x4   :  { %3531 = sst [smem:[#allocation44_spill]] %s3486_s3 }
   0x5   :  { %3532 = sst [smem:[#allocation45_spill]] %s3487_s4 }
   0x6   :  { %3533 = sst [smem:[#allocation46_spill]] %s3488_s5 }
   0x7   :  { %3534 = sst [smem:[#allocation47_spill]] %s3489_s6 }
   0x8   :  { %3535 = sst [smem:[#allocation48_spill]] %s3490_s7 }
   0x9   :  { %3536 = sst [smem:[#allocation49_spill]] %s3491_s8 }
   0xa   :  { %3537 = sst [smem:[#allocation50_spill]] %s3492_s9 }
   0xb   :  { %3538 = sst [smem:[#allocation51_spill]] %s3493_s10 }
   0xc   :  { %15 = vsyncpa [#allocation3], 0 }
   0xd   :  { %17 = vsyncpa [#allocation3 + $0x1], 0 }
   0xe   :  { %18 = vsyncpa [#allocation6], 0 }
   0xf   :  { %20 = vsyncpa [#allocation6 + $0x1], 0 }
  0x10   :  { %21 = vsyncpa [#allocation9], 0 }
  0x11   :  { %22 = vsyncpa [#allocation12], 0 }
  0x12   :  { %23 = vsyncpa [#allocation4], 0 }
  0x13   :  { %25 = vsyncpa [#allocation4 + $0x1], 0  ;;  %s2799_s13 = smov 0   ;;  %s2801_s14 = smov 0  }
  0x14   :  { %s2803_s15 = smov 0   ;;  %s2805_s16 = smov 0  }
  0x15   :  { %s2807_s17 = smov 0   ;;  %s2809_s18 = smov 0  }
  0x16   :  { %s2811_s19 = smov 0   ;;  %s2813_s20 = smov 0  }
  0x17   :  { %s2815_s21 = smov 0   ;;  %s2817_s22 = smov 0  }
  0x18   :  { %s2819_s23 = smov 0  }
  0x19 LB: > { %3539 = sst [smem:[#allocation28_spill]] %s2688_s15  ;;  %s2855_s24 = sadd.s32 4294967295, %s2720_s23   ;;  %s2720_s23 = sphi %s2819_s23, %s31_s23   ;;  %s2716_s22 = sphi %s2817_s22, %s3619_s22   ;;  %s2712_s21 = sphi %s2815_s21, %s3612_s21   ;;  %s2708_s20 = sphi %s2813_s20, %s3618_s20   ;;  %s2704_s19 = sphi %s2811_s19, %s3611_s19   ;;  %s2700_s18 = sphi %s2809_s18, %s3610_s18   ;;  %s2696_s17 = sphi %s2807_s17, %s3617_s17   ;;  %s2692_s16 = sphi %s2805_s16, %s3616_s16   ;;  %s2688_s15 = sphi %s2803_s15, %s3608_s15   ;;  %s2684_s14 = sphi %s2801_s14, %s3615_s14   ;;  %s2680_s13 = sphi %s2799_s13, %s3614_s13  }
  0x1a   : > { %3540 = sst [smem:[#allocation29_spill]] %s2692_s16  ;;  %p1851_p0 = scmp.ge.s32.totalorder %s2720_s23, 1 }
  0x1b   : > { %3541 = sst [smem:[#allocation30_spill]] %s2700_s18  ;;  %p3497_p1 = scmp.eq.s32.totalorder %s2855_s24, 0 }
  0x1c   : > { %3542 = sst [smem:[#allocation31_spill]] %s2704_s19  ;;  %p308_p2 = scmp.lt.s32.totalorder %s2720_s23, 5 }
  0x1d   : > { %3543 = sst [smem:[#allocation32_spill]] %s2708_s20  ;;  %s2722_s26 = smov [#allocation7]  }
  0x1e   : > { %3544 = sst [smem:[#allocation33_spill]] %s2712_s21  ;;  %p2860_p3 = pnand %p1851_p0, %p308_p2 }
  0x1f   : > { %s321_s27 = sshll.u32 %s2722_s26, 4  ;;  %s2723_s28 = smov [#allocation8]   ;;  %s322_s27 = int_to_ptr.vmem [resolvable:$true] %s321_s27 }
  0x20   : > { %s3545_s25 = scalar_select %p2860_p3, 1, 0 }
  0x21   : > { %p2081_p4 = pneg %p2860_p3  ;;  %s332_s29 = sshll.u32 %s2723_s28, 4  ;;  %s2872_s29 = int_to_ptr.vmem [resolvable:$true] %s332_s29 }
  0x22   : > { %3546 = sst [smem:[#allocation34_spill]] %s3545_s25  ;;  %s2724_s11 = smov [#allocation10]  }
  0x23   : > { %p2868_p5 = pnand %p2081_p4, %p3497_p1  ;;  %s342_s12 = sshll.u32 %s2724_s11, 4  ;;  %s2874_s12 = int_to_ptr.vmem [resolvable:$true] %s342_s12 }
  0x24   : > { %s3548_s2 = sld [smem:[#allocation43_spill]] }
  0x25   : > { %s3547_s30 = scalar_select %p2868_p5, 1, 0 }
  0x26   : > { %p2884_p7 = pneg %p2868_p5 }
  0x28   : > { %s3549_s28 = scalar_select %p2884_p7, 1, 0 }
  0x2a   : > { %s2278_s26 = scalar_lea.hbm %s3548_s2, 16 }
  0x2b   : > { %p2279_p6 = scmp.ne.s32.totalorder %s3548_s2, %s2278_s26  ;;  %p2285_p10 = scmp.lt.u32.totalorder %s2278_s26, %s3548_s2 }
  0x2d   : > { %p2281_p8 = pnand %p2884_p7, %p2279_p6 }
  0x2f   : > { %p2282_p9 = pneg %p2281_p8 }
  0x31   : > { %p2287_p11 = pnand %p2285_p10, %p2282_p9 }
  0x33   : > { %2290 = shalt.err (!%p2287_p11)
}
  0x34   : > { %s2291_s10 = scalar_lea.vmem %s322_s27, 16  ;;  %s2298_s19 = scalar_lea.vmem %s322_s27, 32 }
  0x35   : > { %p2292_p12 = scmp.ne.s32.totalorder %s322_s27, %s2291_s10  ;;  %p2299_p2 = scmp.lt.s32.totalorder %s322_s27, %s322_s27 }
  0x36   : > { %p2300_p4 = scmp.lt.s32.totalorder %s2298_s19, %s2291_s10 }
  0x37   : > { %p2294_p13 = pnand %p2292_p12, %p2884_p7 }
  0x38   : > { %p2301_p1 = por %p2300_p4, %p2299_p2 }
  0x39   : > { %p2295_p0 = pneg %p2294_p13 }
  0x3b   : > { %p2302_p3 = pnand %p2301_p1, %p2295_p0 }
  0x3d   : > { %2305 = shalt.err (!%p2302_p3)
}
  0x3e   : > { %2084 = dma.hbm_to_vmem [thread:$0]  (!%p2868_p5), %s3548_s2, 16, %s322_s27, [#allocation6]  }
  0x3f   : > { %s3550_s3 = sld [smem:[#allocation44_spill]] }
  0x45   : > { %s2306_s11 = scalar_lea.hbm %s3550_s3, 16 }
  0x46   : > { %p2307_p6 = scmp.ne.s32.totalorder %s3550_s3, %s2306_s11  ;;  %p2313_p1 = scmp.lt.u32.totalorder %s2306_s11, %s3550_s3 }
  0x48   : > { %p2309_p8 = pnand %p2307_p6, %p2884_p7 }
  0x4a   : > { %p2310_p9 = pneg %p2309_p8 }
  0x4c   : > { %p2315_p3 = pnand %p2313_p1, %p2310_p9 }
  0x4e   : > { %2318 = shalt.err (!%p2315_p3)
}
  0x4f   : > { %s2319_s27 = scalar_lea.vmem %s2872_s29, 16  ;;  %s2326_s6 = scalar_lea.vmem %s2872_s29, 32 }
  0x50   : > { %p2320_p10 = scmp.ne.s32.totalorder %s2872_s29, %s2319_s27  ;;  %p2327_p13 = scmp.lt.s32.totalorder %s2872_s29, %s2872_s29 }
  0x51   : > { %p2328_p0 = scmp.lt.s32.totalorder %s2326_s6, %s2319_s27 }
  0x52   : > { %p2322_p11 = pnand %p2320_p10, %p2884_p7 }
  0x53   : > { %p2329_p2 = por %p2328_p0, %p2327_p13 }
  0x54   : > { %p2323_p12 = pneg %p2322_p11 }
  0x56   : > { %p2330_p4 = pnand %p2329_p2, %p2323_p12 }
  0x58   : > { %2333 = shalt.err (!%p2330_p4)
}
  0x59   : > { %2087 = dma.hbm_to_vmem [thread:$0]  (!%p2868_p5), %s3550_s3, 16, %s2872_s29, [#allocation9]  }
  0x5a   : > { %s3551_s4 = sld [smem:[#allocation45_spill]] }
  0x60   : > { %s2334_s26 = scalar_lea.hbm %s3551_s4, 1024 }
  0x61   : > { %p2335_p6 = scmp.ne.s32.totalorder %s3551_s4, %s2334_s26  ;;  %p2341_p1 = scmp.lt.u32.totalorder %s2334_s26, %s3551_s4 }
  0x63   : > { %p2337_p8 = pnand %p2335_p6, %p2884_p7 }
  0x65   : > { %p2338_p9 = pneg %p2337_p8 }
  0x67   : > { %p2343_p3 = pnand %p2341_p1, %p2338_p9 }
  0x69   : > { %2346 = shalt.err (!%p2343_p3)
}
  0x6a   : > { %s2347_s29 = scalar_lea.vmem %s2874_s12, 1024  ;;  %p2355_p13 = scmp.lt.s32.totalorder %s2874_s12, %s2874_s12 }
  0x6b   : > { %p2348_p10 = scmp.ne.s32.totalorder %s2874_s12, %s2347_s29  ;;  %p2356_p0 = scmp.lt.s32.totalorder %s2347_s29, %s2347_s29 }
  0x6d   : > { %p2350_p11 = pnand %p2348_p10, %p2884_p7  ;;  %p2357_p2 = por %p2356_p0, %p2355_p13 }
  0x6f   : > { %p2351_p12 = pneg %p2350_p11 }
  0x71   : > { %p2358_p4 = pnand %p2357_p2, %p2351_p12 }
  0x73   : > { %2361 = shalt.err (!%p2358_p4)
}
  0x74   : > { %s3501_s6 = smov 64   ;;  %s3503_s9 = smov 4  }
  0x75   : > { %2090 = dma.hbm_to_vmem [thread:$0]  (!%p2868_p5), %s3551_s4, 1024, %s2874_s12, [#allocation9], %s3501_s6, %s3501_s6, %s3503_s9  }
  0x76   : > { %s2727_s7 = smov [#allocation11]   ;;  %s3552_s5 = sld [smem:[#allocation46_spill]] }
  0x77   : > { %s356_s26 = sshll.u32 %s2727_s7, 4  ;;  %s357_s26 = int_to_ptr.vmem [resolvable:$true] %s356_s26 }
  0x7c   : > { %s2362_s19 = scalar_lea.hbm %s3552_s5, 16 }
  0x7d   : > { %p2363_p6 = scmp.ne.s32.totalorder %s3552_s5, %s2362_s19  ;;  %p2369_p1 = scmp.lt.u32.totalorder %s2362_s19, %s3552_s5 }
  0x7f   : > { %p2365_p8 = pnand %p2363_p6, %p2884_p7 }
  0x81   : > { %p2366_p9 = pneg %p2365_p8 }
  0x83   : > { %p2371_p3 = pnand %p2369_p1, %p2366_p9 }
  0x85   : > { %2374 = shalt.err (!%p2371_p3)
}
  0x86   : > { %s2375_s12 = scalar_lea.vmem %s357_s26, 16  ;;  %s2382_s20 = scalar_lea.vmem %s357_s26, 32 }
  0x87   : > { %p2376_p10 = scmp.ne.s32.totalorder %s357_s26, %s2375_s12  ;;  %p2383_p13 = scmp.lt.s32.totalorder %s357_s26, %s357_s26 }
  0x88   : > { %p2384_p0 = scmp.lt.s32.totalorder %s2382_s20, %s2375_s12 }
  0x89   : > { %p2378_p11 = pnand %p2376_p10, %p2884_p7 }
  0x8a   : > { %p2385_p2 = por %p2384_p0, %p2383_p13 }
  0x8b   : > { %p2379_p12 = pneg %p2378_p11 }
  0x8d   : > { %p2386_p4 = pnand %p2385_p2, %p2379_p12 }
  0x8f   : > { %2389 = shalt.err (!%p2386_p4)
}
  0x90   : > { %2093 = dma.hbm_to_vmem [thread:$0]  (!%p2868_p5), %s3552_s5, 16, %s357_s26, [#allocation12]  }
  0x91   : > { %s1850_s2 = sadd.s32 4294967294, %s2720_s23   ;;  %s40_s3 = sadd.s32 1, %s2712_s21 }
  0x92   : > { %p41_p6 = scmp.ge.s32.totalorder %s40_s3, 2  ;;  %s43_s11 = sadd.s32 1, %s2716_s22 }
  0x93   : > { %s52_s10 = sadd.s32 1, %s2700_s18  ;;  %p59_p8 = scmp.ne.s32.totalorder %s2700_s18, %s2696_s17 }
  0x94   : > { %s3621_s3 = smov (%p41_p6, %s40_s3), 0  ;;  %s3623_s11 = smov (!%p41_p6, %s43_s11), %s2716_s22 }
  0x95   : > { %3553 = sst [smem:[#allocation35_spill]] %s3621_s3  ;;  %s48_s19 = ssub.s32 %s2712_s21, %s3621_s3 }
  0x96   : > { %p3513_p9 = scmp.eq.s32.totalorder %s2720_s23, 0  ;;  %p45_p1 = scmp.ge.s32.totalorder %s3623_s11, 2 }
  0x97   : > { %p65_p3 = scmp.ne.s32.totalorder %s2696_s17, %s2692_s16  ;;  %p295_p11 = scmp.eq.s32.totalorder %s2855_s24, 3 }
  0x98   : > { %p2984_p10 = por %p3513_p9, %p59_p8  ;;  %s3625_s11 = smov (%p45_p1, %s3623_s11), 0 }
  0x99   : > { %3555 = sst [smem:[#allocation36_spill]] %s3625_s11  ;;  %p3556_p12 = scmp.eq.s32.totalorder %s2855_s24, 0 }
  0x9a   : > { %p2997_p0 = por %p295_p11, %p59_p8  ;;  %s3003_s12 = ssub.s32 %s2716_s22, %s3625_s11 }
  0x9b   : > { %p2993_p13 = por %p3556_p12, %p65_p3  ;;  %p301_p2 = scmp.eq.s32.totalorder %s1850_s2, 3 }
  0x9c   : > { %s3559_s29 = scalar_select %p2997_p0, 1, 0 }
  0x9d   : > { %s3557_s27 = scalar_select %p2993_p13, 1, 0 }
  0x9e   : > { %3560 = sst [smem:[#allocation38_spill]] %s3559_s29  ;;  %s49_s20 = sor.u32 %s48_s19, %s3003_s12 }
  0x9f   : > { %3558 = sst [smem:[#allocation37_spill]] %s3557_s27  ;;  %p50_p6 = scmp.eq.s32.totalorder %s49_s20, 0 }
  0xa0   : > { %p3007_p1 = por %p301_p2, %p65_p3  ;;  %p3512_p12 = scmp.lt.s32.totalorder %s2720_s23, 4 }
  0xa1   : > { %s391_s7 = sand.u32 1, %s2720_s23   ;;  %s393_s9 = sand.u32 1, %s2700_s18  }
  0xa2   : > { %s3561_s25 = scalar_select %p3007_p1, 1, 0 }
  0xa3   : > { %s3014_s6 = scalar_select %p50_p6, %s2700_s18, %s52_s10  }
  0xa4   : > { %s1859_s4 = sshll.u32 %s393_s9, 3  ;;  %s1860_s5 = sshll.u32 %s2716_s22, 1 }
  0xa5   : > { %3562 = sst [smem:[#allocation39_spill]] %s3014_s6  ;;  %s400_s11 = sadd.s32 %s2712_s21, %s1860_s5 }
  0xa6   : > { %s1861_s3 = sshll.u32 %s400_s11, 7  ;;  %s395_s2 = scalar_lea.vmem [#allocation2], %s1859_s4 }
  0xa7   : > { %s404_s19 = sshll.u32 %s395_s2, 4  ;;  %s3563_s0 = sld [smem:[#allocation41_spill]]  ;;  %s3024_s19 = int_to_ptr.vmem [resolvable:$true] %s404_s19 }
  0xa8   : > { %p3030_p8 = pnand %p3512_p12, %p2984_p10  ;;  %s3036_s4 = scalar_lea.sflag [#allocation3], %s391_s7 }
  0xaa   : > { %p2392_p11 = pneg %p3030_p8 }
  0xad   : > { %s3022_s27 = scalar_lea.hbm %s3563_s0, %s1861_s3  ;;  %s2395_s11 = scalar_lea.hbm %s3563_s0, 512 }
  0xae   : > { %s2390_s5 = scalar_lea.hbm %s3022_s27, 128  ;;  %p2396_p10 = scmp.lt.u32.totalorder %s3022_s27, %s3563_s0 }
  0xaf   : > { %p2391_p3 = scmp.ne.s32.totalorder %s3022_s27, %s2390_s5  ;;  %p2397_p12 = scmp.lt.u32.totalorder %s2395_s11, %s2390_s5 }
  0xb0   : > { %p2399_p4 = scmp.lt.u32.totalorder %s2390_s5, %s3022_s27 }
  0xb1   : > { %p2393_p2 = pnand %p2392_p11, %p2391_p3  ;;  %p2398_p9 = por %p2397_p12, %p2396_p10 }
  0xb3   : > { %p2394_p6 = pneg %p2393_p2  ;;  %p2400_p1 = por %p2399_p4, %p2398_p9 }
  0xb5   : > { %p2401_p0 = pnand %p2400_p1, %p2394_p6 }
  0xb7   : > { %2404 = shalt.err (!%p2401_p0)
}
  0xb8   : > { %s2405_s29 = scalar_lea.vmem %s3024_s19, 128  ;;  %s2728_s20 = smov [#allocation2]  }
  0xb9   : > { %p2406_p3 = scmp.ne.s32.totalorder %s3024_s19, %s2405_s29  ;;  %s2410_s2 = sshll.u32 %s2728_s20, 4  ;;  %s2411_s2 = int_to_ptr.vmem [resolvable:$false] %s2410_s2 }
  0xba   : > { %s2412_s16 = scalar_lea.vmem %s2411_s2, 256  ;;  %p2413_p5 = scmp.lt.s32.totalorder %s3024_s19, %s2411_s2 }
  0xbb   : > { %p2408_p2 = pnand %p2406_p3, %p2392_p11  ;;  %p2414_p12 = scmp.lt.s32.totalorder %s2412_s16, %s2405_s29 }
  0xbd   : > { %p2409_p13 = pneg %p2408_p2  ;;  %p2415_p10 = por %p2414_p12, %p2413_p5 }
  0xbf   : > { %p2416_p9 = pnand %p2415_p10, %p2409_p13 }
  0xc1   : > { %2419 = shalt.err (!%p2416_p9)
}
  0xc2   : > { %2103 = dma.hbm_to_vmem [thread:$0]  (!%p3030_p8), %s3022_s27, 128, %s3024_s19, %s3036_s4  }
  0xc3   : > { %s78_s5 = sadd.s32 1, %s2688_s15  ;;  %p3565_p5 = scmp.eq.s32.totalorder %s3003_s12, 0 }
  0xc4   : > { %p85_p13 = scmp.ne.s32.totalorder %s2688_s15, %s2684_s14  ;;  %p91_p0 = scmp.ne.s32.totalorder %s2684_s14, %s2680_s13 }
  0xc5   : > { %s3068_s9 = scalar_select %p3565_p5, %s2688_s15, %s78_s5  }
  0xc6   : > { %s413_s3 = sand.u32 1, %s2688_s15   ;;  %s1862_s11 = sshll.u32 %s2716_s22, 4 }
  0xc7   : > { %3566 = sst [smem:[#allocation40_spill]] %s3068_s9  ;;  %p3567_p4 = scmp.eq.s32.totalorder %s2720_s23, 0 }
  0xc8   : > { %p3568_p11 = scmp.eq.s32.totalorder %s2855_s24, 0  ;;  %s3570_s1 = sld [smem:[#allocation42_spill]] }
  0xc9   : > { %p87_p1 = por %p85_p13, %p3567_p4  ;;  %s414_s27 = scalar_lea.vmem [#allocation5], %s413_s3 }
  0xca   : > { %p3080_p6 = por %p91_p0, %p3568_p11  ;;  %s421_s13 = sshll.u32 %s414_s27, 4  ;;  %s3095_s13 = int_to_ptr.vmem [resolvable:$true] %s421_s13 }
  0xcb   : > { %p3571_p8 = scmp.lt.s32.totalorder %s2720_s23, 4  ;;  %s3097_s19 = sshll.u32 %s413_s3, 5 }
  0xcc   : > { %s3569_s10 = scalar_select %p3080_p6, 1, 0 }
  0xcd   : > { %p3091_p3 = pnand %p3571_p8, %p87_p1  ;;  %s3101_s2 = scalar_lea.sflag [#allocation6], %s391_s7 }
  0xce   : > { %s3087_s20 = scalar_lea.hbm %s3570_s1, %s1862_s11  ;;  %s2425_s29 = scalar_lea.hbm %s3570_s1, 32 }
  0xcf   : > { %s3572_s12 = scalar_select %p3091_p3, 1, 0 }
  0xd0   : > { %s2420_s16 = scalar_lea.hbm %s3087_s20, 16  ;;  %p3107_p12 = pneg %p3091_p3 }
  0xd1   : > { %p2421_p2 = scmp.ne.s32.totalorder %s3087_s20, %s2420_s16  ;;  %p2426_p5 = scmp.lt.u32.totalorder %s3087_s20, %s3570_s1 }
  0xd2   : > { %s3573_s5 = scalar_select %p3107_p12, 1, 0 }
  0xd3   : > { %p2423_p10 = pnand %p3107_p12, %p2421_p2  ;;  %p2427_p13 = scmp.lt.u32.totalorder %s2425_s29, %s2420_s16 }
  0xd4   : > { %p2429_p4 = scmp.lt.u32.totalorder %s2420_s16, %s3087_s20 }
  0xd5   : > { %p2424_p9 = pneg %p2423_p10  ;;  %p2428_p0 = por %p2427_p13, %p2426_p5 }
  0xd7   : > { %p2430_p1 = por %p2429_p4, %p2428_p0 }
  0xd9   : > { %p2431_p11 = pnand %p2430_p1, %p2424_p9 }
  0xdb   : > { %2434 = shalt.err (!%p2431_p11)
}
  0xdc   : > { %s2435_s7 = scalar_lea.vmem %s3095_s13, 16  ;;  %s2729_s11 = smov [#allocation5]  }
  0xdd   : > { %p2436_p8 = scmp.ne.s32.totalorder %s3095_s13, %s2435_s7  ;;  %s2440_s26 = sshll.u32 %s2729_s11, 4  ;;  %s2441_s26 = int_to_ptr.vmem [resolvable:$false] %s2440_s26 }
  0xde   : > { %s2442_s3 = scalar_lea.vmem %s2441_s26, 32  ;;  %p2443_p6 = scmp.lt.s32.totalorder %s3095_s13, %s2441_s26 }
  0xdf   : > { %p2438_p2 = pnand %p2436_p8, %p3107_p12  ;;  %p2444_p7 = scmp.lt.s32.totalorder %s2442_s3, %s2435_s7 }
  0xe1   : > { %p2439_p10 = pneg %p2438_p2  ;;  %p2445_p5 = por %p2444_p7, %p2443_p6 }
  0xe3   : > { %p2446_p13 = pnand %p2445_p5, %p2439_p10 }
  0xe5   : > { %2449 = shalt.err (!%p2446_p13)
}
  0xe6   : > { %2106 = dma.hbm_to_vmem [thread:$0]  (!%p3091_p3), %s3087_s20, 16, %s3095_s13, %s3101_s2  }
  0xe7   : > { %s432_s16 = scalar_lea.vmem [#allocation13], %s3097_s19  ;;  %s453_s27 = scalar_lea.vmem [#allocation14], %s3097_s19 }
  0xe8   : > { %s439_s29 = sshll.u32 %s432_s16, 4  ;;  %s460_s11 = sshll.u32 %s453_s27, 4  ;;  %s3132_s29 = int_to_ptr.vmem [resolvable:$true] %s439_s29  ;;  %s3135_s11 = int_to_ptr.vmem [resolvable:$true] %s460_s11 }
  0xe9   : > { %s2730_s7 = smov [#allocation15]   ;;  %s2731_s3 = smov [#allocation16]  }
  0xea   : > { %s366_s26 = sshll.u32 %s2730_s7, 4  ;;  %s380_s0 = sshll.u32 %s2731_s3, 4  ;;  %s367_s26 = int_to_ptr.vmem [resolvable:$true] %s366_s26  ;;  %s381_s0 = int_to_ptr.vmem [resolvable:$true] %s380_s0 }
  0xeb   : > { %s3574_s8 = sld [smem:[#allocation49_spill]]  ;;  %p3575_p6 = scmp.ne.s32.totalorder %s3549_s28, 0 }
  0xf1   : > { %s2450_s6 = scalar_lea.hbm %s3574_s8, 1024 }
  0xf2   : > { %p2451_p7 = scmp.ne.s32.totalorder %s3574_s8, %s2450_s6  ;;  %p2457_p4 = scmp.lt.u32.totalorder %s2450_s6, %s3574_s8 }
  0xf4   : > { %p2453_p9 = pnand %p2451_p7, %p3575_p6 }
  0xf6   : > { %p2454_p0 = pneg %p2453_p9 }
  0xf8   : > { %p2459_p1 = pnand %p2457_p4, %p2454_p0 }
  0xfa   : > { %2462 = shalt.err (!%p2459_p1)
}
  0xfb   : > { %s2463_s19 = scalar_lea.vmem %s367_s26, 1024  ;;  %p2471_p10 = scmp.lt.s32.totalorder %s367_s26, %s367_s26 }
  0xfc   : > { %p2464_p11 = scmp.ne.s32.totalorder %s367_s26, %s2463_s19  ;;  %p2472_p5 = scmp.lt.s32.totalorder %s2463_s19, %s2463_s19 }
  0xfe   : > { %p2466_p8 = pnand %p2464_p11, %p3575_p6  ;;  %p2473_p13 = por %p2472_p5, %p2471_p10 }
 0x100   : > { %p2467_p2 = pneg %p2466_p8 }
 0x102   : > { %p2474_p3 = pnand %p2473_p13, %p2467_p2 }
 0x104   : > { %2477 = shalt.err (!%p2474_p3)
}
 0x105   : > { %p3576_p7 = scmp.ne.s32.totalorder %s3547_s30, 0  ;;  %s3577_s1 = smov 4  }
 0x106   : > { %s3578_s18 = smov 64   ;;  %s1923_s9 = sshll.u32 %s2716_s22, 9 }
 0x107   : > { %2096 = dma.hbm_to_vmem [thread:$0]  (!%p3576_p7), %s3574_s8, 1024, %s367_s26, [#allocation9], %s3578_s18, %s3578_s18, %s3577_s1  }
 0x108   : > { %s3579_s7 = sld [smem:[#allocation50_spill]] }
 0x10e   : > { %s2478_s3 = scalar_lea.hbm %s3579_s7, 16 }
 0x10f   : > { %p2479_p3 = scmp.ne.s32.totalorder %s3579_s7, %s2478_s3  ;;  %p2485_p4 = scmp.lt.u32.totalorder %s2478_s3, %s3579_s7 }
 0x111   : > { %p2481_p9 = pnand %p2479_p3, %p3575_p6 }
 0x113   : > { %p2482_p0 = pneg %p2481_p9 }
 0x115   : > { %p2487_p1 = pnand %p2485_p4, %p2482_p0 }
 0x117   : > { %2490 = shalt.err (!%p2487_p1)
}
 0x118   : > { %s2491_s26 = scalar_lea.vmem %s381_s0, 16  ;;  %s2498_s21 = scalar_lea.vmem %s381_s0, 32 }
 0x119   : > { %p2492_p11 = scmp.ne.s32.totalorder %s381_s0, %s2491_s26  ;;  %p2499_p10 = scmp.lt.s32.totalorder %s381_s0, %s381_s0 }
 0x11a   : > { %p2500_p5 = scmp.lt.s32.totalorder %s2498_s21, %s2491_s26 }
 0x11b   : > { %p2494_p8 = pnand %p2492_p11, %p3575_p6 }
 0x11c   : > { %p2501_p13 = por %p2500_p5, %p2499_p10 }
 0x11d   : > { %p2495_p2 = pneg %p2494_p8 }
 0x11f   : > { %p2502_p12 = pnand %p2501_p13, %p2495_p2 }
 0x121   : > { %2505 = shalt.err (!%p2502_p12)
}
 0x122   : > { %2099 = dma.hbm_to_vmem [thread:$0]  (!%p3576_p7), %s3579_s7, 16, %s381_s0, [#allocation12]  }
 0x123   : > { %s3580_s3 = sld [smem:[#allocation47_spill]]  ;;  %s3581_s19 = sld [smem:[#allocation48_spill]] }
 0x124   : > { %p3583_p6 = scmp.ne.s32.totalorder %s3573_s5, 0 }
 0x129   : > { %s3180_s20 = scalar_lea.hbm %s3580_s3, %s1923_s9  ;;  %s3582_s8 = smov %s3581_s19 }
 0x12a   : > { %s3185_s26 = scalar_lea.hbm %s3581_s19, %s1923_s9  ;;  %s2506_s30 = scalar_lea.hbm %s3180_s20, 512 }
 0x12b   : > { %p2507_p12 = scmp.ne.s32.totalorder %s3180_s20, %s2506_s30  ;;  %s2511_s6 = scalar_lea.hbm %s3580_s3, 1024 }
 0x12c   : > { %p2512_p7 = scmp.lt.u32.totalorder %s3180_s20, %s3580_s3  ;;  %p2513_p0 = scmp.lt.u32.totalorder %s2511_s6, %s2506_s30 }
 0x12d   : > { %p2509_p3 = pnand %p2507_p12, %p3583_p6  ;;  %p2515_p1 = scmp.lt.u32.totalorder %s2506_s30, %s3180_s20 }
 0x12e   : > { %p2514_p4 = por %p2513_p0, %p2512_p7 }
 0x12f   : > { %p2510_p9 = pneg %p2509_p3 }
 0x130   : > { %p2516_p11 = por %p2515_p1, %p2514_p4 }
 0x132   : > { %p2517_p8 = pnand %p2516_p11, %p2510_p9 }
 0x134   : > { %2520 = shalt.err (!%p2517_p8)
}
 0x135   : > { %s2521_s9 = scalar_lea.vmem %s3132_s29, 512  ;;  %s2732_s27 = smov [#allocation13]  }
 0x136   : > { %p2522_p2 = scmp.ne.s32.totalorder %s3132_s29, %s2521_s9  ;;  %s2526_s28 = sshll.u32 %s2732_s27, 4  ;;  %s2527_s28 = int_to_ptr.vmem [resolvable:$false] %s2526_s28 }
 0x137   : > { %s2528_s13 = scalar_lea.vmem %s2527_s28, 1024  ;;  %p2529_p13 = scmp.lt.s32.totalorder %s3132_s29, %s2527_s28 }
 0x138   : > { %p2524_p10 = pnand %p2522_p2, %p3583_p6  ;;  %p2530_p12 = scmp.lt.s32.totalorder %s2528_s13, %s2521_s9 }
 0x13a   : > { %p2525_p5 = pneg %p2524_p10  ;;  %p2531_p3 = por %p2530_p12, %p2529_p13 }
 0x13c   : > { %p2532_p7 = pnand %p2531_p3, %p2525_p5 }
 0x13e   : > { %2535 = shalt.err (!%p2532_p7)
}
 0x13f   : > { %p3584_p9 = scmp.ne.s32.totalorder %s3572_s12, 0  ;;  %s2536_s19 = scalar_lea.hbm %s3185_s26, 512 }
 0x140   : > { %p2537_p0 = scmp.ne.s32.totalorder %s3185_s26, %s2536_s19  ;;  %s2541_s21 = scalar_lea.hbm %s3582_s8, 1024 }
 0x141   : > { %2109 = dma.hbm_to_vmem [thread:$0]  (!%p3584_p9), %s3180_s20, 512, %s3132_s29, %s3036_s4, %s3578_s18, %s3578_s18, %s3577_s1  }
 0x142   : > { %p2539_p4 = pnand %p2537_p0, %p3583_p6  ;;  %p2542_p11 = scmp.lt.u32.totalorder %s3185_s26, %s3582_s8 }
 0x143   : > { %p2543_p8 = scmp.lt.u32.totalorder %s2541_s21, %s2536_s19  ;;  %p2545_p10 = scmp.lt.u32.totalorder %s2536_s19, %s3185_s26 }
 0x144   : > { %p2540_p1 = pneg %p2539_p4 }
 0x145   : > { %p2544_p2 = por %p2543_p8, %p2542_p11 }
 0x147   : > { %p2546_p5 = por %p2545_p10, %p2544_p2 }
 0x149   : > { %p2547_p13 = pnand %p2546_p5, %p2540_p1 }
 0x14b   : > { %2550 = shalt.err (!%p2547_p13)
}
 0x14c   : > { %s2551_s4 = scalar_lea.vmem %s3135_s11, 512  ;;  %s2733_s29 = smov [#allocation14]  }
 0x14d   : > { %p2552_p12 = scmp.ne.s32.totalorder %s3135_s11, %s2551_s4  ;;  %s2556_s20 = sshll.u32 %s2733_s29, 4  ;;  %s2557_s20 = int_to_ptr.vmem [resolvable:$false] %s2556_s20 }
 0x14e   : > { %s2558_s15 = scalar_lea.vmem %s2557_s20, 1024  ;;  %p2559_p0 = scmp.lt.s32.totalorder %s3135_s11, %s2557_s20 }
 0x14f   : > { %p2554_p3 = pnand %p2552_p12, %p3583_p6  ;;  %p2560_p4 = scmp.lt.s32.totalorder %s2558_s15, %s2551_s4 }
 0x151   : > { %p2555_p7 = pneg %p2554_p3  ;;  %p2561_p11 = por %p2560_p4, %p2559_p0 }
 0x153   : > { %p2562_p8 = pnand %p2561_p11, %p2555_p7 }
 0x155   : > { %2565 = shalt.err (!%p2562_p8)
}
 0x156   : > { %2112 = dma.hbm_to_vmem [thread:$0]  (!%p3584_p9), %s3185_s26, 512, %s3135_s11, %s3101_s2, %s3578_s18, %s3578_s18, %s3577_s1  }
 0x157   : > { %s3585_s5 = sld [smem:[#allocation34_spill]] }
 0x15d   : > { %p3586_p6 = scmp.ne.s32.totalorder %s3585_s5, 0 }
 0x15e   : > { %s3587_s9 = sld [smem:[#allocation37_spill]] (!%p3586_p6)  ;;  %s474_s27 = sand.u32 (!%p3586_p6), 1, %s2855_s24  }
 0x15f   : > { %472 = sbr.rel (%p3586_p6) target bundleno = 2191 (0x88f), region = 60  ;;  %s476_s28 = sand.u32 (!%p3586_p6), 1, %s2696_s17  }
 0x160   : > { %s3243_s13 = sshll.u32 (!%p3586_p6), %s476_s28, 3  ;;  %s475_s12 = scalar_lea.sflag (!%p3586_p6), [#allocation3], %s474_s27 }
 0x161   : > { %s478_s19 = scalar_lea.vmem (!%p3586_p6), [#allocation2], %s3243_s13 }
 0x164   : > { %p3588_p1 = scmp.ne.s32.totalorder (!%p3586_p6), %s3587_s9, 0 }
 0x166   : > { %2639 = dma.done.wait (%p3588_p1), %s475_s12, 128  }
 0x167   : > { %2641 = vsyncadd (%p3588_p1), %s475_s12, 4294967168  ;;  %s485_s2 = sand.u32 1, %s2684_s14   ;;  %s484_s11 = scalar_lea.sflag [#allocation6], %s474_s27 }
 0x168   : > { %s3251_s1 = scalar_lea.vmem [#allocation5], %s485_s2  ;;  %p3589_p9 = scmp.ne.s32.totalorder %s3569_s10, 0 }
 0x16a   : > { %2643 = dma.done.wait (%p3589_p9), %s484_s11, 16  }
 0x16b   : > { %2645 = vsyncadd (%p3589_p9), %s484_s11, 4294967280  ;;  %p3590_p2 = scmp.eq.s32.totalorder %s2855_s24, 0 }
 0x16d   : > { %2647 = dma.done.wait (%p3590_p2), [#allocation6], 16   ;;  %p3591_p10 = pmov %p3590_p2 }
 0x16e   : > { %p3592_p5 = pmov %p3590_p2 }
 0x16f   : > { %2649 = vsyncadd (%p3591_p10), [#allocation6], 4294967280 }
 0x170   : > { %2651 = dma.done.wait (%p3592_p5), [#allocation9], 1040   ;;  %p3593_p13 = pmov %p3590_p2 }
 0x171   : > { %p3594_p12 = pmov %p3590_p2 }
 0x172   : > { %2653 = vsyncadd (%p3593_p13), [#allocation9], 4294966256 }
 0x173   : > { %2655 = dma.done.wait (%p3594_p12), [#allocation12], 16   ;;  %p3595_p3 = pmov %p3590_p2 }
 0x174   : > { %s1875_s18 = sshll.u32 %s485_s2, 5 }
 0x175   : > { %2657 = vsyncadd (%p3595_p3), [#allocation12], 4294967280  ;;  %s3269_s26 = scalar_lea.vmem [#allocation13], %s1875_s18 }
 0x176   : > { %2659 = dma.done.wait (%p3589_p9), %s475_s12, 512  }
 0x177   : > { %2661 = vsyncadd (%p3589_p9), %s475_s12, 4294966784  ;;  %s3275_s30 = scalar_lea.vmem [#allocation14], %s1875_s18 }
 0x178   : > { %2663 = dma.done.wait (%p3589_p9), %s484_s11, 512  }
 0x179   : > { %2665 = vsyncadd (%p3589_p9), %s484_s11, 4294966784  ;;  %p3596_p7 = pmov %p3590_p2 }
 0x17a   : > { %p3597_p0 = pmov %p3590_p2 }
 0x17b   : > { %2667 = dma.done.wait (%p3596_p7), [#allocation9], 1024  }
 0x17c   : > { %2669 = vsyncadd (%p3597_p0), [#allocation9], 4294966272  ;;  %p3598_p4 = pmov %p3597_p0 }
 0x17d   : > { %p3599_p11 = pmov %p3597_p0 }
 0x17e   : > { %2671 = dma.done.wait (%p3598_p4), [#allocation12], 16  }
 0x17f   : > { %2673 = vsyncadd (%p3599_p11), [#allocation12], 4294967280  ;;  %v3289_v0 = vld [vmem:[%s478_s19] sm:$0xff]  ;;  %v2236_v1 = vld [vmem:[#allocation10] sm:$0xff]   ;;  %v2734_v2 = vmov 0.0   ;;  %vm2735_vm0 = vmmov 0   ;;  %v751_v35 = vlaneseq }
 0x180   : > { %583 = vadd.xlane.f32.xlu0 %v3289_v0  ;;  %1959 = vmatprep.subr.bf16.mxu0 %v2734_v2  ;;  %v2237_v3 = vld [vmem:[#allocation10 + $0x8] sm:$0xff]   ;;  %v2238_v8 = vld [vmem:[#allocation10 + $0x10] sm:$0xff]   ;;  %v2239_v9 = vld [vmem:[#allocation10 + $0x18] sm:$0xff]   ;;  %s2736_s24 = smov 32   ;;  %s2737_s10 = smov 96   ;;  %vm920_vm1 = vcmask 261120  }
 0x181   : > { %1979 = vmatprep.subr.bf16.mxu1 %v2734_v2  ;;  %1960 = vmatpush3.bf16.msra.mxu0 %v2236_v1  ;;  %v2240_v10 = vld [vmem:[#allocation10 + $0x20] sm:$0xff]   ;;  %v2241_v11 = vld [vmem:[#allocation10 + $0x28] sm:$0xff]   ;;  %v2242_v12 = vld [vmem:[#allocation10 + $0x30] sm:$0xff]   ;;  %s2738_s0 = smov 64   ;;  %v2739_v33 = vmov 1983009808  }
 0x182   : > { %1961 = vmatprep.subr.bf16.mxu0 %v2734_v2  ;;  %1975 = vmatprep.mubr.msk.bf16.mxu0 %vm2735_vm0, %v2734_v2  ;;  %v2243_v13 = vld [vmem:[#allocation10 + $0x38] sm:$0xff]   ;;  %v1882_v24 = vld [vmem:[#allocation11] ss:$0 sm:$0xff]  ;;  %v2244_v31 = vld [vmem:[%s3269_s26] sm:$0xff]   ;;  %v749_v34 = vunpack.c.l.s4 %v2739_v33  ;;  %v2740_v36 = vmov 1934713408  }
 0x183   : > { %1981 = vmatprep.mubr.msk.bf16.mxu1 %vm2735_vm0, %v2734_v2  ;;  %v1880_v18 = vld [vmem:[#allocation7] ss:$0 sm:$0xff]  ;;  %v1881_v20 = vld [vmem:[#allocation8] ss:$0 sm:$0xff]  ;;  %v925_v32 = vsel %vm920_vm1, %v2244_v31, 0  ;;  %v766_v37 = vunpack.c.l.s4 %v2740_v36  ;;  %v3315_v39 = vshrl.u32 %v751_v35, 7 }
 0x184   : > { %1980 = vmatpush3.bf16.xpose.msra.mxu1 %v925_v32  ;;  %v750_v38 = vunpack.c.0.s8 %v749_v34  ;;  %v2741_v56 = vmov 0   ;;  %v2246_v33 = vld [vmem:[%s3269_s26 + $0x10] sm:$0xff]   ;;  %vm1120_vm3 = vcmask 130048   ;;  %s3600_s21 = sld [smem:[#allocation32_spill]]  ;;  %s3601_s6 = sld [smem:[#allocation31_spill]]  ;;  %vm1514_vm4 = vcmask 523264  }
 0x185   : > { %1962 = vmatpush3.bf16.msra.mxu0 %v2237_v3  ;;  %1985 = vmatprep.subr.bf16.mxu1 %v2734_v2  ;;  %v767_v40 = vunpack.c.0.s8 %v766_v37  ;;  %v1027_v36 = vsel %vm920_vm1, %v2246_v33, 0  ;;  %vm1516_vm5 = vcmask 785408   ;;  %s3602_s29 = sld [smem:[#allocation38_spill]]  ;;  %s578_s15 = scalar_lea.vmem [#allocation17], %s3243_s13 }
 0x186   : > { %1963 = vmatprep.subr.bf16.mxu0 %v2734_v2  ;;  %v3318_v41 = vsub.s32 %v750_v38, %v3315_v39  ;;  %v2247_v38 = vld [vmem:[%s3269_s26 + $0x18] sm:$0xff]   ;;  %s1648_s5 = sshll.u32 %s578_s15, 4  ;;  %s3603_s12 = sld [smem:[#allocation51_spill]]  ;;  %s3421_s5 = int_to_ptr.vmem [resolvable:$true] %s1648_s5 }
 0x187   : > { %v3322_v45 = vsub.s32 %v767_v40, %v3315_v39  ;;  %s1633_s13 = scalar_lea.sflag [#allocation4], %s476_s28  ;;  %s2566_s2 = scalar_lea.vmem %s3421_s5, 128 }
 0x188   : > { %p2567_p8 = scmp.ne.s32.totalorder %s3421_s5, %s2566_s2  ;;  %s2743_s11 = smov [#allocation17]  }
 0x189   : > { %1964 = vmatpush3.bf16.msra.mxu0 %v2238_v8 }
 0x18a   : > { %1965 = vmatprep.subr.bf16.mxu0 %v2734_v2  ;;  %s1919_s16 = sshll.u32 %s3600_s21, 1 }
 0x18b   : > { %s1644_s4 = sadd.s32 %s3601_s6, %s1919_s16  ;;  %p3604_p6 = scmp.ne.s32.totalorder %s3602_s29, 0 }
 0x18c   : > { %s1920_s20 = sshll.u32 %s1644_s4, 7 }
 0x18d   : > { %1966 = vmatpush3.bf16.msra.mxu0 %v2239_v9  ;;  %s3419_s19 = scalar_lea.hbm %s3603_s12, %s1920_s20  ;;  %p2568_p1 = pnand %p2567_p8, %p3604_p6 }
 0x18e   : > { %1967 = vmatprep.subr.bf16.mxu0 %v2734_v2 }
 0x18f   : > { %p2569_p9 = pneg %p2568_p1 }
 0x191   : > { %1968 = vmatpush3.bf16.msra.mxu0 %v2240_v10 }
 0x192   : > { %1969 = vmatprep.subr.bf16.mxu0 %v2734_v2 }
 0x195   : > { %1970 = vmatpush3.bf16.msra.mxu0 %v2241_v11 }
 0x196   : > { %1971 = vmatprep.subr.bf16.mxu0 %v2734_v2 }
 0x199   : > { %1972 = vmatpush3.bf16.msra.mxu0 %v2242_v12 }
 0x19a   : > { %1973 = vmatprep.subr.bf16.mxu0 %v2734_v2 }
 0x19d   : > { %1974 = vmatpush3.bf16.msra.mxu0 %v2243_v13 }
 0x19e   : > { %2027 = vmatprep.subr.bf16.mxu0 %v2734_v2 }
 0x20d   : > { %v584_v4 = vpop.xlane.xlu0 %583 }
 0x20e   : > { %v586_v5 = vmul.f32 0.0078125, %v584_v4 }
 0x210   : > { %v587_v6 = vsub.f32 %v3289_v0, %v586_v5 }
 0x212   : > { %v588_v7 = vmul.f32 %v587_v6, %v587_v6 }
 0x214   : > { %589 = vadd.xlane.f32.xlu0 %v588_v7 }
 0x2a1   : > { %v590_v14 = vpop.xlane.xlu0 %589 }
 0x2a2   : > { %v591_v15 = vmul.f32 0.0078125, %v590_v14 }
 0x2a4   : > { %v592_v16 = vadd.f32 1e-05, %v591_v15 }
 0x2a6   : > { %2260 = vrsqrt.f32 %v592_v16 }
 0x2b0   : > { %v2261_v17 = vpop.eup %2260 }
 0x2b1   : > { %v594_v19 = vmul.f32 %v2261_v17, %v587_v6 }
 0x2b3   : > { %v601_v21 = vmul.f32 %v1880_v18, %v594_v19 }
 0x2b5   : > { %v608_v22 = vadd.f32 %v1881_v20, %v601_v21 }
 0x2b7   : > { %v609_v23 = vpack.c.bf16 %v608_v22, %v608_v22 }
 0x2b9   : > { %1976 = vmatmul.mubr.bf16.vlgmr.msra.gmra.mrb[0].mxu0 %v609_v23 }
 0x2ba   : > { %2043 = vmatprep.mubr.msk.bf16.mxu0 %vm2735_vm0, %v2734_v2 }
 0x38c   : > { %v734_v25 = vpop.f32.mrb[0].mxu0 }
 0x38d   : > { %v735_v26 = vadd.f32 %v1882_v24, %v734_v25  ;;  %v1977_v27 = vpop.f32.mrb[1].mxu0 }
 0x38e   : > { %v737_v28 = vpop.f32.mrb[2].mxu0  ;;  %v2245_v27 = vld [vmem:[%s3269_s26 + $0x8] sm:$0xff]  }
 0x38f   : > { %v740_v29 = vpack.c.bf16 %v735_v26, %v735_v26  ;;  %v1978_v30 = vpop.f32.mrb[3].mxu0  ;;  %v976_v31 = vsel %vm920_vm1, %v2245_v27, 0 }
 0x391   : > { %746 = vrot.lane.b32.xlu0 %v740_v29, %s2736_s24  ;;  %742 = vrot.lane.b32.xlu1 %v740_v29, %s2737_s10  ;;  %v754_v52 = vrot.slane %v740_v29, %v3318_v41 }
 0x395   : > { %744 = vrot.lane.b32.xlu1 %v740_v29, %s2738_s0 }
 0x403   : > { %v747_v42 = vpop.permute.xlu0 %746  ;;  %v743_v43 = vpop.permute.xlu1 %742 }
 0x404   : > { %v796_v44 = vrot.slane %v747_v42, %v3318_v41  ;;  %v788_v46 = vrot.slane %v743_v43, %v3318_v41  ;;  %v1078_v43 = vsel %vm920_vm1, %v2247_v38, 0 }
 0x406   : > { %v797_v47 = vcombine.low %v788_v46, %v796_v44  ;;  %v798_v48 = vcombine.high %v788_v46, %v796_v44 }
 0x407   : > { %v745_v49 = vpop.permute.xlu1 %744 }
 0x408   : > { %v805_v50 = vrot.slane %v797_v47, %v3322_v45  ;;  %v762_v51 = vrot.slane %v745_v49, %v3318_v41  ;;  %v812_v53 = vrot.slane %v798_v48, %v3322_v45  ;;  %v610_v48 = vld [vmem:[%s3251_s1] sm:$0x1]  ;;  %v912_v49 = vsub.s32 0, %v3315_v39  ;;  %s2570_s1 = sshll.u32 %s2743_s11, 4  ;;  %s2571_s1 = int_to_ptr.vmem [resolvable:$false] %s2570_s1 }
 0x409   : > { %vm611_vm2 = vcmp.gt.s32.totalorder %v610_v48, 0  ;;  %s2572_s18 = scalar_lea.vmem %s2571_s1, 256  ;;  %p2573_p2 = scmp.lt.s32.totalorder %s3421_s5, %s2571_s1 }
 0x40a   : > { %v763_v54 = vcombine.low %v754_v52, %v762_v51  ;;  %v764_v55 = vcombine.high %v754_v52, %v762_v51  ;;  %v813_v57 = vcombine.high %v805_v50, %v2741_v56  ;;  %v814_v60 = vcombine.high %v812_v53, %v2741_v56  ;;  %p2574_p10 = scmp.lt.s32.totalorder %s2572_s18, %s2566_s2 }
 0x40b   : > { %v820_v61 = vshrl.u32 %v805_v50, 16  ;;  %v836_v5 = vshrl.u32 %v812_v53, 16 }
 0x40c   : > { %v771_v58 = vrot.slane %v763_v54, %v3322_v45  ;;  %v778_v59 = vrot.slane %v764_v55, %v3322_v45  ;;  %v828_v4 = vshrl.u32 %v813_v57, 16  ;;  %v844_v12 = vshrl.u32 %v814_v60, 16  ;;  %p2575_p5 = por %p2574_p10, %p2573_p2 }
 0x40e   : > { %v779_v62 = vcombine.high %v771_v58, %v2741_v56  ;;  %v780_v63 = vcombine.high %v778_v59, %v2741_v56  ;;  %v817_v1 = vpack.i.b16 %v805_v50, %v771_v58  ;;  %v819_v3 = vshrl.u32 %v771_v58, 16  ;;  %p2576_p13 = pnand %p2575_p5, %p2569_p9 }
 0x40f   : > { %v833_v6 = vpack.i.b16 %v812_v53, %v778_v59  ;;  %v835_v7 = vshrl.u32 %v778_v59, 16  ;;  %v2742_v50 = vmov -1e+30  }
 0x410   : > { %v821_v8 = vpack.i.b16 %v820_v61, %v819_v3  ;;  %v825_v9 = vpack.i.b16 %v813_v57, %v779_v62  ;;  %v827_v10 = vshrl.u32 %v779_v62, 16  ;;  %v841_v11 = vpack.i.b16 %v814_v60, %v780_v63 }
 0x411   : > { %v837_v13 = vpack.i.b16 %v836_v5, %v835_v7  ;;  %v843_v14 = vshrl.u32 %v780_v63, 16  ;;  %v847_v15 = vcombine.low %v817_v1, %v833_v6  ;;  %v612_v51 = vsel %vm611_vm2, 0.0, %v2742_v50 }
 0x412   : > { %v829_v16 = vpack.i.b16 %v828_v4, %v827_v10  ;;  %v855_v17 = vcombine.low %v825_v9, %v841_v11  ;;  %v913_v52 = vrot.slane %v612_v51, %v912_v49 }
 0x413   : > { %v845_v18 = vpack.i.b16 %v844_v12, %v843_v14  ;;  %v872_v19 = vcombine.low %v821_v8, %v837_v13  ;;  %v854_v21 = vrot.slane %v847_v15, %v3318_v41 }
 0x414   : > { %v862_v20 = vrot.slane %v855_v17, %v3318_v41 }
 0x415   : > { %v880_v22 = vcombine.low %v829_v16, %v845_v18  ;;  %v879_v23 = vrot.slane %v872_v19, %v3318_v41 }
 0x416   : > { %v863_v24 = vcombine.low %v854_v21, %v862_v20 }
 0x417   : > { %v887_v25 = vrot.slane %v880_v22, %v3318_v41 }
 0x418   : > { %v870_v28 = vrot.slane %v863_v24, %v3322_v45 }
 0x419   : > { %v888_v26 = vcombine.low %v879_v23, %v887_v25 }
 0x41a   : > { %v900_v34 = vshrl.u32 %v870_v28, 16  ;;  %v871_v40 = vcombine.high %v870_v28, %v2741_v56 }
 0x41b   : > { %v895_v29 = vrot.slane %v888_v26, %v3322_v45 }
 0x41c   : > { %v906_v46 = vshrl.u32 %v871_v40, 16 }
 0x41d   : > { %v899_v30 = vpack.i.b16 %v895_v29, %v870_v28  ;;  %v901_v32 = vshrl.u32 %v895_v29, 16  ;;  %v896_v37 = vcombine.high %v895_v29, %v2741_v56 }
 0x41f   : > { %1982 = vmatmul.mubr.msk.bf16.vlgmr.msra.gmra.mrb[0].mxu1 %vm920_vm1, %v899_v30  ;;  %v902_v35 = vpack.i.b16 %v901_v32, %v900_v34  ;;  %v905_v42 = vpack.i.b16 %v896_v37, %v871_v40  ;;  %v907_v44 = vshrl.u32 %v896_v37, 16  ;;  %v2248_v34 = vld [vmem:[%s3275_s30] sm:$0xff]   ;;  %v2249_v40 = vld [vmem:[%s3275_s30 + $0x8] sm:$0xff]  }
 0x420   : > { %1986 = vmatpush3.bf16.xpose.msra.mxu1 %v976_v31  ;;  %1987 = vmatprep.mubr.msk.bf16.mxu1 %vm2735_vm0, %v2734_v2 }
 0x421   : > { %1991 = vmatprep.subr.bf16.mxu1 %v2734_v2  ;;  %v908_v47 = vpack.i.b16 %v907_v44, %v906_v46 }
 0x427   : > { %1988 = vmatmul.mubr.msk.bf16.vlgmr.msra.gmra.mrb[4].mxu1 %vm920_vm1, %v902_v35 }
 0x428   : > { %1992 = vmatpush3.bf16.xpose.msra.mxu1 %v1027_v36  ;;  %1993 = vmatprep.mubr.msk.bf16.mxu1 %vm2735_vm0, %v2734_v2 }
 0x429   : > { %1997 = vmatprep.subr.bf16.mxu1 %v2734_v2 }
 0x42f   : > { %1994 = vmatmul.mubr.msk.bf16.vlgmr.msra.gmra.mrb[8].mxu1 %vm920_vm1, %v905_v42 }
 0x430   : > { %1998 = vmatpush3.bf16.xpose.msra.mxu1 %v1078_v43  ;;  %1999 = vmatprep.mubr.msk.bf16.mxu1 %vm2735_vm0, %v2734_v2 }
 0x431   : > { %2003 = vmatprep.subr.bf16.mxu1 %v2734_v2 }
 0x437   : > { %2000 = vmatmul.mubr.msk.bf16.vlgmr.msra.gmra.mrb[12].mxu1 %vm920_vm1, %v908_v47  ;;  %v2250_v47 = vld [vmem:[%s3275_s30 + $0x10] sm:$0xff]  }
 0x438   : > { %2005 = vmatprep.mubr.msk.bf16.mxu1 %vm2735_vm0, %v2734_v2  ;;  %2004 = vmatpush3.bf16.msra.mxu1 %v2248_v34 }
 0x439   : > { %2009 = vmatprep.subr.bf16.mxu1 %v2734_v2 }
 0x4f2   : > { %v961_v53 = vpop.f32.mrb[0].mxu1 }
 0x4f3   : > { %v962_v54 = vadd.f32 %v961_v53, %v913_v52  ;;  %v1983_v55 = vpop.f32.mrb[1].mxu1 }
 0x4f4   : > { %v964_v56 = vpop.f32.mrb[2].mxu1 }
 0x4f5   : > { %v1984_v57 = vpop.f32.mrb[3].mxu1  ;;  %v1121_v58 = vsel %vm1120_vm3, %v962_v54, -inf }
 0x4f6   : > { %1122 = vmax.xlane.f32.xlu1 %v1121_v58  ;;  %v2252_v57 = vld [vmem:[#allocation15] sm:$0xff]   ;;  %v2253_v58 = vld [vmem:[#allocation15 + $0x8] sm:$0xff]  }
 0x4f7   : > { %2028 = vmatpush3.bf16.msra.mxu0 %v2252_v57 }
 0x4f8   : > { %2029 = vmatprep.subr.bf16.mxu0 %v2734_v2 }
 0x4fa   : > { %v1012_v59 = vpop.f32.mrb[4].mxu1 }
 0x4fb   : > { %v1013_v60 = vadd.f32 %v1012_v59, %v913_v52  ;;  %v1989_v61 = vpop.f32.mrb[5].mxu1  ;;  %2030 = vmatpush3.bf16.msra.mxu0 %v2253_v58  ;;  %v2254_v59 = vld [vmem:[#allocation15 + $0x10] sm:$0xff]  }
 0x4fc   : > { %v1015_v62 = vpop.f32.mrb[6].mxu1  ;;  %2031 = vmatprep.subr.bf16.mxu0 %v2734_v2  ;;  %v2256_v61 = vld [vmem:[#allocation15 + $0x20] sm:$0xff]  }
 0x4fd   : > { %v1990_v63 = vpop.f32.mrb[7].mxu1  ;;  %v1124_v1 = vsel %vm1120_vm3, %v1013_v60, -inf  ;;  %v2257_v62 = vld [vmem:[#allocation15 + $0x28] sm:$0xff]  }
 0x4fe   : > { %1125 = vmax.xlane.f32.xlu0 %v1124_v1 }
 0x4ff   : > { %2032 = vmatpush3.bf16.msra.mxu0 %v2254_v59 }
 0x500   : > { %2033 = vmatprep.subr.bf16.mxu0 %v2734_v2 }
 0x502   : > { %v1063_v39 = vpop.f32.mrb[8].mxu1 }
 0x503   : > { %v1064_v3 = vadd.f32 %v1063_v39, %v913_v52  ;;  %v1995_v4 = vpop.f32.mrb[9].mxu1 }
 0x504   : > { %v1066_v5 = vpop.f32.mrb[10].mxu1 }
 0x505   : > { %v1996_v6 = vpop.f32.mrb[11].mxu1  ;;  %v1127_v7 = vsel %vm1120_vm3, %v1064_v3, -inf }
 0x506   : > { %1128 = vmax.xlane.f32.xlu1 %v1127_v7 }
 0x50a   : > { %v1114_v8 = vpop.f32.mrb[12].mxu1 }
 0x50b   : > { %v1115_v9 = vadd.f32 %v1114_v8, %v913_v52  ;;  %v2001_v10 = vpop.f32.mrb[13].mxu1  ;;  %v2251_v52 = vld [vmem:[%s3275_s30 + $0x18] sm:$0xff]  }
 0x50c   : > { %v1117_v11 = vpop.f32.mrb[14].mxu1 }
 0x50d   : > { %v2002_v12 = vpop.f32.mrb[15].mxu1  ;;  %v1130_v13 = vsel %vm1120_vm3, %v1115_v9, -inf }
 0x50e   : > { %1131 = vmax.xlane.f32.xlu1 %v1130_v13 }
 0x583   : > { %v1123_v14 = vpop.xlane.xlu1 %1122 }
 0x584   : > { %v1133_v15 = vsub.f32 %v962_v54, %v1123_v14 }
 0x586   : > { %v1137_v16 = vmul.f32 1.442695, %v1133_v15 }
 0x588   : > { %2262 = vpow2.f32 %v1137_v16 }
 0x58b   : > { %v1126_v17 = vpop.xlane.xlu0 %1125 }
 0x58c   : > { %v1134_v18 = vsub.f32 %v1013_v60, %v1126_v17  ;;  %v2255_v60 = vld [vmem:[#allocation15 + $0x18] sm:$0xff]  }
 0x58d   : > { %2034 = vmatpush3.bf16.msra.mxu0 %v2255_v60 }
 0x58e   : > { %v1139_v19 = vmul.f32 1.442695, %v1134_v18  ;;  %2035 = vmatprep.subr.bf16.mxu0 %v2734_v2 }
 0x590   : > { %2264 = vpow2.f32 %v1139_v19 }
 0x591   : > { %2036 = vmatpush3.bf16.msra.mxu0 %v2256_v61  ;;  %v1909_v61 = vld [vmem:[#allocation16] ss:$0 sm:$0xff] }
 0x592   : > { %v2263_v20 = vpop.eup %2262  ;;  %2037 = vmatprep.subr.bf16.mxu0 %v2734_v2 }
 0x593   : > { %v1129_v21 = vpop.xlane.xlu1 %1128  ;;  %v1145_v22 = vsel %vm1120_vm3, %v2263_v20, 0.0 }
 0x594   : > { %v1135_v23 = vsub.f32 %v1064_v3, %v1129_v21  ;;  %1146 = vadd.xlane.f32.xlu1 %v1145_v22 }
 0x595   : > { %2038 = vmatpush3.bf16.msra.mxu0 %v2257_v62 }
 0x596   : > { %v1141_v24 = vmul.f32 1.442695, %v1135_v23  ;;  %2039 = vmatprep.subr.bf16.mxu0 %v2734_v2 }
 0x598   : > { %2266 = vpow2.f32 %v1141_v24  ;;  %v2258_v24 = vld [vmem:[#allocation15 + $0x30] sm:$0xff]  }
 0x599   : > { %2040 = vmatpush3.bf16.msra.mxu0 %v2258_v24 }
 0x59a   : > { %v2265_v25 = vpop.eup %2264  ;;  %2041 = vmatprep.subr.bf16.mxu0 %v2734_v2 }
 0x59b   : > { %v1132_v26 = vpop.xlane.xlu1 %1131  ;;  %v1148_v27 = vsel %vm1120_vm3, %v2265_v25, 0.0 }
 0x59c   : > { %v1136_v28 = vsub.f32 %v1115_v9, %v1132_v26  ;;  %1149 = vadd.xlane.f32.xlu1 %v1148_v27 }
 0x59e   : > { %v1143_v29 = vmul.f32 1.442695, %v1136_v28 }
 0x5a0   : > { %2268 = vpow2.f32 %v1143_v29 }
 0x5a2   : > { %v2267_v30 = vpop.eup %2266 }
 0x5a3   : > { %v1151_v31 = vsel %vm1120_vm3, %v2267_v30, 0.0 }
 0x5a4   : > { %1152 = vadd.xlane.f32.xlu1 %v1151_v31 }
 0x5aa   : > { %v2269_v32 = vpop.eup %2268 }
 0x5ab   : > { %v1154_v33 = vsel %vm1120_vm3, %v2269_v32, 0.0 }
 0x5ac   : > { %1155 = vadd.xlane.f32.xlu0 %v1154_v33  ;;  %v2259_v33 = vld [vmem:[#allocation15 + $0x38] sm:$0xff]  }
 0x5ad   : > { %2042 = vmatpush3.bf16.msra.mxu0 %v2259_v33 }
 0x621   : > { %v1147_v35 = vpop.xlane.xlu1 %1146 }
 0x622   : > { %2270 = vrcp.f32 %v1147_v35 }
 0x629   : > { %v1150_v36 = vpop.xlane.xlu1 %1149 }
 0x62a   : > { %2272 = vrcp.f32 %v1150_v36 }
 0x62c   : > { %v2271_v37 = vpop.eup %2270 }
 0x62d   : > { %v1158_v38 = vmul.f32 %v2271_v37, %v2263_v20 }
 0x62f   : > { %v1165_v42 = vpack.c.bf16 %v1158_v38, %v1158_v38 }
 0x631   : > { %2006 = vmatmul.mubr.msk.bf16.vlgmr.msra.gmra.mrb[16].mxu1 %vm1120_vm3, %v1165_v42  ;;  %v1153_v43 = vpop.xlane.xlu1 %1152 }
 0x632   : > { %2010 = vmatpush3.bf16.msra.mxu1 %v2249_v40  ;;  %2274 = vrcp.f32 %v1153_v43  ;;  %2011 = vmatprep.mubr.msk.bf16.mxu1 %vm2735_vm0, %v2734_v2 }
 0x633   : > { %2015 = vmatprep.subr.bf16.mxu1 %v2734_v2 }
 0x634   : > { %v2273_v44 = vpop.eup %2272 }
 0x635   : > { %v1160_v46 = vmul.f32 %v2273_v44, %v2265_v25 }
 0x637   : > { %v1166_v48 = vpack.c.bf16 %v1160_v46, %v1160_v46 }
 0x639   : > { %v1156_v49 = vpop.xlane.xlu0 %1155  ;;  %2012 = vmatmul.mubr.msk.bf16.vlgmr.msra.gmra.mrb[20].mxu1 %vm1120_vm3, %v1166_v48 }
 0x63a   : > { %2276 = vrcp.f32 %v1156_v49  ;;  %2016 = vmatpush3.bf16.msra.mxu1 %v2250_v47  ;;  %2017 = vmatprep.mubr.msk.bf16.mxu1 %vm2735_vm0, %v2734_v2 }
 0x63b   : > { %2021 = vmatprep.subr.bf16.mxu1 %v2734_v2 }
 0x63c   : > { %v2275_v50 = vpop.eup %2274 }
 0x63d   : > { %v1162_v51 = vmul.f32 %v2275_v50, %v2267_v30 }
 0x63f   : > { %v1167_v53 = vpack.c.bf16 %v1162_v51, %v1162_v51 }
 0x641   : > { %2018 = vmatmul.mubr.msk.bf16.vlgmr.msra.gmra.mrb[24].mxu1 %vm1120_vm3, %v1167_v53 }
 0x642   : > { %2022 = vmatpush3.bf16.msra.mxu1 %v2251_v52  ;;  %2023 = vmatprep.mubr.msk.bf16.mxu1 %vm2735_vm0, %v2734_v2 }
 0x644   : > { %v2277_v54 = vpop.eup %2276 }
 0x645   : > { %v1164_v55 = vmul.f32 %v2277_v54, %v2269_v32 }
 0x647   : > { %v1168_v56 = vpack.c.bf16 %v1164_v55, %v1164_v55 }
 0x649   : > { %2024 = vmatmul.mubr.msk.bf16.vlgmr.msra.gmra.mrb[28].mxu1 %vm1120_vm3, %v1168_v56 }
 0x704   : > { %v1212_v63 = vpop.f32.mrb[16].mxu1 }
 0x705   : > { %v2007_v1 = vpop.f32.mrb[17].mxu1 }
 0x706   : > { %v1215_v39 = vpop.f32.mrb[18].mxu1 }
 0x707   : > { %v2008_v3 = vpop.f32.mrb[19].mxu1 }
 0x70c   : > { %v1261_v4 = vpop.f32.mrb[20].mxu1 }
 0x70d   : > { %v2013_v5 = vpop.f32.mrb[21].mxu1 }
 0x70e   : > { %v1264_v6 = vpop.f32.mrb[22].mxu1 }
 0x70f   : > { %v2014_v7 = vpop.f32.mrb[23].mxu1 }
 0x714   : > { %v1310_v8 = vpop.f32.mrb[24].mxu1 }
 0x715   : > { %v1365_v9 = vcombine.low %v1212_v63, %v1310_v8  ;;  %v1366_v10 = vcombine.high %v1212_v63, %v1310_v8  ;;  %v2019_v11 = vpop.f32.mrb[25].mxu1 }
 0x716   : > { %v1313_v12 = vpop.f32.mrb[26].mxu1 }
 0x717   : > { %v2020_v13 = vpop.f32.mrb[27].mxu1  ;;  %v1373_v19 = vrot.slane %v1365_v9, %v3318_v41  ;;  %v1380_v20 = vrot.slane %v1366_v10, %v3318_v41 }
 0x71c   : > { %v1359_v14 = vpop.f32.mrb[28].mxu1 }
 0x71d   : > { %v1381_v15 = vcombine.low %v1261_v4, %v1359_v14  ;;  %v1382_v16 = vcombine.high %v1261_v4, %v1359_v14  ;;  %v2025_v17 = vpop.f32.mrb[29].mxu1 }
 0x71e   : > { %v1362_v18 = vpop.f32.mrb[30].mxu1 }
 0x71f   : > { %v1389_v21 = vrot.slane %v1381_v15, %v3318_v41  ;;  %v1396_v22 = vrot.slane %v1382_v16, %v3318_v41  ;;  %v2026_v23 = vpop.f32.mrb[31].mxu1 }
 0x721   : > { %v1397_v25 = vcombine.low %v1373_v19, %v1389_v21  ;;  %v1398_v26 = vcombine.high %v1373_v19, %v1389_v21  ;;  %v1413_v27 = vcombine.low %v1380_v20, %v1396_v22  ;;  %v1414_v28 = vcombine.high %v1380_v20, %v1396_v22 }
 0x723   : > { %v1405_v29 = vrot.slane %v1397_v25, %v3322_v45  ;;  %v1412_v30 = vrot.slane %v1398_v26, %v3322_v45  ;;  %v1421_v31 = vrot.slane %v1413_v27, %v3322_v45  ;;  %v1428_v32 = vrot.slane %v1414_v28, %v3322_v45 }
 0x725   : > { %v1433_v34 = vcombine.low %v1405_v29, %v1412_v30  ;;  %v1907_v35 = vcombine.high %v1405_v29, %v1412_v30  ;;  %v1449_v36 = vcombine.low %v1421_v31, %v1428_v32  ;;  %v1908_v37 = vcombine.high %v1421_v31, %v1428_v32 }
 0x727   : > { %v1440_v38 = vrot.slane %v1433_v34, %v3318_v41  ;;  %v1448_v40 = vrot.slane %v1907_v35, %v3318_v41  ;;  %v1456_v42 = vrot.slane %v1449_v36, %v3318_v41  ;;  %v1464_v43 = vrot.slane %v1908_v37, %v3318_v41 }
 0x729   : > { %v1466_v44 = vcombine.high %v1440_v38, %v1448_v40  ;;  %v1482_v46 = vcombine.high %v1456_v42, %v1464_v43  ;;  %v1465_v47 = vcombine.low %v1440_v38, %v1448_v40  ;;  %v1481_v48 = vcombine.low %v1456_v42, %v1464_v43 }
 0x72b   : > { %v1480_v2 = vrot.slane %v1466_v44, %v3322_v45  ;;  %v1496_v49 = vrot.slane %v1482_v46, %v3322_v45  ;;  %v1473_v50 = vrot.slane %v1465_v47, %v3322_v45  ;;  %v1489_v51 = vrot.slane %v1481_v48, %v3322_v45 }
 0x72d   : > { %v1499_v52 = vcombine.low %v1480_v2, %v1496_v49  ;;  %v1498_v53 = vcombine.high %v1473_v50, %v1489_v51  ;;  %v1500_v54 = vcombine.high %v1480_v2, %v1496_v49  ;;  %v1497_v55 = vcombine.low %v1473_v50, %v1489_v51 }
 0x72f   : > { %1506 = vrot.lane.b32.xlu0 %v1499_v52, %s2738_s0  ;;  %1502 = vrot.lane.b32.xlu1 %v1498_v53, %s2736_s24 }
 0x733   : > { %1510 = vrot.lane.b32.xlu1 %v1500_v54, %s2737_s10 }
 0x7a1   : > { %v1503_v41 = vpop.permute.xlu1 %1502  ;;  %v1507_v56 = vpop.permute.xlu0 %1506 }
 0x7a2   : > { %v1513_v57 = vsel %vm920_vm1, %v1497_v55, %v1503_v41 }
 0x7a3   : > { %v1515_v58 = vsel %vm1514_vm4, %v1513_v57, %v1507_v56 }
 0x7a5   : > { %v1511_v45 = vpop.permute.xlu1 %1510 }
 0x7a6   : > { %v1517_v59 = vsel %vm1516_vm5, %v1515_v58, %v1511_v45 }
 0x7a7   : > { %v1518_v60 = vpack.c.bf16 %v1517_v59, %v1517_v59 }
 0x7a9   : > { %2044 = vmatmul.mubr.bf16.vlgmr.msra.gmra.mrb[4].mxu0 %v1518_v60 }
 0x87c   : > { %v1624_v62 = vpop.f32.mrb[4].mxu0 }
 0x87d   : > { %v1625_v63 = vadd.f32 %v1909_v61, %v1624_v62  ;;  %v2045_v1 = vpop.f32.mrb[5].mxu0 }
 0x87e   : > { %v1627_v39 = vpop.f32.mrb[6].mxu0 }
 0x87f   : > { %v1630_v3 = vadd.f32 %v1625_v63, %v3289_v0  ;;  %v2046_v4 = vpop.f32.mrb[7].mxu0 }
 0x881   : > { %1631 = vst [vmem:[%s578_s15] sm:$0xff] %v1630_v3 }
 0x882   : > { %2579 = shalt.err (!%p2576_p13)
}
 0x883   : > { %s2580_s28 = scalar_lea.hbm %s3419_s19, 128  ;;  %s2584_s24 = scalar_lea.hbm %s3603_s12, 512 }
 0x884   : > { %p2581_p12 = scmp.ne.s32.totalorder %s3419_s19, %s2580_s28  ;;  %p2585_p0 = scmp.lt.u32.totalorder %s3419_s19, %s3603_s12 }
 0x885   : > { %p2586_p4 = scmp.lt.u32.totalorder %s2584_s24, %s2580_s28  ;;  %p2588_p8 = scmp.lt.u32.totalorder %s2580_s28, %s3419_s19 }
 0x886   : > { %p2582_p3 = pnand %p2581_p12, %p3604_p6 }
 0x887   : > { %p2587_p11 = por %p2586_p4, %p2585_p0 }
 0x888   : > { %p2583_p7 = pneg %p2582_p3 }
 0x889   : > { %p2589_p1 = por %p2588_p8, %p2587_p11 }
 0x88b   : > { %p2590_p9 = pnand %p2589_p1, %p2583_p7 }
 0x88d   : > { %2593 = shalt.err (!%p2590_p9)
}
 0x88e   : > { %2079 = dma.vmem_to_hbm [thread:$0]  (%p3604_p6), %s3421_s5, 128, %s3419_s19, %s1633_s13  }
 0x88f PF: > { %s3605_s21 = sld [smem:[#allocation29_spill]]  ;;  %p2130_p2 = scmp.ge.s32.totalorder %s2720_s23, 2 }
 0x890   : > { %p3606_p10 = scmp.ne.s32.totalorder %s3561_s25, 0 }
 0x892   : > { %p2114_p5 = pnand %p2130_p2, %p3606_p10 }
 0x895   : > { %s1660_s6 = sand.u32 1, %s3605_s21  }
 0x896   : > { %s1661_s16 = scalar_lea.sflag [#allocation4], %s1660_s6 }
 0x897   : > { %2675 = dma.done.wait (!%p2114_p5), %s1661_s16, 128  }
 0x898   : > { %2677 = vsyncadd (!%p2114_p5), %s1661_s16, 4294967168  ;;  %s31_s23 = sadd.s32 1, %s2720_s23   ;;  %s3607_s4 = sld [smem:[#allocation28_spill]] }
 0x899   : > { %p28_p13 = scmp.ge.s32.totalorder %s31_s23, 6   ;;  %s3608_s15 = sld [smem:[#allocation40_spill]] }
 0x89a   : > { %s3609_s29 = sld [smem:[#allocation30_spill]]  ;;  %s3610_s18 = sld [smem:[#allocation39_spill]] }
 0x89b   : > { %s3611_s19 = sld [smem:[#allocation33_spill]]  ;;  %s3612_s21 = sld [smem:[#allocation35_spill]] }
 0x89c   : > { %s3613_s5 = sld [smem:[#allocation36_spill]]  ;;  %s3614_s13 = smov %s2684_s14 }
 0x89d   : > { %s3616_s16 = smov %s2696_s17  ;;  %s3618_s20 = smov %s2716_s22 }
 0x89e   : > { %s3615_s14 = smov %s3607_s4  ;;  %30 = sbr.rel (!%p28_p13) target bundleno = 25 (0x19), region = 164 }
 0x8a0   : > { %s3617_s17 = smov %s3609_s29 }
 0x8a2   : > { %s3619_s22 = smov %s3613_s5 }
 0x8a5   :  { %1666 = vsyncpa [#allocation3], 1 }
 0x8a6   :  { %1668 = vsyncpa [#allocation3 + $0x1], 1 }
 0x8a7   :  { %1669 = vsyncpa [#allocation6], 1 }
 0x8a8   :  { %1671 = vsyncpa [#allocation6 + $0x1], 1 }
 0x8a9   :  { %1672 = vsyncpa [#allocation9], 1 }
 0x8aa   :  { %1673 = vsyncpa [#allocation12], 1 }
 0x8ab   :  { %1674 = vsyncpa [#allocation4], 1 }
 0x8ac   :  { %1676 = vsyncpa [#allocation4 + $0x1], 1 }

// kernel: _lambda_.15
= control target key start
LH: loop header
LB: loop body
LE: loop exit
PB: predicated region body
PF: predicated region fallthrough
CT: control target
= control target key end

     0   :  { %s2129_s0 = inlined_call_operand.hbm [shape: f32[32,128], index: 0, kind: input, shape index: {}]   ;;  %s2130_s1 = inlined_call_operand.hbm [shape: f32[1,128], index: 1, kind: input, shape index: {}]   ;;  %s2131_s2 = inlined_call_operand.hbm [shape: f32[1,128], index: 2, kind: input, shape index: {}]   ;;  %s2132_s3 = inlined_call_operand.hbm [shape: f32[1,128], index: 3, kind: input, shape index: {}]   ;;  %s2133_s4 = inlined_call_operand.hbm [shape: bf16[128,256], index: 4, kind: input, shape index: {}]   ;;  %s2134_s5 = inlined_call_operand.hbm [shape: f32[1,256], index: 5, kind: input, shape index: {}]   ;;  %s2135_s6 = inlined_call_operand.hbm [shape: bf16[256,128], index: 6, kind: input, shape index: {}]   ;;  %s2136_s7 = inlined_call_operand.hbm [shape: f32[32,128], index: 7, kind: output, shape index: {}]  }
   0x1   :  { %2163 = sst [smem:[#allocation33_spill]] %s2129_s0 }
   0x2   :  { %2164 = sst [smem:[#allocation34_spill]] %s2133_s4 }
   0x3   :  { %2165 = sst [smem:[#allocation35_spill]] %s2134_s5 }
   0x4   :  { %2166 = sst [smem:[#allocation36_spill]] %s2136_s7 }
   0x5   :  { %12 = vsyncpa [#allocation5], 0 }
   0x6   :  { %14 = vsyncpa [#allocation5 + $0x1], 0 }
   0x7   :  { %15 = vsyncpa [#allocation8], 0 }
   0x8   :  { %16 = vsyncpa [#allocation11], 0 }
   0x9   :  { %17 = vsyncpa [#allocation6], 0 }
   0xa   :  { %19 = vsyncpa [#allocation6 + $0x1], 0  ;;  %s1638_s24 = smov 0   ;;  %s1640_s25 = smov 0  }
   0xb   :  { %s1642_s26 = smov 0   ;;  %s1644_s27 = smov 0  }
   0xc   :  { %s1646_s28 = smov 0   ;;  %s1648_s29 = smov 0  }
   0xd   :  { %s1650_s30 = smov 0   ;;  %s1652_s8 = smov 0  }
   0xe   :  { %s1654_s9 = smov 0   ;;  %s1656_s10 = smov 0  }
   0xf   :  { %s1658_s11 = smov 0  }
  0x10 LB: > { %2167 = sst [smem:[#allocation21_spill]] %s1548_s26  ;;  %s34_s12 = sadd.s32 1, %s1572_s9  ;;  %s1580_s11 = sphi %s1658_s11, %s25_s11   ;;  %s1576_s10 = sphi %s1656_s10, %s2226_s10   ;;  %s1572_s9 = sphi %s1654_s9, %s2233_s9   ;;  %s1568_s8 = sphi %s1652_s8, %s2224_s8   ;;  %s1564_s30 = sphi %s1650_s30, %s2232_s30   ;;  %s1560_s29 = sphi %s1648_s29, %s2231_s29   ;;  %s1556_s28 = sphi %s1646_s28, %s2230_s28   ;;  %s1552_s27 = sphi %s1644_s27, %s2229_s27   ;;  %s1548_s26 = sphi %s1642_s26, %s2221_s26   ;;  %s1544_s25 = sphi %s1640_s25, %s2228_s25   ;;  %s1540_s24 = sphi %s1638_s24, %s2227_s24  }
  0x11   : > { %2168 = sst [smem:[#allocation22_spill]] %s1552_s27  ;;  %s37_s13 = sadd.s32 1, %s1576_s10 }
  0x12   : > { %2169 = sst [smem:[#allocation23_spill]] %s1560_s29  ;;  %p35_p0 = scmp.ge.s32.totalorder %s34_s12, 2 }
  0x13   : > { %2170 = sst [smem:[#allocation24_spill]] %s1564_s30  ;;  %s44_s14 = sadd.s32 1, %s1560_s29 }
  0x14   : > { %2171 = sst [smem:[#allocation25_spill]] %s1568_s8  ;;  %p2140_p1 = scmp.ne.s32.totalorder %s1560_s29, %s1556_s28 }
  0x15   : > { %2172 = sst [smem:[#allocation26_spill]] %s1576_s10  ;;  %p52_p2 = scmp.eq.s32.totalorder %s1580_s11, 0 }
  0x16   : > { %2173 = sst [smem:[#allocation27_spill]] %s1580_s11  ;;  %s2235_s12 = smov (%p35_p0, %s34_s12), 0 }
  0x17   : > { %2174 = sst [smem:[#allocation28_spill]] %s2235_s12  ;;  %s2237_s13 = smov (!%p35_p0, %s37_s13), %s1576_s10 }
  0x18   : > { %p1705_p3 = por %p52_p2, %p2140_p1  ;;  %s130_s16 = ssub.s32 %s1572_s9, %s2235_s12 }
  0x19   : > { %p39_p4 = scmp.ge.s32.totalorder %s2237_s13, 2  ;;  %p131_p5 = scmp.eq.s32.totalorder %s130_s16, 0 }
  0x1a   : > { %s133_s17 = sadd.s32 1, %s1548_s26  ;;  %p140_p6 = scmp.ne.s32.totalorder %s1548_s26, %s1544_s25 }
  0x1b   : > { %s2239_s13 = smov (%p39_p4, %s2237_s13), 0  ;;  %p2141_p9 = scmp.lt.s32.totalorder %s1580_s11, 4 }
  0x1c   : > { %2176 = sst [smem:[#allocation29_spill]] %s2239_s13  ;;  %s41_s19 = ssub.s32 %s1576_s10, %s2239_s13 }
  0x1d   : > { %s1717_s18 = scalar_select %p131_p5, %s1548_s26, %s133_s17  }
  0x1e   : > { %p1721_p7 = por %p140_p6, %p52_p2  ;;  %p42_p8 = scmp.eq.s32.totalorder %s41_s19, 0 }
  0x1f   : > { %2177 = sst [smem:[#allocation30_spill]] %s1717_s18  ;;  %s281_s21 = sand.u32 1, %s1580_s11  }
  0x20   : > { %s1728_s22 = scalar_select %p42_p8, %s1560_s29, %s44_s14  }
  0x21   : > { %s283_s23 = sand.u32 1, %s1560_s29   ;;  %s1001_s12 = sshll.u32 %s1576_s10, 8 }
  0x22   : > { %2179 = sst [smem:[#allocation31_spill]] %s1728_s22  ;;  %s957_s16 = sshll.u32 %s283_s23, 4 }
  0x23   : > { %s2180_s0 = sld [smem:[#allocation33_spill]]  ;;  %s285_s17 = scalar_lea.vmem [#allocation4], %s957_s16 }
  0x24   : > { %s292_s13 = sshll.u32 %s285_s17, 4  ;;  %p1741_p10 = pnand %p2141_p9, %p1705_p3  ;;  %s1745_s13 = int_to_ptr.vmem [resolvable:$true] %s292_s13 }
  0x25   : > { %s1747_s14 = scalar_lea.sflag [#allocation5], %s281_s21 }
  0x26   : > { %p1244_p12 = pneg %p1741_p10 }
  0x29   : > { %s1735_s30 = scalar_lea.hbm %s2180_s0, %s1001_s12  ;;  %s1247_s15 = scalar_lea.hbm %s2180_s0, 512 }
  0x2a   : > { %s1242_s7 = scalar_lea.hbm %s1735_s30, 256  ;;  %p1248_p2 = scmp.lt.u32.totalorder %s1735_s30, %s2180_s0 }
  0x2b   : > { %p1243_p11 = scmp.ne.s32.totalorder %s1735_s30, %s1242_s7  ;;  %p1249_p3 = scmp.lt.u32.totalorder %s1247_s15, %s1242_s7 }
  0x2c   : > { %p1251_p5 = scmp.lt.u32.totalorder %s1242_s7, %s1735_s30 }
  0x2d   : > { %p1245_p13 = pnand %p1244_p12, %p1243_p11  ;;  %p1250_p4 = por %p1249_p3, %p1248_p2 }
  0x2f   : > { %p1246_p0 = pneg %p1245_p13  ;;  %p1252_p6 = por %p1251_p5, %p1250_p4 }
  0x31   : > { %p1253_p8 = pnand %p1252_p6, %p1246_p0 }
  0x33   : > { %1256 = shalt.err (!%p1253_p8)
}
  0x34   : > { %s1257_s21 = scalar_lea.vmem %s1745_s13, 256  ;;  %s1582_s17 = smov [#allocation4]  }
  0x35   : > { %p1258_p11 = scmp.ne.s32.totalorder %s1745_s13, %s1257_s21  ;;  %s1262_s8 = sshll.u32 %s1582_s17, 4  ;;  %s1263_s8 = int_to_ptr.vmem [resolvable:$false] %s1262_s8 }
  0x36   : > { %s1264_s12 = scalar_lea.vmem %s1263_s8, 512  ;;  %p1265_p9 = scmp.lt.s32.totalorder %s1745_s13, %s1263_s8 }
  0x37   : > { %p1260_p13 = pnand %p1258_p11, %p1244_p12  ;;  %p1266_p2 = scmp.lt.s32.totalorder %s1264_s12, %s1257_s21 }
  0x39   : > { %p1261_p1 = pneg %p1260_p13  ;;  %p1267_p3 = por %p1266_p2, %p1265_p9 }
  0x3b   : > { %p1268_p4 = pnand %p1267_p3, %p1261_p1 }
  0x3d   : > { %1271 = shalt.err (!%p1268_p4)
}
  0x3e   : > { %s2143_s7 = smov 128   ;;  %s1584_s15 = smov 8  }
  0x3f   : > { %1097 = dma.hbm_to_vmem [thread:$0]  (!%p1741_p10), %s1735_s30, 256, %s1745_s13, %s1747_s14, %s2143_s7, %s2143_s7, %s1584_s15  }
  0x40   : > { %p2182_p12 = scmp.lt.s32.totalorder %s1580_s11, 4  ;;  %s2142_s16 = sand.u32 1, %s1548_s26  }
  0x41   : > { %s1788_s21 = sshll.u32 %s2142_s16, 6  ;;  %s961_s17 = sshll.u32 %s1572_s9, 6 }
  0x42   : > { %p1781_p9 = pnand %p2182_p12, %p1721_p7  ;;  %s2184_s4 = sld [smem:[#allocation34_spill]] }
  0x43   : > { %s306_s30 = scalar_lea.vmem [#allocation12], %s1788_s21 }
  0x44   : > { %s2183_s23 = scalar_select %p1781_p9, 1, 0 }
  0x45   : > { %s312_s13 = sshll.u32 %s306_s30, 4  ;;  %p1803_p7 = pneg %p1781_p9  ;;  %s1797_s13 = int_to_ptr.vmem [resolvable:$true] %s312_s13 }
  0x47   : > { %s2185_s15 = scalar_select %p1803_p7, 1, 0 }
  0x48   : > { %s1794_s19 = scalar_lea.hbm %s2184_s4, %s961_s17  ;;  %s1277_s12 = scalar_lea.hbm %s2184_s4, 2048 }
  0x49   : > { %s1272_s20 = scalar_lea.hbm %s1794_s19, 1024  ;;  %p1278_p5 = scmp.lt.u32.totalorder %s1794_s19, %s2184_s4 }
  0x4a   : > { %p1273_p1 = scmp.ne.s32.totalorder %s1794_s19, %s1272_s20  ;;  %p1279_p6 = scmp.lt.u32.totalorder %s1277_s12, %s1272_s20 }
  0x4b   : > { %p1281_p11 = scmp.lt.u32.totalorder %s1272_s20, %s1794_s19 }
  0x4c   : > { %p1275_p10 = pnand %p1803_p7, %p1273_p1  ;;  %p1280_p8 = por %p1279_p6, %p1278_p5 }
  0x4e   : > { %p1276_p0 = pneg %p1275_p10  ;;  %p1282_p13 = por %p1281_p11, %p1280_p8 }
  0x50   : > { %p1283_p2 = pnand %p1282_p13, %p1276_p0 }
  0x52   : > { %1286 = shalt.err (!%p1283_p2)
}
  0x53   : > { %s1287_s30 = scalar_lea.vmem %s1797_s13, 1024  ;;  %s1585_s17 = smov [#allocation12]  }
  0x54   : > { %p1288_p3 = scmp.ne.s32.totalorder %s1797_s13, %s1287_s30  ;;  %s1292_s8 = sshll.u32 %s1585_s17, 4  ;;  %s1293_s8 = int_to_ptr.vmem [resolvable:$false] %s1292_s8 }
  0x55   : > { %s1294_s7 = scalar_lea.vmem %s1293_s8, 2048  ;;  %p1295_p1 = scmp.lt.s32.totalorder %s1797_s13, %s1293_s8 }
  0x56   : > { %p1290_p4 = pnand %p1288_p3, %p1803_p7  ;;  %p1296_p10 = scmp.lt.s32.totalorder %s1294_s7, %s1287_s30 }
  0x58   : > { %p1291_p12 = pneg %p1290_p4  ;;  %p1297_p5 = por %p1296_p10, %p1295_p1 }
  0x5a   : > { %p1298_p6 = pnand %p1297_p5, %p1291_p12 }
  0x5c   : > { %1301 = shalt.err (!%p1298_p6)
}
  0x5d   : > { %s2146_s16 = smov 64   ;;  %s2147_s20 = smov 4  }
  0x5e   : > { %s2186_s12 = smov 128   ;;  %s1831_s30 = sadd.s32 4294967295, %s1580_s11  }
  0x5f   : > { %1100 = dma.hbm_to_vmem [thread:$0]  (!%p1781_p9), %s1794_s19, 1024, %s1797_s13, %s1747_s14, %s2186_s12, %s2146_s16, %s2147_s20  }
  0x60   : > { %s951_s17 = sadd.s32 4294967294, %s1580_s11   ;;  %p57_p0 = scmp.ne.s32.totalorder %s1556_s28, %s1552_s27 }
  0x61   : > { %p2152_p8 = scmp.eq.s32.totalorder %s1831_s30, 0  ;;  %p146_p11 = scmp.ne.s32.totalorder %s1544_s25, %s1540_s24 }
  0x62   : > { %p222_p13 = scmp.eq.s32.totalorder %s1831_s30, 3  ;;  %p228_p2 = scmp.eq.s32.totalorder %s951_s17, 3 }
  0x63   : > { %p1842_p3 = por %p2152_p8, %p57_p0  ;;  %p1848_p4 = por %p146_p11, %p2152_p8 }
  0x64   : > { %p2189_p12 = scmp.ne.s32.totalorder %s1560_s29, %s1556_s28  ;;  %p1859_p10 = por %p228_p2, %p57_p0 }
  0x65   : > { %s2187_s8 = scalar_select %p1842_p3, 1, 0 }
  0x66   : > { %s2188_s19 = scalar_select %p1848_p4, 1, 0 }
  0x67   : > { %p1855_p1 = por %p222_p13, %p2189_p12  ;;  %p952_p5 = scmp.ge.s32.totalorder %s1580_s11, 1 }
  0x68   : > { %s2191_s24 = scalar_select %p1859_p10, 1, 0 }
  0x69   : > { %s2190_s13 = scalar_select %p1855_p1, 1, 0 }
  0x6a   : > { %2192 = sst [smem:[#allocation32_spill]] %s2191_s24  ;;  %p235_p6 = scmp.lt.s32.totalorder %s1580_s11, 5 }
  0x6b   : > { %s1588_s12 = smov [#allocation7]   ;;  %s962_s16 = sshll.u32 %s1572_s9, 4 }
  0x6c   : > { %p1865_p9 = pnand %p952_p5, %p235_p6  ;;  %s248_s17 = sshll.u32 %s1588_s12, 4  ;;  %s1869_s17 = int_to_ptr.vmem [resolvable:$true] %s248_s17 }
  0x6d   : > { %s2194_s5 = sld [smem:[#allocation35_spill]]  ;;  %s2195_s10 = sand.u32 1, %s1548_s26  }
  0x6e   : > { %s2193_s7 = scalar_select %p1865_p9, 1, 0 }
  0x6f   : > { %p1084_p11 = pneg %p1865_p9  ;;  %s325_s22 = scalar_lea.vmem [#allocation13], %s2195_s10 }
  0x70   : > { %s332_s29 = sshll.u32 %s325_s22, 4  ;;  %s333_s29 = int_to_ptr.vmem [resolvable:$true] %s332_s29 }
  0x71   : > { %p1883_p0 = pnand %p1084_p11, %p2152_p8 }
  0x73   : > { %s1877_s4 = scalar_lea.hbm %s2194_s5, %s962_s16  ;;  %s1307_s20 = scalar_lea.hbm %s2194_s5, 32 }
  0x74   : > { %s2196_s12 = scalar_select %p1883_p0, 1, 0 }
  0x75   : > { %s1302_s18 = scalar_lea.hbm %s1877_s4, 16  ;;  %p1308_p5 = scmp.lt.u32.totalorder %s1877_s4, %s2194_s5 }
  0x76   : > { %p1303_p13 = scmp.ne.s32.totalorder %s1877_s4, %s1302_s18  ;;  %p1309_p6 = scmp.lt.u32.totalorder %s1307_s20, %s1302_s18 }
  0x77   : > { %p1311_p11 = scmp.lt.u32.totalorder %s1302_s18, %s1877_s4 }
  0x78   : > { %p1305_p2 = pnand %p1303_p13, %p1803_p7  ;;  %p1310_p10 = por %p1309_p6, %p1308_p5 }
  0x7a   : > { %p1306_p12 = pneg %p1305_p2  ;;  %p1312_p8 = por %p1311_p11, %p1310_p10 }
  0x7c   : > { %p1313_p1 = pnand %p1312_p8, %p1306_p12 }
  0x7e   : > { %1316 = shalt.err (!%p1313_p1)
}
  0x7f   : > { %s1317_s10 = scalar_lea.vmem %s333_s29, 16  ;;  %s1589_s22 = smov [#allocation13]  }
  0x80   : > { %p1318_p4 = scmp.ne.s32.totalorder %s333_s29, %s1317_s10  ;;  %s1322_s27 = sshll.u32 %s1589_s22, 4  ;;  %s1323_s27 = int_to_ptr.vmem [resolvable:$false] %s1322_s27 }
  0x81   : > { %s1324_s0 = scalar_lea.vmem %s1323_s27, 32  ;;  %p1325_p3 = scmp.lt.s32.totalorder %s333_s29, %s1323_s27 }
  0x82   : > { %p1320_p13 = pnand %p1318_p4, %p1803_p7  ;;  %p1326_p9 = scmp.lt.s32.totalorder %s1324_s0, %s1317_s10 }
  0x84   : > { %p1321_p2 = pneg %p1320_p13  ;;  %p1327_p0 = por %p1326_p9, %p1325_p3 }
  0x86   : > { %p1328_p5 = pnand %p1327_p0, %p1321_p2 }
  0x88   : > { %1331 = shalt.err (!%p1328_p5)
}
  0x89   : > { %p2197_p6 = scmp.ne.s32.totalorder %s2183_s23, 0  ;;  %s1332_s24 = scalar_lea.hbm %s2130_s1, 16 }
  0x8a   : > { %p1333_p8 = scmp.ne.s32.totalorder %s2130_s1, %s1332_s24  ;;  %p2198_p4 = scmp.ne.s32.totalorder %s2196_s12, 0 }
  0x8b   : > { %1103 = dma.hbm_to_vmem [thread:$0]  (!%p2197_p6), %s1877_s4, 16, %s333_s29, %s1747_s14  }
  0x8c   : > { %p1913_p1 = pneg %p2198_p4  ;;  %p1339_p10 = scmp.lt.u32.totalorder %s1332_s24, %s2130_s1 }
  0x8e   : > { %p1335_p9 = pnand %p1913_p1, %p1333_p8 }
  0x90   : > { %p1336_p3 = pneg %p1335_p9 }
  0x92   : > { %p1341_p0 = pnand %p1339_p10, %p1336_p3 }
  0x94   : > { %1344 = shalt.err (!%p1341_p0)
}
  0x95   : > { %s1345_s4 = scalar_lea.vmem %s1869_s17, 16  ;;  %s1352_s29 = scalar_lea.vmem %s1869_s17, 32 }
  0x96   : > { %p1346_p12 = scmp.ne.s32.totalorder %s1869_s17, %s1345_s4  ;;  %p1353_p2 = scmp.lt.s32.totalorder %s1869_s17, %s1869_s17 }
  0x97   : > { %p1354_p5 = scmp.lt.s32.totalorder %s1352_s29, %s1345_s4 }
  0x98   : > { %p1348_p11 = pnand %p1346_p12, %p1913_p1 }
  0x99   : > { %p1355_p8 = por %p1354_p5, %p1353_p2 }
  0x9a   : > { %p1349_p13 = pneg %p1348_p11 }
  0x9c   : > { %p1356_p9 = pnand %p1355_p8, %p1349_p13 }
  0x9e   : > { %1359 = shalt.err (!%p1356_p9)
}
  0x9f   : > { %1087 = dma.hbm_to_vmem [thread:$0]  (!%p2198_p4), %s2130_s1, 16, %s1869_s17, [#allocation8]  }
  0xa0   : > { %s1590_s18 = smov [#allocation9]   ;;  %s1591_s16 = smov [#allocation10]  }
  0xa1   : > { %s259_s24 = sshll.u32 %s1590_s18, 4  ;;  %s270_s20 = sshll.u32 %s1591_s16, 4  ;;  %s260_s24 = int_to_ptr.vmem [resolvable:$true] %s259_s24  ;;  %s271_s20 = int_to_ptr.vmem [resolvable:$true] %s270_s20 }
  0xa2   : > { %s1360_s4 = scalar_lea.hbm %s2131_s2, 16 }
  0xa3   : > { %p1361_p3 = scmp.ne.s32.totalorder %s2131_s2, %s1360_s4  ;;  %p1367_p12 = scmp.lt.u32.totalorder %s1360_s4, %s2131_s2 }
  0xa5   : > { %p1363_p10 = pnand %p1361_p3, %p1913_p1 }
  0xa7   : > { %p1364_p0 = pneg %p1363_p10 }
  0xa9   : > { %p1369_p11 = pnand %p1367_p12, %p1364_p0 }
  0xab   : > { %1372 = shalt.err (!%p1369_p11)
}
  0xac   : > { %s1373_s17 = scalar_lea.vmem %s260_s24, 16  ;;  %s1380_s26 = scalar_lea.vmem %s260_s24, 32 }
  0xad   : > { %p1374_p13 = scmp.ne.s32.totalorder %s260_s24, %s1373_s17  ;;  %p1381_p8 = scmp.lt.s32.totalorder %s260_s24, %s260_s24 }
  0xae   : > { %p1382_p9 = scmp.lt.s32.totalorder %s1380_s26, %s1373_s17 }
  0xaf   : > { %p1376_p2 = pnand %p1374_p13, %p1913_p1 }
  0xb0   : > { %p1383_p6 = por %p1382_p9, %p1381_p8 }
  0xb1   : > { %p1377_p5 = pneg %p1376_p2 }
  0xb3   : > { %p1384_p7 = pnand %p1383_p6, %p1377_p5 }
  0xb5   : > { %1387 = shalt.err (!%p1384_p7)
}
  0xb6   : > { %1090 = dma.hbm_to_vmem [thread:$0]  (!%p2198_p4), %s2131_s2, 16, %s260_s24, [#allocation8]  }
  0xb7   : > { %s1388_s10 = scalar_lea.hbm %s2132_s3, 16 }
  0xb8   : > { %p1389_p3 = scmp.ne.s32.totalorder %s2132_s3, %s1388_s10  ;;  %p1395_p7 = scmp.lt.u32.totalorder %s1388_s10, %s2132_s3 }
  0xba   : > { %p1391_p10 = pnand %p1389_p3, %p1913_p1 }
  0xbc   : > { %p1392_p6 = pneg %p1391_p10 }
  0xbe   : > { %p1397_p0 = pnand %p1395_p7, %p1392_p6 }
  0xc0   : > { %1400 = shalt.err (!%p1397_p0)
}
  0xc1   : > { %s1401_s17 = scalar_lea.vmem %s271_s20, 16  ;;  %s1408_s24 = scalar_lea.vmem %s271_s20, 32 }
  0xc2   : > { %p1402_p12 = scmp.ne.s32.totalorder %s271_s20, %s1401_s17  ;;  %p1409_p2 = scmp.lt.s32.totalorder %s271_s20, %s271_s20 }
  0xc3   : > { %p1410_p5 = scmp.lt.s32.totalorder %s1408_s24, %s1401_s17 }
  0xc4   : > { %p1404_p11 = pnand %p1402_p12, %p1913_p1 }
  0xc5   : > { %p1411_p8 = por %p1410_p5, %p1409_p2 }
  0xc6   : > { %p1405_p13 = pneg %p1404_p11 }
  0xc8   : > { %p1412_p9 = pnand %p1411_p8, %p1405_p13 }
  0xca   : > { %1415 = shalt.err (!%p1412_p9)
}
  0xcb   : > { %1093 = dma.hbm_to_vmem [thread:$0]  (!%p2198_p4), %s2132_s3, 16, %s271_s20, [#allocation11]  }
  0xcc   : > { %s1002_s18 = sshll.u32 %s1572_s9, 10  ;;  %s343_s11 = scalar_lea.vmem [#allocation14], %s1788_s21 }
  0xcd   : > { %s350_s27 = sshll.u32 %s343_s11, 4  ;;  %s1976_s22 = scalar_lea.hbm %s2135_s6, %s1002_s18  ;;  %s1978_s27 = int_to_ptr.vmem [resolvable:$true] %s350_s27 }
  0xce   : > { %s1416_s12 = scalar_lea.hbm %s1976_s22, 1024  ;;  %p2200_p3 = scmp.ne.s32.totalorder %s2185_s15, 0 }
  0xcf   : > { %p1417_p1 = scmp.ne.s32.totalorder %s1976_s22, %s1416_s12  ;;  %s1421_s21 = scalar_lea.hbm %s2135_s6, 2048 }
  0xd0   : > { %p1422_p4 = scmp.lt.u32.totalorder %s1976_s22, %s2135_s6  ;;  %p1423_p7 = scmp.lt.u32.totalorder %s1421_s21, %s1416_s12 }
  0xd1   : > { %p1419_p10 = pnand %p1417_p1, %p2200_p3  ;;  %p1425_p12 = scmp.lt.u32.totalorder %s1416_s12, %s1976_s22 }
  0xd2   : > { %p1424_p0 = por %p1423_p7, %p1422_p4 }
  0xd3   : > { %p1420_p6 = pneg %p1419_p10 }
  0xd4   : > { %p1426_p11 = por %p1425_p12, %p1424_p0 }
  0xd6   : > { %p1427_p13 = pnand %p1426_p11, %p1420_p6 }
  0xd8   : > { %1430 = shalt.err (!%p1427_p13)
}
  0xd9   : > { %s1431_s17 = scalar_lea.vmem %s1978_s27, 1024  ;;  %s1592_s24 = smov [#allocation14]  }
  0xda   : > { %p1432_p2 = scmp.ne.s32.totalorder %s1978_s27, %s1431_s17  ;;  %s1436_s26 = sshll.u32 %s1592_s24, 4  ;;  %s1437_s26 = int_to_ptr.vmem [resolvable:$false] %s1436_s26 }
  0xdb   : > { %s1438_s5 = scalar_lea.vmem %s1437_s26, 2048  ;;  %p1439_p9 = scmp.lt.s32.totalorder %s1978_s27, %s1437_s26 }
  0xdc   : > { %p1434_p5 = pnand %p1432_p2, %p2200_p3  ;;  %p1440_p1 = scmp.lt.s32.totalorder %s1438_s5, %s1431_s17 }
  0xde   : > { %p1435_p8 = pneg %p1434_p5  ;;  %p1441_p10 = por %p1440_p1, %p1439_p9 }
  0xe0   : > { %p1442_p4 = pnand %p1441_p10, %p1435_p8 }
  0xe2   : > { %1445 = shalt.err (!%p1442_p4)
}
  0xe3   : > { %p2201_p6 = scmp.ne.s32.totalorder %s2183_s23, 0  ;;  %s2202_s18 = smov 4  }
  0xe4   : > { %s2203_s11 = smov 64   ;;  %p2204_p3 = scmp.ne.s32.totalorder %s2193_s7, 0 }
  0xe5   : > { %1106 = dma.hbm_to_vmem [thread:$0]  (!%p2201_p6), %s1976_s22, 1024, %s1978_s27, %s1747_s14, %s2203_s11, %s2203_s11, %s2202_s18  }
  0xe6   : > { %362 = sbr.rel (%p2204_p3) target bundleno = 1106 (0x452), region = 48  ;;  %s364_s15 = sand.u32 (!%p2204_p3), 1, %s1831_s30  }
  0xe7   : > { %s366_s16 = sand.u32 (!%p2204_p3), 1, %s1556_s28   ;;  %s365_s12 = scalar_lea.sflag (!%p2204_p3), [#allocation5], %s364_s15 }
  0xe8   : > { %s967_s10 = sshll.u32 (!%p2204_p3), %s366_s16, 4  ;;  %p2205_p7 = scmp.ne.s32.totalorder (!%p2204_p3), %s2187_s8, 0 }
  0xe9   : > { %s368_s23 = scalar_lea.vmem (!%p2204_p3), [#allocation4], %s967_s10 }
  0xed   : > { %1519 = dma.done.wait (%p2205_p7), %s365_s12, 256  }
  0xee   : > { %1521 = vsyncadd (%p2205_p7), %s365_s12, 4294967040  ;;  %p2206_p0 = scmp.eq.s32.totalorder %s1831_s30, 0 }
  0xf0   : > { %1523 = dma.done.wait (%p2206_p0), [#allocation8], 32   ;;  %p2207_p12 = pmov %p2206_p0 }
  0xf1   : > { %p2208_p11 = pmov %p2206_p0 }
  0xf2   : > { %1525 = vsyncadd (%p2207_p12), [#allocation8], 4294967264 }
  0xf3   : > { %1527 = dma.done.wait (%p2208_p11), [#allocation11], 16   ;;  %p2209_p13 = pmov %p2206_p0 }
  0xf4   : > { %s387_s14 = sand.u32 1, %s1544_s25   ;;  %p2210_p2 = scmp.ne.s32.totalorder %s2188_s19, 0 }
  0xf5   : > { %1529 = vsyncadd (%p2209_p13), [#allocation11], 4294967280  ;;  %s971_s7 = sshll.u32 %s387_s14, 6 }
  0xf6   : > { %s2024_s27 = scalar_lea.vmem [#allocation12], %s971_s7 }
  0xf7   : > { %1531 = dma.done.wait (%p2210_p2), %s365_s12, 2064  }
  0xf8   : > { %1533 = vsyncadd (%p2210_p2), %s365_s12, 4294965232  ;;  %s2030_s8 = scalar_lea.vmem [#allocation13], %s387_s14  ;;  %s2032_s22 = scalar_lea.vmem [#allocation14], %s971_s7 }
  0xf9   : > { %s2034_s20 = scalar_lea.vmem [#allocation15], %s967_s10  ;;  %s2211_s4 = sld [smem:[#allocation24_spill]] }
  0xff   : > { %p974_p5 = scmp.ne.s32.totalorder %s2211_s4, 0 }
 0x100   : > { %v459_v0 = vld [vmem:[%s368_s23] sm:$0xff] (!%p974_p5)  ;;  %v460_v2 = vld [vmem:[%s368_s23 + $0x8] sm:$0xff] (!%p974_p5) }
 0x101   : > { %458 = sbr.rel (%p974_p5) target bundleno = 575 (0x23f), region = 80  ;;  %v977_v1 = vld [vmem:[#allocation10] ss:$0 sm:$0xff] (!%p974_p5)  ;;  %463 = vadd.xlane.f32.xlu0 (!%p974_p5), %v459_v0  ;;  %v975_v21 = vld [vmem:[#allocation7] ss:$0 sm:$0xff] (!%p974_p5) }
 0x102   : > { %v511_v3 = vadd.f32 (!%p974_p5), %v977_v1, %v459_v0  ;;  %v512_v4 = vadd.f32 (!%p974_p5), %v977_v1, %v460_v2  ;;  %v976_v25 = vld [vmem:[#allocation9] ss:$0 sm:$0xff] (!%p974_p5) }
 0x104   : > { %513 = vst [vmem:[#allocation3] sm:$0xff] (!%p974_p5), %v511_v3  ;;  %514 = vst [vmem:[#allocation3 + $0x8] sm:$0xff] (!%p974_p5), %v512_v4 }
 0x105   : > { %465 = vadd.xlane.f32.xlu0 (!%p974_p5), %v460_v2 }
 0x18e   : > { %v464_v5 = vpop.xlane.xlu0 %463 }
 0x18f   : > { %v468_v6 = vmul.f32 0.0078125, %v464_v5 }
 0x191   : > { %v470_v7 = vsub.f32 %v459_v0, %v468_v6 }
 0x192   : > { %v466_v8 = vpop.xlane.xlu0 %465 }
 0x193   : > { %v469_v9 = vmul.f32 0.0078125, %v466_v8  ;;  %v472_v10 = vmul.f32 %v470_v7, %v470_v7 }
 0x195   : > { %v471_v11 = vsub.f32 %v460_v2, %v469_v9  ;;  %474 = vadd.xlane.f32.xlu1 %v472_v10 }
 0x197   : > { %v473_v12 = vmul.f32 %v471_v11, %v471_v11 }
 0x199   : > { %476 = vadd.xlane.f32.xlu1 %v473_v12 }
 0x222   : > { %v475_v13 = vpop.xlane.xlu1 %474 }
 0x223   : > { %v478_v14 = vmul.f32 0.0078125, %v475_v13 }
 0x225   : > { %v480_v15 = vadd.f32 1e-05, %v478_v14 }
 0x226   : > { %v477_v16 = vpop.xlane.xlu1 %476 }
 0x227   : > { %1218 = vrsqrt.f32 %v480_v15  ;;  %v479_v17 = vmul.f32 0.0078125, %v477_v16 }
 0x229   : > { %v481_v18 = vadd.f32 1e-05, %v479_v17 }
 0x22b   : > { %1220 = vrsqrt.f32 %v481_v18 }
 0x231   : > { %v1219_v19 = vpop.eup %1218 }
 0x232   : > { %v484_v20 = vmul.f32 %v1219_v19, %v470_v7 }
 0x234   : > { %v492_v23 = vmul.f32 %v975_v21, %v484_v20 }
 0x235   : > { %v1221_v22 = vpop.eup %1220 }
 0x236   : > { %v485_v24 = vmul.f32 %v1221_v22, %v471_v11  ;;  %v500_v27 = vadd.f32 %v976_v25, %v492_v23 }
 0x238   : > { %v493_v26 = vmul.f32 %v975_v21, %v485_v24 }
 0x23a   : > { %v501_v28 = vadd.f32 %v976_v25, %v493_v26 }
 0x23c   : > { %v502_v29 = vpack.c.bf16 %v501_v28, %v500_v27 }
 0x23e   : > { %503 = vst [vmem:[#allocation2] sm:$0xff] %v502_v29 }
 0x23f PF: > { %v1222_v30 = vld [vmem:[%s2024_s27] sm:$0xff]   ;;  %v1593_v31 = vmov 0.0   ;;  %v1223_v32 = vld [vmem:[%s2024_s27 + $0x8] sm:$0xff]   ;;  %vm1594_vm0 = vmmov 0   ;;  %v1224_v33 = vld [vmem:[%s2024_s27 + $0x10] sm:$0xff]   ;;  %s2212_s30 = sld [smem:[#allocation24_spill]] }
 0x240   : > { %1022 = vmatprep.subr.bf16.mxu0 %v1593_v31  ;;  %1042 = vmatprep.subr.bf16.mxu1 %v1593_v31  ;;  %v1225_v34 = vld [vmem:[%s2024_s27 + $0x18] sm:$0xff]   ;;  %v1226_v35 = vld [vmem:[%s2024_s27 + $0x20] sm:$0xff]   ;;  %v1227_v36 = vld [vmem:[%s2024_s27 + $0x28] sm:$0xff]  }
 0x241   : > { %1023 = vmatpush3.bf16.msra.mxu0 %v1222_v30  ;;  %1038 = vmatprep.mubr.msk.bf16.mxu0 %vm1594_vm0, %v1593_v31  ;;  %v1228_v37 = vld [vmem:[%s2024_s27 + $0x30] sm:$0xff]   ;;  %v1229_v38 = vld [vmem:[%s2024_s27 + $0x38] sm:$0xff]   ;;  %v1230_v40 = vld [vmem:[%s2032_s22] sm:$0xff]  }
 0x242   : > { %1024 = vmatprep.subr.bf16.mxu0 %v1593_v31  ;;  %1058 = vmatprep.mubr.msk.bf16.mxu1 %vm1594_vm0, %v1593_v31  ;;  %v1231_v41 = vld [vmem:[%s2032_s22 + $0x8] sm:$0xff]   ;;  %v1232_v42 = vld [vmem:[%s2032_s22 + $0x10] sm:$0xff]   ;;  %v1233_v43 = vld [vmem:[%s2032_s22 + $0x18] sm:$0xff]  }
 0x243   : > { %1043 = vmatpush3.bf16.msra.mxu1 %v1230_v40  ;;  %v1234_v44 = vld [vmem:[%s2032_s22 + $0x20] sm:$0xff]   ;;  %v1235_v45 = vld [vmem:[%s2032_s22 + $0x28] sm:$0xff]   ;;  %v1236_v46 = vld [vmem:[%s2032_s22 + $0x30] sm:$0xff]  }
 0x244   : > { %1044 = vmatprep.subr.bf16.mxu1 %v1593_v31  ;;  %v1237_v47 = vld [vmem:[%s2032_s22 + $0x38] sm:$0xff]   ;;  %v978_v48 = vld [vmem:[%s2030_s8] ss:$0 sm:$0xff]  ;;  %v646_v10 = vld [vmem:[#allocation3] sm:$0xff] }
 0x245   : > { %1025 = vmatpush3.bf16.msra.mxu0 %v1223_v32  ;;  %v515_v39 = vld [vmem:[#allocation2] sm:$0xff]  ;;  %v647_v12 = vld [vmem:[#allocation3 + $0x8] sm:$0xff]  ;;  %p995_p8 = scmp.ne.s32.totalorder %s2212_s30, 1 }
 0x246   : > { %1026 = vmatprep.subr.bf16.mxu0 %v1593_v31 }
 0x247   : > { %1045 = vmatpush3.bf16.msra.mxu1 %v1231_v41 }
 0x248   : > { %1046 = vmatprep.subr.bf16.mxu1 %v1593_v31 }
 0x249   : > { %1027 = vmatpush3.bf16.msra.mxu0 %v1224_v33 }
 0x24a   : > { %1028 = vmatprep.subr.bf16.mxu0 %v1593_v31 }
 0x24b   : > { %1047 = vmatpush3.bf16.msra.mxu1 %v1232_v42 }
 0x24c   : > { %1048 = vmatprep.subr.bf16.mxu1 %v1593_v31 }
 0x24d   : > { %1029 = vmatpush3.bf16.msra.mxu0 %v1225_v34 }
 0x24e   : > { %1030 = vmatprep.subr.bf16.mxu0 %v1593_v31 }
 0x24f   : > { %1049 = vmatpush3.bf16.msra.mxu1 %v1233_v43 }
 0x250   : > { %1050 = vmatprep.subr.bf16.mxu1 %v1593_v31 }
 0x251   : > { %1031 = vmatpush3.bf16.msra.mxu0 %v1226_v35 }
 0x252   : > { %1032 = vmatprep.subr.bf16.mxu0 %v1593_v31 }
 0x253   : > { %1051 = vmatpush3.bf16.msra.mxu1 %v1234_v44 }
 0x254   : > { %1052 = vmatprep.subr.bf16.mxu1 %v1593_v31 }
 0x255   : > { %1033 = vmatpush3.bf16.msra.mxu0 %v1227_v36 }
 0x256   : > { %1034 = vmatprep.subr.bf16.mxu0 %v1593_v31 }
 0x257   : > { %1053 = vmatpush3.bf16.msra.mxu1 %v1235_v45 }
 0x258   : > { %1054 = vmatprep.subr.bf16.mxu1 %v1593_v31 }
 0x259   : > { %1035 = vmatpush3.bf16.msra.mxu0 %v1228_v37 }
 0x25a   : > { %1036 = vmatprep.subr.bf16.mxu0 %v1593_v31 }
 0x25b   : > { %1055 = vmatpush3.bf16.msra.mxu1 %v1236_v46 }
 0x25c   : > { %1056 = vmatprep.subr.bf16.mxu1 %v1593_v31 }
 0x25d   : > { %1037 = vmatpush3.bf16.msra.mxu0 %v1229_v38 }
 0x25f   : > { %1057 = vmatpush3.bf16.msra.mxu1 %v1237_v47 }
 0x260   : > { %1039 = vmatmul.mubr.bf16.vlgmr.msra.gmra.mrb[0].mxu0 %v515_v39 }
 0x333   : > { %v621_v49 = vpop.f32.mrb[0].mxu0 }
 0x334   : > { %v622_v50 = vadd.f32 %v978_v48, %v621_v49  ;;  %v1040_v51 = vpop.f32.mrb[1].mxu0 }
 0x335   : > { %v624_v52 = vpop.f32.mrb[2].mxu0 }
 0x336   : > { %v628_v53 = vmul.f32 %v622_v50, %v622_v50  ;;  %v625_v54 = vadd.f32 %v978_v48, %v624_v52  ;;  %v1041_v55 = vpop.f32.mrb[3].mxu0 }
 0x338   : > { %v630_v56 = vmul.f32 %v628_v53, %v622_v50  ;;  %v629_v57 = vmul.f32 %v625_v54, %v625_v54 }
 0x33a   : > { %v632_v58 = vmul.f32 0.044715, %v630_v56  ;;  %v631_v59 = vmul.f32 %v629_v57, %v625_v54 }
 0x33c   : > { %v634_v60 = vadd.f32 %v632_v58, %v622_v50  ;;  %v633_v61 = vmul.f32 0.044715, %v631_v59 }
 0x33e   : > { %v636_v62 = vmul.f32 0.7978846, %v634_v60  ;;  %v635_v63 = vadd.f32 %v633_v61, %v625_v54 }
 0x340   : > { %1238 = vtanh.f32 %v636_v62  ;;  %v637_v0 = vmul.f32 0.7978846, %v635_v63 }
 0x342   : > { %1240 = vtanh.f32 %v637_v0 }
 0x34a   : > { %v1239_v1 = vpop.eup %1238 }
 0x34b   : > { %v640_v2 = vadd.f32 1.0, %v1239_v1 }
 0x34c   : > { %v1241_v3 = vpop.eup %1240 }
 0x34d   : > { %v641_v4 = vadd.f32 1.0, %v1241_v3  ;;  %v642_v5 = vmul.f32 0.5, %v640_v2 }
 0x34f   : > { %v643_v6 = vmul.f32 0.5, %v641_v4  ;;  %v644_v7 = vmul.f32 %v642_v5, %v622_v50 }
 0x351   : > { %v645_v8 = vmul.f32 %v643_v6, %v625_v54 }
 0x353   : > { %v648_v9 = vpack.c.bf16 %v645_v8, %v644_v7 }
 0x355   : > { %1059 = vmatmul.mubr.bf16.vlgmr.msra.gmra.mrb[0].mxu1 %v648_v9 }
 0x427   : > { %761 = sbr.rel (%p995_p8) target bundleno = 1078 (0x436), region = 84 }
 0x428   : > { %v747_v11 = vpop.f32.mrb[0].mxu1 }
 0x429   : > { %v754_v13 = vadd.f32 %v747_v11, %v646_v10  ;;  %v1060_v14 = vpop.f32.mrb[1].mxu1 }
 0x42a   : > { %v750_v15 = vpop.f32.mrb[2].mxu1 }
 0x42b   : > { %756 = vst [vmem:[#allocation3] sm:$0xff] %v754_v13  ;;  %v755_v16 = vadd.f32 %v750_v15, %v647_v12  ;;  %v1061_v17 = vpop.f32.mrb[3].mxu1 }
 0x42d   : > { %757 = vst [vmem:[#allocation3 + $0x8] sm:$0xff] %v755_v16 }
 0x432   : > { %v762_v18 = vld [vmem:[#allocation3] sm:$0xff] }
 0x433   : > { %764 = vst [vmem:[%s2034_s20] sm:$0xff] %v762_v18 }
 0x434   : > { %v763_v19 = vld [vmem:[#allocation3 + $0x8] sm:$0xff] }
 0x435   : > { %765 = vst [vmem:[%s2034_s20 + $0x8] sm:$0xff] %v763_v19 }
 0x436 PF: > { %s2213_s19 = sld [smem:[#allocation25_spill]]  ;;  %s2214_s17 = sld [smem:[#allocation36_spill]] }
 0x437   : > { %s780_s26 = sshll.u32 %s2034_s20, 4  ;;  %s2068_s5 = scalar_lea.sflag [#allocation6], %s366_s16  ;;  %s2064_s26 = int_to_ptr.vmem [resolvable:$true] %s780_s26 }
 0x438   : > { %s1446_s18 = scalar_lea.vmem %s2064_s26, 256  ;;  %p2215_p1 = scmp.ne.s32.totalorder %s2190_s13, 0 }
 0x439   : > { %p1447_p9 = scmp.ne.s32.totalorder %s2064_s26, %s1446_s18  ;;  %s1595_s11 = smov [#allocation15]  }
 0x43a   : > { %s1450_s15 = sshll.u32 %s1595_s11, 4  ;;  %s1451_s15 = int_to_ptr.vmem [resolvable:$false] %s1450_s15 }
 0x43b   : > { %p1448_p10 = pnand %p1447_p9, %p2215_p1  ;;  %s1452_s10 = scalar_lea.vmem %s1451_s15, 512 }
 0x43c   : > { %s1003_s21 = sshll.u32 %s2213_s19, 8  ;;  %p1453_p6 = scmp.lt.s32.totalorder %s2064_s26, %s1451_s15 }
 0x43d   : > { %s2061_s24 = scalar_lea.hbm %s2214_s17, %s1003_s21  ;;  %p1449_p4 = pneg %p1448_p10 }
 0x43e   : > { %p1454_p3 = scmp.lt.s32.totalorder %s1452_s10, %s1446_s18 }
 0x440   : > { %p1455_p7 = por %p1454_p3, %p1453_p6 }
 0x442   : > { %p1456_p0 = pnand %p1455_p7, %p1449_p4 }
 0x444   : > { %1459 = shalt.err (!%p1456_p0)
}
 0x445   : > { %s1460_s16 = scalar_lea.hbm %s2061_s24, 256  ;;  %s1464_s14 = scalar_lea.hbm %s2214_s17, 512 }
 0x446   : > { %p1461_p12 = scmp.ne.s32.totalorder %s2061_s24, %s1460_s16  ;;  %p1465_p2 = scmp.lt.u32.totalorder %s2061_s24, %s2214_s17 }
 0x447   : > { %p1466_p5 = scmp.lt.u32.totalorder %s1464_s14, %s1460_s16  ;;  %p1468_p9 = scmp.lt.u32.totalorder %s1460_s16, %s2061_s24 }
 0x448   : > { %p1462_p11 = pnand %p1461_p12, %p2215_p1 }
 0x449   : > { %p1467_p8 = por %p1466_p5, %p1465_p2 }
 0x44a   : > { %p1463_p13 = pneg %p1462_p11 }
 0x44b   : > { %p1469_p10 = por %p1468_p9, %p1467_p8 }
 0x44d   : > { %p1470_p4 = pnand %p1469_p10, %p1463_p13 }
 0x44f   : > { %1473 = shalt.err (!%p1470_p4)
}
 0x450   : > { %s1596_s8 = smov 128   ;;  %s1597_s22 = smov 8  }
 0x451   : > { %1082 = dma.vmem_to_hbm [thread:$0]  (%p2215_p1), %s2064_s26, 256, %s2061_s24, %s2068_s5, %s1596_s8, %s1596_s8, %s1597_s22  }
 0x452 PF: > { %s2216_s20 = sld [smem:[#allocation27_spill]]  ;;  %s2217_s4 = sld [smem:[#allocation22_spill]] }
 0x453   : > { %s2218_s30 = sld [smem:[#allocation32_spill]] }
 0x458   : > { %p1118_p6 = scmp.ge.s32.totalorder %s2216_s20, 2  ;;  %s795_s19 = sand.u32 1, %s2217_s4  }
 0x459   : > { %p2219_p3 = scmp.ne.s32.totalorder %s2218_s30, 0  ;;  %s796_s21 = scalar_lea.sflag [#allocation6], %s795_s19 }
 0x45b   : > { %p1108_p7 = pnand %p1118_p6, %p2219_p3 }
 0x45d   : > { %1535 = dma.done.wait (!%p1108_p7), %s796_s21, 256  }
 0x45e   : > { %1537 = vsyncadd (!%p1108_p7), %s796_s21, 4294967040  ;;  %s25_s11 = sadd.s32 1, %s2216_s20   ;;  %s2220_s29 = sld [smem:[#allocation21_spill]] }
 0x45f   : > { %p22_p0 = scmp.ge.s32.totalorder %s25_s11, 6   ;;  %s2221_s26 = sld [smem:[#allocation30_spill]] }
 0x460   : > { %s2222_s13 = sld [smem:[#allocation23_spill]]  ;;  %s2223_s0 = sld [smem:[#allocation31_spill]] }
 0x461   : > { %s2224_s8 = sld [smem:[#allocation26_spill]]  ;;  %s2225_s5 = sld [smem:[#allocation28_spill]] }
 0x462   : > { %s2226_s10 = sld [smem:[#allocation29_spill]]  ;;  %s2227_s24 = smov %s1544_s25 }
 0x463   : > { %s2229_s27 = smov %s1556_s28  ;;  %s2232_s30 = smov %s1572_s9 }
 0x464   : > { %s2228_s25 = smov %s2220_s29  ;;  %24 = sbr.rel (!%p22_p0) target bundleno = 16 (0x10), region = 146 }
 0x466   : > { %s2230_s28 = smov %s2222_s13  ;;  %s2231_s29 = smov %s2223_s0 }
 0x467   : > { %s2233_s9 = smov %s2225_s5 }
 0x46b   :  { %801 = vsyncpa [#allocation5], 1 }
 0x46c   :  { %803 = vsyncpa [#allocation5 + $0x1], 1 }
 0x46d   :  { %804 = vsyncpa [#allocation8], 1 }
 0x46e   :  { %805 = vsyncpa [#allocation11], 1 }
 0x46f   :  { %806 = vsyncpa [#allocation6], 1 }
 0x470   :  { %808 = vsyncpa [#allocation6 + $0x1], 1 }

// kernel: _lambda_.21
= control target key start
LH: loop header
LB: loop body
LE: loop exit
PB: predicated region body
PF: predicated region fallthrough
CT: control target
= control target key end

     0   :  { %s1564_s0 = inlined_call_operand.hbm [shape: f32[32,128], index: 0, kind: input, shape index: {}]   ;;  %s1565_s1 = inlined_call_operand.hbm [shape: f32[1,128], index: 1, kind: input, shape index: {}]   ;;  %s1566_s2 = inlined_call_operand.hbm [shape: f32[1,128], index: 2, kind: input, shape index: {}]   ;;  %s1567_s3 = inlined_call_operand.hbm [shape: bf16[128,512], index: 3, kind: input, shape index: {}]   ;;  %s1568_s4 = inlined_call_operand.hbm [shape: f32[1,512], index: 4, kind: input, shape index: {}]   ;;  %s1569_s5 = inlined_call_operand.hbm [shape: f32[32,512], index: 5, kind: output, shape index: {}]  }
   0x1   :  { %1587 = sst [smem:[#allocation23_spill]] %s1565_s1 }
   0x2   :  { %1588 = sst [smem:[#allocation24_spill]] %s1567_s3 }
   0x3   :  { %10 = vsyncpa [#allocation4], 0 }
   0x4   :  { %11 = vsyncpa [#allocation7], 0 }
   0x5   :  { %12 = vsyncpa [#allocation10], 0 }
   0x6   :  { %14 = vsyncpa [#allocation10 + $0x1], 0 }
   0x7   :  { %15 = vsyncpa [#allocation5], 0 }
   0x8   :  { %17 = vsyncpa [#allocation5 + $0x1], 0  ;;  %s1229_s18 = smov 0   ;;  %s1231_s19 = smov 0  }
   0x9   :  { %s1233_s20 = smov 0   ;;  %s1235_s21 = smov 0  }
   0xa   :  { %s1237_s22 = smov 0   ;;  %s1239_s23 = smov 0  }
   0xb LB: > { %1589 = sst [smem:[#allocation17_spill]] %s1164_s18  ;;  %s1260_s24 = sadd.s32 4294967295, %s1184_s23   ;;  %s1184_s23 = sphi %s1239_s23, %s23_s23   ;;  %s1180_s22 = sphi %s1237_s22, %s1632_s22   ;;  %s1176_s21 = sphi %s1235_s21, %s1631_s21   ;;  %s1172_s20 = sphi %s1233_s20, %s1630_s20   ;;  %s1168_s19 = sphi %s1231_s19, %s1629_s19   ;;  %s1164_s18 = sphi %s1229_s18, %s1628_s18  }
   0xc   : > { %1590 = sst [smem:[#allocation18_spill]] %s1184_s23  ;;  %s751_s25 = sadd.s32 4294967294, %s1184_s23  }
   0xd   : > { %s110_s26 = sadd.s32 1, %s1172_s20  ;;  %p117_p0 = scmp.ne.s32.totalorder %s1172_s20, %s1168_s19 }
   0xe   : > { %p118_p1 = scmp.eq.s32.totalorder %s1184_s23, 0  ;;  %p123_p2 = scmp.ne.s32.totalorder %s1168_s19, %s1164_s18 }
   0xf   : > { %p1570_p3 = scmp.eq.s32.totalorder %s1260_s24, 0  ;;  %p175_p4 = scmp.eq.s32.totalorder %s1260_s24, 1 }
  0x10   : > { %p1271_p5 = por %p118_p1, %p117_p0  ;;  %p181_p6 = scmp.eq.s32.totalorder %s751_s25, 1 }
  0x11   : > { %p1277_p7 = por %p1570_p3, %p123_p2  ;;  %p1281_p8 = por %p175_p4, %p117_p0 }
  0x12   : > { %p1285_p9 = por %p181_p6, %p123_p2  ;;  %p752_p10 = scmp.ge.s32.totalorder %s1184_s23, 1 }
  0x13   : > { %s1592_s28 = scalar_select %p1277_p7, 1, 0 }
  0x14   : > { %s1593_s29 = scalar_select %p1281_p8, 1, 0 }
  0x15   : > { %s1595_s30 = scalar_select %p1285_p9, 1, 0 }
  0x16   : > { %1594 = sst [smem:[#allocation19_spill]] %s1593_s29  ;;  %p188_p11 = scmp.lt.s32.totalorder %s1184_s23, 3 }
  0x17   : > { %1596 = sst [smem:[#allocation20_spill]] %s1595_s30  ;;  %s1186_s7 = smov [#allocation6]  }
  0x18   : > { %p1292_p13 = pnand %p752_p10, %p188_p11  ;;  %s217_s8 = sshll.u32 %s1186_s7, 4  ;;  %s218_s8 = int_to_ptr.vmem [resolvable:$true] %s217_s8 }
  0x19   : > { %p855_p1 = scmp.lt.s32.totalorder %s1184_s23, 2  ;;  %s32_s11 = sadd.s32 1, %s1180_s22 }
  0x1a   : > { %s1597_s6 = scalar_select %p1292_p13, 1, 0 }
  0x1b   : > { %p831_p0 = pneg %p1292_p13  ;;  %p1301_p4 = pnand %p855_p1, %p1271_p5 }
  0x1c   : > { %p1312_p6 = scmp.ge.s32.totalorder %s32_s11, 2  ;;  %s1601_s1 = sld [smem:[#allocation23_spill]] }
  0x1d   : > { %s1598_s9 = scalar_select %p1301_p4, 1, 0 }
  0x1e   : > { %p1307_p2 = pnand %p831_p0, %p1570_p3 }
  0x1f   : > { %s1600_s12 = scalar_select %p1312_p6, 1, 0 }
  0x20   : > { %s1599_s10 = scalar_select %p1307_p2, 1, 0 }
  0x21   : > { %p1324_p10 = pneg %p1307_p2 }
  0x22   : > { %s950_s15 = scalar_lea.hbm %s1601_s1, 16 }
  0x23   : > { %p951_p5 = scmp.ne.s32.totalorder %s1601_s1, %s950_s15  ;;  %p957_p0 = scmp.lt.u32.totalorder %s950_s15, %s1601_s1 }
  0x25   : > { %p953_p11 = pnand %p1324_p10, %p951_p5 }
  0x27   : > { %p954_p1 = pneg %p953_p11 }
  0x29   : > { %p959_p12 = pnand %p957_p0, %p954_p1 }
  0x2b   : > { %962 = shalt.err (!%p959_p12)
}
  0x2c   : > { %s963_s13 = scalar_lea.vmem %s218_s8, 16  ;;  %s970_s14 = scalar_lea.vmem %s218_s8, 32 }
  0x2d   : > { %p964_p3 = scmp.ne.s32.totalorder %s218_s8, %s963_s13  ;;  %p971_p7 = scmp.lt.s32.totalorder %s218_s8, %s218_s8 }
  0x2e   : > { %p972_p13 = scmp.lt.s32.totalorder %s970_s14, %s963_s13 }
  0x2f   : > { %p966_p9 = pnand %p964_p3, %p1324_p10 }
  0x30   : > { %p973_p4 = por %p972_p13, %p971_p7 }
  0x31   : > { %p967_p8 = pneg %p966_p9 }
  0x33   : > { %p974_p6 = pnand %p973_p4, %p967_p8 }
  0x35   : > { %977 = shalt.err (!%p974_p6)
}
  0x36   : > { %837 = dma.hbm_to_vmem [thread:$0]  (!%p1307_p2), %s1601_s1, 16, %s218_s8, [#allocation7]  }
  0x37   : > { %p1603_p3 = scmp.ne.s32.totalorder %s1600_s12, 0  ;;  %s239_s15 = sand.u32 1, %s1184_s23  }
  0x38   : > { %s1576_s7 = sand.u32 1, %s1172_s20   ;;  %s794_s14 = sshll.u32 %s1180_s22, 7 }
  0x39   : > { %s1634_s11 = smov (%p1603_p3, %s32_s11), 0  ;;  %s757_s13 = sshll.u32 %s1576_s7, 7 }
  0x3a   : > { %1604 = sst [smem:[#allocation21_spill]] %s1634_s11  ;;  %s107_s27 = ssub.s32 %s1180_s22, %s1634_s11 }
  0x3b   : > { %p108_p7 = scmp.eq.s32.totalorder %s107_s27, 0  ;;  %s1606_s3 = sld [smem:[#allocation24_spill]] }
  0x3c   : > { %s243_s12 = scalar_lea.vmem [#allocation9], %s757_s13  ;;  %s1363_s27 = scalar_lea.sflag [#allocation10], %s239_s15 }
  0x3d   : > { %s1354_s16 = scalar_select %p108_p7, %s1172_s20, %s110_s26  }
  0x3e   : > { %s250_s1 = sshll.u32 %s243_s12, 4  ;;  %p1607_p9 = scmp.ne.s32.totalorder %s1598_s9, 0  ;;  %s1361_s1 = int_to_ptr.vmem [resolvable:$true] %s250_s1 }
  0x3f   : > { %1605 = sst [smem:[#allocation22_spill]] %s1354_s16 }
  0x40   : > { %p1585_p12 = pneg %p1607_p9 }
  0x41   : > { %s1359_s8 = scalar_lea.hbm %s1606_s3, %s794_s14  ;;  %s983_s14 = scalar_lea.hbm %s1606_s3, 4096 }
  0x42   : > { %s978_s7 = scalar_lea.hbm %s1359_s8, 2048  ;;  %p984_p6 = scmp.lt.u32.totalorder %s1359_s8, %s1606_s3 }
  0x43   : > { %p979_p8 = scmp.ne.s32.totalorder %s1359_s8, %s978_s7  ;;  %p985_p5 = scmp.lt.u32.totalorder %s983_s14, %s978_s7 }
  0x44   : > { %p987_p1 = scmp.lt.u32.totalorder %s978_s7, %s1359_s8 }
  0x45   : > { %p981_p13 = pnand %p1585_p12, %p979_p8  ;;  %p986_p11 = por %p985_p5, %p984_p6 }
  0x47   : > { %p982_p4 = pneg %p981_p13  ;;  %p988_p0 = por %p987_p1, %p986_p11 }
  0x49   : > { %p989_p3 = pnand %p988_p0, %p982_p4 }
  0x4b   : > { %992 = shalt.err (!%p989_p3)
}
  0x4c   : > { %s993_s15 = scalar_lea.vmem %s1361_s1, 2048  ;;  %s1187_s13 = smov [#allocation9]  }
  0x4d   : > { %p994_p7 = scmp.ne.s32.totalorder %s1361_s1, %s993_s15  ;;  %s998_s12 = sshll.u32 %s1187_s13, 4  ;;  %s999_s12 = int_to_ptr.vmem [resolvable:$false] %s998_s12 }
  0x4e   : > { %s1000_s11 = scalar_lea.vmem %s999_s12, 4096  ;;  %p1001_p2 = scmp.lt.s32.totalorder %s1361_s1, %s999_s12 }
  0x4f   : > { %p996_p8 = pnand %p994_p7, %p1585_p12  ;;  %p1002_p6 = scmp.lt.s32.totalorder %s1000_s11, %s993_s15 }
  0x51   : > { %p997_p13 = pneg %p996_p8  ;;  %p1003_p5 = por %p1002_p6, %p1001_p2 }
  0x53   : > { %p1004_p11 = pnand %p1003_p5, %p997_p13 }
  0x55   : > { %1007 = shalt.err (!%p1004_p11)
}
  0x56   : > { %s1188_s7 = smov 256   ;;  %s1189_s26 = smov 128  }
  0x57   : > { %s1190_s30 = smov 8   ;;  %s1191_s14 = smov [#allocation3]  }
  0x58   : > { %844 = dma.hbm_to_vmem [thread:$0]  (!%p1607_p9), %s1359_s8, 2048, %s1361_s1, %s1363_s27, %s1188_s7, %s1189_s26, %s1190_s30  }
  0x59   : > { %s203_s17 = sshll.u32 %s1191_s14, 4  ;;  %s1192_s13 = smov [#allocation8]   ;;  %s204_s17 = int_to_ptr.vmem [resolvable:$true] %s203_s17 }
  0x5a   : > { %s228_s3 = sshll.u32 %s1192_s13, 4  ;;  %s1008_s11 = scalar_lea.hbm %s1564_s0, 512  ;;  %s229_s3 = int_to_ptr.vmem [resolvable:$true] %s228_s3 }
  0x5b   : > { %p1009_p2 = scmp.ne.s32.totalorder %s1564_s0, %s1008_s11  ;;  %p1015_p0 = scmp.lt.u32.totalorder %s1008_s11, %s1564_s0 }
  0x5d   : > { %p1011_p4 = pnand %p1009_p2, %p1324_p10 }
  0x5f   : > { %p1012_p1 = pneg %p1011_p4 }
  0x61   : > { %p1017_p3 = pnand %p1015_p0, %p1012_p1 }
  0x63   : > { %1020 = shalt.err (!%p1017_p3)
}
  0x64   : > { %s1021_s1 = scalar_lea.vmem %s204_s17, 512  ;;  %p1029_p6 = scmp.lt.s32.totalorder %s204_s17, %s204_s17 }
  0x65   : > { %p1022_p7 = scmp.ne.s32.totalorder %s204_s17, %s1021_s1  ;;  %p1030_p5 = scmp.lt.s32.totalorder %s1021_s1, %s1021_s1 }
  0x67   : > { %p1024_p8 = pnand %p1022_p7, %p1324_p10  ;;  %p1031_p11 = por %p1030_p5, %p1029_p6 }
  0x69   : > { %p1025_p13 = pneg %p1024_p8 }
  0x6b   : > { %p1032_p12 = pnand %p1031_p11, %p1025_p13 }
  0x6d   : > { %1035 = shalt.err (!%p1032_p12)
}
  0x6e   : > { %p1608_p2 = scmp.ne.s32.totalorder %s1599_s10, 0  ;;  %s1609_s18 = sand.u32 1, %s1172_s20  }
  0x6f   : > { %s760_s29 = sshll.u32 %s1609_s18, 1  ;;  %s1036_s14 = scalar_lea.hbm %s1566_s2, 16 }
  0x70   : > { %834 = dma.hbm_to_vmem [thread:$0]  (!%p1608_p2), %s1564_s0, 512, %s204_s17, [#allocation4], %s1189_s26, %s1189_s26, %s1190_s30  }
  0x71   : > { %p1037_p4 = scmp.ne.s32.totalorder %s1566_s2, %s1036_s14  ;;  %p1043_p0 = scmp.lt.u32.totalorder %s1036_s14, %s1566_s2 }
  0x73   : > { %p1039_p12 = pnand %p1037_p4, %p1324_p10 }
  0x75   : > { %p1040_p1 = pneg %p1039_p12 }
  0x77   : > { %p1045_p3 = pnand %p1043_p0, %p1040_p1 }
  0x79   : > { %1048 = shalt.err (!%p1045_p3)
}
  0x7a   : > { %s1049_s26 = scalar_lea.vmem %s229_s3, 16  ;;  %s1056_s30 = scalar_lea.vmem %s229_s3, 32 }
  0x7b   : > { %p1050_p7 = scmp.ne.s32.totalorder %s229_s3, %s1049_s26  ;;  %p1057_p6 = scmp.lt.s32.totalorder %s229_s3, %s229_s3 }
  0x7c   : > { %p1058_p5 = scmp.lt.s32.totalorder %s1056_s30, %s1049_s26 }
  0x7d   : > { %p1052_p8 = pnand %p1050_p7, %p1324_p10 }
  0x7e   : > { %p1059_p11 = por %p1058_p5, %p1057_p6 }
  0x7f   : > { %p1053_p13 = pneg %p1052_p8 }
  0x81   : > { %p1060_p9 = pnand %p1059_p11, %p1053_p13 }
  0x83   : > { %1063 = shalt.err (!%p1060_p9)
}
  0x84   : > { %840 = dma.hbm_to_vmem [thread:$0]  (!%p1608_p2), %s1566_s2, 16, %s229_s3, [#allocation7]  }
  0x85   : > { %s795_s23 = sshll.u32 %s1180_s22, 5  ;;  %s264_s8 = scalar_lea.vmem [#allocation11], %s760_s29 }
  0x86   : > { %s1433_s25 = scalar_lea.hbm %s1568_s4, %s795_s23  ;;  %s272_s7 = sshll.u32 %s264_s8, 4  ;;  %s273_s7 = int_to_ptr.vmem [resolvable:$true] %s272_s7 }
  0x87   : > { %s1064_s10 = scalar_lea.hbm %s1433_s25, 32  ;;  %p1610_p9 = scmp.ne.s32.totalorder %s1598_s9, 0 }
  0x88   : > { %p1065_p10 = scmp.ne.s32.totalorder %s1433_s25, %s1064_s10  ;;  %s1069_s13 = scalar_lea.hbm %s1568_s4, 64 }
  0x89   : > { %p1611_p4 = pneg %p1610_p9  ;;  %p1070_p2 = scmp.lt.u32.totalorder %s1433_s25, %s1568_s4 }
  0x8a   : > { %p1071_p0 = scmp.lt.u32.totalorder %s1069_s13, %s1064_s10  ;;  %p1073_p7 = scmp.lt.u32.totalorder %s1064_s10, %s1433_s25 }
  0x8b   : > { %p1067_p12 = pnand %p1065_p10, %p1611_p4 }
  0x8c   : > { %p1072_p3 = por %p1071_p0, %p1070_p2 }
  0x8d   : > { %p1068_p1 = pneg %p1067_p12 }
  0x8e   : > { %p1074_p8 = por %p1073_p7, %p1072_p3 }
  0x90   : > { %p1075_p13 = pnand %p1074_p8, %p1068_p1 }
  0x92   : > { %1078 = shalt.err (!%p1075_p13)
}
  0x93   : > { %s1079_s29 = scalar_lea.vmem %s273_s7, 32  ;;  %p1612_p5 = pmov %p1611_p4 }
  0x94   : > { %p1080_p6 = scmp.ne.s32.totalorder %s273_s7, %s1079_s29  ;;  %s1193_s11 = smov [#allocation11]  }
  0x95   : > { %s1084_s26 = sshll.u32 %s1193_s11, 4  ;;  %s1085_s26 = int_to_ptr.vmem [resolvable:$false] %s1084_s26 }
  0x96   : > { %p1082_p11 = pnand %p1080_p6, %p1612_p5  ;;  %s1086_s30 = scalar_lea.vmem %s1085_s26, 64 }
  0x97   : > { %p1087_p4 = scmp.lt.s32.totalorder %s273_s7, %s1085_s26  ;;  %p1088_p12 = scmp.lt.s32.totalorder %s1086_s30, %s1079_s29 }
  0x98   : > { %p1083_p10 = pneg %p1082_p11 }
  0x99   : > { %p1089_p0 = por %p1088_p12, %p1087_p4 }
  0x9b   : > { %p1090_p2 = pnand %p1089_p0, %p1083_p10 }
  0x9d   : > { %1093 = shalt.err (!%p1090_p2)
}
  0x9e   : > { %847 = dma.hbm_to_vmem [thread:$0]  (!%p1610_p9), %s1433_s25, 32, %s273_s7, %s1363_s27  }
  0x9f   : > { %p1613_p1 = scmp.ne.s32.totalorder %s1597_s6, 0 }
  0xa0   : > { %p1614_p3 = scmp.eq.s32.totalorder (!%p1613_p1), %s1260_s24, 0 }
  0xa1   : > { %281 = sbr.rel (%p1613_p1) target bundleno = 770 (0x302), region = 40 }
  0xa8   : > { %1147 = dma.done.wait (%p1614_p3), [#allocation4], 512   ;;  %p1615_p7 = pmov %p1614_p3 }
  0xa9   : > { %p1616_p8 = pmov %p1614_p3 }
  0xaa   : > { %1149 = vsyncadd (%p1615_p7), [#allocation4], 4294966784 }
  0xab   : > { %1151 = dma.done.wait (%p1616_p8), [#allocation7], 32   ;;  %p1617_p13 = pmov %p1614_p3 }
  0xac   : > { %s295_s9 = sand.u32 1, %s1260_s24   ;;  %s1467_s27 = sand.u32 1, %s1168_s19  }
  0xad   : > { %1153 = vsyncadd (%p1617_p13), [#allocation7], 4294967264  ;;  %s767_s6 = sshll.u32 %s1467_s27, 7  ;;  %s296_s17 = scalar_lea.sflag [#allocation10], %s295_s9 }
  0xae   : > { %s1470_s1 = scalar_lea.vmem [#allocation9], %s767_s6  ;;  %p1618_p9 = scmp.ne.s32.totalorder %s1592_s28, 0 }
  0xb0   : > { %1155 = dma.done.wait (%p1618_p9), %s296_s17, 2080  }
  0xb1   : > { %1157 = vsyncadd (%p1618_p9), %s296_s17, 4294965216  ;;  %s768_s23 = sshll.u32 %s1467_s27, 1  ;;  %s769_s16 = sshll.u32 %s1467_s27, 6 }
  0xb2   : > { %s1478_s18 = scalar_lea.vmem [#allocation11], %s768_s23  ;;  %s1480_s25 = scalar_lea.vmem [#allocation12], %s769_s16 }
  0xb3   : > { %p770_p6 = scmp.ne.s32.totalorder %s1176_s21, 0 }
  0xb4   : > { %v350_v0 = vld [vmem:[#allocation3] sm:$0xff] (!%p770_p6)  ;;  %v352_v1 = vld [vmem:[#allocation3 + $0x10] sm:$0xff] (!%p770_p6)  ;;  %v351_v2 = vld [vmem:[#allocation3 + $0x8] sm:$0xff] (!%p770_p6) }
  0xb5   : > { %349 = sbr.rel (%p770_p6) target bundleno = 503 (0x1f7), region = 64  ;;  %356 = vadd.xlane.f32.xlu0 (!%p770_p6), %v350_v0  ;;  %360 = vadd.xlane.f32.xlu1 (!%p770_p6), %v352_v1  ;;  %v353_v3 = vld [vmem:[#allocation3 + $0x18] sm:$0xff] (!%p770_p6)  ;;  %v771_v34 = vld [vmem:[#allocation6] ss:$0 sm:$0xff] (!%p770_p6)  ;;  %v772_v39 = vld [vmem:[#allocation8] ss:$0 sm:$0xff] (!%p770_p6) }
  0xb9   : > { %358 = vadd.xlane.f32.xlu0 (!%p770_p6), %v351_v2  ;;  %362 = vadd.xlane.f32.xlu1 (!%p770_p6), %v353_v3 }
 0x142   : > { %v357_v4 = vpop.xlane.xlu0 %356  ;;  %v361_v5 = vpop.xlane.xlu1 %360 }
 0x143   : > { %v365_v6 = vmul.f32 0.0078125, %v357_v4  ;;  %v367_v7 = vmul.f32 0.0078125, %v361_v5 }
 0x145   : > { %v369_v8 = vsub.f32 %v350_v0, %v365_v6  ;;  %v371_v9 = vsub.f32 %v352_v1, %v367_v7 }
 0x146   : > { %v359_v10 = vpop.xlane.xlu0 %358  ;;  %v363_v11 = vpop.xlane.xlu1 %362 }
 0x147   : > { %v366_v12 = vmul.f32 0.0078125, %v359_v10  ;;  %v373_v13 = vmul.f32 %v369_v8, %v369_v8  ;;  %v368_v14 = vmul.f32 0.0078125, %v363_v11  ;;  %v375_v17 = vmul.f32 %v371_v9, %v371_v9 }
 0x149   : > { %v370_v15 = vsub.f32 %v351_v2, %v366_v12  ;;  %377 = vadd.xlane.f32.xlu0 %v373_v13  ;;  %v372_v16 = vsub.f32 %v353_v3, %v368_v14 }
 0x14b   : > { %v374_v18 = vmul.f32 %v370_v15, %v370_v15  ;;  %v376_v19 = vmul.f32 %v372_v16, %v372_v16 }
 0x14d   : > { %381 = vadd.xlane.f32.xlu0 %v375_v17  ;;  %379 = vadd.xlane.f32.xlu1 %v374_v18 }
 0x151   : > { %383 = vadd.xlane.f32.xlu1 %v376_v19 }
 0x1d6   : > { %v378_v20 = vpop.xlane.xlu0 %377 }
 0x1d7   : > { %v385_v21 = vmul.f32 0.0078125, %v378_v20 }
 0x1d9   : > { %v389_v22 = vadd.f32 1e-05, %v385_v21 }
 0x1da   : > { %v380_v23 = vpop.xlane.xlu1 %379  ;;  %v382_v24 = vpop.xlane.xlu0 %381 }
 0x1db   : > { %918 = vrsqrt.f32 %v389_v22  ;;  %v386_v25 = vmul.f32 0.0078125, %v380_v23  ;;  %v387_v26 = vmul.f32 0.0078125, %v382_v24 }
 0x1dd   : > { %v390_v27 = vadd.f32 1e-05, %v386_v25  ;;  %v391_v28 = vadd.f32 1e-05, %v387_v26 }
 0x1de   : > { %v384_v29 = vpop.xlane.xlu1 %383 }
 0x1df   : > { %920 = vrsqrt.f32 %v390_v27  ;;  %v388_v30 = vmul.f32 0.0078125, %v384_v29 }
 0x1e0   : > { %922 = vrsqrt.f32 %v391_v28 }
 0x1e1   : > { %v392_v31 = vadd.f32 1e-05, %v388_v30 }
 0x1e3   : > { %924 = vrsqrt.f32 %v392_v31 }
 0x1e5   : > { %v919_v32 = vpop.eup %918 }
 0x1e6   : > { %v397_v33 = vmul.f32 %v919_v32, %v369_v8 }
 0x1e8   : > { %v407_v37 = vmul.f32 %v771_v34, %v397_v33 }
 0x1e9   : > { %v921_v35 = vpop.eup %920 }
 0x1ea   : > { %v923_v36 = vpop.eup %922  ;;  %v398_v38 = vmul.f32 %v921_v35, %v370_v15  ;;  %v417_v43 = vadd.f32 %v772_v39, %v407_v37 }
 0x1eb   : > { %v399_v40 = vmul.f32 %v923_v36, %v371_v9 }
 0x1ec   : > { %v408_v41 = vmul.f32 %v771_v34, %v398_v38 }
 0x1ed   : > { %v925_v42 = vpop.eup %924  ;;  %v409_v45 = vmul.f32 %v771_v34, %v399_v40 }
 0x1ee   : > { %v418_v44 = vadd.f32 %v772_v39, %v408_v41  ;;  %v400_v46 = vmul.f32 %v925_v42, %v372_v16 }
 0x1ef   : > { %v419_v49 = vadd.f32 %v772_v39, %v409_v45 }
 0x1f0   : > { %v421_v47 = vpack.c.bf16 %v418_v44, %v417_v43  ;;  %v410_v48 = vmul.f32 %v771_v34, %v400_v46 }
 0x1f2   : > { %423 = vst [vmem:[#allocation2] sm:$0xff] %v421_v47  ;;  %v420_v50 = vadd.f32 %v772_v39, %v410_v48 }
 0x1f4   : > { %v422_v51 = vpack.c.bf16 %v420_v50, %v419_v49 }
 0x1f6   : > { %424 = vst [vmem:[#allocation2 + $0x8] sm:$0xff] %v422_v51 }
 0x1f7 PF: > { %v926_v52 = vld [vmem:[%s1470_s1 + $0x4] ss:$8 sps:$4 sm:$0xff]   ;;  %v928_v53 = vld [vmem:[%s1470_s1] ss:$8 sps:$4 sm:$0xff]   ;;  %v1194_v54 = vmov 0   ;;  %v445_v7 = vlaneseq  ;;  %s796_s24 = sshll.u32 %s1176_s21, 8 }
 0x1f8   : > { %567 = vmatprep.mubr.bf16.mxu0 %v1194_v54  ;;  %577 = vmatprep.mubr.bf16.mxu1 %v1194_v54  ;;  %v929_v55 = vld [vmem:[%s1470_s1 + $0x14] ss:$8 sps:$4 sm:$0xff]   ;;  %v931_v56 = vld [vmem:[%s1470_s1 + $0x10] ss:$8 sps:$4 sm:$0xff]   ;;  %v932_v57 = vld [vmem:[%s1470_s1 + $0x24] ss:$8 sps:$4 sm:$0xff]   ;;  %s1505_s21 = scalar_lea.hbm %s1569_s5, %s796_s24 }
 0x1f9   : > { %535 = vmatprep.subr.bf16.mxu0 %v926_v52  ;;  %797 = vmatprep.subr.bf16.mxu1 %v926_v52  ;;  %v934_v58 = vld [vmem:[%s1470_s1 + $0x20] ss:$8 sps:$4 sm:$0xff]   ;;  %v935_v59 = vld [vmem:[%s1470_s1 + $0x34] ss:$8 sps:$4 sm:$0xff]   ;;  %v937_v60 = vld [vmem:[%s1470_s1 + $0x30] ss:$8 sps:$4 sm:$0xff]  }
 0x1fa   : > { %536 = vmatpush1.bf16.msra.mxu0 %v928_v53  ;;  %805 = vmatpush1.bf16.msra.mxu1 %v928_v53  ;;  %v938_v61 = vld [vmem:[%s1470_s1 + $0x44] ss:$8 sps:$4 sm:$0xff]   ;;  %v940_v62 = vld [vmem:[%s1470_s1 + $0x40] ss:$8 sps:$4 sm:$0xff]   ;;  %v941_v63 = vld [vmem:[%s1470_s1 + $0x54] ss:$8 sps:$4 sm:$0xff]  }
 0x1fb   : > { %537 = vmatprep.subr.bf16.mxu0 %v929_v55  ;;  %798 = vmatprep.subr.bf16.mxu1 %v929_v55  ;;  %v943_v0 = vld [vmem:[%s1470_s1 + $0x50] ss:$8 sps:$4 sm:$0xff]   ;;  %v944_v1 = vld [vmem:[%s1470_s1 + $0x64] ss:$8 sps:$4 sm:$0xff]   ;;  %v946_v2 = vld [vmem:[%s1470_s1 + $0x60] ss:$8 sps:$4 sm:$0xff]  }
 0x1fc   : > { %v947_v3 = vld [vmem:[%s1470_s1 + $0x74] ss:$8 sps:$4 sm:$0xff]   ;;  %v949_v4 = vld [vmem:[%s1470_s1 + $0x70] ss:$8 sps:$4 sm:$0xff]   ;;  %v446_v8 = vshrl.u32 %v445_v7, 7  ;;  %s613_s28 = sshll.u32 %s1480_s25, 4  ;;  %s1509_s28 = int_to_ptr.vmem [resolvable:$true] %s613_s28 }
 0x1fd   : > { %v425_v5 = vld [vmem:[#allocation2] sm:$0xff]  ;;  %v426_v6 = vld [vmem:[#allocation2 + $0x8] sm:$0xff]  ;;  %v443_v10 = vld [vmem:[%s1478_s18] sm:$0x3]  ;;  %s1619_s10 = sld [smem:[#allocation19_spill]]  ;;  %s597_s3 = scalar_lea.sflag [#allocation5], %s1467_s27 }
 0x1fe   : > { %538 = vmatpush1.bf16.msra.mxu0 %v931_v56  ;;  %806 = vmatpush1.bf16.msra.mxu1 %v931_v56  ;;  %v447_v9 = vsub.s32 0, %v446_v8  ;;  %v451_v11 = vsub.s32 1, %v446_v8  ;;  %s1094_s14 = scalar_lea.vmem %s1509_s28, 1024  ;;  %s1195_s13 = smov [#allocation12]  }
 0x1ff   : > { %539 = vmatprep.subr.bf16.mxu0 %v932_v57  ;;  %799 = vmatprep.subr.bf16.mxu1 %v932_v57  ;;  %p1095_p5 = scmp.ne.s32.totalorder %s1509_s28, %s1094_s14  ;;  %s1098_s12 = sshll.u32 %s1195_s13, 4  ;;  %s1099_s12 = int_to_ptr.vmem [resolvable:$false] %s1098_s12 }
 0x200   : > { %v448_v12 = vrot.slane %v443_v10, %v447_v9  ;;  %v452_v13 = vrot.slane %v443_v10, %v451_v11  ;;  %s1100_s15 = scalar_lea.vmem %s1099_s12, 2048  ;;  %p1101_p12 = scmp.lt.s32.totalorder %s1509_s28, %s1099_s12 }
 0x201   : > { %p1102_p0 = scmp.lt.s32.totalorder %s1100_s15, %s1094_s14 }
 0x202   : > { %540 = vmatpush1.bf16.msra.mxu0 %v934_v58  ;;  %807 = vmatpush1.bf16.msra.mxu1 %v934_v58 }
 0x203   : > { %541 = vmatprep.subr.bf16.mxu0 %v935_v59  ;;  %800 = vmatprep.subr.bf16.mxu1 %v935_v59  ;;  %p1620_p11 = scmp.ne.s32.totalorder %s1619_s10, 0  ;;  %p1103_p2 = por %p1102_p0, %p1101_p12 }
 0x205   : > { %p1096_p10 = pnand %p1095_p5, %p1620_p11 }
 0x206   : > { %542 = vmatpush1.bf16.msra.mxu0 %v937_v60  ;;  %808 = vmatpush1.bf16.msra.mxu1 %v937_v60 }
 0x207   : > { %543 = vmatprep.subr.bf16.mxu0 %v938_v61  ;;  %801 = vmatprep.subr.bf16.mxu1 %v938_v61  ;;  %p1097_p4 = pneg %p1096_p10 }
 0x209   : > { %p1104_p1 = pnand %p1103_p2, %p1097_p4 }
 0x20a   : > { %544 = vmatpush1.bf16.msra.mxu0 %v940_v62  ;;  %809 = vmatpush1.bf16.msra.mxu1 %v940_v62 }
 0x20b   : > { %545 = vmatprep.subr.bf16.mxu0 %v941_v63  ;;  %802 = vmatprep.subr.bf16.mxu1 %v941_v63 }
 0x20e   : > { %546 = vmatpush1.bf16.msra.mxu0 %v943_v0  ;;  %810 = vmatpush1.bf16.msra.mxu1 %v943_v0 }
 0x20f   : > { %547 = vmatprep.subr.bf16.mxu0 %v944_v1  ;;  %803 = vmatprep.subr.bf16.mxu1 %v944_v1 }
 0x212   : > { %548 = vmatpush1.bf16.msra.mxu0 %v946_v2  ;;  %811 = vmatpush1.bf16.msra.mxu1 %v946_v2 }
 0x213   : > { %549 = vmatprep.subr.bf16.mxu0 %v947_v3  ;;  %804 = vmatprep.subr.bf16.mxu1 %v947_v3 }
 0x216   : > { %550 = vmatpush1.bf16.msra.mxu0 %v949_v4  ;;  %812 = vmatpush1.bf16.msra.mxu1 %v949_v4 }
 0x219   : > { %568 = vmatmul.mubr.bf16.vlgmr.msra.gmra.mrb[0].mxu0 %v425_v5  ;;  %578 = vmatmul.mubr.bf16.vlgmr.msra.gmra.mrb[0].mxu1 %v426_v6 }
 0x2ec   : > { %v569_v14 = vpop.f32.mrb[0].mxu0  ;;  %v579_v15 = vpop.f32.mrb[0].mxu1 }
 0x2ed   : > { %v570_v16 = vadd.f32 %v569_v14, %v448_v12  ;;  %v580_v17 = vadd.f32 %v579_v15, %v448_v12  ;;  %v571_v18 = vpop.f32.mrb[1].mxu0  ;;  %v581_v19 = vpop.f32.mrb[1].mxu1 }
 0x2ee   : > { %v572_v20 = vadd.f32 %v571_v18, %v452_v13  ;;  %v582_v21 = vadd.f32 %v581_v19, %v452_v13  ;;  %v573_v22 = vpop.f32.mrb[2].mxu0  ;;  %v583_v23 = vpop.f32.mrb[2].mxu1 }
 0x2ef   : > { %588 = vst [vmem:[%s1480_s25] sm:$0xff] %v570_v16  ;;  %592 = vst [vmem:[%s1480_s25 + $0x20] sm:$0xff] %v580_v17  ;;  %v574_v24 = vadd.f32 %v573_v22, %v448_v12  ;;  %v584_v25 = vadd.f32 %v583_v23, %v448_v12  ;;  %v575_v26 = vpop.f32.mrb[3].mxu0  ;;  %v585_v27 = vpop.f32.mrb[3].mxu1 }
 0x2f0   : > { %589 = vst [vmem:[%s1480_s25 + $0x8] sm:$0xff] %v572_v20  ;;  %593 = vst [vmem:[%s1480_s25 + $0x28] sm:$0xff] %v582_v21  ;;  %v576_v28 = vadd.f32 %v575_v26, %v452_v13  ;;  %v586_v29 = vadd.f32 %v585_v27, %v452_v13 }
 0x2f1   : > { %590 = vst [vmem:[%s1480_s25 + $0x10] sm:$0xff] %v574_v24  ;;  %594 = vst [vmem:[%s1480_s25 + $0x30] sm:$0xff] %v584_v25 }
 0x2f2   : > { %591 = vst [vmem:[%s1480_s25 + $0x18] sm:$0xff] %v576_v28  ;;  %595 = vst [vmem:[%s1480_s25 + $0x38] sm:$0xff] %v586_v29 }
 0x2f3   : > { %1107 = shalt.err (!%p1104_p1)
}
 0x2f4   : > { %s1108_s29 = scalar_lea.hbm %s1505_s21, 1024  ;;  %s1112_s30 = scalar_lea.hbm %s1569_s5, 2048 }
 0x2f5   : > { %p1109_p3 = scmp.ne.s32.totalorder %s1505_s21, %s1108_s29  ;;  %p1113_p13 = scmp.lt.u32.totalorder %s1505_s21, %s1569_s5 }
 0x2f6   : > { %p1114_p9 = scmp.lt.u32.totalorder %s1112_s30, %s1108_s29  ;;  %p1116_p5 = scmp.lt.u32.totalorder %s1108_s29, %s1505_s21 }
 0x2f7   : > { %p1110_p7 = pnand %p1109_p3, %p1620_p11 }
 0x2f8   : > { %p1115_p6 = por %p1114_p9, %p1113_p13 }
 0x2f9   : > { %p1111_p8 = pneg %p1110_p7 }
 0x2fa   : > { %p1117_p10 = por %p1116_p5, %p1115_p6 }
 0x2fc   : > { %p1118_p4 = pnand %p1117_p10, %p1111_p8 }
 0x2fe   : > { %1121 = shalt.err (!%p1118_p4)
}
 0x2ff   : > { %s1196_s17 = smov 256   ;;  %s1197_s1 = smov 512  }
 0x300   : > { %s1198_s23 = smov 16  }
 0x301   : > { %829 = dma.vmem_to_hbm [thread:$0]  (%p1620_p11), %s1509_s28, 1024, %s1505_s21, %s597_s3, %s1196_s17, %s1197_s1, %s1198_s23  }
 0x302 PF: > { %s1621_s16 = sld [smem:[#allocation17_spill]]  ;;  %s1622_s18 = sld [smem:[#allocation20_spill]] }
 0x303   : > { %s1623_s25 = sld [smem:[#allocation18_spill]] }
 0x308   : > { %s628_s24 = sand.u32 1, %s1621_s16   ;;  %p1624_p12 = scmp.ne.s32.totalorder %s1622_s18, 0 }
 0x309   : > { %p1625_p0 = scmp.ge.s32.totalorder %s1623_s25, 2  ;;  %s629_s8 = scalar_lea.sflag [#allocation5], %s628_s24 }
 0x30b   : > { %p849_p2 = pnand %p1625_p0, %p1624_p12 }
 0x30d   : > { %1159 = dma.done.wait (!%p849_p2), %s629_s8, 1024  }
 0x30e   : > { %1161 = vsyncadd (!%p849_p2), %s629_s8, 4294966272  ;;  %s23_s23 = sadd.s32 1, %s1623_s25   ;;  %s1626_s7 = sld [smem:[#allocation22_spill]] }
 0x30f   : > { %p20_p1 = scmp.ge.s32.totalorder %s23_s23, 4   ;;  %s1627_s27 = sld [smem:[#allocation21_spill]] }
 0x310   : > { %s1628_s18 = smov %s1168_s19  ;;  %s1629_s19 = smov %s1172_s20 }
 0x311   : > { %s1631_s21 = smov %s1180_s22  ;;  %22 = sbr.rel (!%p20_p1) target bundleno = 11 (0xb), region = 114 }
 0x314   : > { %s1630_s20 = smov %s1626_s7 }
 0x315   : > { %s1632_s22 = smov %s1627_s27 }
 0x318   :  { %634 = vsyncpa [#allocation4], 1 }
 0x319   :  { %636 = vsyncpa [#allocation4 + $0x1], 1 }
 0x31a   :  { %637 = vsyncpa [#allocation7], 1 }
 0x31b   :  { %638 = vsyncpa [#allocation10], 1 }
 0x31c   :  { %640 = vsyncpa [#allocation10 + $0x1], 1 }
 0x31d   :  { %641 = vsyncpa [#allocation5], 1 }
 0x31e   :  { %643 = vsyncpa [#allocation5 + $0x1], 1 }

</bundles_post_ra>
